<compile_context>
chip_gen: v5e
topology: v5e:2x2
jax: 0.10.0
libtpu: 0.0.40
codegen_flags: <defaults>
</compile_context>

<pallas_src>
import jax
import jax.numpy as jnp
from jax import lax
from jax.experimental import pallas as pl
from jax.experimental.pallas import tpu as pltpu

# Run reference convs/matmuls (and the f32 kernel config) at true f32 precision so
# the correctness checks below are meaningful (TPU default matmul precision is bf16).
jax.config.update("jax_default_matmul_precision", "highest")


def _cnn_kernel(x_ref, w1_ref, sh1_ref, w2_ref, sh2_ref, wfc_ref, bfc_ref, out_ref):
    T, BT, F = x_ref.shape            # time-major batch tile
    C1p = w1_ref.shape[2]             # num_filters, lane-padded to 128
    C2p = w2_ref.shape[2]             # 2*num_filters, lane-padded
    M = T * BT
    cdt = w1_ref.dtype                # MXU operand dtype (bf16 or f32)

    def shifted(h3):
        # h3: (T, BT, C) time-major.  Returns activations at input times t-1 / t+1
        # with zeros at the sequence boundaries.  The shift is along the untiled
        # leading axis -> whole-block moves, no sublane shuffles, no scratch.
        z = jnp.zeros((1,) + h3.shape[1:], h3.dtype)
        if T == 1:
            zf = jnp.zeros_like(h3)
            return zf, zf
        prev = jnp.concatenate([z, h3[:T - 1]], axis=0)
        nxt = jnp.concatenate([h3[1:], z], axis=0)
        return prev, nxt

    def conv3(h3, w_ref):
        # 1D conv, kernel_size=3, padding=1; BN scale already folded into w_ref.
        # Accumulator starts from the center tap (no zero-fill), f32 accumulation.
        prev, nxt = shifted(h3)
        y = jnp.dot(h3.reshape(M, -1), w_ref[1], preferred_element_type=jnp.float32)
        y += jnp.dot(prev.reshape(M, -1), w_ref[0], preferred_element_type=jnp.float32)
        y += jnp.dot(nxt.reshape(M, -1), w_ref[2], preferred_element_type=jnp.float32)
        return y                                   # (M, C_out) f32

    # conv1 (+ folded BN scale) -> +shift -> ReLU   (elementwise math in f32)
    y1 = conv3(x_ref[...], w1_ref)
    h1 = jnp.maximum(y1 + sh1_ref[...], 0.0).astype(cdt).reshape(T, BT, C1p)

    # conv2 (+ folded BN scale) -> +shift -> ReLU
    y2 = conv3(h1, w2_ref)
    h2 = jnp.maximum(y2 + sh2_ref[...], 0.0).astype(cdt).reshape(T, BT, C2p)

    # Dropout: identity in inference (eval) mode.
    # fc: out[b, :] = sum_t h2[t, b, :] @ wfc[t]  (torch c*T+t flatten folded into wfc)
    acc = jnp.dot(h2[0], wfc_ref[0], preferred_element_type=jnp.float32)
    for t in range(1, T):
        acc += jnp.dot(h2[t], wfc_ref[t], preferred_element_type=jnp.float32)
    out_ref[...] = (acc + bfc_ref[...]).astype(out_ref.dtype)


def cnn_forward_pallas(x, params, *, num_classes, b_tile=None,
                       compute_dtype=jnp.bfloat16):
    """x: (B, T, F) float32 -> (B, num_classes) float32 logits (eval mode)."""
    B, T, F = x.shape
    K, Fw, C1p = params["w1"].shape
    C2p = params["w2"].shape[2]
    NCP = params["bfc"].shape[1]
    assert Fw == F and params["wfc"].shape[0] == T

    # Sublane-tile alignment so all in-kernel shifts / leading-dim merges are
    # tile-aligned for both f32 (8,128) and bf16 (16,128) layouts.
    ALIGN = 16
    if b_tile is None:
        # Push the FC matmul's M (= b_tile) toward 256 when B allows, while keeping
        # >= 2 grid steps so the batch axis can shard across v7x's two TensorCores.
        b_tile = min(256, -(-B // 2))
    BT = max(ALIGN, -(-b_tile // ALIGN) * ALIGN)
    Bp = -(-B // BT) * BT

    # Time-major input (T, Bp, F): layout plumbing only (done by XLA, not the kernel).
    xt = jnp.pad(jnp.transpose(x, (1, 0, 2)), ((0, 0), (0, Bp - B), (0, 0)))
    xt = xt.astype(compute_dtype)

    # bf16 MXU operands by default; accumulation and shift/ReLU stay f32 in-kernel.
    w1 = params["w1"].astype(compute_dtype)
    w2 = params["w2"].astype(compute_dtype)
    wfc = params["wfc"].astype(compute_dtype)

    def const(shape):
        # Resident weights: block index fixed at 0 for every grid step.
        # TODO(synk): pipeline_mode=pl.Buffered(1) would drop their second buffer
        # (~0.3 MB); omitted to keep lowering maximally portable.
        return pl.BlockSpec(shape, lambda i: (0,) * len(shape))

    out = pl.pallas_call(
        _cnn_kernel,
        out_shape=jax.ShapeDtypeStruct((Bp, NCP), jnp.float32),
        grid_spec=pltpu.PrefetchScalarGridSpec(
            num_scalar_prefetch=0,
            grid=(Bp // BT,),
            in_specs=[
                pl.BlockSpec((T, BT, F), lambda i: (0, i, 0)),   # batch-tiled input
                const((K, F, C1p)),    # conv1 taps (BN scale folded, C1 lane-padded)
                const((1, C1p)),       # conv1 shift (BN shift + conv bias)
                const((K, C1p, C2p)),  # conv2 taps
                const((1, C2p)),       # conv2 shift
                const((T, C2p, NCP)),  # fc weight, per timestep (lane-padded classes)
                const((1, NCP)),       # fc bias
            ],
            out_specs=pl.BlockSpec((BT, NCP), lambda i: (i, 0)),
        ),
        compiler_params=pltpu.CompilerParams(
            dimension_semantics=("parallel",),     # batch tiles are independent
            # Per-step VMEM ~= 2*(T*BT*128*dtype) input (F lane-pads to 128)
            # + 2*(BT*NCP*4) output + ~0.5 MB weights; keep <= ~48 MB for v7x's 64 MiB.
            vmem_limit_bytes=48 * 1024 * 1024),
    )(xt, w1, params["shift1"], w2, params["shift2"], wfc, params["bfc"])

    return out[:B, :num_classes]


def make_params(key, num_features, num_classes, num_timesteps, num_filters=64):
    """Deterministic synthetic parameters mirroring CNNModel.__init__ shapes."""
    F, T, NC = num_features, num_timesteps, num_classes
    C1, C2, K = num_filters, num_filters * 2, 3
    ks = jax.random.split(key, 14)

    conv1_w = jax.random.normal(ks[0], (C1, F, K), jnp.float32) * 0.1
    conv1_b = jax.random.normal(ks[1], (C1,), jnp.float32) * 0.1
    gamma1 = 1.0 + 0.1 * jax.random.normal(ks[2], (C1,), jnp.float32)
    beta1 = 0.1 * jax.random.normal(ks[3], (C1,), jnp.float32)
    rm1 = 0.05 * jax.random.normal(ks[4], (C1,), jnp.float32)
    rv1 = 1.0 + 0.1 * jax.nn.softplus(jax.random.normal(ks[5], (C1,), jnp.float32))

    conv2_w = jax.random.normal(ks[6], (C2, C1, K), jnp.float32) * 0.05
    conv2_b = jax.random.normal(ks[7], (C2,), jnp.float32) * 0.1
    gamma2 = 1.0 + 0.1 * jax.random.normal(ks[8], (C2,), jnp.float32)
    beta2 = 0.1 * jax.random.normal(ks[9], (C2,), jnp.float32)
    rm2 = 0.05 * jax.random.normal(ks[10], (C2,), jnp.float32)
    rv2 = 1.0 + 0.1 * jax.nn.softplus(jax.random.normal(ks[11], (C2,), jnp.float32))

    fc_w = jax.random.normal(ks[12], (NC, C2 * T), jnp.float32) * 0.02
    fc_b = jax.random.normal(ks[13], (NC,), jnp.float32) * 0.1

    raw = dict(conv1_w=conv1_w, conv1_b=conv1_b, gamma1=gamma1, beta1=beta1,
               rm1=rm1, rv1=rv1, conv2_w=conv2_w, conv2_b=conv2_b,
               gamma2=gamma2, beta2=beta2, rm2=rm2, rv2=rv2,
               fc_w=fc_w, fc_b=fc_b)

    eps = 1e-5
    scale1 = gamma1 / jnp.sqrt(rv1 + eps)
    shift1 = beta1 + (conv1_b - rm1) * scale1
    scale2 = gamma2 / jnp.sqrt(rv2 + eps)
    shift2 = beta2 + (conv2_b - rm2) * scale2

    lane = 128
    C1p = -(-C1 // lane) * lane
    C2p = -(-C2 // lane) * lane
    NCP = -(-NC // lane) * lane

    # conv1: (C1, F, K) -> per-tap (K, F, C1); fold BN scale into output columns
    # (in f32, before any bf16 cast), zero-pad output channels to 128 lanes.
    w1 = jnp.transpose(conv1_w, (2, 1, 0)) * scale1[None, None, :]
    w1 = jnp.pad(w1, ((0, 0), (0, 0), (0, C1p - C1)))

    # conv2: (C2, C1, K) -> per-tap (K, C1, C2); fold BN scale into output columns,
    # zero-pad contraction rows to C1p and output columns to C2p.
    w2 = jnp.transpose(conv2_w, (2, 1, 0)) * scale2[None, None, :]
    w2 = jnp.pad(w2, ((0, 0), (0, C1p - C1), (0, C2p - C2)))

    # fc: torch flattens (B, C2, T) as c*T + t; kernel contracts per timestep with
    # a (T, C2p, NCP) weight so no in-kernel relayout is needed.
    wfc = jnp.transpose(fc_w.reshape(NC, C2, T), (2, 1, 0))
    wfc = jnp.pad(wfc, ((0, 0), (0, C2p - C2), (0, NCP - NC)))

    kernel_params = dict(
        w1=w1,
        shift1=jnp.pad(shift1, (0, C1p - C1)).reshape(1, C1p),
        w2=w2,
        shift2=jnp.pad(shift2, (0, C2p - C2)).reshape(1, C2p),
        wfc=wfc,
        bfc=jnp.pad(fc_b, (0, NCP - NC)).reshape(1, NCP),
    )
    return raw, kernel_params


def ref_forward(x, raw, *, eps=1e-5):
    """Pure-JAX reference matching the PyTorch forward (eval mode)."""
    xt = jnp.transpose(x, (0, 2, 1))                              # (B, F, T) == NCL
    dn = ("NCH", "OIH", "NCH")

    def conv_bn_relu(h, w, b, gamma, beta, rm, rv):
        y = lax.conv_general_dilated(h, w, window_strides=(1,),
                                     padding="SAME", dimension_numbers=dn)
        y = y + b[None, :, None]
        y = (y - rm[None, :, None]) / jnp.sqrt(rv + eps)[None, :, None]
        y = y * gamma[None, :, None] + beta[None, :, None]
        return jnp.maximum(y, 0.0)

    h1 = conv_bn_relu(xt, raw["conv1_w"], raw["conv1_b"],
                      raw["gamma1"], raw["beta1"], raw["rm1"], raw["rv1"])
    h2 = conv_bn_relu(h1, raw["conv2_w"], raw["conv2_b"],
                      raw["gamma2"], raw["beta2"], raw["rm2"], raw["rv2"])
    flat = h2.reshape(h2.shape[0], -1)                            # (B, C2*T)
    return flat @ raw["fc_w"].T + raw["fc_b"]                     # dropout = identity


if __name__ == "__main__":
    T, F = 8, 4                 # num_timesteps, num_features
    NUM_FILTERS = 64
    NUM_CLASSES = 5

    key = jax.random.PRNGKey(0)
    kx, kp = jax.random.split(key)
    raw, kernel_params = make_params(kp, F, NUM_CLASSES, T, NUM_FILTERS)

    # --- config 1: aligned batch, f32 MXU operands (near-exact), 2 grid steps ---
    B1 = 32
    x1 = jax.random.normal(kx, (B1, T, F), jnp.float32)
    out1 = jax.block_until_ready(
        cnn_forward_pallas(x1, kernel_params, num_classes=NUM_CLASSES,
                           b_tile=16, compute_dtype=jnp.float32))
    ref1 = ref_forward(x1, raw)
    assert out1.shape == (B1, NUM_CLASSES)
    assert jnp.allclose(out1, ref1, rtol=1e-3, atol=1e-3), (out1, ref1)

    # --- config 2: ragged batch (exercises padding), default bf16 MXU operands ---
    B2 = 20
    x2 = jax.random.normal(jax.random.fold_in(kx, 1), (B2, T, F), jnp.float32)
    out2 = jax.block_until_ready(
        cnn_forward_pallas(x2, kernel_params, num_classes=NUM_CLASSES))
    ref2 = ref_forward(x2, raw)
    assert out2.shape == (B2, NUM_CLASSES)
    assert jnp.allclose(out2, ref2, rtol=5e-2, atol=5e-2), (out2, ref2)

    print("KERNEL_OK")
</pallas_src>

<mosaic_0001>
module attributes {stable_mosaic.version = 11 : i64} {
  func.func @_cnn_kernel(%arg0: i32, %arg1: memref<8x16x4xf32, #tpu.memory_space<vmem>>, %arg2: memref<3x4x128xf32, #tpu.memory_space<vmem>>, %arg3: memref<1x128xf32, #tpu.memory_space<vmem>>, %arg4: memref<3x128x128xf32, #tpu.memory_space<vmem>>, %arg5: memref<1x128xf32, #tpu.memory_space<vmem>>, %arg6: memref<8x128x128xf32, #tpu.memory_space<vmem>>, %arg7: memref<1x128xf32, #tpu.memory_space<vmem>>, %arg8: memref<16x128xf32, #tpu.memory_space<vmem>>) attributes {dimension_semantics = [#tpu.dimension_semantics<parallel>], iteration_bounds = array<i64: 2>, scalar_prefetch = 0 : i64, scratch_operands = 0 : i64, tpu.core_type = #tpu.core_type<tc>, window_params = [{transform_indices = @transform_0, window_bounds = array<i64: 8, 16, 4>}, {pipeline_mode = #tpu.pipeline_mode<synchronous>, transform_indices = @transform_1, window_bounds = array<i64: 3, 4, 128>}, {pipeline_mode = #tpu.pipeline_mode<synchronous>, transform_indices = @transform_2, window_bounds = array<i64: 1, 128>}, {pipeline_mode = #tpu.pipeline_mode<synchronous>, transform_indices = @transform_3, window_bounds = array<i64: 3, 128, 128>}, {pipeline_mode = #tpu.pipeline_mode<synchronous>, transform_indices = @transform_4, window_bounds = array<i64: 1, 128>}, {pipeline_mode = #tpu.pipeline_mode<synchronous>, transform_indices = @transform_5, window_bounds = array<i64: 8, 128, 128>}, {pipeline_mode = #tpu.pipeline_mode<synchronous>, transform_indices = @transform_6, window_bounds = array<i64: 1, 128>}, {transform_indices = @transform_7, window_bounds = array<i64: 16, 128>}]} {
    %c0 = arith.constant 0 : index
    %c0_0 = arith.constant 0 : index
    %c0_1 = arith.constant 0 : index
    %0 = vector.load %arg1[%c0, %c0_0, %c0_1] : memref<8x16x4xf32, #tpu.memory_space<vmem>>, vector<8x16x4xf32>
    %cst = arith.constant 0.000000e+00 : f32
    %1 = vector.broadcast %cst : f32 to vector<1x16x4xf32>
    %2 = vector.extract_strided_slice %0 {offsets = [0, 0, 0], sizes = [7, 16, 4], strides = [1, 1, 1]} : vector<8x16x4xf32> to vector<7x16x4xf32>
    %3 = tpu.concatenate %1, %2 in 0 : vector<1x16x4xf32>, vector<7x16x4xf32> -> vector<8x16x4xf32>
    %4 = vector.extract_strided_slice %0 {offsets = [1, 0, 0], sizes = [7, 16, 4], strides = [1, 1, 1]} : vector<8x16x4xf32> to vector<7x16x4xf32>
    %5 = tpu.concatenate %4, %1 in 0 : vector<7x16x4xf32>, vector<1x16x4xf32> -> vector<8x16x4xf32>
    %6 = vector.shape_cast %0 : vector<8x16x4xf32> to vector<128x4xf32>
    %c1 = arith.constant 1 : index
    %c0_2 = arith.constant 0 : index
    %c0_3 = arith.constant 0 : index
    %7 = vector.load %arg2[%c1, %c0_2, %c0_3] : memref<3x4x128xf32, #tpu.memory_space<vmem>>, vector<1x4x128xf32>
    %8 = vector.shape_cast %7 : vector<1x4x128xf32> to vector<4x128xf32>
    %cst_4 = arith.constant dense<0.000000e+00> : vector<128x128xf32>
    %9 = tpu.matmul %6, %8, %cst_4 {dimension_numbers = #tpu.dot_dimension_numbers<[1], [0], [0], [1], [0, 0, 1, 1], [], []>, precision = #tpu.contract_precision<fp32>} : vector<128x4xf32>, vector<4x128xf32>, vector<128x128xf32> -> vector<128x128xf32>
    %10 = vector.shape_cast %3 : vector<8x16x4xf32> to vector<128x4xf32>
    %c0_5 = arith.constant 0 : index
    %c0_6 = arith.constant 0 : index
    %c0_7 = arith.constant 0 : index
    %11 = vector.load %arg2[%c0_5, %c0_6, %c0_7] : memref<3x4x128xf32, #tpu.memory_space<vmem>>, vector<1x4x128xf32>
    %12 = vector.shape_cast %11 : vector<1x4x128xf32> to vector<4x128xf32>
    %cst_8 = arith.constant dense<0.000000e+00> : vector<128x128xf32>
    %13 = tpu.matmul %10, %12, %cst_8 {dimension_numbers = #tpu.dot_dimension_numbers<[1], [0], [0], [1], [0, 0, 1, 1], [], []>, precision = #tpu.contract_precision<fp32>} : vector<128x4xf32>, vector<4x128xf32>, vector<128x128xf32> -> vector<128x128xf32>
    %14 = arith.addf %9, %13 : vector<128x128xf32>
    %15 = vector.shape_cast %5 : vector<8x16x4xf32> to vector<128x4xf32>
    %c2 = arith.constant 2 : index
    %c0_9 = arith.constant 0 : index
    %c0_10 = arith.constant 0 : index
    %16 = vector.load %arg2[%c2, %c0_9, %c0_10] : memref<3x4x128xf32, #tpu.memory_space<vmem>>, vector<1x4x128xf32>
    %17 = vector.shape_cast %16 : vector<1x4x128xf32> to vector<4x128xf32>
    %cst_11 = arith.constant dense<0.000000e+00> : vector<128x128xf32>
    %18 = tpu.matmul %15, %17, %cst_11 {dimension_numbers = #tpu.dot_dimension_numbers<[1], [0], [0], [1], [0, 0, 1, 1], [], []>, precision = #tpu.contract_precision<fp32>} : vector<128x4xf32>, vector<4x128xf32>, vector<128x128xf32> -> vector<128x128xf32>
    %19 = arith.addf %14, %18 : vector<128x128xf32>
    %c0_12 = arith.constant 0 : index
    %c0_13 = arith.constant 0 : index
    %20 = vector.load %arg3[%c0_12, %c0_13] : memref<1x128xf32, #tpu.memory_space<vmem>>, vector<1x128xf32>
    %21 = vector.broadcast %20 : vector<1x128xf32> to vector<128x128xf32>
    %22 = arith.addf %19, %21 : vector<128x128xf32>
    %cst_14 = arith.constant 0.000000e+00 : f32
    %23 = vector.broadcast %cst_14 : f32 to vector<128x128xf32>
    %24 = arith.maximumf %22, %23 : vector<128x128xf32>
    %25 = vector.shape_cast %24 : vector<128x128xf32> to vector<8x16x128xf32>
    %cst_15 = arith.constant 0.000000e+00 : f32
    %26 = vector.broadcast %cst_15 : f32 to vector<1x16x128xf32>
    %27 = vector.extract_strided_slice %25 {offsets = [0, 0, 0], sizes = [7, 16, 128], strides = [1, 1, 1]} : vector<8x16x128xf32> to vector<7x16x128xf32>
    %28 = tpu.concatenate %26, %27 in 0 : vector<1x16x128xf32>, vector<7x16x128xf32> -> vector<8x16x128xf32>
    %29 = vector.extract_strided_slice %25 {offsets = [1, 0, 0], sizes = [7, 16, 128], strides = [1, 1, 1]} : vector<8x16x128xf32> to vector<7x16x128xf32>
    %30 = tpu.concatenate %29, %26 in 0 : vector<7x16x128xf32>, vector<1x16x128xf32> -> vector<8x16x128xf32>
    %31 = vector.shape_cast %25 : vector<8x16x128xf32> to vector<128x128xf32>
    %c1_16 = arith.constant 1 : index
    %c0_17 = arith.constant 0 : index
    %c0_18 = arith.constant 0 : index
    %32 = vector.load %arg4[%c1_16, %c0_17, %c0_18] : memref<3x128x128xf32, #tpu.memory_space<vmem>>, vector<1x128x128xf32>
    %33 = vector.shape_cast %32 : vector<1x128x128xf32> to vector<128x128xf32>
    %cst_19 = arith.constant dense<0.000000e+00> : vector<128x128xf32>
    %34 = tpu.matmul %31, %33, %cst_19 {dimension_numbers = #tpu.dot_dimension_numbers<[1], [0], [0], [1], [0, 0, 1, 1], [], []>, precision = #tpu.contract_precision<fp32>} : vector<128x128xf32>, vector<128x128xf32>, vector<128x128xf32> -> vector<128x128xf32>
    %35 = vector.shape_cast %28 : vector<8x16x128xf32> to vector<128x128xf32>
    %c0_20 = arith.constant 0 : index
    %c0_21 = arith.constant 0 : index
    %c0_22 = arith.constant 0 : index
    %36 = vector.load %arg4[%c0_20, %c0_21, %c0_22] : memref<3x128x128xf32, #tpu.memory_space<vmem>>, vector<1x128x128xf32>
    %37 = vector.shape_cast %36 : vector<1x128x128xf32> to vector<128x128xf32>
    %cst_23 = arith.constant dense<0.000000e+00> : vector<128x128xf32>
    %38 = tpu.matmul %35, %37, %cst_23 {dimension_numbers = #tpu.dot_dimension_numbers<[1], [0], [0], [1], [0, 0, 1, 1], [], []>, precision = #tpu.contract_precision<fp32>} : vector<128x128xf32>, vector<128x128xf32>, vector<128x128xf32> -> vector<128x128xf32>
    %39 = arith.addf %34, %38 : vector<128x128xf32>
    %40 = vector.shape_cast %30 : vector<8x16x128xf32> to vector<128x128xf32>
    %c2_24 = arith.constant 2 : index
    %c0_25 = arith.constant 0 : index
    %c0_26 = arith.constant 0 : index
    %41 = vector.load %arg4[%c2_24, %c0_25, %c0_26] : memref<3x128x128xf32, #tpu.memory_space<vmem>>, vector<1x128x128xf32>
    %42 = vector.shape_cast %41 : vector<1x128x128xf32> to vector<128x128xf32>
    %cst_27 = arith.constant dense<0.000000e+00> : vector<128x128xf32>
    %43 = tpu.matmul %40, %42, %cst_27 {dimension_numbers = #tpu.dot_dimension_numbers<[1], [0], [0], [1], [0, 0, 1, 1], [], []>, precision = #tpu.contract_precision<fp32>} : vector<128x128xf32>, vector<128x128xf32>, vector<128x128xf32> -> vector<128x128xf32>
    %44 = arith.addf %39, %43 : vector<128x128xf32>
    %c0_28 = arith.constant 0 : index
    %c0_29 = arith.constant 0 : index
    %45 = vector.load %arg5[%c0_28, %c0_29] : memref<1x128xf32, #tpu.memory_space<vmem>>, vector<1x128xf32>
    %46 = vector.broadcast %45 : vector<1x128xf32> to vector<128x128xf32>
    %47 = arith.addf %44, %46 : vector<128x128xf32>
    %cst_30 = arith.constant 0.000000e+00 : f32
    %48 = vector.broadcast %cst_30 : f32 to vector<128x128xf32>
    %49 = arith.maximumf %47, %48 : vector<128x128xf32>
    %50 = vector.shape_cast %49 : vector<128x128xf32> to vector<8x16x128xf32>
    %51 = vector.extract_strided_slice %50 {offsets = [0, 0, 0], sizes = [1, 16, 128], strides = [1, 1, 1]} : vector<8x16x128xf32> to vector<1x16x128xf32>
    %52 = vector.shape_cast %51 : vector<1x16x128xf32> to vector<16x128xf32>
    %c0_31 = arith.constant 0 : index
    %c0_32 = arith.constant 0 : index
    %c0_33 = arith.constant 0 : index
    %53 = vector.load %arg6[%c0_31, %c0_32, %c0_33] : memref<8x128x128xf32, #tpu.memory_space<vmem>>, vector<1x128x128xf32>
    %54 = vector.shape_cast %53 : vector<1x128x128xf32> to vector<128x128xf32>
    %cst_34 = arith.constant dense<0.000000e+00> : vector<16x128xf32>
    %55 = tpu.matmul %52, %54, %cst_34 {dimension_numbers = #tpu.dot_dimension_numbers<[1], [0], [0], [1], [0, 0, 1, 1], [], []>, precision = #tpu.contract_precision<fp32>} : vector<16x128xf32>, vector<128x128xf32>, vector<16x128xf32> -> vector<16x128xf32>
    %56 = vector.extract_strided_slice %50 {offsets = [1, 0, 0], sizes = [1, 16, 128], strides = [1, 1, 1]} : vector<8x16x128xf32> to vector<1x16x128xf32>
    %57 = vector.shape_cast %56 : vector<1x16x128xf32> to vector<16x128xf32>
    %c1_35 = arith.constant 1 : index
    %c0_36 = arith.constant 0 : index
    %c0_37 = arith.constant 0 : index
    %58 = vector.load %arg6[%c1_35, %c0_36, %c0_37] : memref<8x128x128xf32, #tpu.memory_space<vmem>>, vector<1x128x128xf32>
    %59 = vector.shape_cast %58 : vector<1x128x128xf32> to vector<128x128xf32>
    %cst_38 = arith.constant dense<0.000000e+00> : vector<16x128xf32>
    %60 = tpu.matmul %57, %59, %cst_38 {dimension_numbers = #tpu.dot_dimension_numbers<[1], [0], [0], [1], [0, 0, 1, 1], [], []>, precision = #tpu.contract_precision<fp32>} : vector<16x128xf32>, vector<128x128xf32>, vector<16x128xf32> -> vector<16x128xf32>
    %61 = arith.addf %55, %60 : vector<16x128xf32>
    %62 = vector.extract_strided_slice %50 {offsets = [2, 0, 0], sizes = [1, 16, 128], strides = [1, 1, 1]} : vector<8x16x128xf32> to vector<1x16x128xf32>
    %63 = vector.shape_cast %62 : vector<1x16x128xf32> to vector<16x128xf32>
    %c2_39 = arith.constant 2 : index
    %c0_40 = arith.constant 0 : index
    %c0_41 = arith.constant 0 : index
    %64 = vector.load %arg6[%c2_39, %c0_40, %c0_41] : memref<8x128x128xf32, #tpu.memory_space<vmem>>, vector<1x128x128xf32>
    %65 = vector.shape_cast %64 : vector<1x128x128xf32> to vector<128x128xf32>
    %cst_42 = arith.constant dense<0.000000e+00> : vector<16x128xf32>
    %66 = tpu.matmul %63, %65, %cst_42 {dimension_numbers = #tpu.dot_dimension_numbers<[1], [0], [0], [1], [0, 0, 1, 1], [], []>, precision = #tpu.contract_precision<fp32>} : vector<16x128xf32>, vector<128x128xf32>, vector<16x128xf32> -> vector<16x128xf32>
    %67 = arith.addf %61, %66 : vector<16x128xf32>
    %68 = vector.extract_strided_slice %50 {offsets = [3, 0, 0], sizes = [1, 16, 128], strides = [1, 1, 1]} : vector<8x16x128xf32> to vector<1x16x128xf32>
    %69 = vector.shape_cast %68 : vector<1x16x128xf32> to vector<16x128xf32>
    %c3 = arith.constant 3 : index
    %c0_43 = arith.constant 0 : index
    %c0_44 = arith.constant 0 : index
    %70 = vector.load %arg6[%c3, %c0_43, %c0_44] : memref<8x128x128xf32, #tpu.memory_space<vmem>>, vector<1x128x128xf32>
    %71 = vector.shape_cast %70 : vector<1x128x128xf32> to vector<128x128xf32>
    %cst_45 = arith.constant dense<0.000000e+00> : vector<16x128xf32>
    %72 = tpu.matmul %69, %71, %cst_45 {dimension_numbers = #tpu.dot_dimension_numbers<[1], [0], [0], [1], [0, 0, 1, 1], [], []>, precision = #tpu.contract_precision<fp32>} : vector<16x128xf32>, vector<128x128xf32>, vector<16x128xf32> -> vector<16x128xf32>
    %73 = arith.addf %67, %72 : vector<16x128xf32>
    %74 = vector.extract_strided_slice %50 {offsets = [4, 0, 0], sizes = [1, 16, 128], strides = [1, 1, 1]} : vector<8x16x128xf32> to vector<1x16x128xf32>
    %75 = vector.shape_cast %74 : vector<1x16x128xf32> to vector<16x128xf32>
    %c4 = arith.constant 4 : index
    %c0_46 = arith.constant 0 : index
    %c0_47 = arith.constant 0 : index
    %76 = vector.load %arg6[%c4, %c0_46, %c0_47] : memref<8x128x128xf32, #tpu.memory_space<vmem>>, vector<1x128x128xf32>
    %77 = vector.shape_cast %76 : vector<1x128x128xf32> to vector<128x128xf32>
    %cst_48 = arith.constant dense<0.000000e+00> : vector<16x128xf32>
    %78 = tpu.matmul %75, %77, %cst_48 {dimension_numbers = #tpu.dot_dimension_numbers<[1], [0], [0], [1], [0, 0, 1, 1], [], []>, precision = #tpu.contract_precision<fp32>} : vector<16x128xf32>, vector<128x128xf32>, vector<16x128xf32> -> vector<16x128xf32>
    %79 = arith.addf %73, %78 : vector<16x128xf32>
    %80 = vector.extract_strided_slice %50 {offsets = [5, 0, 0], sizes = [1, 16, 128], strides = [1, 1, 1]} : vector<8x16x128xf32> to vector<1x16x128xf32>
    %81 = vector.shape_cast %80 : vector<1x16x128xf32> to vector<16x128xf32>
    %c5 = arith.constant 5 : index
    %c0_49 = arith.constant 0 : index
    %c0_50 = arith.constant 0 : index
    %82 = vector.load %arg6[%c5, %c0_49, %c0_50] : memref<8x128x128xf32, #tpu.memory_space<vmem>>, vector<1x128x128xf32>
    %83 = vector.shape_cast %82 : vector<1x128x128xf32> to vector<128x128xf32>
    %cst_51 = arith.constant dense<0.000000e+00> : vector<16x128xf32>
    %84 = tpu.matmul %81, %83, %cst_51 {dimension_numbers = #tpu.dot_dimension_numbers<[1], [0], [0], [1], [0, 0, 1, 1], [], []>, precision = #tpu.contract_precision<fp32>} : vector<16x128xf32>, vector<128x128xf32>, vector<16x128xf32> -> vector<16x128xf32>
    %85 = arith.addf %79, %84 : vector<16x128xf32>
    %86 = vector.extract_strided_slice %50 {offsets = [6, 0, 0], sizes = [1, 16, 128], strides = [1, 1, 1]} : vector<8x16x128xf32> to vector<1x16x128xf32>
    %87 = vector.shape_cast %86 : vector<1x16x128xf32> to vector<16x128xf32>
    %c6 = arith.constant 6 : index
    %c0_52 = arith.constant 0 : index
    %c0_53 = arith.constant 0 : index
    %88 = vector.load %arg6[%c6, %c0_52, %c0_53] : memref<8x128x128xf32, #tpu.memory_space<vmem>>, vector<1x128x128xf32>
    %89 = vector.shape_cast %88 : vector<1x128x128xf32> to vector<128x128xf32>
    %cst_54 = arith.constant dense<0.000000e+00> : vector<16x128xf32>
    %90 = tpu.matmul %87, %89, %cst_54 {dimension_numbers = #tpu.dot_dimension_numbers<[1], [0], [0], [1], [0, 0, 1, 1], [], []>, precision = #tpu.contract_precision<fp32>} : vector<16x128xf32>, vector<128x128xf32>, vector<16x128xf32> -> vector<16x128xf32>
    %91 = arith.addf %85, %90 : vector<16x128xf32>
    %92 = vector.extract_strided_slice %50 {offsets = [7, 0, 0], sizes = [1, 16, 128], strides = [1, 1, 1]} : vector<8x16x128xf32> to vector<1x16x128xf32>
    %93 = vector.shape_cast %92 : vector<1x16x128xf32> to vector<16x128xf32>
    %c7 = arith.constant 7 : index
    %c0_55 = arith.constant 0 : index
    %c0_56 = arith.constant 0 : index
    %94 = vector.load %arg6[%c7, %c0_55, %c0_56] : memref<8x128x128xf32, #tpu.memory_space<vmem>>, vector<1x128x128xf32>
    %95 = vector.shape_cast %94 : vector<1x128x128xf32> to vector<128x128xf32>
    %cst_57 = arith.constant dense<0.000000e+00> : vector<16x128xf32>
    %96 = tpu.matmul %93, %95, %cst_57 {dimension_numbers = #tpu.dot_dimension_numbers<[1], [0], [0], [1], [0, 0, 1, 1], [], []>, precision = #tpu.contract_precision<fp32>} : vector<16x128xf32>, vector<128x128xf32>, vector<16x128xf32> -> vector<16x128xf32>
    %97 = arith.addf %91, %96 : vector<16x128xf32>
    %c0_58 = arith.constant 0 : index
    %c0_59 = arith.constant 0 : index
    %98 = vector.load %arg7[%c0_58, %c0_59] : memref<1x128xf32, #tpu.memory_space<vmem>>, vector<1x128xf32>
    %99 = vector.broadcast %98 : vector<1x128xf32> to vector<16x128xf32>
    %100 = arith.addf %97, %99 : vector<16x128xf32>
    %c0_60 = arith.constant 0 : index
    %c0_61 = arith.constant 0 : index
    %101 = vector.load %arg8[%c0_60, %c0_61] : memref<16x128xf32, #tpu.memory_space<vmem>>, vector<16x128xf32>
    tpu.vector_store %arg8[%c0_60, %c0_61], %100 {strides = array<i32>} : memref<16x128xf32, #tpu.memory_space<vmem>>, vector<16x128xf32>,
    return
  }
  func.func @transform_0(%arg0: i32) -> (i32, i32, i32) {
    %c0_i32 = arith.constant 0 : i32
    %c0_i32_0 = arith.constant 0 : i32
    %c0_i32_1 = arith.constant 0 : i32
    return %c0_i32, %arg0, %c0_i32_0 : i32, i32, i32
  }
  func.func @transform_1(%arg0: i32) -> (i32, i32, i32) {
    %c0_i32 = arith.constant 0 : i32
    %c0_i32_0 = arith.constant 0 : i32
    %c0_i32_1 = arith.constant 0 : i32
    %c0_i32_2 = arith.constant 0 : i32
    return %c0_i32, %c0_i32_0, %c0_i32_1 : i32, i32, i32
  }
  func.func @transform_2(%arg0: i32) -> (i32, i32) {
    %c0_i32 = arith.constant 0 : i32
    %c0_i32_0 = arith.constant 0 : i32
    %c0_i32_1 = arith.constant 0 : i32
    return %c0_i32, %c0_i32_0 : i32, i32
  }
  func.func @transform_3(%arg0: i32) -> (i32, i32, i32) {
    %c0_i32 = arith.constant 0 : i32
    %c0_i32_0 = arith.constant 0 : i32
    %c0_i32_1 = arith.constant 0 : i32
    %c0_i32_2 = arith.constant 0 : i32
    return %c0_i32, %c0_i32_0, %c0_i32_1 : i32, i32, i32
  }
  func.func @transform_4(%arg0: i32) -> (i32, i32) {
    %c0_i32 = arith.constant 0 : i32
    %c0_i32_0 = arith.constant 0 : i32
    %c0_i32_1 = arith.constant 0 : i32
    return %c0_i32, %c0_i32_0 : i32, i32
  }
  func.func @transform_5(%arg0: i32) -> (i32, i32, i32) {
    %c0_i32 = arith.constant 0 : i32
    %c0_i32_0 = arith.constant 0 : i32
    %c0_i32_1 = arith.constant 0 : i32
    %c0_i32_2 = arith.constant 0 : i32
    return %c0_i32, %c0_i32_0, %c0_i32_1 : i32, i32, i32
  }
  func.func @transform_6(%arg0: i32) -> (i32, i32) {
    %c0_i32 = arith.constant 0 : i32
    %c0_i32_0 = arith.constant 0 : i32
    %c0_i32_1 = arith.constant 0 : i32
    return %c0_i32, %c0_i32_0 : i32, i32
  }
  func.func @transform_7(%arg0: i32) -> (i32, i32) {
    %c0_i32 = arith.constant 0 : i32
    %c0_i32_0 = arith.constant 0 : i32
    return %arg0, %c0_i32 : i32, i32
  }
}

</mosaic_0001>

<bundles_post_ra>
// kernel: tpu_custom_call.1
= control target key start
LH: loop header
LB: loop body
LE: loop exit
PB: predicated region body
PF: predicated region fallthrough
CT: control target
= control target key end

     0   :  { %12 = vsyncpa [#allocation4], 0  ;;  %s13232_s0 = inlined_call_operand.vmem [shape: f32[8,32,4], index: 0, kind: input, shape index: {}]   ;;  %s13233_s1 = inlined_call_operand.vmem [shape: f32[3,4,128], index: 1, kind: input, shape index: {}]   ;;  %s13234_s2 = inlined_call_operand.vmem [shape: f32[1,128], index: 2, kind: input, shape index: {}]   ;;  %s13235_s3 = inlined_call_operand.hbm [shape: f32[3,128,128], index: 3, kind: input, shape index: {}]   ;;  %s13236_s4 = inlined_call_operand.vmem [shape: f32[1,128], index: 4, kind: input, shape index: {}]   ;;  %s13237_s5 = inlined_call_operand.hbm [shape: f32[8,128,128], index: 5, kind: input, shape index: {}]   ;;  %s13238_s6 = inlined_call_operand.vmem [shape: f32[1,128], index: 6, kind: input, shape index: {}]   ;;  %s13239_s7 = inlined_call_operand.hbm [shape: f32[32,128], index: 7, kind: output, shape index: {}]  }
   0x1   :  { %13 = vsyncpa [#allocation7], 0 }
   0x2   :  { %14 = vsyncpa [#allocation5], 0 }
   0x3   :  { %16 = vsyncpa [#allocation5 + $0x1], 0  ;;  %s8354_s24 = smov 0   ;;  %s8356_s25 = smov 0  }
   0x4   :  { %s8358_s26 = smov 0   ;;  %s8360_s27 = smov 0  }
   0x5 LB: > { %s8375_s28 = sadd.s32 4294967295, %s8305_s27   ;;  %s8082_s29 = sadd.s32 4294967294, %s8305_s27   ;;  %s8305_s27 = sphi %s8360_s27, %s14275_s27   ;;  %s8301_s26 = sphi %s8358_s26, %s14274_s26   ;;  %s8297_s25 = sphi %s8356_s25, %s14273_s25   ;;  %s8293_s24 = sphi %s8354_s24, %s14272_s24  }
   0x6   : > { %s8379_s30 = sadd.s32 1, %s8305_s27   ;;  %s29_s8 = sadd.s32 1, %s8301_s26 }
   0x7   : > { %s26_s9 = ssub.s32 %s8305_s27, %s8379_s30  ;;  %p36_p0 = scmp.ne.s32.totalorder %s8301_s26, %s8297_s25 }
   0x8   : > { %p27_p1 = scmp.eq.s32.totalorder %s26_s9, 0  ;;  %p37_p2 = scmp.eq.s32.totalorder %s8305_s27, 0 }
   0x9   : > { %p192_p3 = scmp.eq.s32.totalorder %s8375_s28, 1  ;;  %p197_p4 = scmp.ne.s32.totalorder %s8297_s25, %s8293_s24 }
   0xa   : > { %s8391_s10 = scalar_select %p27_p1, %s8301_s26, %s29_s8  }
   0xb   : > { %p8393_p5 = por %p37_p2, %p36_p0  ;;  %p8397_p6 = por %p192_p3, %p36_p0 }
   0xc   : > { %p198_p7 = scmp.eq.s32.totalorder %s8082_s29, 1  ;;  %p8083_p8 = scmp.ge.s32.totalorder %s8305_s27, 1 }
   0xd   : > { %p205_p9 = scmp.lt.s32.totalorder %s8305_s27, 3  ;;  %p8125_p11 = scmp.eq.s32.totalorder %s8375_s28, 0 }
   0xe   : > { %p8403_p10 = por %p198_p7, %p197_p4  ;;  %s222_s17 = sshll.u32 %s13235_s3, 4  ;;  %s223_s17 = int_to_ptr.hbm [resolvable:$true] %s222_s17 }
   0xf   : > { %p8408_p12 = pnand %p8083_p8, %p205_p9  ;;  %s8307_s18 = smov [#allocation3]  }
  0x10   : > { %s224_s19 = sshll.u32 %s8307_s18, 4  ;;  %s239_s22 = sshll.u32 %s13237_s5, 4  ;;  %s225_s19 = int_to_ptr.vmem [resolvable:$true] %s224_s19  ;;  %s240_s22 = int_to_ptr.hbm [resolvable:$true] %s239_s22 }
  0x11   : > { %p8114_p13 = pneg %p8408_p12  ;;  %s8308_s23 = smov 128  }
  0x12   : > { %s8309_s29 = smov 8   ;;  %s8310_s8 = smov [#allocation6]  }
  0x13   : > { %p8115_p0 = pnand %p8125_p11, %p8114_p13  ;;  %s241_s9 = sshll.u32 %s8310_s8, 4  ;;  %s242_s9 = int_to_ptr.vmem [resolvable:$true] %s241_s9 }
  0x14   : > { %p8086_p1 = scmp.ge.s32.totalorder %s8305_s27, 2 }
  0x15   : > { %8117 = dma.hbm_to_vmem [thread:$0]  (!%p8115_p0), %s223_s17, 6144, %s225_s19, [#allocation4], %s8308_s23, %s8308_s23, %s8309_s29  }
  0x16   : > { %8120 = dma.hbm_to_vmem [thread:$0]  (!%p8115_p0), %s240_s22, 16384, %s242_s9, [#allocation7], %s8308_s23, %s8308_s23, %s8309_s29  }
  0x17   : > { %254 = sbr.rel (%p8086_p1) target bundleno = 48 (0x30), region = 40 }
  0x1c   : > { %257 = sbr.rel (!%p8393_p5) target bundleno = 48 (0x30), region = 44  ;;  %s259_s15 = sand.u32 (%p8393_p5), 1, %s8301_s26  }
  0x1d   : > { %s8102_s16 = sshll.u32 (%p8393_p5), %s8305_s27, 4  ;;  %s8087_s18 = sshll.u32 (%p8393_p5), %s259_s15, 7 }
  0x1e   : > { %s8432_s17 = scalar_lea.vmem (%p8393_p5), %s13232_s0, %s8102_s16  ;;  %s261_s11 = scalar_lea.vmem (%p8393_p5), [#allocation2], %s8087_s18 }
  0x1f   : > { %v323_v0 = vld [vmem:[%s8432_s17] sm:$0xff] (%p8393_p5)  ;;  %v325_v1 = vld [vmem:[%s8432_s17 + $0x8] sm:$0xff] (%p8393_p5) }
  0x20   : > { %v327_v2 = vld [vmem:[%s8432_s17 + $0x20] sm:$0xff] (%p8393_p5)  ;;  %324 = vst [vmem:[%s261_s11] sm:$0xff] (%p8393_p5), %v323_v0  ;;  %v329_v3 = vld [vmem:[%s8432_s17 + $0x28] sm:$0xff] (%p8393_p5) }
  0x21   : > { %326 = vst [vmem:[%s261_s11 + $0x8] sm:$0xff] %v325_v1  ;;  %v331_v4 = vld [vmem:[%s8432_s17 + $0x40] sm:$0xff]  ;;  %v333_v5 = vld [vmem:[%s8432_s17 + $0x48] sm:$0xff] }
  0x22   : > { %328 = vst [vmem:[%s261_s11 + $0x10] sm:$0xff] %v327_v2  ;;  %v335_v6 = vld [vmem:[%s8432_s17 + $0x60] sm:$0xff]  ;;  %v337_v7 = vld [vmem:[%s8432_s17 + $0x68] sm:$0xff] }
  0x23   : > { %330 = vst [vmem:[%s261_s11 + $0x18] sm:$0xff] %v329_v3  ;;  %v339_v8 = vld [vmem:[%s8432_s17 + $0x80] sm:$0xff]  ;;  %v341_v9 = vld [vmem:[%s8432_s17 + $0x88] sm:$0xff] }
  0x24   : > { %332 = vst [vmem:[%s261_s11 + $0x20] sm:$0xff] %v331_v4  ;;  %v343_v10 = vld [vmem:[%s8432_s17 + $0xa0] sm:$0xff]  ;;  %v345_v11 = vld [vmem:[%s8432_s17 + $0xa8] sm:$0xff] }
  0x25   : > { %334 = vst [vmem:[%s261_s11 + $0x28] sm:$0xff] %v333_v5  ;;  %v347_v12 = vld [vmem:[%s8432_s17 + $0xc0] sm:$0xff]  ;;  %v349_v13 = vld [vmem:[%s8432_s17 + $0xc8] sm:$0xff] }
  0x26   : > { %336 = vst [vmem:[%s261_s11 + $0x30] sm:$0xff] %v335_v6  ;;  %v351_v14 = vld [vmem:[%s8432_s17 + $0xe0] sm:$0xff]  ;;  %v353_v15 = vld [vmem:[%s8432_s17 + $0xe8] sm:$0xff] }
  0x27   : > { %338 = vst [vmem:[%s261_s11 + $0x38] sm:$0xff] %v337_v7 }
  0x28   : > { %340 = vst [vmem:[%s261_s11 + $0x40] sm:$0xff] %v339_v8 }
  0x29   : > { %342 = vst [vmem:[%s261_s11 + $0x48] sm:$0xff] %v341_v9 }
  0x2a   : > { %344 = vst [vmem:[%s261_s11 + $0x50] sm:$0xff] %v343_v10 }
  0x2b   : > { %346 = vst [vmem:[%s261_s11 + $0x58] sm:$0xff] %v345_v11 }
  0x2c   : > { %348 = vst [vmem:[%s261_s11 + $0x60] sm:$0xff] %v347_v12 }
  0x2d   : > { %350 = vst [vmem:[%s261_s11 + $0x68] sm:$0xff] %v349_v13 }
  0x2e   : > { %352 = vst [vmem:[%s261_s11 + $0x70] sm:$0xff] %v351_v14 }
  0x2f   : > { %354 = vst [vmem:[%s261_s11 + $0x78] sm:$0xff] %v353_v15 }
  0x30 PF: > { %363 = sbr.rel (%p8408_p12) target bundleno = 1905 (0x771), region = 82 }
  0x35   : > { %s8453_s19 = sand.u32 1, %s8297_s25  }
  0x36   : > { %s8091_s22 = sshll.u32 %s8453_s19, 7 }
  0x37   : > { %s8456_s23 = scalar_lea.vmem [#allocation2], %s8091_s22 }
  0x38   : > { %8280 = dma.done.wait (%p8125_p11), [#allocation4], 6144  }
  0x39   : > { %8282 = vsyncadd (%p8125_p11), [#allocation4], 4294961152 }
  0x3a   : > { %8284 = dma.done.wait (%p8125_p11), [#allocation7], 16384  }
  0x3b   : > { %8286 = vsyncadd (%p8125_p11), [#allocation7], 4294950912  ;;  %vm474_vm0 = vcmask 1043456   ;;  %vm428_vm1 = vcmask 31744   ;;  %v427_v16 = vld [vmem:[%s13233_s1] sm:$0xf] }
  0x3c   : > { %v409_v17 = vld [vmem:[%s8456_s23] sm:$0xff]  ;;  %v476_v18 = vsel %vm474_vm0, %v427_v16, 0  ;;  %v410_v22 = vld [vmem:[%s8456_s23 + $0x8] sm:$0xff]  ;;  %v13252_v24 = vmov 0.0   ;;  %v411_v32 = vld [vmem:[%s8456_s23 + $0x10] sm:$0xff]  ;;  %s8094_s9 = sshll.u32 %s8453_s19, 4 }
  0x3d   : > { %v433_v19 = vsel %vm428_vm1, %v409_v17, 0  ;;  %v493_v20 = vand.u32 4294901760, %v476_v18  ;;  %v436_v27 = vsel %vm428_vm1, %v410_v22, 0  ;;  %v439_v35 = vsel %vm428_vm1, %v411_v32, 0  ;;  %v412_v39 = vld [vmem:[%s8456_s23 + $0x18] sm:$0xff]  ;;  %v413_v46 = vld [vmem:[%s8456_s23 + $0x20] sm:$0xff] }
  0x3e   : > { %v8472_v21 = vand.u32 4294901760, %v433_v19  ;;  %v8485_v30 = vand.u32 4294901760, %v436_v27  ;;  %v8503_v38 = vand.u32 4294901760, %v439_v35  ;;  %v442_v42 = vsel %vm428_vm1, %v412_v39, 0  ;;  %v414_v53 = vld [vmem:[%s8456_s23 + $0x28] sm:$0xff]  ;;  %v415_v60 = vld [vmem:[%s8456_s23 + $0x30] sm:$0xff] }
  0x3f   : > { %494 = vmatpush.msra.mxu0 %v493_v20  ;;  %v640_v23 = vsub.f32 %v476_v18, %v493_v20  ;;  %825 = vmatpush.msra.mxu3 %v493_v20  ;;  %v8521_v45 = vand.u32 4294901760, %v442_v42  ;;  %v445_v49 = vsel %vm428_vm1, %v413_v46, 0  ;;  %v448_v56 = vsel %vm428_vm1, %v414_v53, 0  ;;  %v416_v3 = vld [vmem:[%s8456_s23 + $0x38] sm:$0xff]  ;;  %v417_v10 = vld [vmem:[%s8456_s23 + $0x40] sm:$0xff]  ;;  %v418_v17 = vld [vmem:[%s8456_s23 + $0x48] sm:$0xff] }
  0x40   : > { %500 = vmatmul.f32.vlgmr.msra.gmra.mxu0 %v13252_v24  ;;  %829 = vmatmul.f32.vlgmr.msra.gmra.mxu3 %v13252_v24  ;;  %v8478_v25 = vsub.f32 %v433_v19, %v8472_v21  ;;  %v8493_v34 = vsub.f32 %v436_v27, %v8485_v30  ;;  %v8511_v41 = vsub.f32 %v439_v35, %v8503_v38  ;;  %v8539_v52 = vand.u32 4294901760, %v445_v49  ;;  %v419_v27 = vld [vmem:[%s8456_s23 + $0x50] sm:$0xff]  ;;  %s8103_s18 = sshll.u32 %s8375_s28, 4  ;;  %s406_s11 = scalar_lea.vmem [#allocation8], %s8094_s9 }
  0x41   : > { %727 = vmatpush.msra.mxu2 %v640_v23  ;;  %v641_v26 = vand.u32 4294901760, %v640_v23  ;;  %v8529_v48 = vsub.f32 %v442_v42, %v8521_v45  ;;  %v8557_v59 = vand.u32 4294901760, %v448_v56  ;;  %v451_v63 = vsel %vm428_vm1, %v415_v60, 0  ;;  %s7988_s17 = scalar_lea.hbm %s13239_s7, %s8103_s18  ;;  %s7989_s22 = sshll.u32 %s406_s11, 4  ;;  %s7990_s22 = int_to_ptr.vmem [resolvable:$true] %s7989_s22 }
  0x42   : > { %730 = vmatmul.f32.vlgmr.msra.gmra.mxu2 %v13252_v24  ;;  %v8483_v29 = vand.u32 4294901760, %v8478_v25  ;;  %v8501_v37 = vand.u32 4294901760, %v8493_v34  ;;  %v8519_v44 = vand.u32 4294901760, %v8511_v41  ;;  %v8547_v55 = vsub.f32 %v445_v49, %v8539_v52  ;;  %s7991_s28 = sshll.u32 %s7988_s17, 4  ;;  %s8255_s15 = scalar_lea.hbm %s13239_s7, 32  ;;  %s7992_s28 = int_to_ptr.hbm [resolvable:$true] %s7991_s28 }
  0x43   : > { %v642_v28 = vsub.f32 %v640_v23, %v641_v26  ;;  %941 = vmatpush.msrb.mxu0 %v641_v26  ;;  %v8537_v51 = vand.u32 4294901760, %v8529_v48  ;;  %v8565_v62 = vsub.f32 %v448_v56, %v8557_v59  ;;  %v8575_v2 = vand.u32 4294901760, %v451_v63  ;;  %v421_v56 = vld [vmem:[%s8456_s23 + $0x60] sm:$0xff]  ;;  %s8249_s14 = sshra.s32 %s7992_s28, 4  ;;  %s8250_s14 = int_to_ptr.hbm [resolvable:$true] %s8249_s14 }
  0x44   : > { %v514_v33 = vsub.f32 %v8478_v25, %v8483_v29  ;;  %v522_v40 = vsub.f32 %v8493_v34, %v8501_v37  ;;  %v530_v47 = vsub.f32 %v8511_v41, %v8519_v44  ;;  %v8555_v58 = vand.u32 4294901760, %v8547_v55  ;;  %s8251_s29 = scalar_lea.hbm %s8250_s14, 16  ;;  %p8256_p5 = scmp.lt.s32.totalorder %s8250_s14, %s13239_s7 }
  0x45   : > { %v643_v31 = vand.u32 4294901760, %v642_v28  ;;  %v538_v54 = vsub.f32 %v8529_v48, %v8537_v51  ;;  %v8573_v1 = vand.u32 4294901760, %v8565_v62  ;;  %v8583_v5 = vsub.f32 %v451_v63, %v8575_v2  ;;  %p8252_p2 = scmp.ne.s32.totalorder %s8250_s14, %s8251_s29  ;;  %p8257_p7 = scmp.lt.s32.totalorder %s8255_s15, %s8251_s29 }
  0x46   : > { %v8498_v36 = vand.u32 4294901760, %v514_v33  ;;  %v8516_v43 = vand.u32 4294901760, %v522_v40  ;;  %v8534_v50 = vand.u32 4294901760, %v530_v47  ;;  %v546_v61 = vsub.f32 %v8547_v55, %v8555_v58  ;;  %v420_v40 = vld [vmem:[%s8456_s23 + $0x58] sm:$0xff] }
  0x47   : > { %644 = vmatpush.msra.mxu1 %v643_v31  ;;  %v8552_v57 = vand.u32 4294901760, %v538_v54  ;;  %v554_v4 = vsub.f32 %v8565_v62, %v8573_v1  ;;  %v454_v6 = vsel %vm428_vm1, %v416_v3, 0  ;;  %v8591_v8 = vand.u32 4294901760, %v8583_v5  ;;  %v8095_v3 = vld [vmem:[%s13233_s1 + $0x4] sm:$0xf]  ;;  %p8253_p3 = pnand %p8252_p2, %p8397_p6  ;;  %p8258_p8 = por %p8257_p7, %p8256_p5 }
  0x48   : > { %508 = vmatmul.f32.gmra.mxu0 %v13252_v24  ;;  %646 = vmatmul.f32.vlgmr.msra.gmra.mxu1 %v13252_v24  ;;  %13533 = vst [vmem:[#allocation12_spill] sm:$0xff] %v8534_v50  ;;  %v8570_v0 = vand.u32 4294901760, %v546_v61  ;;  %v8593_v9 = vand.u32 4294901760, %v454_v6  ;;  %v457_v13 = vsel %vm428_vm1, %v417_v10, 0  ;;  %v463_v32 = vsel %vm428_vm1, %v419_v27, 0 }
  0x49   : > { %835 = vmatmul.f32.gmra.mxu3 %v13252_v24  ;;  %1023 = vmatpush.msrb.mxu1 %v493_v20  ;;  %13534 = vst [vmem:[#allocation13_spill] sm:$0xff] %v8552_v57  ;;  %v8588_v7 = vand.u32 4294901760, %v554_v4  ;;  %v562_v11 = vsub.f32 %v8583_v5, %v8591_v8  ;;  %v8611_v16 = vand.u32 4294901760, %v457_v13  ;;  %v460_v20 = vsel %vm428_vm1, %v418_v17, 0  ;;  %p8254_p4 = pneg %p8253_p3 }
  0x4a   : > { %735 = vmatmul.f32.gmra.mxu2 %v13252_v24  ;;  %13535 = vst [vmem:[#allocation14_spill] sm:$0xff] %v8570_v0  ;;  %v8601_v12 = vsub.f32 %v454_v6, %v8593_v9  ;;  %v8629_v26 = vand.u32 4294901760, %v460_v20  ;;  %v8647_v39 = vand.u32 4294901760, %v463_v32  ;;  %v466_v47 = vsel %vm428_vm1, %v420_v40, 0 }
  0x4b   : > { %13536 = vst [vmem:[#allocation15_spill] sm:$0xff] %v8588_v7  ;;  %v8606_v14 = vand.u32 4294901760, %v562_v11  ;;  %v8619_v19 = vsub.f32 %v457_v13, %v8611_v16  ;;  %v8665_v54 = vand.u32 4294901760, %v466_v47  ;;  %v469_v63 = vsel %vm428_vm1, %v421_v56, 0  ;;  %p8259_p9 = pnand %p8258_p8, %p8254_p4 }
  0x4c   : > { %v8609_v15 = vand.u32 4294901760, %v8601_v12  ;;  %v8637_v31 = vsub.f32 %v460_v20, %v8629_v26  ;;  %v8655_v46 = vsub.f32 %v463_v32, %v8647_v39  ;;  %v1096_v4 = vsel %vm474_vm0, %v8095_v3, 0 }
  0x4d   : > { %13537 = vst [vmem:[#allocation16_spill] sm:$0xff] %v8606_v14  ;;  %v8627_v23 = vand.u32 4294901760, %v8619_v19  ;;  %v8673_v61 = vsub.f32 %v466_v47, %v8665_v54  ;;  %v1113_v6 = vand.u32 4294901760, %v1096_v4  ;;  %v8687_v13 = vand.u32 4294901760, %v469_v63 }
  0x4e   : > { %v570_v18 = vsub.f32 %v8601_v12, %v8609_v15  ;;  %v8645_v35 = vand.u32 4294901760, %v8637_v31  ;;  %v8663_v53 = vand.u32 4294901760, %v8655_v46 }
  0x4f   : > { %v578_v28 = vsub.f32 %v8619_v19, %v8627_v23  ;;  %13542 = vst [vmem:[#allocation21_spill] sm:$0xff] %v8673_v61  ;;  %v8685_v11 = vand.u32 4294901760, %v8673_v61  ;;  %1114 = vmatpush.msrb.mxu2 %v1113_v6  ;;  %v1260_v17 = vsub.f32 %v1096_v4, %v1113_v6  ;;  %1445 = vmatpush.msra.mxu1 %v1113_v6 }
  0x50   : > { %516 = vmatmul.f32.gmra.mxu0 %v8498_v36  ;;  %650 = vmatmul.f32.gmra.mxu1 %v13252_v24  ;;  %v8624_v22 = vand.u32 4294901760, %v570_v18  ;;  %v586_v42 = vsub.f32 %v8637_v31, %v8645_v35  ;;  %13541 = vst [vmem:[#allocation20_spill] sm:$0xff] %v8663_v53  ;;  %v594_v60 = vsub.f32 %v8655_v46, %v8663_v53  ;;  %v422_v18 = vld [vmem:[%s8456_s23 + $0x68] sm:$0xff] }
  0x51   : > { %841 = vmatmul.f32.gmra.mxu3 %v8483_v29  ;;  %v8642_v33 = vand.u32 4294901760, %v578_v28  ;;  %13544 = vst [vmem:[#allocation23_spill] sm:$0xff] %v8685_v11  ;;  %v1261_v20 = vand.u32 4294901760, %v1260_v17  ;;  %1347 = vmatpush.msra.mxu0 %v1260_v17  ;;  %v602_v27 = vsub.f32 %v8673_v61, %v8685_v11  ;;  %v8695_v28 = vsub.f32 %v469_v63, %v8687_v13 }
  0x52   : > { %740 = vmatmul.f32.gmra.mxu2 %v8478_v25  ;;  %13538 = vst [vmem:[#allocation17_spill] sm:$0xff] %v8624_v22  ;;  %v8660_v49 = vand.u32 4294901760, %v586_v42  ;;  %v8682_v10 = vand.u32 4294901760, %v594_v60  ;;  %v472_v32 = vsel %vm428_vm1, %v422_v18, 0 }
  0x53   : > { %13539 = vst [vmem:[#allocation18_spill] sm:$0xff] %v8642_v33  ;;  %v1262_v40 = vsub.f32 %v1260_v17, %v1261_v20  ;;  %1561 = vmatpush.msra.mxu2 %v1261_v20  ;;  %v8700_v47 = vand.u32 4294901760, %v602_v27  ;;  %v8703_v56 = vand.u32 4294901760, %v8695_v28  ;;  %v8705_v60 = vand.u32 4294901760, %v472_v32 }
  0x54   : > { %13540 = vst [vmem:[#allocation19_spill] sm:$0xff] %v8660_v49 }
  0x55   : > { %13543 = vst [vmem:[#allocation22_spill] sm:$0xff] %v8682_v10  ;;  %v1263_v42 = vand.u32 4294901760, %v1262_v40  ;;  %v610_v63 = vsub.f32 %v8695_v28, %v8703_v56  ;;  %v8712_v3 = vsub.f32 %v472_v32, %v8705_v60 }
  0x56   : > { %13545 = vst [vmem:[#allocation24_spill] sm:$0xff] %v8695_v28 }
  0x57   : > { %13546 = vst [vmem:[#allocation25_spill] sm:$0xff] %v8700_v47  ;;  %1264 = vmatpush.msrb.mxu3 %v1263_v42  ;;  %v8716_v4 = vand.u32 4294901760, %v610_v63  ;;  %v8719_v17 = vand.u32 4294901760, %v8712_v3 }
  0x58   : > { %524 = vmatmul.f32.gmra.mxu0 %v8516_v43  ;;  %654 = vmatmul.f32.gmra.mxu1 %v8472_v21  ;;  %13547 = vst [vmem:[#allocation26_spill] sm:$0xff] %v8703_v56 }
  0x59   : > { %847 = vmatmul.f32.gmra.mxu3 %v8501_v37  ;;  %13548 = vst [vmem:[#allocation27_spill] sm:$0xff] %v8712_v3 }
  0x5a   : > { %745 = vmatmul.f32.gmra.mxu2 %v8493_v34  ;;  %1643 = vmatpush.msra.mxu3 %v1113_v6  ;;  %13549 = vst [vmem:[#allocation28_spill] sm:$0xff] %v8716_v4  ;;  %v618_v6 = vsub.f32 %v8712_v3, %v8719_v17 }
  0x5b   : > { %13550 = vst [vmem:[#allocation29_spill] sm:$0xff] %v8719_v17 }
  0x5c   : > { %v8727_v18 = vand.u32 4294901760, %v618_v6 }
  0x5e   : > { %13551 = vst [vmem:[#allocation30_spill] sm:$0xff] %v8727_v18 }
  0x60   : > { %532 = vmatmul.f32.gmra.mxu0 %v8534_v50  ;;  %658 = vmatmul.f32.gmra.mxu1 %v8485_v30 }
  0x61   : > { %853 = vmatmul.f32.gmra.mxu3 %v8519_v44 }
  0x62   : > { %750 = vmatmul.f32.gmra.mxu2 %v8511_v41 }
  0x68   : > { %540 = vmatmul.f32.gmra.mxu0 %v8552_v57  ;;  %662 = vmatmul.f32.gmra.mxu1 %v8503_v38 }
  0x69   : > { %859 = vmatmul.f32.gmra.mxu3 %v8537_v51 }
  0x6a   : > { %755 = vmatmul.f32.gmra.mxu2 %v8529_v48 }
  0x70   : > { %548 = vmatmul.f32.gmra.mxu0 %v8570_v0  ;;  %666 = vmatmul.f32.gmra.mxu1 %v8521_v45 }
  0x71   : > { %865 = vmatmul.f32.gmra.mxu3 %v8555_v58 }
  0x72   : > { %760 = vmatmul.f32.gmra.mxu2 %v8547_v55 }
  0x78   : > { %556 = vmatmul.f32.gmra.mxu0 %v8588_v7  ;;  %670 = vmatmul.f32.gmra.mxu1 %v8539_v52 }
  0x79   : > { %871 = vmatmul.f32.gmra.mxu3 %v8573_v1 }
  0x7a   : > { %765 = vmatmul.f32.gmra.mxu2 %v8565_v62 }
  0x80   : > { %564 = vmatmul.f32.gmra.mxu0 %v8606_v14  ;;  %674 = vmatmul.f32.gmra.mxu1 %v8557_v59 }
  0x81   : > { %877 = vmatmul.f32.gmra.mxu3 %v8591_v8 }
  0x82   : > { %770 = vmatmul.f32.gmra.mxu2 %v8583_v5 }
  0x88   : > { %572 = vmatmul.f32.gmra.mxu0 %v8624_v22  ;;  %678 = vmatmul.f32.gmra.mxu1 %v8575_v2 }
  0x89   : > { %883 = vmatmul.f32.gmra.mxu3 %v8609_v15 }
  0x8a   : > { %775 = vmatmul.f32.gmra.mxu2 %v8601_v12 }
  0x90   : > { %580 = vmatmul.f32.gmra.mxu0 %v8642_v33  ;;  %682 = vmatmul.f32.gmra.mxu1 %v8593_v9 }
  0x91   : > { %889 = vmatmul.f32.gmra.mxu3 %v8627_v23 }
  0x92   : > { %780 = vmatmul.f32.gmra.mxu2 %v8619_v19 }
  0x98   : > { %588 = vmatmul.f32.gmra.mxu0 %v8660_v49  ;;  %686 = vmatmul.f32.gmra.mxu1 %v8611_v16 }
  0x99   : > { %895 = vmatmul.f32.gmra.mxu3 %v8645_v35 }
  0x9a   : > { %785 = vmatmul.f32.gmra.mxu2 %v8637_v31 }
  0xa0   : > { %596 = vmatmul.f32.gmra.mxu0 %v8682_v10  ;;  %690 = vmatmul.f32.gmra.mxu1 %v8629_v26 }
  0xa1   : > { %901 = vmatmul.f32.gmra.mxu3 %v8663_v53 }
  0xa2   : > { %790 = vmatmul.f32.gmra.mxu2 %v8655_v46 }
  0xa8   : > { %604 = vmatmul.f32.gmra.mxu0 %v8700_v47  ;;  %694 = vmatmul.f32.gmra.mxu1 %v8647_v39 }
  0xa9   : > { %907 = vmatmul.f32.gmra.mxu3 %v8685_v11 }
  0xaa   : > { %795 = vmatmul.f32.gmra.mxu2 %v8673_v61 }
  0xb0   : > { %612 = vmatmul.f32.gmra.mxu0 %v8716_v4  ;;  %698 = vmatmul.f32.gmra.mxu1 %v8665_v54 }
  0xb1   : > { %913 = vmatmul.f32.gmra.mxu3 %v8703_v56 }
  0xb2   : > { %800 = vmatmul.f32.gmra.mxu2 %v8695_v28 }
  0xb8   : > { %620 = vmatmul.f32.gmra.mxu0 %v8727_v18  ;;  %702 = vmatmul.f32.gmra.mxu1 %v8687_v13 }
  0xb9   : > { %919 = vmatmul.f32.gmra.mxu3 %v8719_v17 }
  0xba   : > { %805 = vmatmul.f32.gmra.mxu2 %v8712_v3 }
  0xbd   : > { %v501_v20 = vpop.f32.mrf.mxu0 }
  0xc0   : > { %706 = vmatmul.f32.gmra.mxu1 %v8705_v60  ;;  %943 = vmatmul.f32.vlgmr.msrb.gmra.mxu0 %v13252_v24 }
  0xc1   : > { %1266 = vmatmul.f32.vlgmr.msrb.gmra.mxu3 %v8472_v21 }
  0xc2   : > { %1120 = vmatmul.f32.vlgmr.msrb.gmra.mxu2 %v8498_v36 }
  0xc3   : > { %v830_v27 = vpop.f32.mrf.mxu3 }
  0xc5   : > { %v509_v32 = vpop.f32.mrf.mxu0  ;;  %v647_v40 = vpop.f32.mrf.mxu1 }
  0xc6   : > { %v648_v42 = vadd.f32 %v647_v40, %v501_v20  ;;  %v731_v63 = vpop.f32.mrf.mxu2 }
  0xc8   : > { %v732_v6 = vadd.f32 %v731_v63, %v648_v42  ;;  %947 = vmatmul.f32.gmra.mxu0 %v13252_v24  ;;  %1025 = vmatmul.f32.vlgmr.msrb.gmra.mxu1 %v13252_v24 }
  0xc9   : > { %1270 = vmatmul.f32.gmra.mxu3 %v8485_v30 }
  0xca   : > { %v8740_v17 = vadd.f32 %v830_v27, %v732_v6  ;;  %1128 = vmatmul.f32.gmra.mxu2 %v8516_v43 }
  0xcc   : > { %v836_v56 = vpop.f32.mrf.mxu3 }
  0xcd   : > { %v517_v3 = vpop.f32.mrf.mxu0  ;;  %v651_v11 = vpop.f32.mrf.mxu1 }
  0xce   : > { %v652_v36 = vadd.f32 %v651_v11, %v509_v32  ;;  %v736_v28 = vpop.f32.mrf.mxu2 }
  0xd0   : > { %v737_v53 = vadd.f32 %v736_v28, %v652_v36  ;;  %951 = vmatmul.f32.gmra.mxu0 %v8472_v21  ;;  %1029 = vmatmul.f32.gmra.mxu1 %v13252_v24 }
  0xd1   : > { %1274 = vmatmul.f32.gmra.mxu3 %v8503_v38 }
  0xd2   : > { %v8746_v20 = vadd.f32 %v836_v56, %v737_v53  ;;  %1136 = vmatmul.f32.gmra.mxu2 %v8534_v50 }
  0xd4   : > { %v842_v27 = vpop.f32.mrf.mxu3 }
  0xd5   : > { %v525_v40 = vpop.f32.mrf.mxu0  ;;  %v655_v42 = vpop.f32.mrf.mxu1 }
  0xd6   : > { %v656_v43 = vadd.f32 %v655_v42, %v517_v3  ;;  %v741_v63 = vpop.f32.mrf.mxu2 }
  0xd8   : > { %v742_v6 = vadd.f32 %v741_v63, %v656_v43  ;;  %955 = vmatmul.f32.gmra.mxu0 %v8485_v30  ;;  %1033 = vmatmul.f32.gmra.mxu1 %v8472_v21 }
  0xd9   : > { %1278 = vmatmul.f32.gmra.mxu3 %v8521_v45 }
  0xda   : > { %v8752_v11 = vadd.f32 %v842_v27, %v742_v6  ;;  %1144 = vmatmul.f32.gmra.mxu2 %v8552_v57 }
  0xdc   : > { %v848_v53 = vpop.f32.mrf.mxu3 }
  0xdd   : > { %v533_v28 = vpop.f32.mrf.mxu0  ;;  %v659_v56 = vpop.f32.mrf.mxu1 }
  0xde   : > { %v660_v32 = vadd.f32 %v659_v56, %v525_v40  ;;  %v746_v36 = vpop.f32.mrf.mxu2 }
  0xe0   : > { %v747_v24 = vadd.f32 %v746_v36, %v660_v32  ;;  %959 = vmatmul.f32.gmra.mxu0 %v8503_v38  ;;  %1037 = vmatmul.f32.gmra.mxu1 %v8485_v30 }
  0xe1   : > { %1282 = vmatmul.f32.gmra.mxu3 %v8539_v52 }
  0xe2   : > { %v8758_v3 = vadd.f32 %v848_v53, %v747_v24  ;;  %1152 = vmatmul.f32.gmra.mxu2 %v8570_v0 }
  0xe4   : > { %v854_v27 = vpop.f32.mrf.mxu3 }
  0xe5   : > { %v541_v42 = vpop.f32.mrf.mxu0  ;;  %v663_v43 = vpop.f32.mrf.mxu1 }
  0xe6   : > { %v664_v63 = vadd.f32 %v663_v43, %v533_v28  ;;  %v751_v6 = vpop.f32.mrf.mxu2 }
  0xe8   : > { %v752_v57 = vadd.f32 %v751_v6, %v664_v63  ;;  %963 = vmatmul.f32.gmra.mxu0 %v8521_v45  ;;  %1041 = vmatmul.f32.gmra.mxu1 %v8503_v38 }
  0xe9   : > { %1286 = vmatmul.f32.gmra.mxu3 %v8557_v59 }
  0xea   : > { %v8764_v40 = vadd.f32 %v854_v27, %v752_v57  ;;  %1160 = vmatmul.f32.gmra.mxu2 %v8588_v7 }
  0xec   : > { %v860_v24 = vpop.f32.mrf.mxu3 }
  0xed   : > { %v549_v53 = vpop.f32.mrf.mxu0  ;;  %v667_v56 = vpop.f32.mrf.mxu1 }
  0xee   : > { %v668_v32 = vadd.f32 %v667_v56, %v541_v42  ;;  %v756_v36 = vpop.f32.mrf.mxu2 }
  0xf0   : > { %v757_v0 = vadd.f32 %v756_v36, %v668_v32  ;;  %967 = vmatmul.f32.gmra.mxu0 %v8539_v52  ;;  %1045 = vmatmul.f32.gmra.mxu1 %v8521_v45 }
  0xf1   : > { %1290 = vmatmul.f32.gmra.mxu3 %v8575_v2 }
  0xf2   : > { %v8770_v28 = vadd.f32 %v860_v24, %v757_v0  ;;  %1168 = vmatmul.f32.gmra.mxu2 %v8606_v14 }
  0xf4   : > { %v866_v57 = vpop.f32.mrf.mxu3 }
  0xf5   : > { %v557_v27 = vpop.f32.mrf.mxu0  ;;  %v671_v43 = vpop.f32.mrf.mxu1 }
  0xf6   : > { %v672_v63 = vadd.f32 %v671_v43, %v549_v53  ;;  %v761_v6 = vpop.f32.mrf.mxu2 }
  0xf8   : > { %v762_v7 = vadd.f32 %v761_v6, %v672_v63  ;;  %971 = vmatmul.f32.gmra.mxu0 %v8557_v59  ;;  %1049 = vmatmul.f32.gmra.mxu1 %v8539_v52 }
  0xf9   : > { %1294 = vmatmul.f32.gmra.mxu3 %v8593_v9 }
  0xfa   : > { %v8776_v42 = vadd.f32 %v866_v57, %v762_v7  ;;  %1176 = vmatmul.f32.gmra.mxu2 %v8624_v22 }
  0xfc   : > { %v872_v0 = vpop.f32.mrf.mxu3 }
  0xfd   : > { %v565_v24 = vpop.f32.mrf.mxu0  ;;  %v675_v56 = vpop.f32.mrf.mxu1 }
  0xfe   : > { %v676_v32 = vadd.f32 %v675_v56, %v557_v27  ;;  %v766_v36 = vpop.f32.mrf.mxu2 }
 0x100   : > { %v767_v14 = vadd.f32 %v766_v36, %v676_v32  ;;  %975 = vmatmul.f32.gmra.mxu0 %v8575_v2  ;;  %1053 = vmatmul.f32.gmra.mxu1 %v8557_v59 }
 0x101   : > { %1298 = vmatmul.f32.gmra.mxu3 %v8611_v16 }
 0x102   : > { %v8782_v53 = vadd.f32 %v872_v0, %v767_v14  ;;  %1184 = vmatmul.f32.gmra.mxu2 %v8642_v33 }
 0x104   : > { %v878_v7 = vpop.f32.mrf.mxu3 }
 0x105   : > { %v573_v57 = vpop.f32.mrf.mxu0  ;;  %v679_v43 = vpop.f32.mrf.mxu1 }
 0x106   : > { %v680_v63 = vadd.f32 %v679_v43, %v565_v24  ;;  %v771_v6 = vpop.f32.mrf.mxu2 }
 0x108   : > { %v772_v22 = vadd.f32 %v771_v6, %v680_v63  ;;  %979 = vmatmul.f32.gmra.mxu0 %v8593_v9  ;;  %1057 = vmatmul.f32.gmra.mxu1 %v8575_v2 }
 0x109   : > { %1302 = vmatmul.f32.gmra.mxu3 %v8629_v26 }
 0x10a   : > { %v8788_v27 = vadd.f32 %v878_v7, %v772_v22  ;;  %1192 = vmatmul.f32.gmra.mxu2 %v8660_v49 }
 0x10c   : > { %v884_v14 = vpop.f32.mrf.mxu3 }
 0x10d   : > { %v581_v0 = vpop.f32.mrf.mxu0  ;;  %v683_v56 = vpop.f32.mrf.mxu1 }
 0x10e   : > { %v684_v32 = vadd.f32 %v683_v56, %v573_v57  ;;  %v776_v36 = vpop.f32.mrf.mxu2  ;;  %v423_v57 = vld [vmem:[%s8456_s23 + $0x70] sm:$0xff] }
 0x110   : > { %v777_v33 = vadd.f32 %v776_v36, %v684_v32  ;;  %983 = vmatmul.f32.gmra.mxu0 %v8611_v16  ;;  %1061 = vmatmul.f32.gmra.mxu1 %v8593_v9 }
 0x111   : > { %1306 = vmatmul.f32.gmra.mxu3 %v8647_v39 }
 0x112   : > { %v8794_v24 = vadd.f32 %v884_v14, %v777_v33  ;;  %1200 = vmatmul.f32.gmra.mxu2 %v8682_v10  ;;  %v1090_v33 = vsel %vm428_vm1, %v423_v57, 0  ;;  %v424_v10 = vld [vmem:[%s8456_s23 + $0x78] sm:$0xff]  ;;  %s7977_s23 = scalar_lea.sflag [#allocation5], %s8453_s19 }
 0x114   : > { %v890_v22 = vpop.f32.mrf.mxu3 }
 0x115   : > { %v589_v7 = vpop.f32.mrf.mxu0  ;;  %v687_v43 = vpop.f32.mrf.mxu1 }
 0x116   : > { %v688_v63 = vadd.f32 %v687_v43, %v581_v0  ;;  %v781_v6 = vpop.f32.mrf.mxu2 }
 0x118   : > { %v782_v49 = vadd.f32 %v781_v6, %v688_v63  ;;  %987 = vmatmul.f32.gmra.mxu0 %v8629_v26  ;;  %1065 = vmatmul.f32.gmra.mxu1 %v8611_v16  ;;  %v8805_v63 = vand.u32 4294901760, %v1090_v33 }
 0x119   : > { %1310 = vmatmul.f32.gmra.mxu3 %v8665_v54 }
 0x11a   : > { %v8801_v56 = vadd.f32 %v890_v22, %v782_v49  ;;  %1208 = vmatmul.f32.gmra.mxu2 %v8700_v47  ;;  %v8815_v22 = vsub.f32 %v1090_v33, %v8805_v63 }
 0x11c   : > { %13552 = vst [vmem:[#allocation31_spill] sm:$0xff] %v8801_v56  ;;  %v896_v14 = vpop.f32.mrf.mxu3  ;;  %v8819_v50 = vand.u32 4294901760, %v8815_v22 }
 0x11d   : > { %v597_v32 = vpop.f32.mrf.mxu0  ;;  %v691_v36 = vpop.f32.mrf.mxu1  ;;  %13554 = vst [vmem:[#allocation33_spill] sm:$0xff] %v8815_v22 }
 0x11e   : > { %v692_v0 = vadd.f32 %v691_v36, %v589_v7  ;;  %v786_v43 = vpop.f32.mrf.mxu2  ;;  %v1093_v7 = vsel %vm428_vm1, %v424_v10, 0  ;;  %13555 = vst [vmem:[#allocation34_spill] sm:$0xff] %v8819_v50  ;;  %v1230_v10 = vsub.f32 %v8815_v22, %v8819_v50 }
 0x11f   : > { %v8821_v61 = vand.u32 4294901760, %v1093_v7 }
 0x120   : > { %v787_v6 = vadd.f32 %v786_v43, %v692_v0  ;;  %991 = vmatmul.f32.gmra.mxu0 %v8647_v39  ;;  %1069 = vmatmul.f32.gmra.mxu1 %v8629_v26 }
 0x121   : > { %1314 = vmatmul.f32.gmra.mxu3 %v8687_v13 }
 0x122   : > { %v8811_v49 = vadd.f32 %v896_v14, %v787_v6  ;;  %1216 = vmatmul.f32.gmra.mxu2 %v8716_v4  ;;  %v8834_v4 = vand.u32 4294901760, %v1230_v10 }
 0x124   : > { %13553 = vst [vmem:[#allocation32_spill] sm:$0xff] %v8811_v49  ;;  %v902_v57 = vpop.f32.mrf.mxu3 }
 0x125   : > { %v605_v36 = vpop.f32.mrf.mxu0  ;;  %v695_v47 = vpop.f32.mrf.mxu1  ;;  %13557 = vst [vmem:[#allocation36_spill] sm:$0xff] %v8834_v4 }
 0x126   : > { %v696_v0 = vadd.f32 %v695_v47, %v597_v32  ;;  %v791_v43 = vpop.f32.mrf.mxu2  ;;  %v8832_v47 = vsub.f32 %v1093_v7, %v8821_v61 }
 0x128   : > { %v792_v56 = vadd.f32 %v791_v43, %v696_v0  ;;  %995 = vmatmul.f32.gmra.mxu0 %v8665_v54  ;;  %1073 = vmatmul.f32.gmra.mxu1 %v8647_v39  ;;  %13556 = vst [vmem:[#allocation35_spill] sm:$0xff] %v8832_v47  ;;  %v8837_v49 = vand.u32 4294901760, %v8832_v47 }
 0x129   : > { %1318 = vmatmul.f32.gmra.mxu3 %v8705_v60 }
 0x12a   : > { %v8826_v33 = vadd.f32 %v902_v57, %v792_v56  ;;  %1224 = vmatmul.f32.gmra.mxu2 %v8727_v18  ;;  %13558 = vst [vmem:[#allocation37_spill] sm:$0xff] %v8837_v49  ;;  %v1238_v7 = vsub.f32 %v8832_v47, %v8837_v49 }
 0x12c   : > { %v908_v14 = vpop.f32.mrf.mxu3  ;;  %v8847_v22 = vand.u32 4294901760, %v1238_v7 }
 0x12d   : > { %v613_v32 = vpop.f32.mrf.mxu0  ;;  %v699_v6 = vpop.f32.mrf.mxu1 }
 0x12e   : > { %v700_v0 = vadd.f32 %v699_v6, %v605_v36  ;;  %v796_v43 = vpop.f32.mrf.mxu2  ;;  %13559 = vst [vmem:[#allocation38_spill] sm:$0xff] %v8847_v22 }
 0x130   : > { %v797_v56 = vadd.f32 %v796_v43, %v700_v0  ;;  %999 = vmatmul.f32.gmra.mxu0 %v8687_v13  ;;  %1077 = vmatmul.f32.gmra.mxu1 %v8665_v54 }
 0x131   : > { %1322 = vmatmul.f32.gmra.mxu3 %v8805_v63 }
 0x132   : > { %v8842_v57 = vadd.f32 %v908_v14, %v797_v56  ;;  %1232 = vmatmul.f32.gmra.mxu2 %v8834_v4 }
 0x134   : > { %v914_v36 = vpop.f32.mrf.mxu3 }
 0x135   : > { %v621_v10 = vpop.f32.mrf.mxu0  ;;  %v703_v6 = vpop.f32.mrf.mxu1 }
 0x136   : > { %v704_v18 = vadd.f32 %v703_v6, %v613_v32  ;;  %v801_v50 = vpop.f32.mrf.mxu2 }
 0x138   : > { %v802_v0 = vadd.f32 %v801_v50, %v704_v18  ;;  %1003 = vmatmul.f32.gmra.mxu0 %v8705_v60  ;;  %1081 = vmatmul.f32.gmra.mxu1 %v8687_v13 }
 0x139   : > { %1326 = vmatmul.f32.gmra.mxu3 %v8821_v61 }
 0x13a   : > { %v8852_v14 = vadd.f32 %v914_v36, %v802_v0  ;;  %1240 = vmatmul.f32.gmra.mxu2 %v8847_v22 }
 0x13c   : > { %v920_v43 = vpop.f32.mrf.mxu3 }
 0x13d   : > { %v707_v56 = vpop.f32.mrf.mxu1  ;;  %v944_v4 = vpop.f32.mrf.mxu0 }
 0x13e   : > { %v708_v49 = vadd.f32 %v707_v56, %v621_v10  ;;  %v806_v47 = vpop.f32.mrf.mxu2  ;;  %v945_v18 = vadd.f32 %v944_v4, %v8740_v17 }
 0x140   : > { %v807_v32 = vadd.f32 %v806_v47, %v708_v49  ;;  %1085 = vmatmul.f32.gmra.mxu1 %v8705_v60  ;;  %1350 = vmatmul.f32.vlgmr.msra.gmra.mxu0 %v8478_v25 }
 0x141   : > { %1645 = vmatmul.f32.vlgmr.msra.gmra.mxu3 %v8472_v21 }
 0x142   : > { %v8858_v50 = vadd.f32 %v920_v43, %v807_v32  ;;  %1563 = vmatmul.f32.vlgmr.msra.gmra.mxu2 %v8472_v21 }
 0x144   : > { %v1267_v7 = vpop.f32.mrf.mxu3 }
 0x145   : > { %v948_v36 = vpop.f32.mrf.mxu0  ;;  %v1026_v6 = vpop.f32.mrf.mxu1 }
 0x146   : > { %v1027_v0 = vadd.f32 %v1026_v6, %v945_v18  ;;  %v1121_v22 = vpop.f32.mrf.mxu2  ;;  %v949_v21 = vadd.f32 %v948_v36, %v8746_v20 }
 0x148   : > { %v1122_v10 = vadd.f32 %v1121_v22, %v1027_v0  ;;  %1355 = vmatmul.f32.gmra.mxu0 %v8493_v34  ;;  %1449 = vmatmul.f32.vlgmr.msra.gmra.mxu1 %v8483_v29 }
 0x149   : > { %1649 = vmatmul.f32.gmra.mxu3 %v8485_v30 }
 0x14a   : > { %v8865_v25 = vadd.f32 %v1267_v7, %v1122_v10  ;;  %1567 = vmatmul.f32.gmra.mxu2 %v8485_v30 }
 0x14c   : > { %v1271_v49 = vpop.f32.mrf.mxu3 }
 0x14d   : > { %v952_v4 = vpop.f32.mrf.mxu0  ;;  %v1030_v17 = vpop.f32.mrf.mxu1 }
 0x14e   : > { %v1031_v47 = vadd.f32 %v1030_v17, %v949_v21  ;;  %v1129_v43 = vpop.f32.mrf.mxu2  ;;  %v953_v30 = vadd.f32 %v952_v4, %v8752_v11 }
 0x150   : > { %v1130_v56 = vadd.f32 %v1129_v43, %v1031_v47  ;;  %1360 = vmatmul.f32.gmra.mxu0 %v8511_v41  ;;  %1455 = vmatmul.f32.gmra.mxu1 %v8501_v37 }
 0x151   : > { %1653 = vmatmul.f32.gmra.mxu3 %v8503_v38 }
 0x152   : > { %v8872_v29 = vadd.f32 %v1271_v49, %v1130_v56  ;;  %1571 = vmatmul.f32.gmra.mxu2 %v8503_v38 }
 0x154   : > { %v1275_v34 = vpop.f32.mrf.mxu3 }
 0x155   : > { %v956_v20 = vpop.f32.mrf.mxu0  ;;  %v1034_v22 = vpop.f32.mrf.mxu1 }
 0x156   : > { %v1035_v32 = vadd.f32 %v1034_v22, %v953_v30  ;;  %v1137_v18 = vpop.f32.mrf.mxu2  ;;  %v957_v36 = vadd.f32 %v956_v20, %v8758_v3 }
 0x158   : > { %v1138_v7 = vadd.f32 %v1137_v18, %v1035_v32  ;;  %1365 = vmatmul.f32.gmra.mxu0 %v8529_v48  ;;  %1461 = vmatmul.f32.gmra.mxu1 %v8519_v44 }
 0x159   : > { %1657 = vmatmul.f32.gmra.mxu3 %v8521_v45 }
 0x15a   : > { %v8879_v37 = vadd.f32 %v1275_v34, %v1138_v7  ;;  %1575 = vmatmul.f32.gmra.mxu2 %v8521_v45 }
 0x15c   : > { %v1279_v6 = vpop.f32.mrf.mxu3 }
 0x15d   : > { %v960_v11 = vpop.f32.mrf.mxu0  ;;  %v1038_v0 = vpop.f32.mrf.mxu1 }
 0x15e   : > { %v1039_v10 = vadd.f32 %v1038_v0, %v957_v36  ;;  %v1145_v21 = vpop.f32.mrf.mxu2  ;;  %v961_v17 = vadd.f32 %v960_v11, %v8764_v40 }
 0x160   : > { %v1146_v49 = vadd.f32 %v1145_v21, %v1039_v10  ;;  %1370 = vmatmul.f32.gmra.mxu0 %v8547_v55  ;;  %1467 = vmatmul.f32.gmra.mxu1 %v8537_v51 }
 0x161   : > { %1661 = vmatmul.f32.gmra.mxu3 %v8539_v52 }
 0x162   : > { %v8886_v4 = vadd.f32 %v1279_v6, %v1146_v49  ;;  %1579 = vmatmul.f32.gmra.mxu2 %v8539_v52 }
 0x164   : > { %v1283_v47 = vpop.f32.mrf.mxu3 }
 0x165   : > { %v964_v3 = vpop.f32.mrf.mxu0  ;;  %v1042_v43 = vpop.f32.mrf.mxu1 }
 0x166   : > { %v1043_v56 = vadd.f32 %v1042_v43, %v961_v17  ;;  %v1153_v30 = vpop.f32.mrf.mxu2  ;;  %v965_v22 = vadd.f32 %v964_v3, %v8770_v28 }
 0x168   : > { %v1154_v34 = vadd.f32 %v1153_v30, %v1043_v56  ;;  %1375 = vmatmul.f32.gmra.mxu0 %v8565_v62  ;;  %1473 = vmatmul.f32.gmra.mxu1 %v8555_v58 }
 0x169   : > { %1665 = vmatmul.f32.gmra.mxu3 %v8557_v59 }
 0x16a   : > { %v8893_v20 = vadd.f32 %v1283_v47, %v1154_v34  ;;  %1583 = vmatmul.f32.gmra.mxu2 %v8557_v59 }
 0x16c   : > { %v1287_v32 = vpop.f32.mrf.mxu3 }
 0x16d   : > { %v968_v40 = vpop.f32.mrf.mxu0  ;;  %v1046_v18 = vpop.f32.mrf.mxu1 }
 0x16e   : > { %v1047_v7 = vadd.f32 %v1046_v18, %v965_v22  ;;  %v1161_v36 = vpop.f32.mrf.mxu2  ;;  %v969_v0 = vadd.f32 %v968_v40, %v8776_v42 }
 0x170   : > { %v1162_v6 = vadd.f32 %v1161_v36, %v1047_v7  ;;  %1380 = vmatmul.f32.gmra.mxu0 %v8583_v5  ;;  %1479 = vmatmul.f32.gmra.mxu1 %v8573_v1 }
 0x171   : > { %1669 = vmatmul.f32.gmra.mxu3 %v8575_v2 }
 0x172   : > { %v8900_v11 = vadd.f32 %v1287_v32, %v1162_v6  ;;  %1587 = vmatmul.f32.gmra.mxu2 %v8575_v2 }
 0x174   : > { %v1291_v10 = vpop.f32.mrf.mxu3 }
 0x175   : > { %v972_v28 = vpop.f32.mrf.mxu0  ;;  %v1050_v21 = vpop.f32.mrf.mxu1 }
 0x176   : > { %v1051_v49 = vadd.f32 %v1050_v21, %v969_v0  ;;  %v1169_v17 = vpop.f32.mrf.mxu2  ;;  %v973_v43 = vadd.f32 %v972_v28, %v8782_v53 }
 0x178   : > { %v1170_v47 = vadd.f32 %v1169_v17, %v1051_v49  ;;  %1385 = vmatmul.f32.gmra.mxu0 %v8601_v12  ;;  %1485 = vmatmul.f32.gmra.mxu1 %v8591_v8 }
 0x179   : > { %1673 = vmatmul.f32.gmra.mxu3 %v8593_v9 }
 0x17a   : > { %v8907_v3 = vadd.f32 %v1291_v10, %v1170_v47  ;;  %1591 = vmatmul.f32.gmra.mxu2 %v8593_v9 }
 0x17c   : > { %v1295_v56 = vpop.f32.mrf.mxu3 }
 0x17d   : > { %v976_v42 = vpop.f32.mrf.mxu0  ;;  %v1054_v30 = vpop.f32.mrf.mxu1 }
 0x17e   : > { %v1055_v34 = vadd.f32 %v1054_v30, %v973_v43  ;;  %v1177_v22 = vpop.f32.mrf.mxu2  ;;  %v977_v18 = vadd.f32 %v976_v42, %v8788_v27  ;;  %v13562_v30 = vld [vmem:[#allocation31_spill] sm:$0xff] }
 0x180   : > { %v1178_v32 = vadd.f32 %v1177_v22, %v1055_v34  ;;  %1390 = vmatmul.f32.gmra.mxu0 %v8619_v19  ;;  %1491 = vmatmul.f32.gmra.mxu1 %v8609_v15 }
 0x181   : > { %1677 = vmatmul.f32.gmra.mxu3 %v8611_v16 }
 0x182   : > { %v8914_v40 = vadd.f32 %v1295_v56, %v1178_v32  ;;  %1595 = vmatmul.f32.gmra.mxu2 %v8611_v16 }
 0x184   : > { %v1299_v7 = vpop.f32.mrf.mxu3 }
 0x185   : > { %v980_v53 = vpop.f32.mrf.mxu0  ;;  %v1058_v36 = vpop.f32.mrf.mxu1 }
 0x186   : > { %v1059_v6 = vadd.f32 %v1058_v36, %v977_v18  ;;  %v1185_v0 = vpop.f32.mrf.mxu2  ;;  %v981_v21 = vadd.f32 %v980_v53, %v8794_v24  ;;  %v13563_v36 = vld [vmem:[#allocation21_spill] sm:$0xff] }
 0x188   : > { %v1186_v10 = vadd.f32 %v1185_v0, %v1059_v6  ;;  %1395 = vmatmul.f32.gmra.mxu0 %v8637_v31  ;;  %1497 = vmatmul.f32.gmra.mxu1 %v8627_v23  ;;  %v13564_v6 = vld [vmem:[#allocation20_spill] sm:$0xff] }
 0x189   : > { %1681 = vmatmul.f32.gmra.mxu3 %v8629_v26 }
 0x18a   : > { %v8921_v28 = vadd.f32 %v1299_v7, %v1186_v10  ;;  %1599 = vmatmul.f32.gmra.mxu2 %v8629_v26  ;;  %v8096_v10 = vld [vmem:[%s13233_s1 + $0x8] sm:$0xf] }
 0x18c   : > { %13560 = vst [vmem:[#allocation39_spill] sm:$0xff] %v8921_v28  ;;  %v1303_v49 = vpop.f32.mrf.mxu3  ;;  %v13570_v28 = vld [vmem:[#allocation27_spill] sm:$0xff] }
 0x18d   : > { %v984_v27 = vpop.f32.mrf.mxu0  ;;  %v1062_v17 = vpop.f32.mrf.mxu1 }
 0x18e   : > { %v1063_v47 = vadd.f32 %v1062_v17, %v981_v21  ;;  %v1193_v43 = vpop.f32.mrf.mxu2  ;;  %v985_v34 = vadd.f32 %v984_v27, %v13562_v30  ;;  %v13566_v21 = vld [vmem:[#allocation32_spill] sm:$0xff]  ;;  %v1712_v17 = vsel %vm474_vm0, %v8096_v10, 0 }
 0x190   : > { %v1194_v56 = vadd.f32 %v1193_v43, %v1063_v47  ;;  %1400 = vmatmul.f32.gmra.mxu0 %v8655_v46  ;;  %1503 = vmatmul.f32.gmra.mxu1 %v8645_v35 }
 0x191   : > { %1685 = vmatmul.f32.gmra.mxu3 %v8647_v39 }
 0x192   : > { %v8928_v42 = vadd.f32 %v1303_v49, %v1194_v56  ;;  %1603 = vmatmul.f32.gmra.mxu2 %v8647_v39  ;;  %v1729_v56 = vand.u32 4294901760, %v1712_v17 }
 0x194   : > { %13561 = vst [vmem:[#allocation40_spill] sm:$0xff] %v8928_v42  ;;  %v1307_v22 = vpop.f32.mrf.mxu3  ;;  %1730 = vmatpush.msrb.mxu0 %v1729_v56  ;;  %2061 = vmatpush.msrb.mxu3 %v1729_v56 }
 0x195   : > { %v988_v24 = vpop.f32.mrf.mxu0  ;;  %v1066_v32 = vpop.f32.mrf.mxu1 }
 0x196   : > { %v1067_v18 = vadd.f32 %v1066_v32, %v985_v34  ;;  %v1201_v7 = vpop.f32.mrf.mxu2  ;;  %v989_v49 = vadd.f32 %v988_v24, %v13566_v21  ;;  %v1876_v32 = vsub.f32 %v1712_v17, %v1729_v56 }
 0x198   : > { %v1202_v53 = vadd.f32 %v1201_v7, %v1067_v18  ;;  %1405 = vmatmul.f32.gmra.mxu0 %v13563_v36  ;;  %1509 = vmatmul.f32.gmra.mxu1 %v13564_v6  ;;  %v13567_v18 = vld [vmem:[#allocation24_spill] sm:$0xff]  ;;  %v13568_v7 = vld [vmem:[#allocation23_spill] sm:$0xff]  ;;  %v1877_v24 = vand.u32 4294901760, %v1876_v32 }
 0x199   : > { %1689 = vmatmul.f32.gmra.mxu3 %v8665_v54  ;;  %1963 = vmatpush.msrb.mxu2 %v1876_v32 }
 0x19a   : > { %v8935_v0 = vadd.f32 %v1307_v22, %v1202_v53  ;;  %1607 = vmatmul.f32.gmra.mxu2 %v8665_v54  ;;  %v1878_v10 = vsub.f32 %v1876_v32, %v1877_v24  ;;  %2177 = vmatpush.msra.mxu0 %v1877_v24 }
 0x19c   : > { %13565 = vst [vmem:[#allocation31_spill] sm:$0xff] %v8935_v0  ;;  %v1311_v27 = vpop.f32.mrf.mxu3 }
 0x19d   : > { %v992_v47 = vpop.f32.mrf.mxu0  ;;  %v1070_v43 = vpop.f32.mrf.mxu1 }
 0x19e   : > { %v1071_v30 = vadd.f32 %v1070_v43, %v989_v49  ;;  %v1209_v34 = vpop.f32.mrf.mxu2  ;;  %v993_v21 = vadd.f32 %v992_v47, %v8826_v33 }
 0x1a0   : > { %v1210_v22 = vadd.f32 %v1209_v34, %v1071_v30  ;;  %1410 = vmatmul.f32.gmra.mxu0 %v13567_v18  ;;  %1515 = vmatmul.f32.gmra.mxu1 %v13568_v7  ;;  %v1879_v30 = vand.u32 4294901760, %v1878_v10  ;;  %v13571_v18 = vld [vmem:[#allocation26_spill] sm:$0xff] }
 0x1a1   : > { %1693 = vmatmul.f32.gmra.mxu3 %v8687_v13 }
 0x1a2   : > { %v8946_v53 = vadd.f32 %v1311_v27, %v1210_v22  ;;  %1611 = vmatmul.f32.gmra.mxu2 %v8687_v13  ;;  %1880 = vmatpush.msrb.mxu1 %v1879_v30 }
 0x1a4   : > { %13569 = vst [vmem:[#allocation21_spill] sm:$0xff] %v8946_v53  ;;  %v1315_v49 = vpop.f32.mrf.mxu3  ;;  %2259 = vmatpush.msra.mxu1 %v1729_v56 }
 0x1a5   : > { %v996_v17 = vpop.f32.mrf.mxu0  ;;  %v1074_v43 = vpop.f32.mrf.mxu1 }
 0x1a6   : > { %v1075_v34 = vadd.f32 %v1074_v43, %v993_v21  ;;  %v1217_v0 = vpop.f32.mrf.mxu2  ;;  %v997_v33 = vadd.f32 %v996_v17, %v8842_v57  ;;  %v13574_v43 = vld [vmem:[#allocation29_spill] sm:$0xff] }
 0x1a8   : > { %v1218_v42 = vadd.f32 %v1217_v0, %v1075_v34  ;;  %1415 = vmatmul.f32.gmra.mxu0 %v13570_v28  ;;  %1521 = vmatmul.f32.gmra.mxu1 %v13571_v18  ;;  %v13573_v0 = vld [vmem:[#allocation33_spill] sm:$0xff] }
 0x1a9   : > { %1697 = vmatmul.f32.gmra.mxu3 %v8705_v60 }
 0x1aa   : > { %v8953_v27 = vadd.f32 %v1315_v49, %v1218_v42  ;;  %1615 = vmatmul.f32.gmra.mxu2 %v8705_v60 }
 0x1ac   : > { %13572 = vst [vmem:[#allocation20_spill] sm:$0xff] %v8953_v27  ;;  %v1319_v47 = vpop.f32.mrf.mxu3 }
 0x1ad   : > { %v1000_v32 = vpop.f32.mrf.mxu0  ;;  %v1078_v22 = vpop.f32.mrf.mxu1 }
 0x1ae   : > { %v1079_v24 = vadd.f32 %v1078_v22, %v997_v33  ;;  %v1225_v10 = vpop.f32.mrf.mxu2  ;;  %v1001_v42 = vadd.f32 %v1000_v32, %v8852_v14  ;;  %v13576_v22 = vld [vmem:[#allocation35_spill] sm:$0xff] }
 0x1b0   : > { %v1226_v21 = vadd.f32 %v1225_v10, %v1079_v24  ;;  %1420 = vmatmul.f32.gmra.mxu0 %v13573_v0  ;;  %1527 = vmatmul.f32.gmra.mxu1 %v13574_v43  ;;  %v13577_v24 = vld [vmem:[#allocation34_spill] sm:$0xff] }
 0x1b1   : > { %1701 = vmatmul.f32.gmra.mxu3 %v8805_v63 }
 0x1b2   : > { %v8960_v30 = vadd.f32 %v1319_v47, %v1226_v21  ;;  %1619 = vmatmul.f32.gmra.mxu2 %v8805_v63 }
 0x1b4   : > { %13575 = vst [vmem:[#allocation32_spill] sm:$0xff] %v8960_v30  ;;  %v1323_v56 = vpop.f32.mrf.mxu3 }
 0x1b5   : > { %v1004_v57 = vpop.f32.mrf.mxu0  ;;  %v1082_v49 = vpop.f32.mrf.mxu1 }
 0x1b6   : > { %v1083_v17 = vadd.f32 %v1082_v49, %v1001_v42  ;;  %v1233_v34 = vpop.f32.mrf.mxu2  ;;  %v1005_v47 = vadd.f32 %v1004_v57, %v8858_v50  ;;  %v13579_v49 = vld [vmem:[#allocation37_spill] sm:$0xff] }
 0x1b8   : > { %v1234_v33 = vadd.f32 %v1233_v34, %v1083_v17  ;;  %1425 = vmatmul.f32.gmra.mxu0 %v13576_v22  ;;  %1533 = vmatmul.f32.gmra.mxu1 %v13577_v24  ;;  %v13580_v17 = vld [vmem:[#allocation12_spill] sm:$0xff] }
 0x1b9   : > { %1705 = vmatmul.f32.gmra.mxu3 %v8821_v61 }
 0x1ba   : > { %v8967_v10 = vadd.f32 %v1323_v56, %v1234_v33  ;;  %1623 = vmatmul.f32.gmra.mxu2 %v8821_v61 }
 0x1bc   : > { %13578 = vst [vmem:[#allocation23_spill] sm:$0xff] %v8967_v10  ;;  %v1327_v21 = vpop.f32.mrf.mxu3 }
 0x1bd   : > { %v1086_v14 = vpop.f32.mrf.mxu1  ;;  %v1351_v32 = vpop.f32.mrf.mxu0 }
 0x1be   : > { %v1087_v30 = vadd.f32 %v1086_v14, %v1005_v47  ;;  %v1241_v27 = vpop.f32.mrf.mxu2  ;;  %v1352_v56 = vadd.f32 %v1351_v32, %v8865_v25  ;;  %v13582_v14 = vld [vmem:[#allocation13_spill] sm:$0xff] }
 0x1c0   : > { %v1242_v42 = vadd.f32 %v1241_v27, %v1087_v30  ;;  %1539 = vmatmul.f32.gmra.mxu1 %v13579_v49  ;;  %1736 = vmatmul.f32.vlgmr.msrb.gmra.mxu0 %v13580_v17  ;;  %v13583_v17 = vld [vmem:[#allocation14_spill] sm:$0xff] }
 0x1c1   : > { %2065 = vmatmul.f32.vlgmr.msrb.gmra.mxu3 %v8519_v44 }
 0x1c2   : > { %v8974_v34 = vadd.f32 %v1327_v21, %v1242_v42  ;;  %1966 = vmatmul.f32.vlgmr.msrb.gmra.mxu2 %v8511_v41 }
 0x1c4   : > { %13581 = vst [vmem:[#allocation27_spill] sm:$0xff] %v8974_v34  ;;  %v1646_v33 = vpop.f32.mrf.mxu3 }
 0x1c5   : > { %v1356_v50 = vpop.f32.mrf.mxu0  ;;  %v1450_v57 = vpop.f32.mrf.mxu1 }
 0x1c6   : > { %v1451_v10 = vadd.f32 %v1450_v57, %v1352_v56  ;;  %v1564_v53 = vpop.f32.mrf.mxu2  ;;  %v1357_v41 = vadd.f32 %v1356_v50, %v8872_v29  ;;  %v13584_v57 = vld [vmem:[#allocation15_spill] sm:$0xff] }
 0x1c8   : > { %v1565_v47 = vadd.f32 %v1564_v53, %v1451_v10  ;;  %1744 = vmatmul.f32.gmra.mxu0 %v13582_v14  ;;  %1882 = vmatmul.f32.vlgmr.msrb.gmra.mxu1 %v8503_v38 }
 0x1c9   : > { %2071 = vmatmul.f32.gmra.mxu3 %v8537_v51 }
 0x1ca   : > { %v8981_v27 = vadd.f32 %v1646_v33, %v1565_v47  ;;  %1971 = vmatmul.f32.gmra.mxu2 %v8529_v48 }
 0x1cc   : > { %v1650_v44 = vpop.f32.mrf.mxu3 }
 0x1cd   : > { %v1361_v25 = vpop.f32.mrf.mxu0  ;;  %v1456_v30 = vpop.f32.mrf.mxu1 }
 0x1ce   : > { %v1457_v21 = vadd.f32 %v1456_v30, %v1357_v41  ;;  %v1568_v32 = vpop.f32.mrf.mxu2  ;;  %v1362_v48 = vadd.f32 %v1361_v25, %v8879_v37  ;;  %v13585_v30 = vld [vmem:[#allocation16_spill] sm:$0xff] }
 0x1d0   : > { %v1569_v42 = vadd.f32 %v1568_v32, %v1457_v21  ;;  %1752 = vmatmul.f32.gmra.mxu0 %v13583_v17  ;;  %1886 = vmatmul.f32.gmra.mxu1 %v8521_v45 }
 0x1d1   : > { %2077 = vmatmul.f32.gmra.mxu3 %v8555_v58 }
 0x1d2   : > { %v8988_v53 = vadd.f32 %v1650_v44, %v1569_v42  ;;  %1976 = vmatmul.f32.gmra.mxu2 %v8547_v55 }
 0x1d4   : > { %v1654_v51 = vpop.f32.mrf.mxu3 }
 0x1d5   : > { %v1366_v29 = vpop.f32.mrf.mxu0  ;;  %v1462_v10 = vpop.f32.mrf.mxu1 }
 0x1d6   : > { %v1463_v56 = vadd.f32 %v1462_v10, %v1362_v48  ;;  %v1572_v33 = vpop.f32.mrf.mxu2  ;;  %v1367_v55 = vadd.f32 %v1366_v29, %v8886_v4 }
 0x1d8   : > { %v1573_v50 = vadd.f32 %v1572_v33, %v1463_v56  ;;  %1760 = vmatmul.f32.gmra.mxu0 %v13584_v57  ;;  %1890 = vmatmul.f32.gmra.mxu1 %v8539_v52  ;;  %v13588_v57 = vld [vmem:[#allocation18_spill] sm:$0xff] }
 0x1d9   : > { %2083 = vmatmul.f32.gmra.mxu3 %v8573_v1 }
 0x1da   : > { %v8995_v47 = vadd.f32 %v1654_v51, %v1573_v50  ;;  %1981 = vmatmul.f32.gmra.mxu2 %v8565_v62  ;;  %v13586_v51 = vld [vmem:[#allocation17_spill] sm:$0xff] }
 0x1dc   : > { %v1658_v58 = vpop.f32.mrf.mxu3 }
 0x1dd   : > { %v1371_v37 = vpop.f32.mrf.mxu0  ;;  %v1468_v14 = vpop.f32.mrf.mxu1 }
 0x1de   : > { %v1469_v41 = vadd.f32 %v1468_v14, %v1367_v55  ;;  %v1576_v44 = vpop.f32.mrf.mxu2  ;;  %v1372_v62 = vadd.f32 %v1371_v37, %v8893_v20 }
 0x1e0   : > { %v1577_v25 = vadd.f32 %v1576_v44, %v1469_v41  ;;  %1768 = vmatmul.f32.gmra.mxu0 %v13585_v30  ;;  %1894 = vmatmul.f32.gmra.mxu1 %v8557_v59  ;;  %v13590_v44 = vld [vmem:[#allocation19_spill] sm:$0xff] }
 0x1e1   : > { %2089 = vmatmul.f32.gmra.mxu3 %v8591_v8 }
 0x1e2   : > { %v9002_v21 = vadd.f32 %v1658_v58, %v1577_v25  ;;  %1986 = vmatmul.f32.gmra.mxu2 %v8583_v5 }
 0x1e4   : > { %v1662_v1 = vpop.f32.mrf.mxu3 }
 0x1e5   : > { %v1376_v4 = vpop.f32.mrf.mxu0  ;;  %v1474_v32 = vpop.f32.mrf.mxu1 }
 0x1e6   : > { %v1475_v42 = vadd.f32 %v1474_v32, %v1372_v62  ;;  %v1580_v17 = vpop.f32.mrf.mxu2  ;;  %v1377_v5 = vadd.f32 %v1376_v4, %v8900_v11  ;;  %v13593_v32 = vld [vmem:[#allocation22_spill] sm:$0xff] }
 0x1e8   : > { %v1581_v48 = vadd.f32 %v1580_v17, %v1475_v42  ;;  %1776 = vmatmul.f32.gmra.mxu0 %v13586_v51  ;;  %1898 = vmatmul.f32.gmra.mxu1 %v8575_v2  ;;  %v13597_v42 = vld [vmem:[#allocation25_spill] sm:$0xff] }
 0x1e9   : > { %2095 = vmatmul.f32.gmra.mxu3 %v8609_v15 }
 0x1ea   : > { %v9009_v29 = vadd.f32 %v1662_v1, %v1581_v48  ;;  %1991 = vmatmul.f32.gmra.mxu2 %v8601_v12 }
 0x1ec   : > { %13587 = vst [vmem:[#allocation26_spill] sm:$0xff] %v9009_v29  ;;  %v1666_v8 = vpop.f32.mrf.mxu3 }
 0x1ed   : > { %v1381_v20 = vpop.f32.mrf.mxu0  ;;  %v1480_v10 = vpop.f32.mrf.mxu1 }
 0x1ee   : > { %v1481_v56 = vadd.f32 %v1480_v10, %v1377_v5  ;;  %v1584_v33 = vpop.f32.mrf.mxu2  ;;  %v1382_v12 = vadd.f32 %v1381_v20, %v8907_v3  ;;  %v13607_v20 = vld [vmem:[#allocation36_spill] sm:$0xff] }
 0x1f0   : > { %v1585_v50 = vadd.f32 %v1584_v33, %v1481_v56  ;;  %1784 = vmatmul.f32.gmra.mxu0 %v13588_v57  ;;  %1902 = vmatmul.f32.gmra.mxu1 %v8593_v9  ;;  %v13610_v56 = vld [vmem:[#allocation38_spill] sm:$0xff]  ;;  %v13613_v33 = vmov 0.0  }
 0x1f1   : > { %2101 = vmatmul.f32.gmra.mxu3 %v8627_v23 }
 0x1f2   : > { %v9016_v55 = vadd.f32 %v1666_v8, %v1585_v50  ;;  %1996 = vmatmul.f32.gmra.mxu2 %v8619_v19  ;;  %v13604_v8 = vld [vmem:[#allocation30_spill] sm:$0xff] }
 0x1f4   : > { %13589 = vst [vmem:[#allocation33_spill] sm:$0xff] %v9016_v55  ;;  %v1670_v15 = vpop.f32.mrf.mxu3 }
 0x1f5   : > { %v1386_v11 = vpop.f32.mrf.mxu0  ;;  %v1486_v58 = vpop.f32.mrf.mxu1 }
 0x1f6   : > { %v1487_v37 = vadd.f32 %v1486_v58, %v1382_v12  ;;  %v1588_v14 = vpop.f32.mrf.mxu2  ;;  %v1387_v19 = vadd.f32 %v1386_v11, %v8914_v40 }
 0x1f8   : > { %v1589_v41 = vadd.f32 %v1588_v14, %v1487_v37  ;;  %1792 = vmatmul.f32.gmra.mxu0 %v13590_v44  ;;  %1906 = vmatmul.f32.gmra.mxu1 %v8611_v16 }
 0x1f9   : > { %2107 = vmatmul.f32.gmra.mxu3 %v8645_v35 }
 0x1fa   : > { %v9023_v25 = vadd.f32 %v1670_v15, %v1589_v41  ;;  %2001 = vmatmul.f32.gmra.mxu2 %v8637_v31 }
 0x1fc   : > { %13591 = vst [vmem:[#allocation29_spill] sm:$0xff] %v9023_v25  ;;  %v1674_v1 = vpop.f32.mrf.mxu3 }
 0x1fd   : > { %v9027_v23 = vpop.f32.mrf.mxu0  ;;  %v1492_v3 = vpop.f32.mrf.mxu1 }
 0x1fe   : > { %13592 = vst [vmem:[#allocation35_spill] sm:$0xff] %v9027_v23  ;;  %v1493_v30 = vadd.f32 %v1492_v3, %v1387_v19  ;;  %v1592_v62 = vpop.f32.mrf.mxu2 }
 0x200   : > { %v1593_v4 = vadd.f32 %v1592_v62, %v1493_v30  ;;  %1800 = vmatmul.f32.gmra.mxu0 %v13593_v32  ;;  %1910 = vmatmul.f32.gmra.mxu1 %v8629_v26 }
 0x201   : > { %2113 = vmatmul.f32.gmra.mxu3 %v13564_v6  ;;  %v13600_v6 = vld [vmem:[#allocation28_spill] sm:$0xff] }
 0x202   : > { %v9032_v35 = vadd.f32 %v1674_v1, %v1593_v4  ;;  %2006 = vmatmul.f32.gmra.mxu2 %v8655_v46  ;;  %v13601_v46 = vld [vmem:[#allocation24_spill] sm:$0xff] }
 0x204   : > { %13594 = vst [vmem:[#allocation34_spill] sm:$0xff] %v9032_v35  ;;  %v9109_v58 = vpop.f32.mrf.mxu3 }
 0x205   : > { %v9035_v31 = vpop.f32.mrf.mxu0  ;;  %v9037_v40 = vpop.f32.mrf.mxu1  ;;  %13618 = vst [vmem:[#allocation41_spill] sm:$0xff] %v9109_v58 }
 0x206   : > { %13595 = vst [vmem:[#allocation37_spill] sm:$0xff] %v9035_v31  ;;  %v9103_v12 = vpop.f32.mrf.mxu2 }
 0x207   : > { %13596 = vst [vmem:[#allocation12_spill] sm:$0xff] %v9037_v40  ;;  %v2398_v40 = vld [vmem:[#allocation3 + $0x20] sm:$0xff] }
 0x208   : > { %1808 = vmatmul.f32.gmra.mxu0 %v13597_v42  ;;  %1914 = vmatmul.f32.gmra.mxu1 %v8647_v39  ;;  %13617 = vst [vmem:[#allocation38_spill] sm:$0xff] %v9103_v12 }
 0x209   : > { %2119 = vmatmul.f32.gmra.mxu3 %v13568_v7 }
 0x20a   : > { %2011 = vmatmul.f32.gmra.mxu2 %v13563_v36 }
 0x20d   : > { %v9043_v17 = vpop.f32.mrf.mxu0  ;;  %v9045_v48 = vpop.f32.mrf.mxu1 }
 0x20e   : > { %13598 = vst [vmem:[#allocation13_spill] sm:$0xff] %v9043_v17  ;;  %v9117_v41 = vpop.f32.mrf.mxu2 }
 0x20f   : > { %13599 = vst [vmem:[#allocation14_spill] sm:$0xff] %v9045_v48 }
 0x210   : > { %1816 = vmatmul.f32.gmra.mxu0 %v13600_v6  ;;  %1918 = vmatmul.f32.gmra.mxu1 %v8665_v54  ;;  %13619 = vst [vmem:[#allocation42_spill] sm:$0xff] %v9117_v41 }
 0x211   : > { %2125 = vmatmul.f32.gmra.mxu3 %v13571_v18 }
 0x212   : > { %2016 = vmatmul.f32.gmra.mxu2 %v13601_v46  ;;  %v2409_v46 = vld [vmem:[#allocation3 + $0x78] sm:$0xff] }
 0x215   : > { %v9051_v51 = vpop.f32.mrf.mxu0  ;;  %v9053_v5 = vpop.f32.mrf.mxu1 }
 0x216   : > { %13602 = vst [vmem:[#allocation15_spill] sm:$0xff] %v9051_v51  ;;  %v9127_v3 = vpop.f32.mrf.mxu2 }
 0x217   : > { %13603 = vst [vmem:[#allocation16_spill] sm:$0xff] %v9053_v5  ;;  %v2400_v5 = vld [vmem:[#allocation3 + $0x30] sm:$0xff] }
 0x218   : > { %1824 = vmatmul.f32.gmra.mxu0 %v13604_v8  ;;  %1922 = vmatmul.f32.gmra.mxu1 %v8687_v13  ;;  %13621 = vst [vmem:[#allocation44_spill] sm:$0xff] %v9127_v3 }
 0x219   : > { %2131 = vmatmul.f32.gmra.mxu3 %v13574_v43 }
 0x21a   : > { %2021 = vmatmul.f32.gmra.mxu2 %v13570_v28 }
 0x21d   : > { %v9059_v36 = vpop.f32.mrf.mxu0  ;;  %v9061_v7 = vpop.f32.mrf.mxu1 }
 0x21e   : > { %13605 = vst [vmem:[#allocation17_spill] sm:$0xff] %v9059_v36 }
 0x21f   : > { %13606 = vst [vmem:[#allocation18_spill] sm:$0xff] %v9061_v7 }
 0x220   : > { %1832 = vmatmul.f32.gmra.mxu0 %v13607_v20  ;;  %1926 = vmatmul.f32.gmra.mxu1 %v8705_v60  ;;  %v2408_v20 = vld [vmem:[#allocation3 + $0x70] sm:$0xff] }
 0x221   : > { %2137 = vmatmul.f32.gmra.mxu3 %v13577_v24 }
 0x222   : > { %2026 = vmatmul.f32.gmra.mxu2 %v13573_v0 }
 0x225   : > { %v9067_v18 = vpop.f32.mrf.mxu0  ;;  %v9069_v10 = vpop.f32.mrf.mxu1 }
 0x226   : > { %13608 = vst [vmem:[#allocation19_spill] sm:$0xff] %v9067_v18 }
 0x227   : > { %13609 = vst [vmem:[#allocation22_spill] sm:$0xff] %v9069_v10  ;;  %v2405_v10 = vld [vmem:[#allocation3 + $0x58] sm:$0xff] }
 0x228   : > { %1840 = vmatmul.f32.gmra.mxu0 %v13610_v56  ;;  %1930 = vmatmul.f32.gmra.mxu1 %v8805_v63 }
 0x229   : > { %2143 = vmatmul.f32.gmra.mxu3 %v13579_v49 }
 0x22a   : > { %2031 = vmatmul.f32.gmra.mxu2 %v13576_v22 }
 0x22d   : > { %v9075_v28 = vpop.f32.mrf.mxu0  ;;  %v9077_v43 = vpop.f32.mrf.mxu1 }
 0x22e   : > { %13611 = vst [vmem:[#allocation25_spill] sm:$0xff] %v9075_v28 }
 0x22f   : > { %13612 = vst [vmem:[#allocation28_spill] sm:$0xff] %v9077_v43 }
 0x230   : > { %1848 = vmatmul.f32.gmra.mxu0 %v13613_v33  ;;  %1934 = vmatmul.f32.gmra.mxu1 %v8821_v61 }
 0x231   : > { %2149 = vmatmul.f32.gmra.mxu3 %v13613_v33 }
 0x232   : > { %2036 = vmatmul.f32.gmra.mxu2 %v13613_v33 }
 0x235   : > { %v9083_v0 = vpop.f32.mrf.mxu0  ;;  %v9085_v24 = vpop.f32.mrf.mxu1 }
 0x236   : > { %13614 = vst [vmem:[#allocation24_spill] sm:$0xff] %v9083_v0 }
 0x237   : > { %13615 = vst [vmem:[#allocation30_spill] sm:$0xff] %v9085_v24 }
 0x238   : > { %1856 = vmatmul.f32.gmra.mxu0 %v13613_v33  ;;  %1938 = vmatmul.f32.gmra.mxu1 %v13613_v33 }
 0x239   : > { %2155 = vmatmul.f32.gmra.mxu3 %v13613_v33 }
 0x23a   : > { %2041 = vmatmul.f32.gmra.mxu2 %v13613_v33 }
 0x23d   : > { %v9091_v22 = vpop.f32.mrf.mxu1  ;;  %v9093_v49 = vpop.f32.mrf.mxu0 }
 0x23e   : > { %13616 = vst [vmem:[#allocation36_spill] sm:$0xff] %v9091_v22  ;;  %v2407_v22 = vld [vmem:[#allocation3 + $0x68] sm:$0xff] }
 0x23f   : > { %v9173_v24 = vand.u32 4294901760, %v2407_v22 }
 0x240   : > { %1942 = vmatmul.f32.gmra.mxu1 %v13613_v33  ;;  %2179 = vmatmul.f32.vlgmr.msra.gmra.mxu0 %v8503_v38 }
 0x245   : > { %v9097_v50 = vpop.f32.mrf.mxu0  ;;  %v9099_v57 = vpop.f32.mrf.mxu1 }
 0x248   : > { %2183 = vmatmul.f32.gmra.mxu0 %v8521_v45  ;;  %2261 = vmatmul.f32.vlgmr.msra.gmra.mxu1 %v8503_v38  ;;  %v9121_v38 = vpop.f32.mrf.mxu3 }
 0x249   : > { %13620 = vst [vmem:[#allocation43_spill] sm:$0xff] %v9121_v38 }
 0x24d   : > { %v9105_v15 = vpop.f32.mrf.mxu0  ;;  %v9107_v11 = vpop.f32.mrf.mxu1 }
 0x250   : > { %2187 = vmatmul.f32.gmra.mxu0 %v8539_v52  ;;  %2265 = vmatmul.f32.gmra.mxu1 %v8521_v45  ;;  %v9131_v45 = vpop.f32.mrf.mxu3 }
 0x251   : > { %13622 = vst [vmem:[#allocation45_spill] sm:$0xff] %v9131_v45 }
 0x255   : > { %v9113_v37 = vpop.f32.mrf.mxu0  ;;  %v9115_v14 = vpop.f32.mrf.mxu1 }
 0x258   : > { %2191 = vmatmul.f32.gmra.mxu0 %v8557_v59  ;;  %2269 = vmatmul.f32.gmra.mxu1 %v8539_v52  ;;  %v9139_v52 = vpop.f32.mrf.mxu2  ;;  %v9145_v32 = vpop.f32.mrf.mxu3 }
 0x259   : > { %13623 = vst [vmem:[#allocation46_spill] sm:$0xff] %v9139_v52 }
 0x25a   : > { %13625 = vst [vmem:[#allocation48_spill] sm:$0xff] %v9145_v32 }
 0x25d   : > { %v9123_v44 = vpop.f32.mrf.mxu0  ;;  %v9125_v19 = vpop.f32.mrf.mxu1 }
 0x260   : > { %2195 = vmatmul.f32.gmra.mxu0 %v8575_v2  ;;  %2273 = vmatmul.f32.gmra.mxu1 %v8557_v59  ;;  %v9149_v59 = vpop.f32.mrf.mxu2  ;;  %v9157_v8 = vpop.f32.mrf.mxu3 }
 0x261   : > { %13626 = vst [vmem:[#allocation49_spill] sm:$0xff] %v9149_v59 }
 0x262   : > { %13629 = vst [vmem:[#allocation52_spill] sm:$0xff] %v9157_v8  ;;  %v9186_v8 = vsub.f32 %v2407_v22, %v9173_v24 }
 0x264   : > { %v13280_v45 = vand.u32 4294901760, %v9186_v8 }
 0x265   : > { %v9133_v30 = vpop.f32.mrf.mxu0  ;;  %v9135_v62 = vpop.f32.mrf.mxu1 }
 0x268   : > { %2199 = vmatmul.f32.gmra.mxu0 %v8593_v9  ;;  %2277 = vmatmul.f32.gmra.mxu1 %v8575_v2  ;;  %v9155_v2 = vand.u32 4294901760, %v2409_v46  ;;  %v9192_v59 = vpop.f32.mrf.mxu2  ;;  %v9215_v58 = vpop.f32.mrf.mxu3 }
 0x269   : > { %13632 = vst [vmem:[#allocation55_spill] sm:$0xff] %v9192_v59  ;;  %v9206_v59 = vand.u32 4294901760, %v2405_v10 }
 0x26a   : > { %v9162_v56 = vsub.f32 %v2409_v46, %v9155_v2  ;;  %2411 = vmatpush.msra.mxu2 %v9155_v2  ;;  %2846 = vmatpush.msrb.mxu1 %v9155_v2  ;;  %13633 = vst [vmem:[#allocation56_spill] sm:$0xff] %v9215_v58 }
 0x26b   : > { %v9218_v52 = vsub.f32 %v2405_v10, %v9206_v59  ;;  %v2402_v10 = vld [vmem:[#allocation3 + $0x40] sm:$0xff] }
 0x26c   : > { %v13278_v0 = vand.u32 4294901760, %v9162_v56  ;;  %2722 = vmatpush.msrb.mxu0 %v9162_v56  ;;  %v9241_v41 = vand.u32 4294901760, %v2402_v10 }
 0x26d   : > { %v9141_v1 = vpop.f32.mrf.mxu0  ;;  %v9143_v4 = vpop.f32.mrf.mxu1  ;;  %v13282_v58 = vand.u32 4294901760, %v9218_v52 }
 0x26e   : > { %13624 = vst [vmem:[#allocation47_spill] sm:$0xff] %v9141_v1  ;;  %v2564_v43 = vsub.f32 %v9162_v56, %v13278_v0 }
 0x26f   : > { %v2588_v12 = vsub.f32 %v9218_v52, %v13282_v58 }
 0x270   : > { %2203 = vmatmul.f32.gmra.mxu0 %v8611_v16  ;;  %2281 = vmatmul.f32.gmra.mxu1 %v8593_v9  ;;  %v9164_v9 = vand.u32 4294901760, %v2408_v20  ;;  %v2565_v32 = vand.u32 4294901760, %v2564_v43  ;;  %v2404_v43 = vld [vmem:[#allocation3 + $0x50] sm:$0xff]  ;;  %v9259_v58 = vpop.f32.mrf.mxu2 }
 0x271   : > { %v9213_v38 = vand.u32 4294901760, %v2404_v43  ;;  %13636 = vst [vmem:[#allocation59_spill] sm:$0xff] %v9259_v58  ;;  %v9272_v58 = vand.u32 4294901760, %v2400_v5 }
 0x272   : > { %v9170_v34 = vsub.f32 %v2408_v20, %v9164_v9  ;;  %2413 = vmatpush.msra.mxu2 %v9164_v9  ;;  %2848 = vmatpush.msrb.mxu1 %v9164_v9 }
 0x273   : > { %2566 = vmatpush.msra.mxu3 %v2565_v32 }
 0x274   : > { %v13279_v20 = vand.u32 4294901760, %v9170_v34  ;;  %2725 = vmatpush.msrb.mxu0 %v9170_v34  ;;  %2415 = vmatpush.msra.mxu2 %v9173_v24 }
 0x275   : > { %v9151_v42 = vpop.f32.mrf.mxu0  ;;  %v9153_v6 = vpop.f32.mrf.mxu1  ;;  %2850 = vmatpush.msrb.mxu1 %v9173_v24 }
 0x276   : > { %13627 = vst [vmem:[#allocation50_spill] sm:$0xff] %v9151_v42  ;;  %v2570_v0 = vsub.f32 %v9170_v34, %v13279_v20  ;;  %2728 = vmatpush.msrb.mxu0 %v9186_v8  ;;  %v2576_v20 = vsub.f32 %v9186_v8, %v13280_v45  ;;  %v9226_v45 = vsub.f32 %v2404_v43, %v9213_v38 }
 0x277   : > { %13628 = vst [vmem:[#allocation51_spill] sm:$0xff] %v9153_v6 }
 0x278   : > { %2207 = vmatmul.f32.gmra.mxu0 %v8629_v26  ;;  %2285 = vmatmul.f32.gmra.mxu1 %v8611_v16  ;;  %v2406_v16 = vld [vmem:[#allocation3 + $0x60] sm:$0xff]  ;;  %v2571_v36 = vand.u32 4294901760, %v2570_v0  ;;  %v2577_v0 = vand.u32 4294901760, %v2576_v20 }
 0x279   : > { %v9189_v18 = vand.u32 4294901760, %v2406_v16 }
 0x27a   : > { %2572 = vmatpush.msra.mxu3 %v2571_v36 }
 0x27b   : > { %v9200_v22 = vsub.f32 %v2406_v16, %v9189_v18  ;;  %2417 = vmatpush.msra.mxu2 %v9189_v18  ;;  %2852 = vmatpush.msrb.mxu1 %v9189_v18 }
 0x27c   : > { %2578 = vmatpush.msra.mxu3 %v2577_v0 }
 0x27d   : > { %v9177_v46 = vpop.f32.mrf.mxu0  ;;  %v9179_v28 = vpop.f32.mrf.mxu1  ;;  %v13281_v16 = vand.u32 4294901760, %v9200_v22  ;;  %2731 = vmatpush.msrb.mxu0 %v9200_v22  ;;  %2419 = vmatpush.msra.mxu2 %v9206_v59 }
 0x27e   : > { %13630 = vst [vmem:[#allocation53_spill] sm:$0xff] %v9177_v46  ;;  %2854 = vmatpush.msrb.mxu1 %v9206_v59 }
 0x27f   : > { %13631 = vst [vmem:[#allocation54_spill] sm:$0xff] %v9179_v28  ;;  %v2582_v32 = vsub.f32 %v9200_v22, %v13281_v16  ;;  %2734 = vmatpush.msrb.mxu0 %v9218_v52  ;;  %v13283_v16 = vand.u32 4294901760, %v9226_v45  ;;  %2421 = vmatpush.msra.mxu2 %v9213_v38 }
 0x280   : > { %2211 = vmatmul.f32.gmra.mxu0 %v8647_v39  ;;  %2289 = vmatmul.f32.gmra.mxu1 %v8629_v26  ;;  %v2403_v26 = vld [vmem:[#allocation3 + $0x48] sm:$0xff] }
 0x281   : > { %v9228_v3 = vand.u32 4294901760, %v2403_v26  ;;  %v2583_v20 = vand.u32 4294901760, %v2582_v32  ;;  %2737 = vmatpush.msrb.mxu0 %v9226_v45  ;;  %2856 = vmatpush.msrb.mxu1 %v9213_v38  ;;  %v2594_v0 = vsub.f32 %v9226_v45, %v13283_v16  ;;  %v9254_v32 = vsub.f32 %v2402_v10, %v9241_v41 }
 0x283   : > { %v9239_v43 = vsub.f32 %v2403_v26, %v9228_v3  ;;  %2584 = vmatpush.msra.mxu3 %v2583_v20  ;;  %2423 = vmatpush.msra.mxu2 %v9228_v3  ;;  %v2589_v20 = vand.u32 4294901760, %v2588_v12  ;;  %v2595_v51 = vand.u32 4294901760, %v2594_v0  ;;  %v13285_v10 = vand.u32 4294901760, %v9254_v32 }
 0x284   : > { %2858 = vmatpush.msrb.mxu1 %v9228_v3 }
 0x285   : > { %v9233_v35 = vpop.f32.mrf.mxu0  ;;  %v9235_v36 = vpop.f32.mrf.mxu1  ;;  %v13284_v26 = vand.u32 4294901760, %v9239_v43  ;;  %2740 = vmatpush.msrb.mxu0 %v9239_v43  ;;  %2590 = vmatpush.msra.mxu3 %v2589_v20  ;;  %v2606_v0 = vsub.f32 %v9254_v32, %v13285_v10  ;;  %v9286_v20 = vsub.f32 %v2400_v5, %v9272_v58 }
 0x286   : > { %13634 = vst [vmem:[#allocation57_spill] sm:$0xff] %v9233_v35  ;;  %v2401_v35 = vld [vmem:[#allocation3 + $0x38] sm:$0xff]  ;;  %2425 = vmatpush.msra.mxu2 %v9241_v41  ;;  %2860 = vmatpush.msrb.mxu1 %v9241_v41 }
 0x287   : > { %13635 = vst [vmem:[#allocation58_spill] sm:$0xff] %v9235_v36  ;;  %v9256_v7 = vand.u32 4294901760, %v2401_v35  ;;  %v2600_v16 = vsub.f32 %v9239_v43, %v13284_v26  ;;  %2743 = vmatpush.msrb.mxu0 %v9254_v32  ;;  %2596 = vmatpush.msra.mxu3 %v2595_v51  ;;  %v2607_v26 = vand.u32 4294901760, %v2606_v0  ;;  %v9300_v51 = vand.u32 4294901760, %v2398_v40 }
 0x288   : > { %2215 = vmatmul.f32.gmra.mxu0 %v8665_v54  ;;  %2293 = vmatmul.f32.gmra.mxu1 %v8647_v39  ;;  %v2399_v39 = vld [vmem:[#allocation3 + $0x28] sm:$0xff]  ;;  %v13286_v5 = vand.u32 4294901760, %v9286_v20 }
 0x289   : > { %v9269_v48 = vsub.f32 %v2401_v35, %v9256_v7  ;;  %v2601_v12 = vand.u32 4294901760, %v2600_v16  ;;  %v9280_v17 = vand.u32 4294901760, %v2399_v39  ;;  %v9283_v35 = vpop.f32.mrf.mxu3  ;;  %2427 = vmatpush.msra.mxu2 %v9256_v7  ;;  %2862 = vmatpush.msrb.mxu1 %v9256_v7 }
 0x28a   : > { %13637 = vst [vmem:[#allocation60_spill] sm:$0xff] %v9283_v35 }
 0x28b   : > { %v13640_v36 = vand.u32 4294901760, %v9269_v48  ;;  %2746 = vmatpush.msrb.mxu0 %v9269_v48  ;;  %v9298_v35 = vsub.f32 %v2399_v39, %v9280_v17  ;;  %2602 = vmatpush.msra.mxu3 %v2601_v12  ;;  %v2618_v12 = vsub.f32 %v9286_v20, %v13286_v5  ;;  %v2395_v5 = vld [vmem:[#allocation3 + $0x8] sm:$0xff] }
 0x28c   : > { %2429 = vmatpush.msra.mxu2 %v9272_v58  ;;  %2864 = vmatpush.msrb.mxu1 %v9272_v58 }
 0x28d   : > { %v9289_v16 = vpop.f32.mrf.mxu0  ;;  %v9291_v10 = vpop.f32.mrf.mxu1  ;;  %v2612_v46 = vsub.f32 %v9269_v48, %v13640_v36  ;;  %2749 = vmatpush.msrb.mxu0 %v9286_v20  ;;  %v9308_v36 = vsub.f32 %v2398_v40, %v9300_v51  ;;  %2608 = vmatpush.msra.mxu3 %v2607_v26  ;;  %v2619_v28 = vand.u32 4294901760, %v2618_v12  ;;  %v2394_v12 = vld [vmem:[#allocation3] sm:$0xff] }
 0x28e   : > { %13638 = vst [vmem:[#allocation61_spill] sm:$0xff] %v9289_v16  ;;  %v2397_v16 = vld [vmem:[#allocation3 + $0x18] sm:$0xff]  ;;  %2431 = vmatpush.msra.mxu2 %v9280_v17  ;;  %2866 = vmatpush.msrb.mxu1 %v9280_v17  ;;  %v9353_v6 = vand.u32 4294901760, %v2394_v12 }
 0x28f   : > { %13639 = vst [vmem:[#allocation62_spill] sm:$0xff] %v9291_v10  ;;  %v2613_v0 = vand.u32 4294901760, %v2612_v46  ;;  %v13287_v10 = vand.u32 4294901760, %v9298_v35  ;;  %v9310_v39 = vand.u32 4294901760, %v2397_v16  ;;  %v2396_v46 = vld [vmem:[#allocation3 + $0x10] sm:$0xff]  ;;  %v13288_v40 = vand.u32 4294901760, %v9308_v36  ;;  %2752 = vmatpush.msrb.mxu0 %v9298_v35 }
 0x290   : > { %2219 = vmatmul.f32.gmra.mxu0 %v8687_v13  ;;  %2297 = vmatmul.f32.gmra.mxu1 %v8665_v54  ;;  %v9326_v25 = vand.u32 4294901760, %v2396_v46  ;;  %v9328_v54 = vpop.f32.mrf.mxu2 }
 0x291   : > { %v2624_v31 = vsub.f32 %v9298_v35, %v13287_v10  ;;  %v9324_v23 = vsub.f32 %v2397_v16, %v9310_v39  ;;  %13641 = vst [vmem:[#allocation63_spill] sm:$0xff] %v9328_v54  ;;  %2614 = vmatpush.msra.mxu3 %v2613_v0  ;;  %v2630_v10 = vsub.f32 %v9308_v36, %v13288_v40  ;;  %v9340_v54 = vand.u32 4294901760, %v2395_v5  ;;  %v9355_v1 = vpop.f32.mrf.mxu3 }
 0x292   : > { %2755 = vmatpush.msrb.mxu0 %v9308_v36  ;;  %v9338_v16 = vsub.f32 %v2396_v46, %v9326_v25  ;;  %2433 = vmatpush.msra.mxu2 %v9300_v51  ;;  %13642 = vst [vmem:[#allocation64_spill] sm:$0xff] %v9355_v1 }
 0x293   : > { %v2625_v26 = vand.u32 4294901760, %v2624_v31  ;;  %v13289_v42 = vand.u32 4294901760, %v9324_v23  ;;  %2868 = vmatpush.msrb.mxu1 %v9300_v51  ;;  %2620 = vmatpush.msra.mxu3 %v2619_v28  ;;  %v2631_v40 = vand.u32 4294901760, %v2630_v10  ;;  %v9358_v29 = vsub.f32 %v2395_v5, %v9340_v54 }
 0x294   : > { %v13291_v46 = vand.u32 4294901760, %v9338_v16  ;;  %2758 = vmatpush.msrb.mxu0 %v9324_v23  ;;  %2435 = vmatpush.msra.mxu2 %v9310_v39 }
 0x295   : > { %v9344_v0 = vpop.f32.mrf.mxu0  ;;  %v9346_v31 = vpop.f32.mrf.mxu1  ;;  %v2636_v55 = vsub.f32 %v9324_v23, %v13289_v42  ;;  %2870 = vmatpush.msrb.mxu1 %v9310_v39  ;;  %2626 = vmatpush.msra.mxu3 %v2625_v26  ;;  %v9367_v42 = vsub.f32 %v2394_v12, %v9353_v6  ;;  %v13290_v5 = vand.u32 4294901760, %v9358_v29 }
 0x296   : > { %v2642_v10 = vsub.f32 %v9338_v16, %v13291_v46  ;;  %2761 = vmatpush.msrb.mxu0 %v9338_v16  ;;  %2437 = vmatpush.msra.mxu2 %v9326_v25 }
 0x297   : > { %v2637_v28 = vand.u32 4294901760, %v2636_v55  ;;  %2632 = vmatpush.msra.mxu3 %v2631_v40  ;;  %v13292_v26 = vand.u32 4294901760, %v9367_v42  ;;  %v2648_v55 = vsub.f32 %v9358_v29, %v13290_v5  ;;  %2872 = vmatpush.msrb.mxu1 %v9326_v25 }
 0x298   : > { %2223 = vmatmul.f32.gmra.mxu0 %v8705_v60  ;;  %2301 = vmatmul.f32.gmra.mxu1 %v8687_v13  ;;  %v2643_v1 = vand.u32 4294901760, %v2642_v10  ;;  %v9383_v40 = vpop.f32.mrf.mxu2 }
 0x299   : > { %2764 = vmatpush.msrb.mxu0 %v9358_v29  ;;  %2638 = vmatpush.msra.mxu3 %v2637_v28  ;;  %v2654_v13 = vsub.f32 %v9367_v42, %v13292_v26  ;;  %v2649_v12 = vand.u32 4294901760, %v2648_v55  ;;  %v9394_v28 = vpop.f32.mrf.mxu3  ;;  %v13643_v55 = vand.u32 4294901760, %v9162_v56  ;;  %v13645_v26 = vand.u32 4294901760, %v9186_v8 }
 0x29a   : > { %2439 = vmatpush.msra.mxu2 %v9340_v54  ;;  %2874 = vmatpush.msrb.mxu1 %v9340_v54  ;;  %v13647_v8 = vand.u32 4294901760, %v9218_v52  ;;  %v13650_v52 = vand.u32 4294901760, %v9254_v32  ;;  %v13656_v32 = vand.u32 4294901760, %v9338_v16 }
 0x29b   : > { %2767 = vmatpush.msrb.mxu0 %v9367_v42  ;;  %2644 = vmatpush.msra.mxu3 %v2643_v1  ;;  %v2655_v46 = vand.u32 4294901760, %v2654_v13  ;;  %v13644_v1 = vand.u32 4294901760, %v9170_v34  ;;  %v13646_v34 = vand.u32 4294901760, %v9200_v22  ;;  %v13652_v22 = vand.u32 4294901760, %v9286_v20 }
 0x29c   : > { %2441 = vmatpush.msra.mxu2 %v9353_v6  ;;  %2876 = vmatpush.msrb.mxu1 %v9353_v6 }
 0x29d   : > { %v9387_v10 = vpop.f32.mrf.mxu0  ;;  %v9389_v5 = vpop.f32.mrf.mxu1  ;;  %2650 = vmatpush.msra.mxu3 %v2649_v12  ;;  %2442 = vmatmul.f32.vlgmr.msra.gmra.mxu2 %v13613_v33 }
 0x29e   : > { %2971 = vmatpush.msrb.mxu2 %v13643_v55 }
 0x29f   : > { %2656 = vmatpush.msra.mxu3 %v2655_v46  ;;  %v9480_v46 = vld [vmem:[%s13234_s2] ss:$0 sm:$0xff] }
 0x2a0   : > { %2227 = vmatmul.f32.gmra.mxu0 %v8805_v63  ;;  %2305 = vmatmul.f32.gmra.mxu1 %v8705_v60  ;;  %v1972_v60 = vpop.f32.mrf.mxu2 }
 0x2a1   : > { %2657 = vmatmul.f32.vlgmr.msra.gmra.mxu3 %v13613_v33  ;;  %2975 = vmatpush.msrb.mxu2 %v13644_v1 }
 0x2a2   : > { %3096 = vmatpush.msrb.mxu3 %v9155_v2  ;;  %v2072_v2 = vpop.f32.mrf.mxu3 }
 0x2a3   : > { %2979 = vmatpush.msrb.mxu2 %v13645_v26 }
 0x2a4   : > { %3098 = vmatpush.msrb.mxu3 %v9164_v9 }
 0x2a5   : > { %v9404_v13 = vpop.f32.mrf.mxu0  ;;  %v9406_v12 = vpop.f32.mrf.mxu1  ;;  %2445 = vmatmul.f32.gmra.mxu2 %v13613_v33 }
 0x2a6   : > { %3100 = vmatpush.msrb.mxu3 %v9173_v24  ;;  %2983 = vmatpush.msrb.mxu2 %v13646_v34 }
 0x2a8   : > { %2231 = vmatmul.f32.gmra.mxu0 %v8821_v61  ;;  %2309 = vmatmul.f32.gmra.mxu1 %v8805_v63  ;;  %v13648_v63 = vand.u32 4294901760, %v9226_v45  ;;  %v1977_v9 = vpop.f32.mrf.mxu2 }
 0x2a9   : > { %3102 = vmatpush.msrb.mxu3 %v9189_v18  ;;  %2987 = vmatpush.msrb.mxu2 %v13647_v8  ;;  %v13649_v18 = vand.u32 4294901760, %v9239_v43 }
 0x2aa   : > { %2660 = vmatmul.f32.gmra.mxu3 %v13613_v33  ;;  %v2078_v45 = vpop.f32.mrf.mxu3 }
 0x2ab   : > { %3104 = vmatpush.msrb.mxu3 %v9206_v59  ;;  %2991 = vmatpush.msrb.mxu2 %v13648_v63 }
 0x2ad   : > { %v9422_v56 = vpop.f32.mrf.mxu0  ;;  %v9424_v24 = vpop.f32.mrf.mxu1  ;;  %3106 = vmatpush.msrb.mxu3 %v9213_v38  ;;  %2995 = vmatpush.msrb.mxu2 %v13649_v18  ;;  %v13651_v38 = vand.u32 4294901760, %v9269_v48  ;;  %v13654_v48 = vand.u32 4294901760, %v9308_v36 }
 0x2af   : > { %3108 = vmatpush.msrb.mxu3 %v9228_v3  ;;  %2999 = vmatpush.msrb.mxu2 %v13650_v52 }
 0x2b0   : > { %2235 = vmatmul.f32.gmra.mxu0 %v13613_v33  ;;  %2313 = vmatmul.f32.gmra.mxu1 %v8821_v61  ;;  %v13653_v61 = vand.u32 4294901760, %v9298_v35 }
 0x2b1   : > { %3110 = vmatpush.msrb.mxu3 %v9241_v41  ;;  %3003 = vmatpush.msrb.mxu2 %v13651_v38 }
 0x2b2   : > { %v2084_v20 = vpop.f32.mrf.mxu3 }
 0x2b3   : > { %3112 = vmatpush.msrb.mxu3 %v9256_v7  ;;  %3007 = vmatpush.msrb.mxu2 %v13652_v22  ;;  %v1884_v7 = vadd.f32 %v9099_v57, %v9093_v49  ;;  %v13657_v49 = vand.u32 4294901760, %v9358_v29  ;;  %v1888_v57 = vadd.f32 %v9107_v11, %v9097_v50  ;;  %v1892_v50 = vadd.f32 %v9115_v14, %v9105_v15 }
 0x2b4   : > { %v1896_v14 = vadd.f32 %v9125_v19, %v9113_v37 }
 0x2b5   : > { %v9440_v3 = vpop.f32.mrf.mxu0  ;;  %v9442_v59 = vpop.f32.mrf.mxu1  ;;  %3114 = vmatpush.msrb.mxu3 %v9272_v58  ;;  %3011 = vmatpush.msrb.mxu2 %v13653_v61  ;;  %v1968_v35 = vadd.f32 %v9383_v40, %v1884_v7  ;;  %v1973_v29 = vadd.f32 %v1972_v60, %v1888_v57  ;;  %v1978_v60 = vadd.f32 %v1977_v9, %v1892_v50 }
 0x2b6   : > { %v1982_v58 = vpop.f32.mrf.mxu2 }
 0x2b7   : > { %3116 = vmatpush.msrb.mxu3 %v9280_v17  ;;  %3015 = vmatpush.msrb.mxu2 %v13654_v48  ;;  %v13655_v17 = vand.u32 4294901760, %v9324_v23  ;;  %v13658_v23 = vand.u32 4294901760, %v9367_v42  ;;  %v2073_v26 = vadd.f32 %v2072_v2, %v1973_v29  ;;  %v2079_v15 = vadd.f32 %v2078_v45, %v1978_v60 }
 0x2b8   : > { %2239 = vmatmul.f32.gmra.mxu0 %v13613_v33  ;;  %2317 = vmatmul.f32.gmra.mxu1 %v13613_v33  ;;  %v1983_v7 = vadd.f32 %v1982_v58, %v1896_v14  ;;  %v1900_v58 = vadd.f32 %v9135_v62, %v9123_v44  ;;  %v13670_v14 = vld [vmem:[#allocation26_spill] sm:$0xff] }
 0x2b9   : > { %3118 = vmatpush.msrb.mxu3 %v9300_v51  ;;  %3019 = vmatpush.msrb.mxu2 %v13655_v17 }
 0x2bb   : > { %3120 = vmatpush.msrb.mxu3 %v9310_v39  ;;  %3023 = vmatpush.msrb.mxu2 %v13656_v32 }
 0x2bd   : > { %v9460_v41 = vpop.f32.mrf.mxu1  ;;  %v2180_v43 = vpop.f32.mrf.mxu0  ;;  %3122 = vmatpush.msrb.mxu3 %v9326_v25  ;;  %3027 = vmatpush.msrb.mxu2 %v13657_v49  ;;  %v2067_v25 = vadd.f32 %v9394_v28, %v1968_v35  ;;  %v2085_v35 = vadd.f32 %v2084_v20, %v1983_v7 }
 0x2be   : > { %v1987_v51 = vpop.f32.mrf.mxu2 }
 0x2bf   : > { %3124 = vmatpush.msrb.mxu3 %v9340_v54  ;;  %3031 = vmatpush.msrb.mxu2 %v13658_v23  ;;  %v2181_v36 = vadd.f32 %v2180_v43, %v2067_v25  ;;  %v1988_v29 = vadd.f32 %v1987_v51, %v1900_v58  ;;  %v1904_v51 = vadd.f32 %v9143_v4, %v9133_v30 }
 0x2c0   : > { %2321 = vmatmul.f32.gmra.mxu1 %v13613_v33  ;;  %2768 = vmatmul.f32.vlgmr.msrb.gmra.mxu0 %v13613_v33 }
 0x2c1   : > { %3126 = vmatpush.msrb.mxu3 %v9353_v6  ;;  %v2090_v6 = vpop.f32.mrf.mxu3 }
 0x2c5   : > { %v2184_v39 = vpop.f32.mrf.mxu0  ;;  %v2262_v54 = vpop.f32.mrf.mxu1 }
 0x2c6   : > { %v2263_v16 = vadd.f32 %v2262_v54, %v2181_v36  ;;  %v2185_v40 = vadd.f32 %v2184_v39, %v2073_v26  ;;  %v1992_v34 = vpop.f32.mrf.mxu2  ;;  %v2091_v26 = vadd.f32 %v2090_v6, %v1988_v29  ;;  %v13677_v29 = vld [vmem:[#allocation33_spill] sm:$0xff] }
 0x2c8   : > { %v2325_v42 = vadd.f32 %v2263_v16, %v8981_v27  ;;  %2877 = vmatmul.f32.vlgmr.msrb.gmra.mxu1 %v13613_v33  ;;  %2771 = vmatmul.f32.gmra.mxu0 %v13613_v33 }
 0x2c9   : > { %v2096_v18 = vpop.f32.mrf.mxu3 }
 0x2ca   : > { %v2345_v11 = vadd.f32 %v9480_v46, %v2325_v42 }
 0x2cc   : > { %v2361_v28 = vmax.f32 %v2345_v11, 0.0 }
 0x2cd   : > { %v2188_v55 = vpop.f32.mrf.mxu0  ;;  %v2266_v1 = vpop.f32.mrf.mxu1 }
 0x2ce   : > { %v9488_v8 = vand.u32 4294901760, %v2361_v28  ;;  %v2267_v63 = vadd.f32 %v2266_v1, %v2185_v40  ;;  %v1997_v19 = vpop.f32.mrf.mxu2 }
 0x2d0   : > { %v2326_v27 = vadd.f32 %v2267_v63, %v8988_v53  ;;  %2664 = vmatmul.f32.gmra.mxu3 %v9488_v8  ;;  %2880 = vmatmul.f32.gmra.mxu1 %v13613_v33  ;;  %v9494_v2 = vsub.f32 %v2361_v28, %v9488_v8  ;;  %v2189_v53 = vadd.f32 %v2188_v55, %v2079_v15 }
 0x2d1   : > { %v1993_v63 = vadd.f32 %v1992_v34, %v1904_v51  ;;  %v13672_v34 = vld [vmem:[#allocation51_spill] sm:$0xff] }
 0x2d2   : > { %13659 = vst [vmem:[#allocation65_spill] sm:$0xff] %v9494_v2  ;;  %v2346_v9 = vadd.f32 %v9480_v46, %v2326_v27  ;;  %2776 = vmatmul.f32.gmra.mxu0 %v9494_v2  ;;  %v9501_v52 = vand.u32 4294901760, %v9494_v2 }
 0x2d4   : > { %13660 = vst [vmem:[#allocation66_spill] sm:$0xff] %v9501_v52  ;;  %v2362_v38 = vmax.f32 %v2346_v9, 0.0  ;;  %v2451_v22 = vsub.f32 %v9494_v2, %v9501_v52 }
 0x2d5   : > { %v2192_v61 = vpop.f32.mrf.mxu0  ;;  %v2270_v48 = vpop.f32.mrf.mxu1 }
 0x2d6   : > { %v9505_v45 = vand.u32 4294901760, %v2362_v38  ;;  %v2271_v17 = vadd.f32 %v2270_v48, %v2189_v53  ;;  %v9507_v37 = vand.u32 4294901760, %v2451_v22  ;;  %v2193_v25 = vadd.f32 %v2192_v61, %v2085_v35  ;;  %v2002_v50 = vpop.f32.mrf.mxu2 }
 0x2d7   : > { %v2097_v53 = vadd.f32 %v2096_v18, %v1993_v63 }
 0x2d8   : > { %13661 = vst [vmem:[#allocation67_spill] sm:$0xff] %v9505_v45  ;;  %v2327_v43 = vadd.f32 %v2271_v17, %v8995_v47  ;;  %2453 = vmatmul.f32.gmra.mxu2 %v9507_v37  ;;  %2668 = vmatmul.f32.gmra.mxu3 %v9505_v45  ;;  %v9513_v32 = vsub.f32 %v2362_v38, %v9505_v45  ;;  %v2102_v47 = vpop.f32.mrf.mxu3  ;;  %v13671_v38 = vld [vmem:[#allocation47_spill] sm:$0xff] }
 0x2d9   : > { %2886 = vmatmul.f32.gmra.mxu1 %v9501_v52  ;;  %v1908_v22 = vadd.f32 %v13672_v34, %v13671_v38  ;;  %v13684_v34 = vld [vmem:[#allocation29_spill] sm:$0xff]  ;;  %v1928_v52 = vadd.f32 %v9389_v5, %v9344_v0  ;;  %v2385_v5 = vld [vmem:[#allocation3 + $0xb8] sm:$0xff] }
 0x2da   : > { %13662 = vst [vmem:[#allocation68_spill] sm:$0xff] %v9513_v32  ;;  %v2347_v49 = vadd.f32 %v9480_v46, %v2327_v43  ;;  %2781 = vmatmul.f32.gmra.mxu0 %v9513_v32  ;;  %v9521_v23 = vand.u32 4294901760, %v9513_v32 }
 0x2dc   : > { %13663 = vst [vmem:[#allocation69_spill] sm:$0xff] %v9521_v23  ;;  %v2363_v57 = vmax.f32 %v2347_v49, 0.0  ;;  %v2459_v36 = vsub.f32 %v9513_v32, %v9521_v23 }
 0x2dd   : > { %v2196_v39 = vpop.f32.mrf.mxu0  ;;  %v2274_v54 = vpop.f32.mrf.mxu1 }
 0x2de   : > { %v9525_v20 = vand.u32 4294901760, %v2363_v57  ;;  %v2275_v16 = vadd.f32 %v2274_v54, %v2193_v25  ;;  %v9527_v44 = vand.u32 4294901760, %v2459_v36  ;;  %v2197_v28 = vadd.f32 %v2196_v39, %v2091_v26  ;;  %v2007_v7 = vpop.f32.mrf.mxu2  ;;  %v13678_v26 = vld [vmem:[#allocation50_spill] sm:$0xff] }
 0x2df   : > { %v1998_v25 = vadd.f32 %v1997_v19, %v1908_v22  ;;  %v13679_v19 = vld [vmem:[#allocation54_spill] sm:$0xff] }
 0x2e0   : > { %13664 = vst [vmem:[#allocation70_spill] sm:$0xff] %v9525_v20  ;;  %v9530_v62 = vsub.f32 %v2363_v57, %v9525_v20  ;;  %v2328_v42 = vadd.f32 %v2275_v16, %v9002_v21  ;;  %2461 = vmatmul.f32.gmra.mxu2 %v9527_v44  ;;  %2672 = vmatmul.f32.gmra.mxu3 %v9525_v20  ;;  %v2108_v6 = vpop.f32.mrf.mxu3  ;;  %v2378_v20 = vld [vmem:[#allocation3 + $0x80] sm:$0xff] }
 0x2e1   : > { %2892 = vmatmul.f32.gmra.mxu1 %v9521_v23  ;;  %v1912_v51 = vadd.f32 %v13679_v19, %v13678_v26  ;;  %v13692_v19 = vld [vmem:[#allocation12_spill] sm:$0xff] }
 0x2e2   : > { %13665 = vst [vmem:[#allocation71_spill] sm:$0xff] %v9530_v62  ;;  %v2348_v11 = vadd.f32 %v9480_v46, %v2328_v42  ;;  %2786 = vmatmul.f32.gmra.mxu0 %v9530_v62  ;;  %v9541_v40 = vand.u32 4294901760, %v9530_v62  ;;  %v2103_v42 = vadd.f32 %v2102_v47, %v1998_v25  ;;  %v13690_v25 = vld [vmem:[#allocation58_spill] sm:$0xff] }
 0x2e4   : > { %13666 = vst [vmem:[#allocation72_spill] sm:$0xff] %v9541_v40  ;;  %v2364_v21 = vmax.f32 %v2348_v11, 0.0  ;;  %v2467_v55 = vsub.f32 %v9530_v62, %v9541_v40 }
 0x2e5   : > { %v2200_v1 = vpop.f32.mrf.mxu0  ;;  %v2278_v60 = vpop.f32.mrf.mxu1 }
 0x2e6   : > { %v9545_v27 = vand.u32 4294901760, %v2364_v21  ;;  %v2279_v30 = vadd.f32 %v2278_v60, %v2197_v28  ;;  %v9547_v4 = vand.u32 4294901760, %v2467_v55  ;;  %v2201_v17 = vadd.f32 %v2200_v1, %v2097_v53 }
 0x2e8   : > { %13667 = vst [vmem:[#allocation73_spill] sm:$0xff] %v9545_v27  ;;  %v9550_v15 = vsub.f32 %v2364_v21, %v9545_v27  ;;  %v2329_v9 = vadd.f32 %v2279_v30, %v13670_v14  ;;  %2469 = vmatmul.f32.gmra.mxu2 %v9547_v4  ;;  %2676 = vmatmul.f32.gmra.mxu3 %v9545_v27  ;;  %v2114_v39 = vpop.f32.mrf.mxu3  ;;  %v2012_v14 = vpop.f32.mrf.mxu2 }
 0x2e9   : > { %13668 = vst [vmem:[#allocation74_spill] sm:$0xff] %v9547_v4  ;;  %2898 = vmatmul.f32.gmra.mxu1 %v9541_v40  ;;  %v2003_v30 = vadd.f32 %v2002_v50, %v1912_v51  ;;  %v13688_v50 = vld [vmem:[#allocation37_spill] sm:$0xff] }
 0x2ea   : > { %13669 = vst [vmem:[#allocation75_spill] sm:$0xff] %v9550_v15  ;;  %v2349_v61 = vadd.f32 %v9480_v46, %v2329_v9  ;;  %2791 = vmatmul.f32.gmra.mxu0 %v9550_v15  ;;  %v9561_v48 = vand.u32 4294901760, %v9550_v15  ;;  %v2387_v40 = vld [vmem:[#allocation3 + $0xc8] sm:$0xff] }
 0x2ec   : > { %13673 = vst [vmem:[#allocation26_spill] sm:$0xff] %v9561_v48  ;;  %v2365_v43 = vmax.f32 %v2349_v61, 0.0  ;;  %v2475_v35 = vsub.f32 %v9550_v15, %v9561_v48  ;;  %v13685_v61 = vld [vmem:[#allocation39_spill] sm:$0xff] }
 0x2ed   : > { %v2204_v58 = vpop.f32.mrf.mxu0  ;;  %v2282_v49 = vpop.f32.mrf.mxu1 }
 0x2ee   : > { %v9565_v18 = vand.u32 4294901760, %v2365_v43  ;;  %v2283_v57 = vadd.f32 %v2282_v49, %v2201_v17  ;;  %v9567_v36 = vand.u32 4294901760, %v2475_v35  ;;  %v2205_v21 = vadd.f32 %v2204_v58, %v2103_v42  ;;  %v13686_v17 = vld [vmem:[#allocation35_spill] sm:$0xff]  ;;  %v13687_v35 = vld [vmem:[#allocation40_spill] sm:$0xff]  ;;  %v13689_v49 = vld [vmem:[#allocation53_spill] sm:$0xff] }
 0x2ef   : > { %v1397_v58 = vadd.f32 %v13688_v50, %v13687_v35  ;;  %v13699_v50 = vld [vmem:[#allocation18_spill] sm:$0xff] }
 0x2f0   : > { %13674 = vst [vmem:[#allocation47_spill] sm:$0xff] %v9565_v18  ;;  %v9570_v54 = vsub.f32 %v2365_v43, %v9565_v18  ;;  %v2330_v16 = vadd.f32 %v2283_v57, %v13677_v29  ;;  %2477 = vmatmul.f32.gmra.mxu2 %v9567_v36  ;;  %2680 = vmatmul.f32.gmra.mxu3 %v9565_v18 }
 0x2f1   : > { %13675 = vst [vmem:[#allocation51_spill] sm:$0xff] %v9567_v36  ;;  %2904 = vmatmul.f32.gmra.mxu1 %v9561_v48  ;;  %v1392_v43 = vadd.f32 %v13686_v17, %v13685_v61  ;;  %v1916_v57 = vadd.f32 %v13690_v25, %v13689_v49  ;;  %v2109_v29 = vadd.f32 %v2108_v6, %v2003_v30  ;;  %v2381_v36 = vld [vmem:[#allocation3 + $0x98] sm:$0xff] }
 0x2f2   : > { %13676 = vst [vmem:[#allocation76_spill] sm:$0xff] %v9570_v54  ;;  %v2350_v11 = vadd.f32 %v9480_v46, %v2330_v16  ;;  %2796 = vmatmul.f32.gmra.mxu0 %v9570_v54  ;;  %v9581_v28 = vand.u32 4294901760, %v9570_v54  ;;  %v2120_v16 = vpop.f32.mrf.mxu3 }
 0x2f3   : > { %v1499_v51 = vadd.f32 %v13692_v19, %v1392_v43  ;;  %v2008_v25 = vadd.f32 %v2007_v7, %v1916_v57  ;;  %v13701_v43 = vld [vmem:[#allocation62_spill] sm:$0xff] }
 0x2f4   : > { %13680 = vst [vmem:[#allocation33_spill] sm:$0xff] %v9581_v28  ;;  %v2366_v55 = vmax.f32 %v2350_v11, 0.0  ;;  %v2483_v1 = vsub.f32 %v9570_v54, %v9581_v28  ;;  %v13693_v11 = vld [vmem:[#allocation31_spill] sm:$0xff]  ;;  %v13700_v54 = vld [vmem:[#allocation57_spill] sm:$0xff]  ;;  %v13707_v7 = vld [vmem:[#allocation34_spill] sm:$0xff] }
 0x2f5   : > { %v2208_v60 = vpop.f32.mrf.mxu0  ;;  %v2286_v63 = vpop.f32.mrf.mxu1  ;;  %v1920_v19 = vadd.f32 %v13701_v43, %v13700_v54 }
 0x2f6   : > { %v9585_v47 = vand.u32 4294901760, %v2366_v55  ;;  %v2287_v9 = vadd.f32 %v2286_v63, %v2205_v21  ;;  %v9587_v53 = vand.u32 4294901760, %v2483_v1  ;;  %v13694_v21 = vld [vmem:[#allocation13_spill] sm:$0xff]  ;;  %v13695_v1 = vld [vmem:[#allocation14_spill] sm:$0xff]  ;;  %v2209_v17 = vadd.f32 %v2208_v60, %v2109_v29 }
 0x2f7   : > { %v1505_v63 = vadd.f32 %v13695_v1, %v1397_v58  ;;  %v13704_v60 = vld [vmem:[#allocation38_spill] sm:$0xff] }
 0x2f8   : > { %13681 = vst [vmem:[#allocation50_spill] sm:$0xff] %v9585_v47  ;;  %v9590_v38 = vsub.f32 %v2366_v55, %v9585_v47  ;;  %v2331_v22 = vadd.f32 %v2287_v9, %v13684_v34  ;;  %2485 = vmatmul.f32.gmra.mxu2 %v9587_v53  ;;  %2684 = vmatmul.f32.gmra.mxu3 %v9585_v47  ;;  %v13696_v9 = vld [vmem:[#allocation21_spill] sm:$0xff]  ;;  %v13697_v34 = vld [vmem:[#allocation15_spill] sm:$0xff] }
 0x2f9   : > { %13682 = vst [vmem:[#allocation54_spill] sm:$0xff] %v9587_v53  ;;  %2910 = vmatmul.f32.gmra.mxu1 %v9581_v28  ;;  %v1402_v55 = vadd.f32 %v13694_v21, %v13693_v11  ;;  %v1407_v61 = vadd.f32 %v13697_v34, %v13696_v9  ;;  %v1597_v29 = vadd.f32 %v13704_v60, %v1499_v51  ;;  %v2393_v34 = vld [vmem:[#allocation3 + $0xf8] sm:$0xff] }
 0x2fa   : > { %13683 = vst [vmem:[#allocation77_spill] sm:$0xff] %v9590_v38  ;;  %v2351_v42 = vadd.f32 %v9480_v46, %v2331_v22  ;;  %2801 = vmatmul.f32.gmra.mxu0 %v9590_v38  ;;  %v9605_v26 = vand.u32 4294901760, %v9590_v38  ;;  %v13698_v22 = vld [vmem:[#allocation16_spill] sm:$0xff]  ;;  %v9633_v54 = vand.u32 4294901760, %v2393_v34 }
 0x2fb   : > { %v1511_v35 = vadd.f32 %v13698_v22, %v1402_v55  ;;  %v1517_v49 = vadd.f32 %v13699_v50, %v1407_v61  ;;  %v13708_v61 = vld [vmem:[#allocation44_spill] sm:$0xff]  ;;  %v2115_v22 = vadd.f32 %v2114_v39, %v2008_v25  ;;  %v2392_v50 = vld [vmem:[#allocation3 + $0xf0] sm:$0xff] }
 0x2fc   : > { %13691 = vst [vmem:[#allocation29_spill] sm:$0xff] %v9605_v26  ;;  %v2367_v6 = vmax.f32 %v2351_v42, 0.0  ;;  %v2491_v30 = vsub.f32 %v9590_v38, %v9605_v26  ;;  %v13705_v42 = vld [vmem:[#allocation42_spill] sm:$0xff]  ;;  %v9625_v38 = vpop.f32.mrf.mxu2  ;;  %3642 = vmatpush.msra.mxu3 %v9633_v54  ;;  %v13713_v25 = vld [vmem:[#allocation20_spill] sm:$0xff]  ;;  %3191 = vmatpush.msra.mxu0 %v9633_v54 }
 0x2fd   : > { %v2212_v28 = vpop.f32.mrf.mxu0  ;;  %v2290_v11 = vpop.f32.mrf.mxu1  ;;  %v1601_v9 = vadd.f32 %v13705_v42, %v1505_v63  ;;  %v2013_v63 = vadd.f32 %v2012_v14, %v1920_v19  ;;  %v13712_v14 = vld [vmem:[#allocation43_spill] sm:$0xff]  ;;  %v13714_v19 = vld [vmem:[#allocation17_spill] sm:$0xff] }
 0x2fe   : > { %v9619_v21 = vand.u32 4294901760, %v2367_v6  ;;  %v2291_v58 = vadd.f32 %v2290_v11, %v2209_v17  ;;  %v9621_v1 = vand.u32 4294901760, %v2491_v30  ;;  %v1605_v17 = vadd.f32 %v13708_v61, %v1511_v35  ;;  %v13709_v30 = vld [vmem:[#allocation46_spill] sm:$0xff]  ;;  %v13711_v35 = vld [vmem:[#allocation41_spill] sm:$0xff] }
 0x2ff   : > { %v1609_v51 = vadd.f32 %v13709_v30, %v1517_v49  ;;  %v9644_v11 = vsub.f32 %v2393_v34, %v9633_v54  ;;  %v1679_v39 = vadd.f32 %v13711_v35, %v1597_v29  ;;  %v9651_v49 = vadd.f32 %v13712_v14, %v1601_v9  ;;  %v13715_v9 = vld [vmem:[#allocation45_spill] sm:$0xff]  ;;  %v13717_v14 = vld [vmem:[#allocation22_spill] sm:$0xff] }
 0x300   : > { %13702 = vst [vmem:[#allocation39_spill] sm:$0xff] %v9619_v21  ;;  %v9628_v55 = vsub.f32 %v2367_v6, %v9619_v21  ;;  %v2332_v57 = vadd.f32 %v2291_v58, %v13707_v7  ;;  %2493 = vmatmul.f32.gmra.mxu2 %v9621_v1  ;;  %2688 = vmatmul.f32.gmra.mxu3 %v9619_v21  ;;  %v9646_v58 = vand.u32 4294901760, %v2392_v50  ;;  %v2391_v7 = vld [vmem:[#allocation3 + $0xe8] sm:$0xff] }
 0x301   : > { %13703 = vst [vmem:[#allocation35_spill] sm:$0xff] %v9621_v1  ;;  %2916 = vmatmul.f32.gmra.mxu1 %v9605_v26  ;;  %v1412_v60 = vadd.f32 %v13714_v19, %v13713_v25  ;;  %v2213_v42 = vadd.f32 %v2212_v28, %v2115_v22  ;;  %v9660_v30 = vand.u32 4294901760, %v2391_v7  ;;  %3514 = vmatpush.msra.mxu2 %v9644_v11  ;;  %v13716_v28 = vld [vmem:[#allocation48_spill] sm:$0xff] }
 0x302   : > { %13706 = vst [vmem:[#allocation40_spill] sm:$0xff] %v9628_v55  ;;  %v2352_v6 = vadd.f32 %v9480_v46, %v2332_v57  ;;  %2806 = vmatmul.f32.gmra.mxu0 %v9628_v55  ;;  %v9641_v43 = vand.u32 4294901760, %v9628_v55  ;;  %v9656_v57 = vpop.f32.mrf.mxu3  ;;  %3644 = vmatpush.msra.mxu3 %v9646_v58  ;;  %v9666_v35 = vadd.f32 %v13715_v9, %v1605_v17 }
 0x303   : > { %v9669_v22 = vadd.f32 %v13716_v28, %v1609_v51  ;;  %v9672_v25 = vadd.f32 %v13717_v14, %v1412_v60  ;;  %3193 = vmatpush.msra.mxu0 %v9646_v58  ;;  %v9676_v29 = vsub.f32 %v2392_v50, %v9646_v58  ;;  %v2121_v26 = vadd.f32 %v2120_v16, %v2013_v63  ;;  %v2389_v28 = vld [vmem:[#allocation3 + $0xd8] sm:$0xff]  ;;  %v13721_v63 = vld [vmem:[#allocation61_spill] sm:$0xff] }
 0x304   : > { %13710 = vst [vmem:[#allocation37_spill] sm:$0xff] %v9641_v43  ;;  %v2368_v34 = vmax.f32 %v2352_v6, 0.0  ;;  %v2499_v61 = vsub.f32 %v9628_v55, %v9641_v43  ;;  %v2390_v55 = vld [vmem:[#allocation3 + $0xe0] sm:$0xff]  ;;  %3646 = vmatpush.msra.mxu3 %v9660_v30  ;;  %v13720_v60 = vand.u32 4294901760, %v9644_v11  ;;  %v9691_v16 = vsub.f32 %v2391_v7, %v9660_v30 }
 0x305   : > { %v2216_v6 = vpop.f32.mrf.mxu0  ;;  %v2294_v19 = vpop.f32.mrf.mxu1  ;;  %3195 = vmatpush.msra.mxu0 %v9660_v30  ;;  %v9684_v51 = vand.u32 4294901760, %v2390_v55  ;;  %v13311_v50 = vand.u32 4294901760, %v9676_v29  ;;  %3517 = vmatpush.msra.mxu2 %v9676_v29 }
 0x306   : > { %v9678_v15 = vand.u32 4294901760, %v2368_v34  ;;  %v2295_v48 = vadd.f32 %v2294_v19, %v2213_v42  ;;  %v9680_v17 = vand.u32 4294901760, %v2499_v61  ;;  %v3354_v9 = vsub.f32 %v9644_v11, %v13720_v60 }
 0x307   : > { %v1924_v42 = vadd.f32 %v9346_v31, %v13721_v63  ;;  %v9701_v19 = vand.u32 4294901760, %v2389_v28  ;;  %3197 = vmatpush.msra.mxu0 %v9684_v51  ;;  %v3360_v60 = vsub.f32 %v9676_v29, %v13311_v50  ;;  %v2388_v31 = vld [vmem:[#allocation3 + $0xd0] sm:$0xff]  ;;  %3648 = vmatpush.msra.mxu3 %v9684_v51  ;;  %v2217_v50 = vadd.f32 %v2216_v6, %v2121_v26 }
 0x308   : > { %13718 = vst [vmem:[#allocation53_spill] sm:$0xff] %v9678_v15  ;;  %v9697_v61 = vsub.f32 %v2368_v34, %v9678_v15  ;;  %v2333_v14 = vadd.f32 %v2295_v48, %v1679_v39  ;;  %2501 = vmatmul.f32.gmra.mxu2 %v9680_v17  ;;  %2692 = vmatmul.f32.gmra.mxu3 %v9678_v15  ;;  %v3355_v7 = vand.u32 4294901760, %v3354_v9  ;;  %v13318_v34 = vand.u32 4294901760, %v9691_v16  ;;  %v2022_v39 = vpop.f32.mrf.mxu2 }
 0x309   : > { %13719 = vst [vmem:[#allocation58_spill] sm:$0xff] %v9680_v17  ;;  %2922 = vmatmul.f32.gmra.mxu1 %v9641_v43  ;;  %v9710_v48 = vsub.f32 %v2390_v55, %v9684_v51  ;;  %v9717_v62 = vand.u32 4294901760, %v2388_v31  ;;  %v9720_v9 = vsub.f32 %v2389_v28, %v9701_v19  ;;  %3199 = vmatpush.msra.mxu0 %v9701_v19  ;;  %v3361_v55 = vand.u32 4294901760, %v3360_v60 }
 0x30a   : > { %13722 = vst [vmem:[#allocation12_spill] sm:$0xff] %v9697_v61  ;;  %v2353_v63 = vadd.f32 %v9480_v46, %v2333_v14  ;;  %2811 = vmatmul.f32.gmra.mxu0 %v9697_v61  ;;  %v9715_v43 = vand.u32 4294901760, %v9697_v61  ;;  %3356 = vmatpush.msra.mxu1 %v3355_v7  ;;  %v3366_v14 = vsub.f32 %v9691_v16, %v13318_v34  ;;  %v9730_v28 = vand.u32 4294901760, %v2387_v40  ;;  %v2386_v34 = vld [vmem:[#allocation3 + $0xc0] sm:$0xff]  ;;  %v9745_v15 = vpop.f32.mrf.mxu3 }
 0x30b   : > { %v13323_v32 = vand.u32 4294901760, %v9710_v48  ;;  %3650 = vmatpush.msra.mxu3 %v9701_v19  ;;  %3520 = vmatpush.msra.mxu2 %v9691_v16  ;;  %v2018_v26 = vadd.f32 %v9625_v38, %v1924_v42 }
 0x30c   : > { %13723 = vst [vmem:[#allocation31_spill] sm:$0xff] %v9715_v43  ;;  %v2369_v23 = vmax.f32 %v2353_v63, 0.0  ;;  %v2507_v2 = vsub.f32 %v9697_v61, %v9715_v43  ;;  %3362 = vmatpush.msra.mxu1 %v3361_v55  ;;  %3201 = vmatpush.msra.mxu0 %v9717_v62  ;;  %v3367_v60 = vand.u32 4294901760, %v3366_v14  ;;  %v9741_v61 = vsub.f32 %v2388_v31, %v9717_v62 }
 0x30d   : > { %v2220_v6 = vpop.f32.mrf.mxu0  ;;  %v2298_v7 = vpop.f32.mrf.mxu1  ;;  %v3372_v63 = vsub.f32 %v9710_v48, %v13323_v32  ;;  %3652 = vmatpush.msra.mxu3 %v9717_v62  ;;  %3523 = vmatpush.msra.mxu2 %v9710_v48  ;;  %v9754_v31 = vand.u32 4294901760, %v2386_v34  ;;  %v13726_v32 = vand.u32 4294901760, %v9720_v9 }
 0x30e   : > { %v9747_v38 = vand.u32 4294901760, %v2369_v23  ;;  %v2299_v42 = vadd.f32 %v2298_v7, %v2217_v50  ;;  %v9749_v55 = vand.u32 4294901760, %v2507_v2  ;;  %3368 = vmatpush.msra.mxu1 %v3367_v60  ;;  %3203 = vmatpush.msra.mxu0 %v9730_v28  ;;  %v13328_v21 = vand.u32 4294901760, %v9741_v61 }
 0x30f   : > { %v3373_v14 = vand.u32 4294901760, %v3372_v63  ;;  %v3378_v0 = vsub.f32 %v9720_v9, %v13726_v32  ;;  %v9766_v7 = vand.u32 4294901760, %v2385_v5  ;;  %v9769_v60 = vsub.f32 %v2387_v40, %v9730_v28  ;;  %3654 = vmatpush.msra.mxu3 %v9730_v28  ;;  %3526 = vmatpush.msra.mxu2 %v9720_v9 }
 0x310   : > { %13724 = vst [vmem:[#allocation13_spill] sm:$0xff] %v9747_v38  ;;  %v9761_v2 = vsub.f32 %v2369_v23, %v9747_v38  ;;  %v2334_v50 = vadd.f32 %v2299_v42, %v9651_v49  ;;  %2509 = vmatmul.f32.gmra.mxu2 %v9749_v55  ;;  %2696 = vmatmul.f32.gmra.mxu3 %v9747_v38  ;;  %v2384_v49 = vld [vmem:[#allocation3 + $0xb0] sm:$0xff] }
 0x311   : > { %13725 = vst [vmem:[#allocation14_spill] sm:$0xff] %v9749_v55  ;;  %v2127_v63 = vadd.f32 %v9656_v57, %v2018_v26  ;;  %2928 = vmatmul.f32.gmra.mxu1 %v9715_v43  ;;  %3205 = vmatpush.msra.mxu0 %v9754_v31  ;;  %v3379_v32 = vand.u32 4294901760, %v3378_v0  ;;  %v3384_v23 = vsub.f32 %v9741_v61, %v13328_v21  ;;  %v9785_v57 = vand.u32 4294901760, %v2384_v49  ;;  %v2383_v43 = vld [vmem:[#allocation3 + $0xa8] sm:$0xff] }
 0x312   : > { %13727 = vst [vmem:[#allocation21_spill] sm:$0xff] %v9761_v2  ;;  %v9778_v42 = vsub.f32 %v2386_v34, %v9754_v31  ;;  %v2354_v38 = vadd.f32 %v9480_v46, %v2334_v50  ;;  %2816 = vmatmul.f32.gmra.mxu0 %v9761_v2  ;;  %v9783_v40 = vand.u32 4294901760, %v9761_v2  ;;  %3374 = vmatpush.msra.mxu1 %v3373_v14  ;;  %v13337_v26 = vand.u32 4294901760, %v9769_v60  ;;  %v2027_v50 = vpop.f32.mrf.mxu2 }
 0x313   : > { %13729 = vst [vmem:[#allocation16_spill] sm:$0xff] %v9785_v57  ;;  %v2023_v0 = vadd.f32 %v2022_v39, %v1928_v52  ;;  %3207 = vmatpush.msra.mxu0 %v9766_v7  ;;  %v3385_v21 = vand.u32 4294901760, %v3384_v23  ;;  %v9791_v55 = vsub.f32 %v2385_v5, %v9766_v7  ;;  %v2221_v17 = vadd.f32 %v2220_v6, %v2127_v63 }
 0x314   : > { %13728 = vst [vmem:[#allocation15_spill] sm:$0xff] %v9783_v40  ;;  %v13344_v34 = vand.u32 4294901760, %v9778_v42  ;;  %v2370_v47 = vmax.f32 %v2354_v38, 0.0  ;;  %v2515_v14 = vsub.f32 %v9761_v2, %v9783_v40  ;;  %3380 = vmatpush.msra.mxu1 %v3379_v32  ;;  %v3390_v52 = vsub.f32 %v9769_v60, %v13337_v26  ;;  %v2382_v38 = vld [vmem:[#allocation3 + $0xa0] sm:$0xff]  ;;  %3656 = vmatpush.msra.mxu3 %v9754_v31 }
 0x315   : > { %v2224_v39 = vpop.f32.mrf.mxu0  ;;  %v2302_v23 = vpop.f32.mrf.mxu1  ;;  %3209 = vmatpush.msra.mxu0 %v9785_v57  ;;  %v9801_v5 = vand.u32 4294901760, %v2383_v43  ;;  %v9808_v32 = vsub.f32 %v2384_v49, %v9785_v57  ;;  %v1932_v26 = vadd.f32 %v9406_v12, %v9387_v10  ;;  %3529 = vmatpush.msra.mxu2 %v9741_v61  ;;  %v9819_v53 = vand.u32 4294901760, %v2382_v38 }
 0x316   : > { %v3396_v6 = vsub.f32 %v9778_v42, %v13344_v34  ;;  %v9813_v2 = vand.u32 4294901760, %v2370_v47  ;;  %v2303_v1 = vadd.f32 %v2302_v23, %v2221_v17  ;;  %v9815_v18 = vand.u32 4294901760, %v2515_v14  ;;  %3386 = vmatpush.msra.mxu1 %v3385_v21  ;;  %3658 = vmatpush.msra.mxu3 %v9766_v7  ;;  %v2138_v10 = vpop.f32.mrf.mxu3 }
 0x317   : > { %13730 = vst [vmem:[#allocation18_spill] sm:$0xff] %v9801_v5  ;;  %v3391_v34 = vand.u32 4294901760, %v3390_v52  ;;  %3211 = vmatpush.msra.mxu0 %v9801_v5  ;;  %v13733_v49 = vand.u32 4294901760, %v9791_v55  ;;  %v9831_v17 = vand.u32 4294901760, %v2381_v36  ;;  %v13355_v14 = vand.u32 4294901760, %v9808_v32  ;;  %3532 = vmatpush.msra.mxu2 %v9769_v60 }
 0x318   : > { %13731 = vst [vmem:[#allocation57_spill] sm:$0xff] %v9813_v2  ;;  %v3397_v63 = vand.u32 4294901760, %v3396_v6  ;;  %v9826_v12 = vsub.f32 %v2370_v47, %v9813_v2  ;;  %v2335_v21 = vadd.f32 %v2303_v1, %v9666_v35  ;;  %2517 = vmatmul.f32.gmra.mxu2 %v9815_v18  ;;  %2700 = vmatmul.f32.gmra.mxu3 %v9813_v2  ;;  %v2380_v6 = vld [vmem:[#allocation3 + $0x90] sm:$0xff] }
 0x319   : > { %13732 = vst [vmem:[#allocation62_spill] sm:$0xff] %v9815_v18  ;;  %v3402_v27 = vsub.f32 %v9791_v55, %v13733_v49  ;;  %v2133_v52 = vadd.f32 %v9745_v15, %v2023_v0  ;;  %2934 = vmatmul.f32.gmra.mxu1 %v9783_v40  ;;  %3213 = vmatpush.msra.mxu0 %v9819_v53 }
 0x31a   : > { %13734 = vst [vmem:[#allocation38_spill] sm:$0xff] %v9826_v12  ;;  %v9838_v47 = vsub.f32 %v2383_v43, %v9801_v5  ;;  %v9841_v1 = vsub.f32 %v2382_v38, %v9819_v53  ;;  %v2355_v35 = vadd.f32 %v9480_v46, %v2335_v21  ;;  %2821 = vmatmul.f32.gmra.mxu0 %v9826_v12  ;;  %v9846_v49 = vand.u32 4294901760, %v9826_v12  ;;  %v2379_v38 = vld [vmem:[#allocation3 + $0x88] sm:$0xff] }
 0x31b   : > { %v3403_v23 = vand.u32 4294901760, %v3402_v27  ;;  %3392 = vmatpush.msra.mxu1 %v3391_v34  ;;  %v3408_v15 = vsub.f32 %v9808_v32, %v13355_v14  ;;  %v9851_v27 = vand.u32 4294901760, %v2380_v6  ;;  %v2028_v0 = vadd.f32 %v2027_v50, %v1932_v26  ;;  %3215 = vmatpush.msra.mxu0 %v9831_v17 }
 0x31c   : > { %13735 = vst [vmem:[#allocation42_spill] sm:$0xff] %v9846_v49  ;;  %v9857_v40 = vsub.f32 %v2381_v36, %v9831_v17  ;;  %3660 = vmatpush.msra.mxu3 %v9785_v57  ;;  %v2225_v34 = vadd.f32 %v2224_v39, %v2133_v52  ;;  %v2371_v2 = vmax.f32 %v2355_v35, 0.0  ;;  %v2523_v14 = vsub.f32 %v9826_v12, %v9846_v49 }
 0x31d   : > { %3398 = vmatpush.msra.mxu1 %v3397_v63  ;;  %v9862_v18 = vand.u32 4294901760, %v2379_v38  ;;  %v2228_v26 = vpop.f32.mrf.mxu0  ;;  %v2306_v50 = vpop.f32.mrf.mxu1  ;;  %v3409_v43 = vand.u32 4294901760, %v3408_v15  ;;  %3217 = vmatpush.msra.mxu0 %v9851_v27  ;;  %v13736_v36 = vand.u32 4294901760, %v9838_v47  ;;  %v9871_v52 = vsub.f32 %v2380_v6, %v9851_v27 }
 0x31e   : > { %3662 = vmatpush.msra.mxu3 %v9801_v5  ;;  %v9874_v63 = vand.u32 4294901760, %v2371_v2  ;;  %v2307_v35 = vadd.f32 %v2306_v50, %v2225_v34  ;;  %v9876_v12 = vand.u32 4294901760, %v2523_v14  ;;  %v13739_v15 = vand.u32 4294901760, %v9841_v1  ;;  %3535 = vmatpush.msra.mxu2 %v9778_v42  ;;  %v2032_v6 = vpop.f32.mrf.mxu2  ;;  %v2144_v34 = vpop.f32.mrf.mxu3 }
 0x31f   : > { %v3414_v21 = vsub.f32 %v9838_v47, %v13736_v36  ;;  %3404 = vmatpush.msra.mxu1 %v3403_v23  ;;  %v13740_v36 = vld [vmem:[#allocation49_spill] sm:$0xff]  ;;  %v2139_v45 = vadd.f32 %v2138_v10, %v2028_v0  ;;  %3219 = vmatpush.msra.mxu0 %v9862_v18  ;;  %v9885_v5 = vand.u32 4294901760, %v2378_v20  ;;  %v9896_v10 = vsub.f32 %v2379_v38, %v9862_v18 }
 0x320   : > { %13737 = vst [vmem:[#allocation34_spill] sm:$0xff] %v9874_v63  ;;  %v3420_v4 = vsub.f32 %v9841_v1, %v13739_v15  ;;  %v1613_v39 = vadd.f32 %v13740_v36, %v9672_v25  ;;  %3664 = vmatpush.msra.mxu3 %v9819_v53  ;;  %v9889_v14 = vsub.f32 %v2371_v2, %v9874_v63  ;;  %v13741_v2 = vand.u32 4294901760, %v9857_v40  ;;  %v13744_v15 = vld [vmem:[#allocation19_spill] sm:$0xff]  ;;  %v13745_v25 = vld [vmem:[#allocation52_spill] sm:$0xff] }
 0x321   : > { %13738 = vst [vmem:[#allocation44_spill] sm:$0xff] %v9876_v12  ;;  %v3415_v57 = vand.u32 4294901760, %v3414_v21  ;;  %v2336_v23 = vadd.f32 %v2307_v35, %v9669_v22  ;;  %2525 = vmatmul.f32.gmra.mxu2 %v9876_v12  ;;  %2704 = vmatmul.f32.gmra.mxu3 %v9874_v63  ;;  %v1936_v0 = vadd.f32 %v9424_v24, %v9404_v13  ;;  %v13743_v35 = vld [vmem:[#allocation32_spill] sm:$0xff] }
 0x322   : > { %2940 = vmatmul.f32.gmra.mxu1 %v9846_v49  ;;  %3221 = vmatpush.msra.mxu0 %v9885_v5  ;;  %v3426_v22 = vsub.f32 %v9857_v40, %v13741_v2  ;;  %v9906_v21 = vsub.f32 %v2378_v20, %v9885_v5  ;;  %v9911_v38 = vand.u32 4294901760, %v9889_v14  ;;  %v3421_v13 = vand.u32 4294901760, %v3420_v4 }
 0x323   : > { %v2356_v50 = vadd.f32 %v9480_v46, %v2336_v23  ;;  %2826 = vmatmul.f32.gmra.mxu0 %v9889_v14  ;;  %3410 = vmatpush.msra.mxu1 %v3409_v43  ;;  %v1417_v36 = vadd.f32 %v13744_v15, %v13743_v35  ;;  %v1695_v2 = vadd.f32 %v13745_v25, %v1613_v39  ;;  %v13746_v20 = vand.u32 4294901760, %v9644_v11  ;;  %v13748_v35 = vld [vmem:[#allocation28_spill] sm:$0xff] }
 0x324   : > { %13742 = vst [vmem:[#allocation46_spill] sm:$0xff] %v9911_v38  ;;  %3538 = vmatpush.msra.mxu2 %v9791_v55  ;;  %v2229_v23 = vadd.f32 %v2228_v26, %v2139_v45  ;;  %v2531_v63 = vsub.f32 %v9889_v14, %v9911_v38  ;;  %v13747_v4 = vand.u32 4294901760, %v9871_v52  ;;  %3666 = vmatpush.msra.mxu3 %v9831_v17  ;;  %v3443_v24 = vand.u32 4294901760, %v9906_v21 }
 0x325   : > { %3773 = vmatpush.msrb.mxu0 %v13746_v20  ;;  %v2372_v49 = vmax.f32 %v2356_v50, 0.0  ;;  %3416 = vmatpush.msra.mxu1 %v3415_v57  ;;  %v1529_v15 = vadd.f32 %v13748_v35, %v1417_v36  ;;  %v2033_v39 = vadd.f32 %v2032_v6, %v1936_v0  ;;  %v2232_v25 = vpop.f32.mrf.mxu0  ;;  %v2310_v11 = vpop.f32.mrf.mxu1  ;;  %v3427_v20 = vand.u32 4294901760, %v3426_v22 }
 0x326   : > { %v3432_v43 = vsub.f32 %v9871_v52, %v13747_v4  ;;  %v13749_v45 = vand.u32 4294901760, %v9676_v29  ;;  %3541 = vmatpush.msra.mxu2 %v9808_v32  ;;  %v2311_v26 = vadd.f32 %v2310_v11, %v2229_v23  ;;  %v9933_v50 = vand.u32 4294901760, %v2531_v63  ;;  %3668 = vmatpush.msra.mxu3 %v9851_v27  ;;  %v2037_v11 = vpop.f32.mrf.mxu2 }
 0x327   : > { %v9931_v57 = vand.u32 4294901760, %v2372_v49  ;;  %3422 = vmatpush.msra.mxu1 %v3421_v13  ;;  %v13751_v4 = vand.u32 4294901760, %v9896_v10  ;;  %v13752_v0 = vand.u32 4294901760, %v9691_v16  ;;  %v13753_v13 = vld [vmem:[#allocation55_spill] sm:$0xff]  ;;  %v2145_v23 = vadd.f32 %v2144_v34, %v2033_v39 }
 0x328   : > { %3777 = vmatpush.msrb.mxu0 %v13749_v45  ;;  %13750 = vst [vmem:[#allocation41_spill] sm:$0xff] %v9933_v50  ;;  %3544 = vmatpush.msra.mxu2 %v9838_v47  ;;  %v2337_v22 = vadd.f32 %v2311_v26, %v1695_v2  ;;  %v3433_v63 = vand.u32 4294901760, %v3432_v43  ;;  %v1617_v36 = vadd.f32 %v13753_v13, %v1529_v15  ;;  %v13754_v16 = vand.u32 4294901760, %v9710_v48  ;;  %v2150_v48 = vpop.f32.mrf.mxu3 }
 0x329   : > { %v3438_v6 = vsub.f32 %v9896_v10, %v13751_v4  ;;  %v9943_v29 = vsub.f32 %v2372_v49, %v9931_v57  ;;  %2533 = vmatmul.f32.gmra.mxu2 %v9933_v50  ;;  %2708 = vmatmul.f32.gmra.mxu3 %v9931_v57  ;;  %v1940_v35 = vadd.f32 %v9442_v59, %v9422_v56  ;;  %v13756_v56 = vld [vmem:[#allocation23_spill] sm:$0xff]  ;;  %v13757_v59 = vld [vmem:[#allocation25_spill] sm:$0xff]  ;;  %v13758_v39 = vand.u32 4294901760, %v9720_v9 }
 0x32a   : > { %3781 = vmatpush.msrb.mxu0 %v13752_v0  ;;  %2946 = vmatmul.f32.gmra.mxu1 %v9911_v38  ;;  %v2357_v49 = vadd.f32 %v9480_v46, %v2337_v22  ;;  %v3444_v34 = vsub.f32 %v9906_v21, %v3443_v24  ;;  %v1422_v15 = vadd.f32 %v13757_v59, %v13756_v56  ;;  %v13760_v0 = vld [vmem:[#allocation30_spill] sm:$0xff]  ;;  %v13761_v9 = vand.u32 4294901760, %v9741_v61  ;;  %v13764_v61 = vld [vmem:[#allocation59_spill] sm:$0xff] }
 0x32b   : > { %2831 = vmatmul.f32.gmra.mxu0 %v9943_v29  ;;  %v9956_v2 = vand.u32 4294901760, %v9943_v29  ;;  %3428 = vmatpush.msra.mxu1 %v3427_v20  ;;  %v3439_v43 = vand.u32 4294901760, %v3438_v6  ;;  %v2233_v45 = vadd.f32 %v2232_v25, %v2145_v23  ;;  %v13759_v20 = vld [vmem:[#allocation56_spill] sm:$0xff]  ;;  %v2038_v13 = vadd.f32 %v2037_v11, %v1940_v35 }
 0x32c   : > { %3785 = vmatpush.msrb.mxu0 %v13754_v16  ;;  %3670 = vmatpush.msra.mxu3 %v9862_v18  ;;  %v2373_v26 = vmax.f32 %v2357_v49, 0.0  ;;  %v1699_v6 = vadd.f32 %v13759_v20, %v1617_v36  ;;  %v1535_v22 = vadd.f32 %v13760_v0, %v1422_v15  ;;  %v13763_v36 = vand.u32 4294901760, %v9769_v60  ;;  %v13770_v0 = vld [vmem:[#allocation36_spill] sm:$0xff] }
 0x32d   : > { %13755 = vst [vmem:[#allocation43_spill] sm:$0xff] %v9956_v2  ;;  %v2539_v4 = vsub.f32 %v9943_v29, %v9956_v2  ;;  %3434 = vmatpush.msra.mxu1 %v3433_v63  ;;  %3547 = vmatpush.msra.mxu2 %v9841_v1  ;;  %v2236_v16 = vpop.f32.mrf.mxu0  ;;  %v2314_v56 = vpop.f32.mrf.mxu1  ;;  %v3445_v63 = vand.u32 4294901760, %v3444_v34  ;;  %v2151_v34 = vadd.f32 %v2150_v48, %v2038_v13 }
 0x32e   : > { %3789 = vmatpush.msrb.mxu0 %v13758_v39  ;;  %3672 = vmatpush.msra.mxu3 %v9885_v5  ;;  %v9974_v25 = vand.u32 4294901760, %v2373_v26  ;;  %v2315_v23 = vadd.f32 %v2314_v56, %v2233_v45  ;;  %v1621_v59 = vadd.f32 %v13764_v61, %v1535_v22  ;;  %v1944_v60 = vadd.f32 %v9460_v41, %v9440_v3  ;;  %v13766_v45 = vld [vmem:[#allocation27_spill] sm:$0xff]  ;;  %v2042_v20 = vpop.f32.mrf.mxu2  ;;  %v13769_v41 = vld [vmem:[#allocation60_spill] sm:$0xff] }
 0x32f   : > { %v9976_v49 = vand.u32 4294901760, %v2539_v4  ;;  %3440 = vmatpush.msra.mxu1 %v3439_v43  ;;  %3550 = vmatpush.msra.mxu2 %v9857_v40  ;;  %v13765_v43 = vand.u32 4294901760, %v9778_v42  ;;  %v13768_v42 = vand.u32 4294901760, %v9791_v55  ;;  %v2237_v48 = vadd.f32 %v2236_v16, %v2151_v34  ;;  %v13775_v61 = vld [vmem:[#allocation63_spill] sm:$0xff] }
 0x330   : > { %3793 = vmatpush.msrb.mxu0 %v13761_v9  ;;  %v9982_v35 = vsub.f32 %v2373_v26, %v9974_v25  ;;  %v2338_v11 = vadd.f32 %v2315_v23, %v1699_v6  ;;  %v13767_v26 = vld [vmem:[#allocation24_spill] sm:$0xff]  ;;  %v2043_v55 = vadd.f32 %v2042_v20, %v1944_v60 }
 0x331   : > { %13762 = vst [vmem:[#allocation20_spill] sm:$0xff] %v9976_v49  ;;  %2541 = vmatmul.f32.gmra.mxu2 %v9976_v49  ;;  %2712 = vmatmul.f32.gmra.mxu3 %v9974_v25  ;;  %v1427_v4 = vadd.f32 %v13767_v26, %v13766_v45  ;;  %v13777_v45 = vand.u32 4294901760, %v9871_v52  ;;  %v13778_v26 = vld [vmem:[#allocation64_spill] sm:$0xff] }
 0x332   : > { %3797 = vmatpush.msrb.mxu0 %v13763_v36  ;;  %2952 = vmatmul.f32.gmra.mxu1 %v9956_v2  ;;  %v2358_v15 = vadd.f32 %v9480_v46, %v2338_v11  ;;  %v9995_v39 = vand.u32 4294901760, %v9982_v35  ;;  %v1703_v46 = vadd.f32 %v13769_v41, %v1621_v59  ;;  %v13773_v36 = vand.u32 4294901760, %v9838_v47  ;;  %v13785_v41 = vld [vmem:[#allocation70_spill] sm:$0xff] }
 0x333   : > { %2836 = vmatmul.f32.gmra.mxu0 %v9982_v35  ;;  %3446 = vmatpush.msra.mxu1 %v3445_v63  ;;  %v1541_v22 = vadd.f32 %v13770_v0, %v1427_v4  ;;  %v2156_v63 = vpop.f32.mrf.mxu3 }
 0x334   : > { %3801 = vmatpush.msrb.mxu0 %v13765_v43  ;;  %v2374_v6 = vmax.f32 %v2358_v15, 0.0  ;;  %v2547_v3 = vsub.f32 %v9982_v35, %v9995_v39  ;;  %3553 = vmatpush.msra.mxu2 %v9871_v52  ;;  %v13776_v43 = vand.u32 4294901760, %v9857_v40 }
 0x335   : > { %3900 = vmatpush.msrb.mxu1 %v9633_v54  ;;  %v2240_v13 = vpop.f32.mrf.mxu0  ;;  %v2318_v56 = vpop.f32.mrf.mxu1  ;;  %v13771_v54 = vand.u32 4294901760, %v9808_v32  ;;  %v13774_v32 = vand.u32 4294901760, %v9841_v1  ;;  %v1625_v59 = vadd.f32 %v13775_v61, %v1541_v22 }
 0x336   : > { %3805 = vmatpush.msrb.mxu0 %v13768_v42  ;;  %v10010_v9 = vand.u32 4294901760, %v2374_v6  ;;  %v2319_v16 = vadd.f32 %v2318_v56, %v2237_v48  ;;  %v10012_v23 = vand.u32 4294901760, %v2547_v3  ;;  %3556 = vmatpush.msra.mxu2 %v9896_v10  ;;  %v13780_v42 = vand.u32 4294901760, %v9896_v10  ;;  %v10067_v52 = vpop.f32.mrf.mxu2 }
 0x337   : > { %3902 = vmatpush.msrb.mxu1 %v9646_v58  ;;  %v1707_v4 = vadd.f32 %v13778_v26, %v1625_v59 }
 0x338   : > { %3809 = vmatpush.msrb.mxu0 %v13771_v54  ;;  %13772 = vst [vmem:[#allocation17_spill] sm:$0xff] %v10012_v23  ;;  %v10019_v11 = vsub.f32 %v2374_v6, %v10010_v9  ;;  %v10021_v58 = vadd.f32 %v2319_v16, %v1703_v46  ;;  %3559 = vmatpush.msra.mxu2 %v9906_v21  ;;  %v13783_v21 = vld [vmem:[#allocation67_spill] sm:$0xff]  ;;  %v13784_v6 = vld [vmem:[#allocation74_spill] sm:$0xff]  ;;  %v13787_v54 = vld [vmem:[#allocation73_spill] sm:$0xff] }
 0x339   : > { %3904 = vmatpush.msrb.mxu1 %v9660_v30  ;;  %2549 = vmatmul.f32.gmra.mxu2 %v10012_v23  ;;  %v2157_v30 = vadd.f32 %v2156_v63, %v2043_v55  ;;  %v13786_v46 = vld [vmem:[#allocation51_spill] sm:$0xff]  ;;  %v13788_v55 = vld [vmem:[#allocation54_spill] sm:$0xff] }
 0x33a   : > { %3813 = vmatpush.msrb.mxu0 %v13773_v36  ;;  %2716 = vmatmul.f32.gmra.mxu3 %v10010_v9  ;;  %v10031_v47 = vand.u32 4294901760, %v10019_v11 }
 0x33b   : > { %2958 = vmatmul.f32.gmra.mxu1 %v9995_v39  ;;  %2841 = vmatmul.f32.gmra.mxu0 %v10019_v11  ;;  %v2241_v34 = vadd.f32 %v2240_v13, %v2157_v30  ;;  %v10048_v40 = vpop.f32.mrf.mxu3  ;;  %v13789_v30 = vld [vmem:[#allocation47_spill] sm:$0xff] }
 0x33c   : > { %3817 = vmatpush.msrb.mxu0 %v13774_v32  ;;  %3906 = vmatpush.msrb.mxu1 %v9684_v51  ;;  %v2555_v1 = vsub.f32 %v10019_v11, %v10031_v47 }
 0x33d   : > { %v2322_v60 = vpop.f32.mrf.mxu1  ;;  %v10040_v15 = vpop.f32.mrf.mxu0 }
 0x33e   : > { %3821 = vmatpush.msrb.mxu0 %v13776_v43  ;;  %3908 = vmatpush.msrb.mxu1 %v9701_v19  ;;  %v2323_v51 = vadd.f32 %v2322_v60, %v2241_v34  ;;  %v10045_v20 = vand.u32 4294901760, %v2555_v1  ;;  %v13790_v43 = vld [vmem:[#allocation35_spill] sm:$0xff] }
 0x340   : > { %3825 = vmatpush.msrb.mxu0 %v13777_v45  ;;  %13779 = vst [vmem:[#allocation45_spill] sm:$0xff] %v10045_v20  ;;  %3910 = vmatpush.msrb.mxu1 %v9717_v62  ;;  %v10052_v48 = vadd.f32 %v2323_v51, %v1707_v4 }
 0x341   : > { %2557 = vmatmul.f32.gmra.mxu2 %v10045_v20 }
 0x342   : > { %3829 = vmatpush.msrb.mxu0 %v13780_v42  ;;  %3127 = vmatmul.f32.vlgmr.msrb.gmra.mxu3 %v13613_v33  ;;  %v13791_v42 = vld [vmem:[#allocation50_spill] sm:$0xff] }
 0x343   : > { %2964 = vmatmul.f32.gmra.mxu1 %v10031_v47  ;;  %3227 = vmatmul.f32.vlgmr.msra.gmra.mxu0 %v9507_v37  ;;  %v10072_v10 = vpop.f32.mrf.mxu3  ;;  %v13781_v37 = vld [vmem:[#allocation16_spill] sm:$0xff] }
 0x344   : > { %3833 = vmatpush.msrb.mxu0 %v3443_v24  ;;  %3912 = vmatpush.msrb.mxu1 %v9730_v28  ;;  %v13782_v28 = vld [vmem:[#allocation18_spill] sm:$0xff]  ;;  %v10083_v24 = vpop.f32.mrf.mxu2 }
 0x345   : > { %v10062_v62 = vpop.f32.mrf.mxu1  ;;  %v10064_v19 = vpop.f32.mrf.mxu0 }
 0x346   : > { %3914 = vmatpush.msrb.mxu1 %v9754_v31 }
 0x348   : > { %3916 = vmatpush.msrb.mxu1 %v9766_v7 }
 0x349   : > { %3032 = vmatmul.f32.vlgmr.msrb.gmra.mxu2 %v13613_v33 }
 0x34a   : > { %3130 = vmatmul.f32.gmra.mxu3 %v13613_v33  ;;  %3918 = vmatpush.msrb.mxu1 %v13781_v37  ;;  %v13792_v37 = vld [vmem:[#allocation58_spill] sm:$0xff] }
 0x34b   : > { %3448 = vmatmul.f32.vlgmr.msra.gmra.mxu1 %v9488_v8  ;;  %3235 = vmatmul.f32.gmra.mxu0 %v9527_v44 }
 0x34c   : > { %3920 = vmatpush.msrb.mxu1 %v13782_v28 }
 0x34d   : > { %v10077_v31 = vpop.f32.mrf.mxu1 }
 0x34e   : > { %3922 = vmatpush.msrb.mxu1 %v9819_v53 }
 0x34f   : > { %v2777_v7 = vpop.f32.mrf.mxu0 }
 0x350   : > { %3924 = vmatpush.msrb.mxu1 %v9831_v17 }
 0x351   : > { %3035 = vmatmul.f32.gmra.mxu2 %v13613_v33 }
 0x352   : > { %3134 = vmatmul.f32.gmra.mxu3 %v9488_v8  ;;  %3926 = vmatpush.msrb.mxu1 %v9851_v27 }
 0x353   : > { %3452 = vmatmul.f32.gmra.mxu1 %v13783_v21  ;;  %3243 = vmatmul.f32.gmra.mxu0 %v13784_v6  ;;  %v2665_v44 = vpop.f32.mrf.mxu3 }
 0x354   : > { %3928 = vmatpush.msrb.mxu1 %v9862_v18 }
 0x356   : > { %v2887_v3 = vpop.f32.mrf.mxu1  ;;  %3930 = vmatpush.msrb.mxu1 %v9885_v5 }
 0x357   : > { %v2782_v53 = vpop.f32.mrf.mxu0 }
 0x359   : > { %3039 = vmatmul.f32.gmra.mxu2 %v9488_v8 }
 0x35a   : > { %3138 = vmatmul.f32.gmra.mxu3 %v13783_v21 }
 0x35b   : > { %3456 = vmatmul.f32.gmra.mxu1 %v13785_v41  ;;  %3251 = vmatmul.f32.gmra.mxu0 %v13786_v46  ;;  %v2454_v0 = vpop.f32.mrf.mxu2  ;;  %v2669_v22 = vpop.f32.mrf.mxu3 }
 0x35c   : > { %v2666_v17 = vadd.f32 %v2665_v44, %v2454_v0 }
 0x35e   : > { %v2778_v13 = vadd.f32 %v2777_v7, %v2666_v17  ;;  %v2893_v56 = vpop.f32.mrf.mxu1  ;;  %v13793_v17 = vld [vmem:[#allocation39_spill] sm:$0xff] }
 0x35f   : > { %v2787_v27 = vpop.f32.mrf.mxu0 }
 0x360   : > { %v10096_v18 = vadd.f32 %v2887_v3, %v2778_v13  ;;  %v13794_v13 = vld [vmem:[#allocation14_spill] sm:$0xff] }
 0x361   : > { %3043 = vmatmul.f32.gmra.mxu2 %v13783_v21 }
 0x362   : > { %3142 = vmatmul.f32.gmra.mxu3 %v13785_v41 }
 0x363   : > { %3460 = vmatmul.f32.gmra.mxu1 %v13787_v54  ;;  %3259 = vmatmul.f32.gmra.mxu0 %v13788_v55  ;;  %v2462_v16 = vpop.f32.mrf.mxu2  ;;  %v2673_v63 = vpop.f32.mrf.mxu3 }
 0x364   : > { %v2670_v36 = vadd.f32 %v2669_v22, %v2462_v16 }
 0x366   : > { %v2783_v5 = vadd.f32 %v2782_v53, %v2670_v36  ;;  %v2899_v32 = vpop.f32.mrf.mxu1 }
 0x367   : > { %v2792_v61 = vpop.f32.mrf.mxu0 }
 0x368   : > { %v10102_v59 = vadd.f32 %v2893_v56, %v2783_v5 }
 0x369   : > { %3047 = vmatmul.f32.gmra.mxu2 %v13785_v41 }
 0x36a   : > { %3146 = vmatmul.f32.gmra.mxu3 %v13787_v54 }
 0x36b   : > { %3464 = vmatmul.f32.gmra.mxu1 %v13789_v30  ;;  %3267 = vmatmul.f32.gmra.mxu0 %v13790_v43  ;;  %v2470_v34 = vpop.f32.mrf.mxu2  ;;  %v2677_v1 = vpop.f32.mrf.mxu3 }
 0x36c   : > { %v2674_v60 = vadd.f32 %v2673_v63, %v2470_v34  ;;  %v13796_v34 = vld [vmem:[#allocation62_spill] sm:$0xff] }
 0x36e   : > { %v2788_v45 = vadd.f32 %v2787_v27, %v2674_v60  ;;  %v2905_v26 = vpop.f32.mrf.mxu1 }
 0x36f   : > { %v2797_v4 = vpop.f32.mrf.mxu0 }
 0x370   : > { %v10108_v51 = vadd.f32 %v2899_v32, %v2788_v45 }
 0x371   : > { %3051 = vmatmul.f32.gmra.mxu2 %v13787_v54 }
 0x372   : > { %3150 = vmatmul.f32.gmra.mxu3 %v13789_v30 }
 0x373   : > { %3468 = vmatmul.f32.gmra.mxu1 %v13791_v42  ;;  %3275 = vmatmul.f32.gmra.mxu0 %v13792_v37  ;;  %v2478_v28 = vpop.f32.mrf.mxu2  ;;  %v2681_v7 = vpop.f32.mrf.mxu3 }
 0x374   : > { %v2678_v44 = vadd.f32 %v2677_v1, %v2478_v28 }
 0x376   : > { %v2793_v3 = vadd.f32 %v2792_v61, %v2678_v44  ;;  %v2911_v53 = vpop.f32.mrf.mxu1  ;;  %v13795_v61 = vld [vmem:[#allocation53_spill] sm:$0xff] }
 0x377   : > { %v2802_v0 = vpop.f32.mrf.mxu0 }
 0x378   : > { %v10114_v22 = vadd.f32 %v2905_v26, %v2793_v3 }
 0x379   : > { %3055 = vmatmul.f32.gmra.mxu2 %v13789_v30 }
 0x37a   : > { %3154 = vmatmul.f32.gmra.mxu3 %v13791_v42 }
 0x37b   : > { %3472 = vmatmul.f32.gmra.mxu1 %v13793_v17  ;;  %3283 = vmatmul.f32.gmra.mxu0 %v13794_v13  ;;  %v2486_v56 = vpop.f32.mrf.mxu2  ;;  %v2685_v27 = vpop.f32.mrf.mxu3 }
 0x37c   : > { %v2682_v16 = vadd.f32 %v2681_v7, %v2486_v56  ;;  %v13797_v7 = vld [vmem:[#allocation13_spill] sm:$0xff] }
 0x37e   : > { %v2798_v63 = vadd.f32 %v2797_v4, %v2682_v16  ;;  %v2917_v36 = vpop.f32.mrf.mxu1 }
 0x37f   : > { %v2807_v5 = vpop.f32.mrf.mxu0 }
 0x380   : > { %v10120_v32 = vadd.f32 %v2911_v53, %v2798_v63 }
 0x381   : > { %3059 = vmatmul.f32.gmra.mxu2 %v13791_v42 }
 0x382   : > { %3158 = vmatmul.f32.gmra.mxu3 %v13793_v17 }
 0x383   : > { %3476 = vmatmul.f32.gmra.mxu1 %v13795_v61  ;;  %3291 = vmatmul.f32.gmra.mxu0 %v13796_v34  ;;  %v2494_v1 = vpop.f32.mrf.mxu2  ;;  %v2689_v60 = vpop.f32.mrf.mxu3 }
 0x384   : > { %v2686_v45 = vadd.f32 %v2685_v27, %v2494_v1  ;;  %v13798_v27 = vld [vmem:[#allocation57_spill] sm:$0xff] }
 0x386   : > { %v2803_v26 = vadd.f32 %v2802_v0, %v2686_v45  ;;  %v2923_v28 = vpop.f32.mrf.mxu1 }
 0x387   : > { %v2812_v44 = vpop.f32.mrf.mxu0 }
 0x388   : > { %v10126_v4 = vadd.f32 %v2917_v36, %v2803_v26 }
 0x389   : > { %3063 = vmatmul.f32.gmra.mxu2 %v13793_v17 }
 0x38a   : > { %3162 = vmatmul.f32.gmra.mxu3 %v13795_v61 }
 0x38b   : > { %3480 = vmatmul.f32.gmra.mxu1 %v13797_v7  ;;  %3299 = vmatmul.f32.gmra.mxu0 %v9876_v12  ;;  %v2502_v3 = vpop.f32.mrf.mxu2  ;;  %v2693_v53 = vpop.f32.mrf.mxu3 }
 0x38c   : > { %v2690_v56 = vadd.f32 %v2689_v60, %v2502_v3  ;;  %v13799_v3 = vld [vmem:[#allocation34_spill] sm:$0xff] }
 0x38e   : > { %v2808_v16 = vadd.f32 %v2807_v5, %v2690_v56  ;;  %v2929_v63 = vpop.f32.mrf.mxu1  ;;  %v8172_v5 = vld [vmem:[%s13234_s2] ss:$0 sm:$0xff] }
 0x38f   : > { %v2817_v33 = vpop.f32.mrf.mxu0  ;;  %v2359_v60 = vadd.f32 %v8172_v5, %v10021_v58  ;;  %v2360_v58 = vadd.f32 %v8172_v5, %v10052_v48 }
 0x390   : > { %v10132_v0 = vadd.f32 %v2923_v28, %v2808_v16 }
 0x391   : > { %3067 = vmatmul.f32.gmra.mxu2 %v13795_v61  ;;  %v2375_v56 = vmax.f32 %v2359_v60, 0.0 }
 0x392   : > { %3166 = vmatmul.f32.gmra.mxu3 %v13797_v7 }
 0x393   : > { %3484 = vmatmul.f32.gmra.mxu1 %v13798_v27  ;;  %3307 = vmatmul.f32.gmra.mxu0 %v9933_v50  ;;  %v2510_v36 = vpop.f32.mrf.mxu2  ;;  %v2697_v1 = vpop.f32.mrf.mxu3  ;;  %v10146_v13 = vand.u32 4294901760, %v2375_v56 }
 0x394   : > { %v2694_v45 = vadd.f32 %v2693_v53, %v2510_v36 }
 0x396   : > { %v2813_v26 = vadd.f32 %v2812_v44, %v2694_v45  ;;  %v2935_v12 = vpop.f32.mrf.mxu1 }
 0x397   : > { %v2822_v34 = vpop.f32.mrf.mxu0 }
 0x398   : > { %v10142_v28 = vadd.f32 %v2929_v63, %v2813_v26 }
 0x399   : > { %3071 = vmatmul.f32.gmra.mxu2 %v13797_v7 }
 0x39a   : > { %3170 = vmatmul.f32.gmra.mxu3 %v13798_v27 }
 0x39b   : > { %3488 = vmatmul.f32.gmra.mxu1 %v13799_v3  ;;  %3315 = vmatmul.f32.gmra.mxu0 %v9976_v49  ;;  %v2518_v53 = vpop.f32.mrf.mxu2  ;;  %v2701_v44 = vpop.f32.mrf.mxu3 }
 0x39c   : > { %v2698_v16 = vadd.f32 %v2697_v1, %v2518_v53  ;;  %v2376_v1 = vmax.f32 %v2360_v58, 0.0 }
 0x39e   : > { %v2818_v36 = vadd.f32 %v2817_v33, %v2698_v16  ;;  %v10156_v33 = vsub.f32 %v2375_v56, %v10146_v13  ;;  %v10158_v5 = vand.u32 4294901760, %v2376_v1 }
 0x39f   : > { %v2941_v45 = vpop.f32.mrf.mxu1 }
 0x3a0   : > { %v2827_v50 = vpop.f32.mrf.mxu0  ;;  %v10151_v63 = vadd.f32 %v2935_v12, %v2818_v36  ;;  %v10163_v12 = vand.u32 4294901760, %v10156_v33 }
 0x3a1   : > { %3075 = vmatmul.f32.gmra.mxu2 %v13798_v27 }
 0x3a2   : > { %3174 = vmatmul.f32.gmra.mxu3 %v13799_v3 }
 0x3a3   : > { %3492 = vmatmul.f32.gmra.mxu1 %v9931_v57  ;;  %3323 = vmatmul.f32.gmra.mxu0 %v10012_v23 }
 0x3a4   : > { %v2526_v26 = vpop.f32.mrf.mxu2  ;;  %v2705_v60 = vpop.f32.mrf.mxu3 }
 0x3a5   : > { %v2702_v53 = vadd.f32 %v2701_v44, %v2526_v26  ;;  %v3337_v26 = vsub.f32 %v10156_v33, %v10163_v12 }
 0x3a7   : > { %v2823_v16 = vadd.f32 %v2822_v34, %v2702_v53  ;;  %v2947_v49 = vpop.f32.mrf.mxu1  ;;  %v10170_v34 = vsub.f32 %v2376_v1, %v10158_v5 }
 0x3a8   : > { %v2832_v48 = vpop.f32.mrf.mxu0 }
 0x3a9   : > { %3079 = vmatmul.f32.gmra.mxu2 %v13799_v3  ;;  %v10165_v36 = vadd.f32 %v2941_v45, %v2823_v16  ;;  %13800 = vst [vmem:[#allocation48_spill] sm:$0xff] %v10170_v34  ;;  %v10176_v45 = vand.u32 4294901760, %v3337_v26  ;;  %v10179_v16 = vand.u32 4294901760, %v10170_v34 }
 0x3aa   : > { %3178 = vmatmul.f32.gmra.mxu3 %v9931_v57 }
 0x3ab   : > { %3496 = vmatmul.f32.gmra.mxu1 %v9974_v25  ;;  %3331 = vmatmul.f32.gmra.mxu0 %v10045_v20  ;;  %13801 = vst [vmem:[#allocation22_spill] sm:$0xff] %v10176_v45 }
 0x3ac   : > { %v2534_v56 = vpop.f32.mrf.mxu2  ;;  %v2709_v44 = vpop.f32.mrf.mxu3 }
 0x3ad   : > { %v2706_v58 = vadd.f32 %v2705_v60, %v2534_v56  ;;  %v3345_v56 = vsub.f32 %v10170_v34, %v10179_v16  ;;  %v13805_v34 = vld [vmem:[#allocation65_spill] sm:$0xff] }
 0x3af   : > { %v2828_v53 = vadd.f32 %v2827_v50, %v2706_v58  ;;  %v2953_v23 = vpop.f32.mrf.mxu1  ;;  %v10189_v26 = vand.u32 4294901760, %v3345_v56 }
 0x3b0   : > { %v2837_v37 = vpop.f32.mrf.mxu0 }
 0x3b1   : > { %3083 = vmatmul.f32.gmra.mxu2 %v9931_v57  ;;  %v10181_v20 = vadd.f32 %v2947_v49, %v2828_v53  ;;  %13802 = vst [vmem:[#allocation61_spill] sm:$0xff] %v10189_v26 }
 0x3b2   : > { %3182 = vmatmul.f32.gmra.mxu3 %v9974_v25 }
 0x3b3   : > { %3500 = vmatmul.f32.gmra.mxu1 %v10010_v9  ;;  %3339 = vmatmul.f32.gmra.mxu0 %v10176_v45 }
 0x3b4   : > { %v2542_v60 = vpop.f32.mrf.mxu2  ;;  %v2713_v1 = vpop.f32.mrf.mxu3 }
 0x3b5   : > { %v2710_v50 = vadd.f32 %v2709_v44, %v2542_v60 }
 0x3b7   : > { %v2833_v58 = vadd.f32 %v2832_v48, %v2710_v50  ;;  %v13803_v50 = vld [vmem:[#allocation66_spill] sm:$0xff] }
 0x3b8   : > { %v2959_v43 = vpop.f32.mrf.mxu1  ;;  %v2842_v55 = vpop.f32.mrf.mxu0 }
 0x3b9   : > { %3087 = vmatmul.f32.gmra.mxu2 %v9974_v25  ;;  %v10191_v49 = vadd.f32 %v2953_v23, %v2833_v58  ;;  %v2659_v23 = vadd.f32 %v10048_v40, %v10067_v52  ;;  %v2662_v40 = vadd.f32 %v10072_v10, %v10083_v24 }
 0x3ba   : > { %3186 = vmatmul.f32.gmra.mxu3 %v10010_v9 }
 0x3bb   : > { %3504 = vmatmul.f32.gmra.mxu1 %v10146_v13  ;;  %3347 = vmatmul.f32.gmra.mxu0 %v10189_v26 }
 0x3bc   : > { %v2550_v53 = vpop.f32.mrf.mxu2 }
 0x3bd   : > { %v2717_v44 = vpop.f32.mrf.mxu3  ;;  %v2714_v60 = vadd.f32 %v2713_v1, %v2550_v53 }
 0x3bf   : > { %v2838_v45 = vadd.f32 %v2837_v37, %v2714_v60  ;;  %v2770_v37 = vadd.f32 %v10040_v15, %v2659_v23 }
 0x3c0   : > { %v2965_v46 = vpop.f32.mrf.mxu1  ;;  %v3228_v48 = vpop.f32.mrf.mxu0 }
 0x3c1   : > { %3091 = vmatmul.f32.gmra.mxu2 %v10010_v9  ;;  %v10197_v6 = vadd.f32 %v2959_v43, %v2838_v45  ;;  %v2879_v52 = vadd.f32 %v10062_v62, %v2770_v37 }
 0x3c2   : > { %3676 = vmatmul.f32.vlgmr.msra.gmra.mxu3 %v13803_v50  ;;  %v13806_v50 = vld [vmem:[#allocation69_spill] sm:$0xff] }
 0x3c3   : > { %13804 = vst [vmem:[#allocation49_spill] sm:$0xff] %v10197_v6  ;;  %3508 = vmatmul.f32.gmra.mxu1 %v10158_v5  ;;  %3835 = vmatmul.f32.vlgmr.msrb.gmra.mxu0 %v9488_v8 }
 0x3c4   : > { %v2558_v56 = vpop.f32.mrf.mxu2 }
 0x3c5   : > { %v3128_v58 = vpop.f32.mrf.mxu3  ;;  %v2718_v26 = vadd.f32 %v2717_v44, %v2558_v56  ;;  %v13808_v56 = vld [vmem:[#allocation68_spill] sm:$0xff] }
 0x3c7   : > { %v2843_v1 = vadd.f32 %v2842_v55, %v2718_v26  ;;  %v2773_v26 = vadd.f32 %v10064_v19, %v2662_v40  ;;  %v13811_v40 = vld [vmem:[#allocation71_spill] sm:$0xff] }
 0x3c8   : > { %v3449_v53 = vpop.f32.mrf.mxu1  ;;  %v3236_v60 = vpop.f32.mrf.mxu0 }
 0x3c9   : > { %3562 = vmatmul.f32.vlgmr.msra.gmra.mxu2 %v13805_v34  ;;  %v10206_v43 = vadd.f32 %v2965_v46, %v2843_v1  ;;  %v13809_v46 = vld [vmem:[#allocation72_spill] sm:$0xff]  ;;  %v2882_v10 = vadd.f32 %v10077_v31, %v2773_v26 }
 0x3ca   : > { %3682 = vmatmul.f32.gmra.mxu3 %v13806_v50 }
 0x3cb   : > { %13807 = vst [vmem:[#allocation32_spill] sm:$0xff] %v10206_v43  ;;  %3932 = vmatmul.f32.vlgmr.msrb.gmra.mxu1 %v9488_v8  ;;  %3839 = vmatmul.f32.gmra.mxu0 %v13783_v21 }
 0x3cc   : > { %v3033_v45 = vpop.f32.mrf.mxu2 }
 0x3cd   : > { %v3131_v15 = vpop.f32.mrf.mxu3  ;;  %v3034_v55 = vadd.f32 %v3033_v45, %v2879_v52  ;;  %v13812_v52 = vld [vmem:[#allocation26_spill] sm:$0xff] }
 0x3cf   : > { %v3129_v44 = vadd.f32 %v3128_v58, %v3034_v55 }
 0x3d0   : > { %v3453_v34 = vpop.f32.mrf.mxu1  ;;  %v3244_v23 = vpop.f32.mrf.mxu0 }
 0x3d1   : > { %3567 = vmatmul.f32.gmra.mxu2 %v13808_v56  ;;  %v3229_v8 = vadd.f32 %v3228_v48, %v3129_v44  ;;  %v13814_v44 = vld [vmem:[#allocation75_spill] sm:$0xff]  ;;  %v13815_v56 = vld [vmem:[#allocation33_spill] sm:$0xff] }
 0x3d2   : > { %3688 = vmatmul.f32.gmra.mxu3 %v13809_v46 }
 0x3d3   : > { %3936 = vmatmul.f32.gmra.mxu1 %v13783_v21  ;;  %3843 = vmatmul.f32.gmra.mxu0 %v13785_v41  ;;  %v10219_v62 = vadd.f32 %v3449_v53, %v3229_v8 }
 0x3d4   : > { %v3036_v24 = vpop.f32.mrf.mxu2 }
 0x3d5   : > { %13810 = vst [vmem:[#allocation19_spill] sm:$0xff] %v10219_v62  ;;  %v3135_v37 = vpop.f32.mrf.mxu3  ;;  %v3037_v1 = vadd.f32 %v3036_v24, %v2882_v10 }
 0x3d7   : > { %v3132_v19 = vadd.f32 %v3131_v15, %v3037_v1 }
 0x3d8   : > { %v3457_v58 = vpop.f32.mrf.mxu1  ;;  %v3252_v50 = vpop.f32.mrf.mxu0 }
 0x3d9   : > { %3572 = vmatmul.f32.gmra.mxu2 %v13811_v40  ;;  %v3237_v45 = vadd.f32 %v3236_v60, %v3132_v19  ;;  %v13817_v19 = vld [vmem:[#allocation76_spill] sm:$0xff] }
 0x3da   : > { %3694 = vmatmul.f32.gmra.mxu3 %v13812_v52 }
 0x3db   : > { %3940 = vmatmul.f32.gmra.mxu1 %v13785_v41  ;;  %3847 = vmatmul.f32.gmra.mxu0 %v13787_v54  ;;  %v10225_v21 = vadd.f32 %v3453_v34, %v3237_v45  ;;  %v13818_v45 = vld [vmem:[#allocation29_spill] sm:$0xff] }
 0x3dc   : > { %v3040_v31 = vpop.f32.mrf.mxu2 }
 0x3dd   : > { %13813 = vst [vmem:[#allocation52_spill] sm:$0xff] %v10225_v21  ;;  %v3139_v48 = vpop.f32.mrf.mxu3  ;;  %v3041_v53 = vadd.f32 %v3040_v31, %v10096_v18  ;;  %v4007_v21 = vld [vmem:[#allocation3 + $0x150] sm:$0xff] }
 0x3df   : > { %v3136_v55 = vadd.f32 %v3135_v37, %v3041_v53 }
 0x3e0   : > { %v3461_v26 = vpop.f32.mrf.mxu1  ;;  %v3260_v15 = vpop.f32.mrf.mxu0 }
 0x3e1   : > { %3577 = vmatmul.f32.gmra.mxu2 %v13814_v44  ;;  %v3245_v8 = vadd.f32 %v3244_v23, %v3136_v55 }
 0x3e2   : > { %3700 = vmatmul.f32.gmra.mxu3 %v13815_v56 }
 0x3e3   : > { %3944 = vmatmul.f32.gmra.mxu1 %v13787_v54  ;;  %3851 = vmatmul.f32.gmra.mxu0 %v13789_v30  ;;  %v10232_v60 = vadd.f32 %v3457_v58, %v3245_v8  ;;  %v4003_v54 = vld [vmem:[#allocation3 + $0x130] sm:$0xff] }
 0x3e4   : > { %v3044_v34 = vpop.f32.mrf.mxu2 }
 0x3e5   : > { %13816 = vst [vmem:[#allocation28_spill] sm:$0xff] %v10232_v60  ;;  %v3143_v10 = vpop.f32.mrf.mxu3  ;;  %v3045_v24 = vadd.f32 %v3044_v34, %v10102_v59  ;;  %v13820_v34 = vld [vmem:[#allocation77_spill] sm:$0xff] }
 0x3e7   : > { %v3140_v1 = vadd.f32 %v3139_v48, %v3045_v24  ;;  %v13821_v24 = vld [vmem:[#allocation37_spill] sm:$0xff] }
 0x3e8   : > { %v3465_v18 = vpop.f32.mrf.mxu1  ;;  %v3268_v37 = vpop.f32.mrf.mxu0 }
 0x3e9   : > { %3582 = vmatmul.f32.gmra.mxu2 %v13817_v19  ;;  %v3253_v31 = vadd.f32 %v3252_v50, %v3140_v1  ;;  %v10312_v19 = vand.u32 4294901760, %v4007_v21 }
 0x3ea   : > { %3706 = vmatmul.f32.gmra.mxu3 %v13818_v45  ;;  %v13824_v45 = vld [vmem:[#allocation31_spill] sm:$0xff] }
 0x3eb   : > { %3948 = vmatmul.f32.gmra.mxu1 %v13789_v30  ;;  %3855 = vmatmul.f32.gmra.mxu0 %v13791_v42  ;;  %v10239_v23 = vadd.f32 %v3461_v26, %v3253_v31 }
 0x3ec   : > { %v3048_v58 = vpop.f32.mrf.mxu2 }
 0x3ed   : > { %13819 = vst [vmem:[#allocation55_spill] sm:$0xff] %v10239_v23  ;;  %v3147_v53 = vpop.f32.mrf.mxu3  ;;  %v3049_v55 = vadd.f32 %v3048_v58, %v10108_v51  ;;  %v4012_v58 = vld [vmem:[#allocation3 + $0x178] sm:$0xff] }
 0x3ef   : > { %v3144_v8 = vadd.f32 %v3143_v10, %v3049_v55  ;;  %v13823_v55 = vld [vmem:[#allocation40_spill] sm:$0xff] }
 0x3f0   : > { %v3469_v59 = vpop.f32.mrf.mxu1  ;;  %v3276_v48 = vpop.f32.mrf.mxu0 }
 0x3f1   : > { %3587 = vmatmul.f32.gmra.mxu2 %v13820_v34  ;;  %v3261_v60 = vadd.f32 %v3260_v15, %v3144_v8  ;;  %v10253_v15 = vand.u32 4294901760, %v4012_v58 }
 0x3f2   : > { %3712 = vmatmul.f32.gmra.mxu3 %v13821_v24 }
 0x3f3   : > { %3952 = vmatmul.f32.gmra.mxu1 %v13791_v42  ;;  %3859 = vmatmul.f32.gmra.mxu0 %v13793_v17  ;;  %v10246_v50 = vadd.f32 %v3465_v18, %v3261_v60  ;;  %v4011_v60 = vld [vmem:[#allocation3 + $0x170] sm:$0xff]  ;;  %v10258_v18 = vsub.f32 %v4012_v58, %v10253_v15 }
 0x3f4   : > { %v3052_v26 = vpop.f32.mrf.mxu2  ;;  %4014 = vmatpush.msrb.mxu2 %v10253_v15  ;;  %4449 = vmatpush.msra.mxu1 %v10253_v15 }
 0x3f5   : > { %13822 = vst [vmem:[#allocation23_spill] sm:$0xff] %v10246_v50  ;;  %v3151_v1 = vpop.f32.mrf.mxu3  ;;  %v3053_v31 = vadd.f32 %v3052_v26, %v10114_v22  ;;  %v10260_v22 = vand.u32 4294901760, %v4011_v60  ;;  %4325 = vmatpush.msra.mxu0 %v10258_v18 }
 0x3f7   : > { %v3148_v23 = vadd.f32 %v3147_v53, %v3053_v31  ;;  %v10269_v50 = vsub.f32 %v4011_v60, %v10260_v22  ;;  %4016 = vmatpush.msrb.mxu2 %v10260_v22  ;;  %4451 = vmatpush.msra.mxu1 %v10260_v22 }
 0x3f8   : > { %v3473_v51 = vpop.f32.mrf.mxu1  ;;  %v10249_v10 = vpop.f32.mrf.mxu0 }
 0x3f9   : > { %3592 = vmatmul.f32.gmra.mxu2 %v13823_v55  ;;  %v3269_v8 = vadd.f32 %v3268_v37, %v3148_v23  ;;  %v13383_v23 = vand.u32 4294901760, %v10258_v18  ;;  %4328 = vmatpush.msra.mxu0 %v10269_v50 }
 0x3fa   : > { %3718 = vmatmul.f32.gmra.mxu3 %v13824_v45  ;;  %v4010_v45 = vld [vmem:[#allocation3 + $0x168] sm:$0xff] }
 0x3fb   : > { %3956 = vmatmul.f32.gmra.mxu1 %v13793_v17  ;;  %3863 = vmatmul.f32.gmra.mxu0 %v13795_v61  ;;  %v10263_v53 = vadd.f32 %v3469_v59, %v3269_v8  ;;  %v10272_v58 = vand.u32 4294901760, %v4010_v45  ;;  %v4009_v59 = vld [vmem:[#allocation3 + $0x160] sm:$0xff]  ;;  %v13827_v17 = vld [vmem:[#allocation15_spill] sm:$0xff] }
 0x3fc   : > { %v3056_v26 = vpop.f32.mrf.mxu2  ;;  %v10289_v55 = vand.u32 4294901760, %v4009_v59 }
 0x3fd   : > { %13825 = vst [vmem:[#allocation25_spill] sm:$0xff] %v10263_v53  ;;  %v3155_v31 = vpop.f32.mrf.mxu3  ;;  %v3057_v37 = vadd.f32 %v3056_v26, %v10120_v32  ;;  %v4167_v32 = vsub.f32 %v10258_v18, %v13383_v23  ;;  %v13385_v26 = vand.u32 4294901760, %v10269_v50  ;;  %v10283_v60 = vsub.f32 %v4010_v45, %v10272_v58  ;;  %4018 = vmatpush.msrb.mxu2 %v10272_v58 }
 0x3fe   : > { %4453 = vmatpush.msra.mxu1 %v10272_v58  ;;  %v10302_v42 = vsub.f32 %v4009_v59, %v10289_v55 }
 0x3ff   : > { %v3152_v8 = vadd.f32 %v3151_v1, %v3057_v37  ;;  %v4008_v1 = vld [vmem:[#allocation3 + $0x158] sm:$0xff]  ;;  %v13826_v37 = vld [vmem:[#allocation12_spill] sm:$0xff]  ;;  %v4168_v23 = vand.u32 4294901760, %v4167_v32  ;;  %v4173_v45 = vsub.f32 %v10269_v50, %v13385_v26  ;;  %v13387_v34 = vand.u32 4294901760, %v10283_v60  ;;  %4331 = vmatpush.msra.mxu0 %v10283_v60  ;;  %4020 = vmatpush.msrb.mxu2 %v10289_v55 }
 0x400   : > { %v10276_v53 = vpop.f32.mrf.mxu1  ;;  %v10287_v24 = vpop.f32.mrf.mxu0  ;;  %v10298_v56 = vand.u32 4294901760, %v4008_v1  ;;  %v13389_v52 = vand.u32 4294901760, %v10302_v42  ;;  %4455 = vmatpush.msra.mxu1 %v10289_v55 }
 0x401   : > { %3597 = vmatmul.f32.gmra.mxu2 %v13826_v37  ;;  %v3277_v37 = vadd.f32 %v3276_v48, %v3152_v8  ;;  %4169 = vmatpush.msrb.mxu3 %v4168_v23  ;;  %v4174_v32 = vand.u32 4294901760, %v4173_v45  ;;  %v4179_v26 = vsub.f32 %v10283_v60, %v13387_v34  ;;  %v4006_v48 = vld [vmem:[#allocation3 + $0x148] sm:$0xff]  ;;  %v10324_v34 = vsub.f32 %v4007_v21, %v10312_v19 }
 0x402   : > { %3724 = vmatmul.f32.gmra.mxu3 %v13827_v17  ;;  %v10310_v17 = vsub.f32 %v4008_v1, %v10298_v56  ;;  %4334 = vmatpush.msra.mxu0 %v10302_v42  ;;  %v4185_v30 = vsub.f32 %v10302_v42, %v13389_v52  ;;  %v10331_v62 = vand.u32 4294901760, %v4006_v48 }
 0x403   : > { %3960 = vmatmul.f32.gmra.mxu1 %v13795_v61  ;;  %3867 = vmatmul.f32.gmra.mxu0 %v13797_v7  ;;  %v10319_v23 = vadd.f32 %v3473_v51, %v3277_v37  ;;  %v4180_v45 = vand.u32 4294901760, %v4179_v26  ;;  %v4005_v51 = vld [vmem:[#allocation3 + $0x140] sm:$0xff]  ;;  %v13392_v26 = vand.u32 4294901760, %v10324_v34 }
 0x404   : > { %v3060_v61 = vpop.f32.mrf.mxu2  ;;  %4175 = vmatpush.msrb.mxu3 %v4174_v32  ;;  %v13390_v1 = vand.u32 4294901760, %v10310_v17  ;;  %4337 = vmatpush.msra.mxu0 %v10310_v17  ;;  %v10340_v37 = vand.u32 4294901760, %v4005_v51  ;;  %v4186_v52 = vand.u32 4294901760, %v4185_v30 }
 0x405   : > { %v10314_v59 = vpop.f32.mrf.mxu3  ;;  %13828 = vst [vmem:[#allocation56_spill] sm:$0xff] %v10319_v23  ;;  %v3061_v8 = vadd.f32 %v3060_v61, %v10126_v4  ;;  %4022 = vmatpush.msrb.mxu2 %v10298_v56  ;;  %4457 = vmatpush.msra.mxu1 %v10298_v56  ;;  %v10346_v23 = vsub.f32 %v4006_v48, %v10331_v62 }
 0x406   : > { %4181 = vmatpush.msrb.mxu3 %v4180_v45  ;;  %v4191_v21 = vsub.f32 %v10310_v17, %v13390_v1  ;;  %4340 = vmatpush.msra.mxu0 %v10324_v34  ;;  %v13830_v45 = vld [vmem:[#allocation42_spill] sm:$0xff]  ;;  %v4197_v44 = vsub.f32 %v10324_v34, %v13392_v26  ;;  %v10356_v46 = vsub.f32 %v4005_v51, %v10340_v37  ;;  %v10368_v51 = vand.u32 4294901760, %v4003_v54 }
 0x407   : > { %v3156_v61 = vadd.f32 %v3155_v31, %v3061_v8  ;;  %v4004_v31 = vld [vmem:[#allocation3 + $0x138] sm:$0xff]  ;;  %4024 = vmatpush.msrb.mxu2 %v10312_v19  ;;  %v13829_v8 = vld [vmem:[#allocation21_spill] sm:$0xff]  ;;  %v13394_v48 = vand.u32 4294901760, %v10346_v23  ;;  %4459 = vmatpush.msra.mxu1 %v10312_v19 }
 0x408   : > { %v10334_v4 = vpop.f32.mrf.mxu1  ;;  %v10343_v32 = vpop.f32.mrf.mxu0  ;;  %v4192_v1 = vand.u32 4294901760, %v4191_v21  ;;  %13831 = vst [vmem:[#allocation30_spill] sm:$0xff] %v10356_v46  ;;  %v10358_v30 = vand.u32 4294901760, %v4004_v31  ;;  %4187 = vmatpush.msrb.mxu3 %v4186_v52  ;;  %v4198_v21 = vand.u32 4294901760, %v4197_v44  ;;  %4343 = vmatpush.msra.mxu0 %v10346_v23  ;;  %v4002_v44 = vld [vmem:[#allocation3 + $0x128] sm:$0xff] }
 0x409   : > { %3602 = vmatmul.f32.gmra.mxu2 %v13829_v8  ;;  %v3285_v8 = vadd.f32 %v10249_v10, %v3156_v61  ;;  %v4203_v52 = vsub.f32 %v10346_v23, %v13394_v48  ;;  %4461 = vmatpush.msra.mxu1 %v10331_v62 }
 0x40a   : > { %3730 = vmatmul.f32.gmra.mxu3 %v13830_v45  ;;  %v13395_v45 = vand.u32 4294901760, %v10356_v46  ;;  %v10366_v26 = vsub.f32 %v4004_v31, %v10358_v30  ;;  %4026 = vmatpush.msrb.mxu2 %v10331_v62 }
 0x40b   : > { %3964 = vmatmul.f32.gmra.mxu1 %v13797_v7  ;;  %3871 = vmatmul.f32.gmra.mxu0 %v13798_v27  ;;  %v10378_v10 = vadd.f32 %v10276_v53, %v3285_v8  ;;  %v4204_v48 = vand.u32 4294901760, %v4203_v52  ;;  %v10391_v53 = vand.u32 4294901760, %v4002_v44 }
 0x40c   : > { %13832 = vst [vmem:[#allocation59_spill] sm:$0xff] %v10366_v26  ;;  %v3064_v43 = vpop.f32.mrf.mxu2  ;;  %4193 = vmatpush.msrb.mxu3 %v4192_v1  ;;  %v4209_v31 = vsub.f32 %v10356_v46, %v13395_v45  ;;  %v13396_v40 = vand.u32 4294901760, %v10366_v26  ;;  %v10386_v1 = vsub.f32 %v4003_v54, %v10368_v51  ;;  %4346 = vmatpush.msra.mxu0 %v10356_v46 }
 0x40d   : > { %v10371_v7 = vpop.f32.mrf.mxu3  ;;  %13833 = vst [vmem:[#allocation27_spill] sm:$0xff] %v10378_v10  ;;  %v3065_v61 = vadd.f32 %v3064_v43, %v10132_v0  ;;  %v4001_v0 = vld [vmem:[#allocation3 + $0x120] sm:$0xff]  ;;  %4028 = vmatpush.msrb.mxu2 %v10340_v37  ;;  %4463 = vmatpush.msra.mxu1 %v10340_v37 }
 0x40e   : > { %13834 = vst [vmem:[#allocation24_spill] sm:$0xff] %v10386_v1  ;;  %4199 = vmatpush.msrb.mxu3 %v4198_v21  ;;  %v4210_v45 = vand.u32 4294901760, %v4209_v31  ;;  %v4215_v54 = vsub.f32 %v10366_v26, %v13396_v40  ;;  %v13399_v10 = vand.u32 4294901760, %v10386_v1  ;;  %4349 = vmatpush.msra.mxu0 %v10366_v26  ;;  %v10408_v52 = vand.u32 4294901760, %v4001_v0  ;;  %v13836_v31 = vld [vmem:[#allocation38_spill] sm:$0xff] }
 0x40f   : > { %v3160_v43 = vadd.f32 %v10314_v59, %v3065_v61  ;;  %v10406_v59 = vsub.f32 %v4002_v44, %v10391_v53  ;;  %v4000_v61 = vld [vmem:[#allocation3 + $0x118] sm:$0xff]  ;;  %4030 = vmatpush.msrb.mxu2 %v10358_v30  ;;  %4465 = vmatpush.msra.mxu1 %v10358_v30 }
 0x410   : > { %v10394_v8 = vpop.f32.mrf.mxu1  ;;  %v10402_v21 = vpop.f32.mrf.mxu0  ;;  %4205 = vmatpush.msrb.mxu3 %v4204_v48  ;;  %v4216_v40 = vand.u32 4294901760, %v4215_v54  ;;  %v4221_v41 = vsub.f32 %v10386_v1, %v13399_v10  ;;  %v10415_v6 = vand.u32 4294901760, %v4000_v61  ;;  %v10421_v26 = vsub.f32 %v4001_v0, %v10408_v52  ;;  %4352 = vmatpush.msra.mxu0 %v10386_v1 }
 0x411   : > { %13835 = vst [vmem:[#allocation60_spill] sm:$0xff] %v10406_v59  ;;  %3607 = vmatmul.f32.gmra.mxu2 %v13836_v31  ;;  %v3293_v48 = vadd.f32 %v10287_v24, %v3160_v43  ;;  %v13403_v44 = vand.u32 4294901760, %v10406_v59  ;;  %v3999_v31 = vld [vmem:[#allocation3 + $0x110] sm:$0xff]  ;;  %4467 = vmatpush.msra.mxu1 %v10368_v51 }
 0x412   : > { %3736 = vmatmul.f32.gmra.mxu3 %v9911_v38  ;;  %v4222_v54 = vand.u32 4294901760, %v4221_v41  ;;  %v10426_v10 = vsub.f32 %v4000_v61, %v10415_v6  ;;  %v10428_v38 = vand.u32 4294901760, %v3999_v31  ;;  %v13405_v41 = vand.u32 4294901760, %v10421_v26  ;;  %4032 = vmatpush.msrb.mxu2 %v10368_v51 }
 0x413   : > { %3968 = vmatmul.f32.gmra.mxu1 %v13798_v27  ;;  %4211 = vmatpush.msrb.mxu3 %v4210_v45  ;;  %v10431_v24 = vadd.f32 %v10334_v4, %v3293_v48  ;;  %v4227_v0 = vsub.f32 %v10406_v59, %v13403_v44  ;;  %v3998_v27 = vld [vmem:[#allocation3 + $0x108] sm:$0xff] }
 0x414   : > { %3875 = vmatmul.f32.gmra.mxu0 %v13799_v3  ;;  %v3068_v45 = vpop.f32.mrf.mxu2  ;;  %v10443_v4 = vsub.f32 %v3999_v31, %v10428_v38  ;;  %v4233_v44 = vsub.f32 %v10421_v26, %v13405_v41  ;;  %4034 = vmatpush.msrb.mxu2 %v10391_v53 }
 0x415   : > { %13837 = vst [vmem:[#allocation36_spill] sm:$0xff] %v10431_v24  ;;  %v3167_v43 = vpop.f32.mrf.mxu3  ;;  %4217 = vmatpush.msrb.mxu3 %v4216_v40  ;;  %v3069_v61 = vadd.f32 %v3068_v45, %v10142_v28  ;;  %v10445_v40 = vand.u32 4294901760, %v3998_v27  ;;  %v4228_v48 = vand.u32 4294901760, %v4227_v0  ;;  %4355 = vmatpush.msra.mxu0 %v10406_v59  ;;  %v3997_v28 = vld [vmem:[#allocation3 + $0x100] sm:$0xff]  ;;  %v13838_v24 = vand.u32 4294901760, %v10426_v10 }
 0x416   : > { %v13407_v31 = vand.u32 4294901760, %v10443_v4  ;;  %v4234_v41 = vand.u32 4294901760, %v4233_v44  ;;  %4469 = vmatpush.msra.mxu1 %v10391_v53  ;;  %4036 = vmatpush.msrb.mxu2 %v10408_v52 }
 0x417   : > { %4223 = vmatpush.msrb.mxu3 %v4222_v54  ;;  %v3164_v45 = vadd.f32 %v10371_v7, %v3069_v61  ;;  %v4239_v1 = vsub.f32 %v10426_v10, %v13838_v24  ;;  %v10459_v54 = vsub.f32 %v3998_v27, %v10445_v40  ;;  %4358 = vmatpush.msra.mxu0 %v10421_v26  ;;  %v10464_v7 = vand.u32 4294901760, %v3997_v28 }
 0x418   : > { %v3489_v46 = vpop.f32.mrf.mxu1  ;;  %v10461_v0 = vpop.f32.mrf.mxu0  ;;  %v4245_v61 = vsub.f32 %v10443_v4, %v13407_v31  ;;  %4471 = vmatpush.msra.mxu1 %v10408_v52  ;;  %4038 = vmatpush.msrb.mxu2 %v10415_v6 }
 0x419   : > { %4229 = vmatpush.msrb.mxu3 %v4228_v48  ;;  %3612 = vmatmul.f32.gmra.mxu2 %v9889_v14  ;;  %v4240_v24 = vand.u32 4294901760, %v4239_v1  ;;  %v4250_v27 = vand.u32 4294901760, %v10459_v54  ;;  %v3301_v59 = vadd.f32 %v10343_v32, %v3164_v45  ;;  %v10475_v44 = vsub.f32 %v3997_v28, %v10464_v7 }
 0x41a   : > { %3742 = vmatmul.f32.gmra.mxu3 %v9956_v2  ;;  %v4246_v48 = vand.u32 4294901760, %v4245_v61  ;;  %4361 = vmatpush.msra.mxu0 %v10426_v10 }
 0x41b   : > { %3972 = vmatmul.f32.gmra.mxu1 %v13799_v3  ;;  %4235 = vmatpush.msrb.mxu3 %v4234_v41  ;;  %v4251_v1 = vsub.f32 %v10459_v54, %v4250_v27  ;;  %v10483_v31 = vadd.f32 %v10394_v8, %v3301_v59  ;;  %v4256_v41 = vand.u32 4294901760, %v10475_v44 }
 0x41c   : > { %3879 = vmatmul.f32.gmra.mxu0 %v9931_v57  ;;  %v3072_v2 = vpop.f32.mrf.mxu2  ;;  %4473 = vmatpush.msra.mxu1 %v10415_v6 }
 0x41d   : > { %v3171_v32 = vpop.f32.mrf.mxu3  ;;  %4241 = vmatpush.msrb.mxu3 %v4240_v24  ;;  %v3073_v28 = vadd.f32 %v3072_v2, %v10151_v63  ;;  %v4252_v45 = vand.u32 4294901760, %v4251_v1  ;;  %4364 = vmatpush.msra.mxu0 %v10443_v4  ;;  %v4257_v8 = vsub.f32 %v10475_v44, %v4256_v41 }
 0x41e   : > { %4040 = vmatpush.msrb.mxu2 %v10428_v38  ;;  %4475 = vmatpush.msra.mxu1 %v10428_v38 }
 0x41f   : > { %4247 = vmatpush.msrb.mxu3 %v4246_v48  ;;  %v3168_v59 = vadd.f32 %v3167_v43, %v3073_v28  ;;  %v4258_v2 = vand.u32 4294901760, %v4257_v8  ;;  %4367 = vmatpush.msra.mxu0 %v10459_v54  ;;  %v13839_v8 = vand.u32 4294901760, %v10258_v18  ;;  %v13869_v54 = vld [vmem:[#allocation26_spill] sm:$0xff] }
 0x420   : > { %v3493_v24 = vpop.f32.mrf.mxu1  ;;  %v3324_v61 = vpop.f32.mrf.mxu0  ;;  %4042 = vmatpush.msrb.mxu2 %v10445_v40  ;;  %4477 = vmatpush.msra.mxu1 %v10445_v40 }
 0x421   : > { %4253 = vmatpush.msrb.mxu3 %v4252_v45  ;;  %3617 = vmatmul.f32.gmra.mxu2 %v9943_v29  ;;  %v3309_v63 = vadd.f32 %v10402_v21, %v3168_v59 }
 0x422   : > { %3748 = vmatmul.f32.gmra.mxu3 %v9995_v39  ;;  %4370 = vmatpush.msra.mxu0 %v10475_v44  ;;  %v13871_v44 = vld [vmem:[#allocation52_spill] sm:$0xff] }
 0x423   : > { %3976 = vmatmul.f32.gmra.mxu1 %v9931_v57  ;;  %4259 = vmatpush.msrb.mxu3 %v4258_v2  ;;  %v10503_v43 = vadd.f32 %v3489_v46, %v3309_v63  ;;  %v13841_v2 = vand.u32 4294901760, %v10283_v60  ;;  %v13842_v63 = vand.u32 4294901760, %v10302_v42  ;;  %v13844_v60 = vand.u32 4294901760, %v10324_v34  ;;  %v13846_v34 = vld [vmem:[#allocation30_spill] sm:$0xff] }
 0x424   : > { %3883 = vmatmul.f32.gmra.mxu0 %v9974_v25  ;;  %v3076_v48 = vpop.f32.mrf.mxu2  ;;  %4044 = vmatpush.msrb.mxu2 %v10464_v7 }
 0x425   : > { %v3175_v1 = vpop.f32.mrf.mxu3  ;;  %v3077_v28 = vadd.f32 %v3076_v48, %v10165_v36  ;;  %4699 = vmatpush.msra.mxu3 %v10253_v15  ;;  %4479 = vmatpush.msra.mxu1 %v10464_v7  ;;  %v13845_v48 = vand.u32 4294901760, %v10346_v23 }
 0x426   : > { %4574 = vmatpush.msra.mxu2 %v13839_v8  ;;  %v13851_v8 = vld [vmem:[#allocation24_spill] sm:$0xff] }
 0x427   : > { %v3172_v21 = vadd.f32 %v3171_v32, %v3077_v28  ;;  %4701 = vmatpush.msra.mxu3 %v10260_v22  ;;  %v13840_v22 = vand.u32 4294901760, %v10269_v50 }
 0x428   : > { %v3497_v45 = vpop.f32.mrf.mxu1  ;;  %v3332_v46 = vpop.f32.mrf.mxu0 }
 0x429   : > { %3622 = vmatmul.f32.gmra.mxu2 %v9982_v35  ;;  %v3317_v36 = vadd.f32 %v10461_v0, %v3172_v21  ;;  %4703 = vmatpush.msra.mxu3 %v10272_v58  ;;  %v13849_v21 = vld [vmem:[#allocation59_spill] sm:$0xff] }
 0x42a   : > { %3754 = vmatmul.f32.gmra.mxu3 %v10031_v47  ;;  %4578 = vmatpush.msra.mxu2 %v13840_v22 }
 0x42b   : > { %3980 = vmatmul.f32.gmra.mxu1 %v9974_v25  ;;  %v10522_v15 = vadd.f32 %v3493_v24, %v3317_v36  ;;  %4705 = vmatpush.msra.mxu3 %v10289_v55  ;;  %v13852_v36 = vand.u32 4294901760, %v13851_v8 }
 0x42c   : > { %3887 = vmatmul.f32.gmra.mxu0 %v10010_v9  ;;  %v3080_v32 = vpop.f32.mrf.mxu2  ;;  %4582 = vmatpush.msra.mxu2 %v13841_v2 }
 0x42d   : > { %v3179_v18 = vpop.f32.mrf.mxu3  ;;  %v3081_v59 = vadd.f32 %v3080_v32, %v10181_v20  ;;  %4707 = vmatpush.msra.mxu3 %v10298_v56  ;;  %v13843_v56 = vand.u32 4294901760, %v10310_v17  ;;  %v13853_v32 = vld [vmem:[#allocation48_spill] sm:$0xff] }
 0x42e   : > { %4586 = vmatpush.msra.mxu2 %v13842_v63 }
 0x42f   : > { %v3176_v0 = vadd.f32 %v3175_v1, %v3081_v59  ;;  %4709 = vmatpush.msra.mxu3 %v10312_v19  ;;  %v13855_v59 = vld [vmem:[#allocation60_spill] sm:$0xff] }
 0x430   : > { %v3501_v58 = vpop.f32.mrf.mxu1  ;;  %v3340_v24 = vpop.f32.mrf.mxu0  ;;  %4590 = vmatpush.msra.mxu2 %v13843_v56  ;;  %v13856_v2 = vand.u32 4294901760, %v13855_v59  ;;  %v13874_v59 = vld [vmem:[#allocation33_spill] sm:$0xff] }
 0x431   : > { %3627 = vmatmul.f32.gmra.mxu2 %v10019_v11  ;;  %v3325_v50 = vadd.f32 %v3324_v61, %v3176_v0  ;;  %4711 = vmatpush.msra.mxu3 %v10331_v62  ;;  %v13857_v0 = vld [vmem:[#allocation71_spill] sm:$0xff] }
 0x432   : > { %3760 = vmatmul.f32.gmra.mxu3 %v10163_v12  ;;  %4594 = vmatpush.msra.mxu2 %v13844_v60  ;;  %v13862_v60 = vld [vmem:[#allocation74_spill] sm:$0xff] }
 0x433   : > { %3984 = vmatmul.f32.gmra.mxu1 %v10010_v9  ;;  %v10539_v20 = vadd.f32 %v3497_v45, %v3325_v50  ;;  %4713 = vmatpush.msra.mxu3 %v10340_v37  ;;  %v13847_v37 = vand.u32 4294901760, %v13846_v34  ;;  %v13850_v45 = vand.u32 4294901760, %v13849_v21  ;;  %v13859_v50 = vld [vmem:[#allocation32_spill] sm:$0xff] }
 0x434   : > { %3891 = vmatmul.f32.gmra.mxu0 %v10146_v13  ;;  %v3084_v42 = vpop.f32.mrf.mxu2  ;;  %4598 = vmatpush.msra.mxu2 %v13845_v48 }
 0x435   : > { %v3183_v55 = vpop.f32.mrf.mxu3  ;;  %v3085_v19 = vadd.f32 %v3084_v42, %v10191_v49  ;;  %4715 = vmatpush.msra.mxu3 %v10358_v30 }
 0x436   : > { %4602 = vmatpush.msra.mxu2 %v13847_v37 }
 0x437   : > { %v3180_v61 = vadd.f32 %v3179_v18, %v3085_v19  ;;  %4717 = vmatpush.msra.mxu3 %v10368_v51  ;;  %v13848_v51 = vld [vmem:[#allocation49_spill] sm:$0xff]  ;;  %v13854_v18 = vld [vmem:[#allocation70_spill] sm:$0xff]  ;;  %v13861_v19 = vand.u32 4294901760, %v10443_v4  ;;  %v13866_v4 = vld [vmem:[#allocation19_spill] sm:$0xff] }
 0x438   : > { %v3505_v62 = vpop.f32.mrf.mxu1  ;;  %v3348_v1 = vpop.f32.mrf.mxu0  ;;  %4606 = vmatpush.msra.mxu2 %v13850_v45 }
 0x439   : > { %3632 = vmatmul.f32.gmra.mxu2 %v10156_v33  ;;  %v3333_v17 = vadd.f32 %v3332_v46, %v3180_v61  ;;  %4719 = vmatpush.msra.mxu3 %v10391_v53 }
 0x43a   : > { %3766 = vmatmul.f32.gmra.mxu3 %v10179_v16  ;;  %4610 = vmatpush.msra.mxu2 %v13852_v36 }
 0x43b   : > { %3988 = vmatmul.f32.gmra.mxu1 %v10146_v13  ;;  %v10556_v49 = vadd.f32 %v3501_v58, %v3333_v17  ;;  %4721 = vmatpush.msra.mxu3 %v10408_v52 }
 0x43c   : > { %3895 = vmatmul.f32.gmra.mxu0 %v10158_v5  ;;  %v3088_v23 = vpop.f32.mrf.mxu2  ;;  %4614 = vmatpush.msra.mxu2 %v13856_v2  ;;  %v13875_v2 = vld [vmem:[#allocation77_spill] sm:$0xff] }
 0x43d   : > { %v3187_v30 = vpop.f32.mrf.mxu3  ;;  %v3089_v28 = vadd.f32 %v3088_v23, %v13848_v51  ;;  %4723 = vmatpush.msra.mxu3 %v10415_v6  ;;  %v13868_v51 = vld [vmem:[#allocation47_spill] sm:$0xff] }
 0x43f   : > { %v3184_v46 = vadd.f32 %v3183_v55, %v3089_v28  ;;  %4725 = vmatpush.msra.mxu3 %v10428_v38  ;;  %v13858_v38 = vand.u32 4294901760, %v10421_v26 }
 0x440   : > { %v3509_v53 = vpop.f32.mrf.mxu1  ;;  %v3836_v22 = vpop.f32.mrf.mxu0 }
 0x441   : > { %3637 = vmatmul.f32.gmra.mxu2 %v13853_v32  ;;  %v3341_v52 = vadd.f32 %v3340_v24, %v3184_v46  ;;  %4727 = vmatpush.msra.mxu3 %v10445_v40  ;;  %v13860_v24 = vand.u32 4294901760, %v10426_v10  ;;  %v13863_v40 = vld [vmem:[#allocation73_spill] sm:$0xff] }
 0x442   : > { %4261 = vmatmul.f32.vlgmr.msrb.gmra.mxu3 %v13854_v18  ;;  %4618 = vmatpush.msra.mxu2 %v13858_v38  ;;  %v13876_v38 = vld [vmem:[#allocation28_spill] sm:$0xff] }
 0x443   : > { %3992 = vmatmul.f32.gmra.mxu1 %v10158_v5  ;;  %v10574_v6 = vadd.f32 %v3505_v62, %v3341_v52  ;;  %4729 = vmatpush.msra.mxu3 %v10464_v7  ;;  %v13864_v62 = vld [vmem:[#allocation72_spill] sm:$0xff]  ;;  %v13865_v7 = vld [vmem:[#allocation75_spill] sm:$0xff]  ;;  %v13872_v52 = vld [vmem:[#allocation54_spill] sm:$0xff] }
 0x444   : > { %4373 = vmatmul.f32.vlgmr.msra.gmra.mxu0 %v13857_v0  ;;  %v3092_v58 = vpop.f32.mrf.mxu2  ;;  %4622 = vmatpush.msra.mxu2 %v13860_v24 }
 0x445   : > { %v3677_v63 = vpop.f32.mrf.mxu3  ;;  %v3093_v56 = vadd.f32 %v3092_v58, %v13859_v50 }
 0x446   : > { %4626 = vmatpush.msra.mxu2 %v13861_v19  ;;  %v13877_v19 = vld [vmem:[#allocation35_spill] sm:$0xff] }
 0x447   : > { %v3188_v42 = vadd.f32 %v3187_v30, %v3093_v56  ;;  %v13867_v30 = vld [vmem:[#allocation51_spill] sm:$0xff] }
 0x448   : > { %v3933_v55 = vpop.f32.mrf.mxu1  ;;  %4630 = vmatpush.msra.mxu2 %v4250_v27  ;;  %v3840_v26 = vpop.f32.mrf.mxu0  ;;  %v13870_v27 = vld [vmem:[#allocation76_spill] sm:$0xff] }
 0x449   : > { %4050 = vmatmul.f32.vlgmr.msrb.gmra.mxu2 %v13862_v60  ;;  %v3349_v61 = vadd.f32 %v3348_v1, %v3188_v42  ;;  %v13878_v60 = vld [vmem:[#allocation39_spill] sm:$0xff] }
 0x44a   : > { %4265 = vmatmul.f32.gmra.mxu3 %v13863_v40  ;;  %4634 = vmatpush.msra.mxu2 %v4256_v41 }
 0x44b   : > { %4483 = vmatmul.f32.vlgmr.msra.gmra.mxu1 %v13864_v62  ;;  %v10591_v10 = vadd.f32 %v3509_v53, %v3349_v61  ;;  %v13879_v61 = vld [vmem:[#allocation29_spill] sm:$0xff]  ;;  %v13880_v62 = vld [vmem:[#allocation40_spill] sm:$0xff] }
 0x44c   : > { %4378 = vmatmul.f32.gmra.mxu0 %v13865_v7  ;;  %v3563_v48 = vpop.f32.mrf.mxu2 }
 0x44d   : > { %v3683_v17 = vpop.f32.mrf.mxu3  ;;  %v3564_v34 = vadd.f32 %v3563_v48, %v13866_v4 }
 0x44f   : > { %v3678_v37 = vadd.f32 %v3677_v63, %v3564_v34 }
 0x450   : > { %v3937_v23 = vpop.f32.mrf.mxu1  ;;  %v3844_v46 = vpop.f32.mrf.mxu0 }
 0x451   : > { %v3837_v1 = vadd.f32 %v3836_v22, %v3678_v37  ;;  %4058 = vmatmul.f32.gmra.mxu2 %v13867_v30  ;;  %v13873_v22 = vld [vmem:[#allocation50_spill] sm:$0xff]  ;;  %v13883_v30 = vld [vmem:[#allocation53_spill] sm:$0xff] }
 0x452   : > { %4269 = vmatmul.f32.gmra.mxu3 %v13868_v51 }
 0x453   : > { %4489 = vmatmul.f32.gmra.mxu1 %v13869_v54  ;;  %v10600_v28 = vadd.f32 %v3933_v55, %v3837_v1  ;;  %v13882_v1 = vld [vmem:[#allocation58_spill] sm:$0xff]  ;;  %v13884_v54 = vld [vmem:[#allocation37_spill] sm:$0xff] }
 0x454   : > { %4383 = vmatmul.f32.gmra.mxu0 %v13870_v27  ;;  %v3568_v21 = vpop.f32.mrf.mxu2 }
 0x455   : > { %v3689_v45 = vpop.f32.mrf.mxu3  ;;  %v3569_v41 = vadd.f32 %v3568_v21, %v13871_v44  ;;  %v13885_v21 = vld [vmem:[#allocation12_spill] sm:$0xff] }
 0x457   : > { %v3684_v53 = vadd.f32 %v3683_v17, %v3569_v41  ;;  %v13881_v17 = vld [vmem:[#allocation55_spill] sm:$0xff] }
 0x458   : > { %v3941_v8 = vpop.f32.mrf.mxu1  ;;  %v3848_v56 = vpop.f32.mrf.mxu0  ;;  %v13886_v41 = vld [vmem:[#allocation23_spill] sm:$0xff] }
 0x459   : > { %v3841_v36 = vadd.f32 %v3840_v26, %v3684_v53  ;;  %4066 = vmatmul.f32.gmra.mxu2 %v13872_v52  ;;  %v13887_v52 = vld [vmem:[#allocation14_spill] sm:$0xff] }
 0x45a   : > { %4273 = vmatmul.f32.gmra.mxu3 %v13873_v22 }
 0x45b   : > { %4495 = vmatmul.f32.gmra.mxu1 %v13874_v59  ;;  %v10607_v0 = vadd.f32 %v3937_v23, %v3841_v36  ;;  %v13888_v59 = vld [vmem:[#allocation13_spill] sm:$0xff] }
 0x45c   : > { %4388 = vmatmul.f32.gmra.mxu0 %v13875_v2  ;;  %v3573_v58 = vpop.f32.mrf.mxu2  ;;  %v13889_v2 = vld [vmem:[#allocation31_spill] sm:$0xff] }
 0x45d   : > { %v3695_v63 = vpop.f32.mrf.mxu3  ;;  %v3574_v50 = vadd.f32 %v3573_v58, %v13876_v38 }
 0x45f   : > { %v3690_v24 = vadd.f32 %v3689_v45, %v3574_v50 }
 0x460   : > { %v3945_v55 = vpop.f32.mrf.mxu1  ;;  %v3852_v37 = vpop.f32.mrf.mxu0 }
 0x461   : > { %v3845_v42 = vadd.f32 %v3844_v46, %v3690_v24  ;;  %4074 = vmatmul.f32.gmra.mxu2 %v13877_v19  ;;  %v13892_v24 = vld [vmem:[#allocation25_spill] sm:$0xff] }
 0x462   : > { %4277 = vmatmul.f32.gmra.mxu3 %v13878_v60 }
 0x463   : > { %4501 = vmatmul.f32.gmra.mxu1 %v13879_v61  ;;  %v10614_v26 = vadd.f32 %v3941_v8, %v3845_v42 }
 0x464   : > { %4393 = vmatmul.f32.gmra.mxu0 %v13880_v62  ;;  %v3578_v7 = vpop.f32.mrf.mxu2  ;;  %v13893_v62 = vld [vmem:[#allocation62_spill] sm:$0xff] }
 0x465   : > { %v3701_v48 = vpop.f32.mrf.mxu3  ;;  %v3579_v4 = vadd.f32 %v3578_v7, %v13881_v17  ;;  %v13894_v7 = vld [vmem:[#allocation57_spill] sm:$0xff]  ;;  %v13896_v17 = vld [vmem:[#allocation38_spill] sm:$0xff] }
 0x467   : > { %v3696_v34 = vadd.f32 %v3695_v63, %v3579_v4  ;;  %v13890_v63 = vld [vmem:[#allocation21_spill] sm:$0xff] }
 0x468   : > { %v3949_v27 = vpop.f32.mrf.mxu1  ;;  %v3856_v58 = vpop.f32.mrf.mxu0 }
 0x469   : > { %v3849_v23 = vadd.f32 %v3848_v56, %v3696_v34  ;;  %4082 = vmatmul.f32.gmra.mxu2 %v13882_v1 }
 0x46a   : > { %4281 = vmatmul.f32.gmra.mxu3 %v13883_v30 }
 0x46b   : > { %4507 = vmatmul.f32.gmra.mxu1 %v13884_v54  ;;  %v10621_v45 = vadd.f32 %v3945_v55, %v3849_v23  ;;  %v13898_v23 = vld [vmem:[#allocation56_spill] sm:$0xff] }
 0x46c   : > { %4398 = vmatmul.f32.gmra.mxu0 %v13885_v21  ;;  %v3583_v46 = vpop.f32.mrf.mxu2 }
 0x46d   : > { %v3707_v44 = vpop.f32.mrf.mxu3  ;;  %v3584_v53 = vadd.f32 %v3583_v46, %v13886_v41  ;;  %v13900_v41 = vld [vmem:[#allocation42_spill] sm:$0xff] }
 0x46f   : > { %v3702_v8 = vadd.f32 %v3701_v48, %v3584_v53  ;;  %v13895_v48 = vld [vmem:[#allocation15_spill] sm:$0xff] }
 0x470   : > { %v3953_v55 = vpop.f32.mrf.mxu1  ;;  %v3860_v54 = vpop.f32.mrf.mxu0 }
 0x471   : > { %v3853_v36 = vadd.f32 %v3852_v37, %v3702_v8  ;;  %4090 = vmatmul.f32.gmra.mxu2 %v13887_v52  ;;  %v13902_v52 = vld [vmem:[#allocation27_spill] sm:$0xff] }
 0x472   : > { %4285 = vmatmul.f32.gmra.mxu3 %v13888_v59 }
 0x473   : > { %4513 = vmatmul.f32.gmra.mxu1 %v13889_v2  ;;  %v10628_v38 = vadd.f32 %v3949_v27, %v3853_v36 }
 0x474   : > { %4403 = vmatmul.f32.gmra.mxu0 %v13890_v63  ;;  %v3588_v50 = vpop.f32.mrf.mxu2 }
 0x475   : > { %13891 = vst [vmem:[#allocation63_spill] sm:$0xff] %v10628_v38  ;;  %v3713_v56 = vpop.f32.mrf.mxu3  ;;  %v3589_v42 = vadd.f32 %v3588_v50, %v13892_v24  ;;  %v4854_v38 = vld [vmem:[#allocation6 + $0x48] sm:$0xff] }
 0x477   : > { %v3708_v19 = vadd.f32 %v3707_v44, %v3589_v42  ;;  %v13899_v44 = vld [vmem:[#allocation44_spill] sm:$0xff]  ;;  %v13904_v42 = vld [vmem:[#allocation46_spill] sm:$0xff] }
 0x478   : > { %v3957_v21 = vpop.f32.mrf.mxu1  ;;  %v3864_v63 = vpop.f32.mrf.mxu0 }
 0x479   : > { %v3857_v61 = vadd.f32 %v3856_v58, %v3708_v19  ;;  %4098 = vmatmul.f32.gmra.mxu2 %v13893_v62 }
 0x47a   : > { %4289 = vmatmul.f32.gmra.mxu3 %v13894_v7 }
 0x47b   : > { %4519 = vmatmul.f32.gmra.mxu1 %v13895_v48  ;;  %v10635_v4 = vadd.f32 %v3953_v55, %v3857_v61  ;;  %v13906_v61 = vld [vmem:[#allocation36_spill] sm:$0xff] }
 0x47c   : > { %4408 = vmatmul.f32.gmra.mxu0 %v13896_v17  ;;  %v3593_v34 = vpop.f32.mrf.mxu2  ;;  %v13908_v17 = vld [vmem:[#allocation20_spill] sm:$0xff] }
 0x47d   : > { %13897 = vst [vmem:[#allocation64_spill] sm:$0xff] %v10635_v4  ;;  %v3719_v37 = vpop.f32.mrf.mxu3  ;;  %v3594_v1 = vadd.f32 %v3593_v34, %v13898_v23  ;;  %v13909_v34 = vld [vmem:[#allocation43_spill] sm:$0xff] }
 0x47f   : > { %v3714_v27 = vadd.f32 %v3713_v56, %v3594_v1  ;;  %v13903_v56 = vld [vmem:[#allocation41_spill] sm:$0xff] }
 0x480   : > { %v3961_v24 = vpop.f32.mrf.mxu1 }
 0x481   : > { %v3861_v46 = vadd.f32 %v3860_v54, %v3714_v27  ;;  %4106 = vmatmul.f32.gmra.mxu2 %v13899_v44  ;;  %v13911_v54 = vld [vmem:[#allocation17_spill] sm:$0xff] }
 0x482   : > { %4293 = vmatmul.f32.gmra.mxu3 %v13799_v3 }
 0x483   : > { %4525 = vmatmul.f32.gmra.mxu1 %v13900_v41  ;;  %v10642_v53 = vadd.f32 %v3957_v21, %v3861_v46 }
 0x484   : > { %4413 = vmatmul.f32.gmra.mxu0 %v9889_v14  ;;  %v3598_v8 = vpop.f32.mrf.mxu2 }
 0x485   : > { %13901 = vst [vmem:[#allocation16_spill] sm:$0xff] %v10642_v53  ;;  %v3725_v36 = vpop.f32.mrf.mxu3  ;;  %v3599_v2 = vadd.f32 %v3598_v8, %v13902_v52  ;;  %v4856_v53 = vld [vmem:[#allocation6 + $0x58] sm:$0xff] }
 0x487   : > { %v3720_v58 = vadd.f32 %v3719_v37, %v3599_v2  ;;  %v13918_v2 = vmov 0.0  }
 0x489   : > { %v3865_v50 = vadd.f32 %v3864_v63, %v3720_v58  ;;  %4114 = vmatmul.f32.gmra.mxu2 %v13903_v56 }
 0x48a   : > { %4297 = vmatmul.f32.gmra.mxu3 %v9931_v57 }
 0x48b   : > { %4531 = vmatmul.f32.gmra.mxu1 %v13904_v42  ;;  %v10649_v55 = vadd.f32 %v3961_v24, %v3865_v50 }
 0x48c   : > { %4418 = vmatmul.f32.gmra.mxu0 %v9943_v29  ;;  %v3603_v14 = vpop.f32.mrf.mxu2 }
 0x48d   : > { %13905 = vst [vmem:[#allocation18_spill] sm:$0xff] %v10649_v55  ;;  %v3731_v19 = vpop.f32.mrf.mxu3  ;;  %v3604_v62 = vadd.f32 %v3603_v14, %v13906_v61 }
 0x48f   : > { %v10652_v48 = vadd.f32 %v3725_v36, %v3604_v62 }
 0x491   : > { %13907 = vst [vmem:[#allocation67_spill] sm:$0xff] %v10652_v48  ;;  %4122 = vmatmul.f32.gmra.mxu2 %v13908_v17 }
 0x492   : > { %4301 = vmatmul.f32.gmra.mxu3 %v9974_v25 }
 0x493   : > { %4537 = vmatmul.f32.gmra.mxu1 %v13909_v34 }
 0x494   : > { %4423 = vmatmul.f32.gmra.mxu0 %v9982_v35  ;;  %v3608_v37 = vpop.f32.mrf.mxu2  ;;  %v13913_v35 = vld [vmem:[#allocation45_spill] sm:$0xff] }
 0x495   : > { %v3737_v23 = vpop.f32.mrf.mxu3  ;;  %v3609_v29 = vadd.f32 %v3608_v37, %v10483_v31 }
 0x497   : > { %v10659_v1 = vadd.f32 %v3731_v19, %v3609_v29  ;;  %v10718_v29 = vpop.f32.mrf.mxu0 }
 0x498   : > { %13922 = vst [vmem:[#allocation59_spill] sm:$0xff] %v10718_v29 }
 0x499   : > { %13910 = vst [vmem:[#allocation34_spill] sm:$0xff] %v10659_v1  ;;  %4130 = vmatmul.f32.gmra.mxu2 %v13911_v54 }
 0x49a   : > { %4305 = vmatmul.f32.gmra.mxu3 %v10010_v9 }
 0x49b   : > { %4543 = vmatmul.f32.gmra.mxu1 %v9995_v39 }
 0x49c   : > { %4428 = vmatmul.f32.gmra.mxu0 %v10019_v11  ;;  %v3613_v27 = vpop.f32.mrf.mxu2  ;;  %v13915_v11 = vld [vmem:[#allocation22_spill] sm:$0xff] }
 0x49d   : > { %v3743_v21 = vpop.f32.mrf.mxu3  ;;  %v3614_v46 = vadd.f32 %v3613_v27, %v10503_v43 }
 0x49f   : > { %v10666_v44 = vadd.f32 %v3737_v23, %v3614_v46  ;;  %v10726_v46 = vpop.f32.mrf.mxu0 }
 0x4a0   : > { %13924 = vst [vmem:[#allocation48_spill] sm:$0xff] %v10726_v46 }
 0x4a1   : > { %13912 = vst [vmem:[#allocation66_spill] sm:$0xff] %v10666_v44  ;;  %4138 = vmatmul.f32.gmra.mxu2 %v13913_v35 }
 0x4a2   : > { %4309 = vmatmul.f32.gmra.mxu3 %v10146_v13 }
 0x4a3   : > { %4549 = vmatmul.f32.gmra.mxu1 %v10031_v47 }
 0x4a4   : > { %4433 = vmatmul.f32.gmra.mxu0 %v10156_v33  ;;  %v3618_v31 = vpop.f32.mrf.mxu2  ;;  %v13917_v33 = vld [vmem:[#allocation61_spill] sm:$0xff] }
 0x4a5   : > { %v3749_v41 = vpop.f32.mrf.mxu3  ;;  %v3619_v39 = vadd.f32 %v3618_v31, %v10522_v15 }
 0x4a7   : > { %v10673_v8 = vadd.f32 %v3743_v21, %v3619_v39 }
 0x4a9   : > { %13914 = vst [vmem:[#allocation65_spill] sm:$0xff] %v10673_v8  ;;  %4146 = vmatmul.f32.gmra.mxu2 %v13915_v11 }
 0x4aa   : > { %4313 = vmatmul.f32.gmra.mxu3 %v10158_v5 }
 0x4ab   : > { %4555 = vmatmul.f32.gmra.mxu1 %v10163_v12 }
 0x4ac   : > { %4438 = vmatmul.f32.gmra.mxu0 %v13853_v32  ;;  %v3623_v43 = vpop.f32.mrf.mxu2 }
 0x4ad   : > { %v3755_v36 = vpop.f32.mrf.mxu3  ;;  %v3624_v47 = vadd.f32 %v3623_v43, %v10539_v20 }
 0x4af   : > { %v10680_v52 = vadd.f32 %v3749_v41, %v3624_v47 }
 0x4b1   : > { %13916 = vst [vmem:[#allocation69_spill] sm:$0xff] %v10680_v52  ;;  %4154 = vmatmul.f32.gmra.mxu2 %v13917_v33  ;;  %v4876_v33 = vld [vmem:[#allocation6 + $0xf0] sm:$0xff] }
 0x4b2   : > { %4316 = vmatmul.f32.gmra.mxu3 %v13918_v2 }
 0x4b3   : > { %4561 = vmatmul.f32.gmra.mxu1 %v10179_v16 }
 0x4b4   : > { %4441 = vmatmul.f32.gmra.mxu0 %v13918_v2  ;;  %v3628_v15 = vpop.f32.mrf.mxu2 }
 0x4b5   : > { %v3761_v58 = vpop.f32.mrf.mxu3  ;;  %v3629_v12 = vadd.f32 %v3628_v15, %v10556_v49 }
 0x4b7   : > { %v10687_v63 = vadd.f32 %v3755_v36, %v3629_v12  ;;  %v10751_v12 = vand.u32 4294901760, %v4876_v33 }
 0x4b9   : > { %13919 = vst [vmem:[#allocation68_spill] sm:$0xff] %v10687_v63  ;;  %4157 = vmatmul.f32.gmra.mxu2 %v13918_v2 }
 0x4ba   : > { %4319 = vmatmul.f32.gmra.mxu3 %v13918_v2 }
 0x4bb   : > { %4564 = vmatmul.f32.gmra.mxu1 %v13918_v2 }
 0x4bc   : > { %4444 = vmatmul.f32.gmra.mxu0 %v13918_v2  ;;  %v3633_v20 = vpop.f32.mrf.mxu2 }
 0x4bd   : > { %v3767_v32 = vpop.f32.mrf.mxu3  ;;  %v3634_v16 = vadd.f32 %v3633_v20, %v10574_v6 }
 0x4bf   : > { %v10694_v50 = vadd.f32 %v3761_v58, %v3634_v16 }
 0x4c1   : > { %13920 = vst [vmem:[#allocation30_spill] sm:$0xff] %v10694_v50  ;;  %4160 = vmatmul.f32.gmra.mxu2 %v13918_v2  ;;  %v4869_v50 = vld [vmem:[#allocation6 + $0xb8] sm:$0xff] }
 0x4c2   : > { %4731 = vmatmul.f32.vlgmr.msra.gmra.mxu3 %v13854_v18 }
 0x4c3   : > { %4567 = vmatmul.f32.gmra.mxu1 %v13918_v2 }
 0x4c4   : > { %v3638_v49 = vpop.f32.mrf.mxu2 }
 0x4c5   : > { %v4262_v56 = vpop.f32.mrf.mxu3  ;;  %v3639_v24 = vadd.f32 %v3638_v49, %v10591_v10  ;;  %v10761_v49 = vsub.f32 %v4876_v33, %v10751_v12 }
 0x4c7   : > { %v10700_v42 = vadd.f32 %v3767_v32, %v3639_v24  ;;  %v4875_v32 = vld [vmem:[#allocation6 + $0xe8] sm:$0xff]  ;;  %v4874_v24 = vld [vmem:[#allocation6 + $0xe0] sm:$0xff] }
 0x4c9   : > { %13921 = vst [vmem:[#allocation49_spill] sm:$0xff] %v10700_v42  ;;  %4636 = vmatmul.f32.vlgmr.msra.gmra.mxu2 %v13854_v18 }
 0x4ca   : > { %4735 = vmatmul.f32.gmra.mxu3 %v13863_v40 }
 0x4cc   : > { %v4051_v14 = vpop.f32.mrf.mxu2 }
 0x4cd   : > { %v4266_v6 = vpop.f32.mrf.mxu3  ;;  %v10704_v19 = vadd.f32 %v4262_v56, %v4051_v14  ;;  %v10764_v56 = vand.u32 4294901760, %v4875_v32 }
 0x4d1   : > { %4640 = vmatmul.f32.gmra.mxu2 %v13863_v40 }
 0x4d2   : > { %4739 = vmatmul.f32.gmra.mxu3 %v13868_v51 }
 0x4d4   : > { %v4059_v61 = vpop.f32.mrf.mxu2 }
 0x4d5   : > { %v4270_v62 = vpop.f32.mrf.mxu3  ;;  %v10708_v17 = vadd.f32 %v4266_v6, %v4059_v61  ;;  %v13410_v6 = vand.u32 4294901760, %v10761_v49  ;;  %v10773_v61 = vsub.f32 %v4875_v32, %v10764_v56 }
 0x4d9   : > { %4644 = vmatmul.f32.gmra.mxu2 %v13868_v51  ;;  %v10722_v51 = vpop.f32.mrf.mxu1 }
 0x4da   : > { %4743 = vmatmul.f32.gmra.mxu3 %v13873_v22  ;;  %13923 = vst [vmem:[#allocation24_spill] sm:$0xff] %v10722_v51 }
 0x4dc   : > { %v4067_v10 = vpop.f32.mrf.mxu2 }
 0x4dd   : > { %v4274_v18 = vpop.f32.mrf.mxu3  ;;  %v10712_v34 = vadd.f32 %v4270_v62, %v4067_v10  ;;  %v10776_v62 = vand.u32 4294901760, %v4874_v24 }
 0x4e1   : > { %4648 = vmatmul.f32.gmra.mxu2 %v13873_v22  ;;  %v10730_v31 = vpop.f32.mrf.mxu1 }
 0x4e2   : > { %4747 = vmatmul.f32.gmra.mxu3 %v13878_v60  ;;  %13925 = vst [vmem:[#allocation70_spill] sm:$0xff] %v10730_v31 }
 0x4e4   : > { %v4075_v37 = vpop.f32.mrf.mxu2 }
 0x4e5   : > { %v4278_v40 = vpop.f32.mrf.mxu3  ;;  %v10716_v23 = vadd.f32 %v4274_v18, %v4075_v37  ;;  %v4873_v18 = vld [vmem:[#allocation6 + $0xd8] sm:$0xff] }
 0x4e9   : > { %4652 = vmatmul.f32.gmra.mxu2 %v13878_v60  ;;  %v10736_v60 = vpop.f32.mrf.mxu0  ;;  %v10740_v36 = vpop.f32.mrf.mxu1 }
 0x4ea   : > { %4751 = vmatmul.f32.gmra.mxu3 %v13883_v30  ;;  %13926 = vst [vmem:[#allocation60_spill] sm:$0xff] %v10736_v60 }
 0x4eb   : > { %13928 = vst [vmem:[#allocation32_spill] sm:$0xff] %v10740_v36 }
 0x4ec   : > { %v4083_v54 = vpop.f32.mrf.mxu2 }
 0x4ed   : > { %v4282_v27 = vpop.f32.mrf.mxu3  ;;  %v10724_v21 = vadd.f32 %v4278_v40, %v4083_v54  ;;  %v4936_v40 = vsub.f32 %v10761_v49, %v13410_v6  ;;  %v13409_v54 = vand.u32 4294901760, %v10773_v61 }
 0x4f1   : > { %4656 = vmatmul.f32.gmra.mxu2 %v13883_v30  ;;  %v4877_v30 = vld [vmem:[#allocation6 + $0xf8] sm:$0xff]  ;;  %v10755_v20 = vpop.f32.mrf.mxu0  ;;  %v10779_v10 = vpop.f32.mrf.mxu1 }
 0x4f2   : > { %4755 = vmatmul.f32.gmra.mxu3 %v13888_v59  ;;  %v10744_v47 = vand.u32 4294901760, %v4877_v30  ;;  %13930 = vst [vmem:[#allocation73_spill] sm:$0xff] %v10755_v20  ;;  %v4867_v20 = vld [vmem:[#allocation6 + $0xa8] sm:$0xff] }
 0x4f3   : > { %13932 = vst [vmem:[#allocation75_spill] sm:$0xff] %v10779_v10  ;;  %v10871_v36 = vand.u32 4294901760, %v4867_v20 }
 0x4f4   : > { %v4091_v22 = vpop.f32.mrf.mxu2  ;;  %v10749_v58 = vsub.f32 %v4877_v30, %v10744_v47  ;;  %5092 = vmatpush.msrb.mxu3 %v10744_v47  ;;  %4879 = vmatpush.msrb.mxu0 %v10744_v47  ;;  %v4942_v30 = vsub.f32 %v10773_v61, %v13409_v54 }
 0x4f5   : > { %v4286_v35 = vpop.f32.mrf.mxu3  ;;  %v10732_v41 = vadd.f32 %v4282_v27, %v4091_v22  ;;  %v10788_v27 = vsub.f32 %v4874_v24, %v10776_v62  ;;  %v10792_v22 = vand.u32 4294901760, %v4873_v18  ;;  %v4871_v24 = vld [vmem:[#allocation6 + $0xc8] sm:$0xff]  ;;  %v10882_v60 = vsub.f32 %v4867_v20, %v10871_v36 }
 0x4f6   : > { %v13411_v16 = vand.u32 4294901760, %v10749_v58  ;;  %5034 = vmatpush.msrb.mxu2 %v10749_v58  ;;  %5094 = vmatpush.msrb.mxu3 %v10751_v12  ;;  %v10817_v54 = vand.u32 4294901760, %v4871_v24 }
 0x4f7   : > { %4881 = vmatpush.msrb.mxu0 %v10751_v12  ;;  %v13412_v33 = vand.u32 4294901760, %v10788_v27  ;;  %v10807_v32 = vsub.f32 %v4873_v18, %v10792_v22 }
 0x4f8   : > { %v4930_v14 = vsub.f32 %v10749_v58, %v13411_v16  ;;  %5037 = vmatpush.msrb.mxu2 %v10761_v49  ;;  %5096 = vmatpush.msrb.mxu3 %v10764_v56  ;;  %v4870_v16 = vld [vmem:[#allocation6 + $0xc0] sm:$0xff] }
 0x4f9   : > { %4660 = vmatmul.f32.gmra.mxu2 %v13888_v59  ;;  %4883 = vmatpush.msrb.mxu0 %v10764_v56  ;;  %v10819_v6 = vpop.f32.mrf.mxu0  ;;  %v13413_v18 = vand.u32 4294901760, %v10807_v32  ;;  %v10846_v63 = vpop.f32.mrf.mxu1 }
 0x4fa   : > { %4759 = vmatmul.f32.gmra.mxu3 %v13894_v7  ;;  %v4931_v37 = vand.u32 4294901760, %v4930_v14  ;;  %5040 = vmatpush.msrb.mxu2 %v10773_v61  ;;  %v4943_v14 = vand.u32 4294901760, %v4942_v30  ;;  %13935 = vst [vmem:[#allocation47_spill] sm:$0xff] %v10819_v6 }
 0x4fb   : > { %5098 = vmatpush.msrb.mxu3 %v10776_v62  ;;  %4885 = vmatpush.msrb.mxu0 %v10776_v62  ;;  %v4954_v42 = vsub.f32 %v10807_v32, %v13413_v18  ;;  %13936 = vst [vmem:[#allocation26_spill] sm:$0xff] %v10846_v63 }
 0x4fc   : > { %v4099_v39 = vpop.f32.mrf.mxu2  ;;  %4932 = vmatpush.msrb.mxu1 %v4931_v37  ;;  %5043 = vmatpush.msrb.mxu2 %v10788_v27  ;;  %v4948_v37 = vsub.f32 %v10788_v27, %v13412_v33  ;;  %v10826_v33 = vsub.f32 %v4871_v24, %v10817_v54 }
 0x4fd   : > { %v4290_v11 = vpop.f32.mrf.mxu3  ;;  %v10738_v43 = vadd.f32 %v4286_v35, %v4099_v39  ;;  %5100 = vmatpush.msrb.mxu3 %v10792_v22  ;;  %4887 = vmatpush.msrb.mxu0 %v10792_v22  ;;  %v4955_v6 = vand.u32 4294901760, %v4954_v42 }
 0x4fe   : > { %5046 = vmatpush.msrb.mxu2 %v10807_v32  ;;  %v13939_v52 = vand.u32 4294901760, %v10826_v33 }
 0x4ff   : > { %13927 = vst [vmem:[#allocation71_spill] sm:$0xff] %v10738_v43 }
 0x501   : > { %4664 = vmatmul.f32.gmra.mxu2 %v13894_v7  ;;  %v10918_v51 = vpop.f32.mrf.mxu1 }
 0x502   : > { %4763 = vmatmul.f32.gmra.mxu3 %v13799_v3  ;;  %13943 = vst [vmem:[#allocation77_spill] sm:$0xff] %v10918_v51  ;;  %v4862_v51 = vld [vmem:[#allocation6 + $0x80] sm:$0xff] }
 0x503   : > { %v10939_v48 = vand.u32 4294901760, %v4862_v51 }
 0x504   : > { %v4107_v15 = vpop.f32.mrf.mxu2 }
 0x505   : > { %v10746_v59 = vpop.f32.mrf.mxu3  ;;  %v10757_v7 = vadd.f32 %v4290_v11, %v4107_v15  ;;  %v4937_v11 = vand.u32 4294901760, %v4936_v40 }
 0x506   : > { %13929 = vst [vmem:[#allocation74_spill] sm:$0xff] %v10746_v59 }
 0x507   : > { %13931 = vst [vmem:[#allocation72_spill] sm:$0xff] %v10757_v7  ;;  %4938 = vmatpush.msrb.mxu1 %v4937_v11  ;;  %v4949_v11 = vand.u32 4294901760, %v4948_v37 }
 0x509   : > { %4668 = vmatmul.f32.gmra.mxu2 %v13799_v3  ;;  %v4872_v3 = vld [vmem:[#allocation6 + $0xd0] sm:$0xff]  ;;  %4944 = vmatpush.msrb.mxu1 %v4943_v14 }
 0x50a   : > { %4767 = vmatmul.f32.gmra.mxu3 %v9931_v57  ;;  %v10804_v15 = vand.u32 4294901760, %v4872_v3 }
 0x50b   : > { %4950 = vmatpush.msrb.mxu1 %v4949_v11  ;;  %v4868_v11 = vld [vmem:[#allocation6 + $0xb0] sm:$0xff] }
 0x50c   : > { %v10795_v35 = vpop.f32.mrf.mxu2  ;;  %v10815_v40 = vsub.f32 %v4872_v3, %v10804_v15  ;;  %5102 = vmatpush.msrb.mxu3 %v10804_v15  ;;  %v10828_v3 = vand.u32 4294901760, %v4870_v16  ;;  %4889 = vmatpush.msrb.mxu0 %v10804_v15  ;;  %v10862_v63 = vand.u32 4294901760, %v4868_v11 }
 0x50d   : > { %13933 = vst [vmem:[#allocation19_spill] sm:$0xff] %v10795_v35  ;;  %v10797_v39 = vpop.f32.mrf.mxu3  ;;  %4956 = vmatpush.msrb.mxu1 %v4955_v6  ;;  %v4866_v6 = vld [vmem:[#allocation6 + $0xa0] sm:$0xff] }
 0x50e   : > { %13934 = vst [vmem:[#allocation51_spill] sm:$0xff] %v10797_v39  ;;  %v13414_v30 = vand.u32 4294901760, %v10815_v40  ;;  %5049 = vmatpush.msrb.mxu2 %v10815_v40  ;;  %v10842_v37 = vsub.f32 %v4870_v16, %v10828_v3  ;;  %5104 = vmatpush.msrb.mxu3 %v10817_v54  ;;  %v4966_v16 = vsub.f32 %v10826_v33, %v13939_v52  ;;  %v10885_v44 = vand.u32 4294901760, %v4866_v6 }
 0x50f   : > { %4891 = vmatpush.msrb.mxu0 %v10817_v54 }
 0x510   : > { %v4960_v14 = vsub.f32 %v10815_v40, %v13414_v30  ;;  %v13415_v10 = vand.u32 4294901760, %v10842_v37  ;;  %5052 = vmatpush.msrb.mxu2 %v10826_v33  ;;  %5106 = vmatpush.msrb.mxu3 %v10828_v3  ;;  %v4967_v8 = vand.u32 4294901760, %v4966_v16  ;;  %v10895_v20 = vsub.f32 %v4866_v6, %v10885_v44 }
 0x511   : > { %4672 = vmatmul.f32.gmra.mxu2 %v9931_v57  ;;  %v10844_v57 = vand.u32 4294901760, %v4869_v50  ;;  %4893 = vmatpush.msrb.mxu0 %v10828_v3 }
 0x512   : > { %4771 = vmatmul.f32.gmra.mxu3 %v9974_v25  ;;  %v4961_v24 = vand.u32 4294901760, %v4960_v14  ;;  %v4972_v14 = vsub.f32 %v10842_v37, %v13415_v10  ;;  %5055 = vmatpush.msrb.mxu2 %v10842_v37  ;;  %v13419_v46 = vand.u32 4294901760, %v10895_v20 }
 0x513   : > { %v10860_v42 = vsub.f32 %v4869_v50, %v10844_v57  ;;  %v10874_v50 = vsub.f32 %v4868_v11, %v10862_v63  ;;  %5108 = vmatpush.msrb.mxu3 %v10844_v57  ;;  %4895 = vmatpush.msrb.mxu0 %v10844_v57 }
 0x514   : > { %v10850_v18 = vpop.f32.mrf.mxu2  ;;  %4962 = vmatpush.msrb.mxu1 %v4961_v24  ;;  %v4973_v16 = vand.u32 4294901760, %v4972_v14  ;;  %v10887_v24 = vpop.f32.mrf.mxu0  ;;  %v4865_v14 = vld [vmem:[#allocation6 + $0x98] sm:$0xff] }
 0x515   : > { %13937 = vst [vmem:[#allocation76_spill] sm:$0xff] %v10850_v18  ;;  %v10852_v30 = vpop.f32.mrf.mxu3  ;;  %v13416_v52 = vand.u32 4294901760, %v10860_v42  ;;  %5058 = vmatpush.msrb.mxu2 %v10860_v42  ;;  %v13417_v11 = vand.u32 4294901760, %v10874_v50  ;;  %v10897_v31 = vand.u32 4294901760, %v4865_v14  ;;  %5110 = vmatpush.msrb.mxu3 %v10862_v63 }
 0x516   : > { %13938 = vst [vmem:[#allocation52_spill] sm:$0xff] %v10852_v30  ;;  %4968 = vmatpush.msrb.mxu1 %v4967_v8  ;;  %v13418_v30 = vand.u32 4294901760, %v10882_v60  ;;  %4897 = vmatpush.msrb.mxu0 %v10862_v63 }
 0x517   : > { %v4978_v10 = vsub.f32 %v10860_v42, %v13416_v52  ;;  %13940 = vst [vmem:[#allocation54_spill] sm:$0xff] %v10887_v24  ;;  %5061 = vmatpush.msrb.mxu2 %v10874_v50  ;;  %v4864_v24 = vld [vmem:[#allocation6 + $0x90] sm:$0xff]  ;;  %5112 = vmatpush.msrb.mxu3 %v10871_v36 }
 0x518   : > { %4974 = vmatpush.msrb.mxu1 %v4973_v16  ;;  %v4990_v6 = vsub.f32 %v10882_v60, %v13418_v30  ;;  %v10916_v1 = vand.u32 4294901760, %v4864_v24  ;;  %v4863_v16 = vld [vmem:[#allocation6 + $0x88] sm:$0xff]  ;;  %v4996_v30 = vsub.f32 %v10895_v20, %v13419_v46  ;;  %4899 = vmatpush.msrb.mxu0 %v10871_v36 }
 0x519   : > { %4676 = vmatmul.f32.gmra.mxu2 %v9974_v25  ;;  %v4979_v52 = vand.u32 4294901760, %v4978_v10  ;;  %v4984_v25 = vsub.f32 %v10874_v50, %v13417_v11  ;;  %v10914_v11 = vsub.f32 %v4865_v14, %v10897_v31  ;;  %5114 = vmatpush.msrb.mxu3 %v10885_v44 }
 0x51a   : > { %4775 = vmatmul.f32.gmra.mxu3 %v10010_v9  ;;  %5064 = vmatpush.msrb.mxu2 %v10882_v60  ;;  %v10928_v14 = vsub.f32 %v4864_v24, %v10916_v1 }
 0x51b   : > { %v4985_v29 = vand.u32 4294901760, %v4984_v25  ;;  %4980 = vmatpush.msrb.mxu1 %v4979_v52  ;;  %v10932_v25 = vand.u32 4294901760, %v4863_v16  ;;  %v4997_v52 = vand.u32 4294901760, %v4996_v30  ;;  %5116 = vmatpush.msrb.mxu3 %v10897_v31 }
 0x51c   : > { %v10904_v8 = vpop.f32.mrf.mxu2  ;;  %5067 = vmatpush.msrb.mxu2 %v10895_v20  ;;  %v13421_v46 = vand.u32 4294901760, %v10928_v14  ;;  %v10953_v39 = vpop.f32.mrf.mxu0  ;;  %4901 = vmatpush.msrb.mxu0 %v10885_v44 }
 0x51d   : > { %13941 = vst [vmem:[#allocation50_spill] sm:$0xff] %v10904_v8  ;;  %v10906_v10 = vpop.f32.mrf.mxu3  ;;  %v13420_v8 = vand.u32 4294901760, %v10914_v11  ;;  %4986 = vmatpush.msrb.mxu1 %v4985_v29  ;;  %v10944_v24 = vsub.f32 %v4863_v16, %v10932_v25  ;;  %5118 = vmatpush.msrb.mxu3 %v10916_v1 }
 0x51e   : > { %13942 = vst [vmem:[#allocation33_spill] sm:$0xff] %v10906_v10  ;;  %v4991_v10 = vand.u32 4294901760, %v4990_v6  ;;  %5070 = vmatpush.msrb.mxu2 %v10914_v11  ;;  %v5008_v30 = vsub.f32 %v10928_v14, %v13421_v46  ;;  %4903 = vmatpush.msrb.mxu0 %v10897_v31 }
 0x51f   : > { %v5002_v6 = vsub.f32 %v10914_v11, %v13420_v8  ;;  %v10951_v8 = vsub.f32 %v4862_v51, %v10939_v48  ;;  %13944 = vst [vmem:[#allocation28_spill] sm:$0xff] %v10953_v39  ;;  %v4860_v51 = vld [vmem:[#allocation6 + $0x78] sm:$0xff]  ;;  %5120 = vmatpush.msrb.mxu3 %v10932_v25 }
 0x520   : > { %4992 = vmatpush.msrb.mxu1 %v4991_v10  ;;  %5073 = vmatpush.msrb.mxu2 %v10928_v14  ;;  %v10969_v18 = vand.u32 4294901760, %v4860_v51 }
 0x521   : > { %4680 = vmatmul.f32.gmra.mxu2 %v10010_v9  ;;  %v5003_v29 = vand.u32 4294901760, %v5002_v6  ;;  %v13422_v9 = vand.u32 4294901760, %v10944_v24  ;;  %v5009_v6 = vand.u32 4294901760, %v5008_v30  ;;  %v13423_v46 = vand.u32 4294901760, %v10951_v8  ;;  %v4859_v30 = vld [vmem:[#allocation6 + $0x70] sm:$0xff]  ;;  %4905 = vmatpush.msrb.mxu0 %v10916_v1 }
 0x522   : > { %4779 = vmatmul.f32.gmra.mxu3 %v10146_v13  ;;  %4998 = vmatpush.msrb.mxu1 %v4997_v52  ;;  %v10982_v59 = vand.u32 4294901760, %v4859_v30 }
 0x523   : > { %5076 = vmatpush.msrb.mxu2 %v10944_v24  ;;  %v5014_v39 = vsub.f32 %v10944_v24, %v13422_v9  ;;  %v5020_v52 = vsub.f32 %v10951_v8, %v13423_v46  ;;  %v10980_v9 = vsub.f32 %v4860_v51, %v10969_v18  ;;  %v4858_v46 = vld [vmem:[#allocation6 + $0x68] sm:$0xff]  ;;  %5122 = vmatpush.msrb.mxu3 %v10939_v48  ;;  %v4857_v51 = vld [vmem:[#allocation6 + $0x60] sm:$0xff] }
 0x524   : > { %v10958_v16 = vpop.f32.mrf.mxu2  ;;  %5004 = vmatpush.msrb.mxu1 %v5003_v29  ;;  %v10991_v35 = vsub.f32 %v4859_v30, %v10982_v59  ;;  %4907 = vmatpush.msrb.mxu0 %v10932_v25  ;;  %v11009_v7 = vpop.f32.mrf.mxu0 }
 0x525   : > { %13945 = vst [vmem:[#allocation35_spill] sm:$0xff] %v10958_v16  ;;  %v10960_v10 = vpop.f32.mrf.mxu3  ;;  %5079 = vmatpush.msrb.mxu2 %v10951_v8  ;;  %v5015_v16 = vand.u32 4294901760, %v5014_v39  ;;  %v5021_v29 = vand.u32 4294901760, %v5020_v52  ;;  %v13424_v39 = vand.u32 4294901760, %v10980_v9  ;;  %v11000_v52 = vand.u32 4294901760, %v4857_v51 }
 0x526   : > { %13946 = vst [vmem:[#allocation39_spill] sm:$0xff] %v10960_v10  ;;  %v10975_v10 = vpop.f32.mrf.mxu1  ;;  %5010 = vmatpush.msrb.mxu1 %v5009_v6  ;;  %4909 = vmatpush.msrb.mxu0 %v10939_v48 }
 0x527   : > { %13947 = vst [vmem:[#allocation29_spill] sm:$0xff] %v10975_v10  ;;  %5251 = vmatpush.msra.mxu2 %v10969_v18  ;;  %v10988_v10 = vand.u32 4294901760, %v4858_v46  ;;  %v5302_v6 = vsub.f32 %v10980_v9, %v13424_v39 }
 0x528   : > { %5016 = vmatpush.msrb.mxu1 %v5015_v16  ;;  %13950 = vst [vmem:[#allocation58_spill] sm:$0xff] %v11009_v7 }
 0x529   : > { %4684 = vmatmul.f32.gmra.mxu2 %v10146_v13  ;;  %v13425_v13 = vand.u32 4294901760, %v10991_v35  ;;  %v11003_v55 = vsub.f32 %v4858_v46, %v10988_v10  ;;  %v5303_v39 = vand.u32 4294901760, %v5302_v6 }
 0x52a   : > { %4783 = vmatmul.f32.gmra.mxu3 %v10158_v5  ;;  %5253 = vmatpush.msra.mxu2 %v10982_v59 }
 0x52b   : > { %5022 = vmatpush.msrb.mxu1 %v5021_v29  ;;  %v5308_v4 = vsub.f32 %v10991_v35, %v13425_v13  ;;  %v13426_v46 = vand.u32 4294901760, %v11003_v55  ;;  %v11021_v29 = vsub.f32 %v4857_v51, %v11000_v52  ;;  %5304 = vmatpush.msra.mxu3 %v5303_v39  ;;  %v13952_v13 = vand.u32 4294901760, %v10749_v58 }
 0x52c   : > { %v11005_v30 = vpop.f32.mrf.mxu2  ;;  %5255 = vmatpush.msra.mxu2 %v10988_v10  ;;  %v11040_v39 = vand.u32 4294901760, %v4854_v38 }
 0x52d   : > { %13948 = vst [vmem:[#allocation40_spill] sm:$0xff] %v11005_v30  ;;  %v11007_v16 = vpop.f32.mrf.mxu3  ;;  %5210 = vmatpush.msra.mxu1 %v10744_v47  ;;  %v11018_v30 = vand.u32 4294901760, %v4856_v53  ;;  %v5309_v47 = vand.u32 4294901760, %v5308_v4  ;;  %v5314_v6 = vsub.f32 %v11003_v55, %v13426_v46  ;;  %5139 = vmatpush.msra.mxu0 %v13952_v13  ;;  %v13427_v43 = vand.u32 4294901760, %v11021_v29  ;;  %v4853_v46 = vld [vmem:[#allocation6 + $0x40] sm:$0xff] }
 0x52e   : > { %13949 = vst [vmem:[#allocation55_spill] sm:$0xff] %v11007_v16  ;;  %v4855_v16 = vld [vmem:[#allocation6 + $0x50] sm:$0xff]  ;;  %5257 = vmatpush.msra.mxu2 %v11000_v52 }
 0x52f   : > { %13951 = vst [vmem:[#allocation53_spill] sm:$0xff] %v11021_v29  ;;  %5212 = vmatpush.msra.mxu1 %v10751_v12  ;;  %v11027_v7 = vand.u32 4294901760, %v4855_v16  ;;  %v11034_v51 = vsub.f32 %v4856_v53, %v11018_v30  ;;  %v11036_v12 = vpop.f32.mrf.mxu1  ;;  %v5315_v4 = vand.u32 4294901760, %v5314_v6  ;;  %5310 = vmatpush.msra.mxu3 %v5309_v47  ;;  %v5320_v53 = vsub.f32 %v11021_v29, %v13427_v43 }
 0x530   : > { %13953 = vst [vmem:[#allocation37_spill] sm:$0xff] %v11036_v12  ;;  %5259 = vmatpush.msra.mxu2 %v11018_v30  ;;  %v11054_v12 = vand.u32 4294901760, %v4853_v46  ;;  %v13959_v6 = vand.u32 4294901760, %v10773_v61  ;;  %v11080_v61 = vpop.f32.mrf.mxu0 }
 0x531   : > { %4688 = vmatmul.f32.gmra.mxu2 %v10158_v5  ;;  %v11043_v58 = vsub.f32 %v4855_v16, %v11027_v7  ;;  %5214 = vmatpush.msra.mxu1 %v10764_v56  ;;  %v13430_v13 = vand.u32 4294901760, %v11034_v51  ;;  %v13955_v5 = vand.u32 4294901760, %v10761_v49  ;;  %v11057_v16 = vsub.f32 %v4854_v38, %v11040_v39 }
 0x532   : > { %4786 = vmatmul.f32.gmra.mxu3 %v13918_v2  ;;  %v5321_v43 = vand.u32 4294901760, %v5320_v53  ;;  %5261 = vmatpush.msra.mxu2 %v11027_v7  ;;  %v4851_v53 = vld [vmem:[#allocation6 + $0x30] sm:$0xff] }
 0x533   : > { %13954 = vst [vmem:[#allocation12_spill] sm:$0xff] %v11043_v58  ;;  %5143 = vmatpush.msra.mxu0 %v13955_v5  ;;  %5216 = vmatpush.msra.mxu1 %v10776_v62  ;;  %v5326_v49 = vsub.f32 %v11034_v51, %v13430_v13  ;;  %v4852_v5 = vld [vmem:[#allocation6 + $0x38] sm:$0xff]  ;;  %v13960_v38 = vand.u32 4294901760, %v11043_v58 }
 0x534   : > { %13956 = vst [vmem:[#allocation23_spill] sm:$0xff] %v11057_v16  ;;  %v11059_v56 = vpop.f32.mrf.mxu2  ;;  %5316 = vmatpush.msra.mxu3 %v5315_v4  ;;  %v11074_v29 = vand.u32 4294901760, %v4852_v5  ;;  %v11078_v4 = vsub.f32 %v4853_v46, %v11054_v12  ;;  %5263 = vmatpush.msra.mxu2 %v11040_v39  ;;  %v4850_v46 = vld [vmem:[#allocation6 + $0x28] sm:$0xff] }
 0x535   : > { %13957 = vst [vmem:[#allocation14_spill] sm:$0xff] %v11059_v56  ;;  %v11061_v47 = vpop.f32.mrf.mxu3  ;;  %5147 = vmatpush.msra.mxu0 %v13959_v6  ;;  %v5332_v56 = vsub.f32 %v11043_v58, %v13960_v38  ;;  %5218 = vmatpush.msra.mxu1 %v10792_v22  ;;  %v5327_v62 = vand.u32 4294901760, %v5326_v49  ;;  %v13962_v6 = vand.u32 4294901760, %v10788_v27  ;;  %v11088_v58 = vand.u32 4294901760, %v4851_v53 }
 0x536   : > { %13958 = vst [vmem:[#allocation13_spill] sm:$0xff] %v11061_v47  ;;  %v13433_v47 = vand.u32 4294901760, %v11057_v16  ;;  %5322 = vmatpush.msra.mxu3 %v5321_v43  ;;  %v13434_v43 = vand.u32 4294901760, %v11078_v4  ;;  %v11093_v22 = vsub.f32 %v4852_v5, %v11074_v29  ;;  %5265 = vmatpush.msra.mxu2 %v11054_v12 }
 0x537   : > { %13961 = vst [vmem:[#allocation31_spill] sm:$0xff] %v11078_v4  ;;  %5151 = vmatpush.msra.mxu0 %v13962_v6  ;;  %v5333_v38 = vand.u32 4294901760, %v5332_v56  ;;  %5220 = vmatpush.msra.mxu1 %v10804_v15  ;;  %v11097_v56 = vand.u32 4294901760, %v4850_v46  ;;  %v11100_v49 = vsub.f32 %v4851_v53, %v11088_v58  ;;  %v11107_v6 = vpop.f32.mrf.mxu1 }
 0x538   : > { %v5338_v13 = vsub.f32 %v11057_v16, %v13433_v47  ;;  %5328 = vmatpush.msra.mxu3 %v5327_v62  ;;  %v5344_v15 = vsub.f32 %v11078_v4, %v13434_v43  ;;  %v4849_v62 = vld [vmem:[#allocation6 + $0x20] sm:$0xff]  ;;  %v13963_v47 = vand.u32 4294901760, %v10807_v32  ;;  %v13966_v32 = vand.u32 4294901760, %v11093_v22  ;;  %v4848_v4 = vld [vmem:[#allocation6 + $0x18] sm:$0xff]  ;;  %5267 = vmatpush.msra.mxu2 %v11074_v29 }
 0x539   : > { %4691 = vmatmul.f32.gmra.mxu2 %v13918_v2  ;;  %5222 = vmatpush.msra.mxu1 %v10817_v54  ;;  %v11113_v53 = vand.u32 4294901760, %v4849_v62  ;;  %v11116_v54 = vsub.f32 %v4850_v46, %v11097_v56  ;;  %v13968_v46 = vand.u32 4294901760, %v11100_v49  ;;  %v11133_v16 = vand.u32 4294901760, %v4848_v4 }
 0x53a   : > { %4789 = vmatmul.f32.gmra.mxu3 %v13918_v2  ;;  %v5339_v27 = vand.u32 4294901760, %v5338_v13  ;;  %5155 = vmatpush.msra.mxu0 %v13963_v47  ;;  %v5345_v5 = vand.u32 4294901760, %v5344_v15  ;;  %v5350_v47 = vsub.f32 %v11093_v22, %v13966_v32  ;;  %v13967_v13 = vand.u32 4294901760, %v10815_v40  ;;  %v4847_v15 = vld [vmem:[#allocation6 + $0x10] sm:$0xff] }
 0x53b   : > { %5334 = vmatpush.msra.mxu3 %v5333_v38  ;;  %5224 = vmatpush.msra.mxu1 %v10828_v3  ;;  %v13969_v40 = vand.u32 4294901760, %v10826_v33  ;;  %v4379_v33 = vpop.f32.mrf.mxu0 }
 0x53c   : > { %v11118_v38 = vpop.f32.mrf.mxu2  ;;  %5159 = vmatpush.msra.mxu0 %v13967_v13  ;;  %v5351_v3 = vand.u32 4294901760, %v5350_v47  ;;  %5269 = vmatpush.msra.mxu2 %v11088_v58 }
 0x53d   : > { %13964 = vst [vmem:[#allocation21_spill] sm:$0xff] %v11118_v38  ;;  %v11120_v43 = vpop.f32.mrf.mxu3  ;;  %5340 = vmatpush.msra.mxu3 %v5339_v27  ;;  %v5356_v38 = vsub.f32 %v11100_v49, %v13968_v46  ;;  %5226 = vmatpush.msra.mxu1 %v10844_v57  ;;  %v11137_v27 = vsub.f32 %v4849_v62, %v11113_v53  ;;  %v11145_v46 = vand.u32 4294901760, %v4847_v15  ;;  %v4846_v62 = vld [vmem:[#allocation6 + $0x8] sm:$0xff] }
 0x53e   : > { %13965 = vst [vmem:[#allocation25_spill] sm:$0xff] %v11120_v43  ;;  %v13439_v43 = vand.u32 4294901760, %v11116_v54  ;;  %5163 = vmatpush.msra.mxu0 %v13969_v40  ;;  %v11155_v40 = vand.u32 4294901760, %v4846_v62  ;;  %5271 = vmatpush.msra.mxu2 %v11097_v56 }
 0x53f   : > { %5346 = vmatpush.msra.mxu3 %v5345_v5  ;;  %v5357_v13 = vand.u32 4294901760, %v5356_v38  ;;  %5228 = vmatpush.msra.mxu1 %v10862_v63  ;;  %v13440_v57 = vand.u32 4294901760, %v11137_v27  ;;  %v11150_v5 = vsub.f32 %v4848_v4, %v11133_v16  ;;  %v13970_v38 = vand.u32 4294901760, %v10842_v37 }
 0x540   : > { %v5362_v32 = vsub.f32 %v11116_v54, %v13439_v43  ;;  %v11158_v43 = vsub.f32 %v4847_v15, %v11145_v46  ;;  %v13971_v37 = vand.u32 4294901760, %v10860_v42  ;;  %v11172_v15 = vsub.f32 %v4846_v62, %v11155_v40  ;;  %5273 = vmatpush.msra.mxu2 %v11113_v53 }
 0x541   : > { %5352 = vmatpush.msra.mxu3 %v5351_v3  ;;  %4694 = vmatmul.f32.gmra.mxu2 %v13918_v2  ;;  %v5368_v63 = vsub.f32 %v11137_v27, %v13440_v57  ;;  %v5373_v4 = vand.u32 4294901760, %v11150_v5  ;;  %v4845_v2 = vld [vmem:[#allocation6] sm:$0xff] }
 0x542   : > { %5167 = vmatpush.msra.mxu0 %v13970_v38  ;;  %v5363_v47 = vand.u32 4294901760, %v5362_v32  ;;  %5230 = vmatpush.msra.mxu1 %v10871_v36  ;;  %v13441_v3 = vand.u32 4294901760, %v11158_v43  ;;  %v11169_v32 = vand.u32 4294901760, %v4845_v2 }
 0x543   : > { %5358 = vmatpush.msra.mxu3 %v5357_v13  ;;  %v5369_v57 = vand.u32 4294901760, %v5368_v63  ;;  %v5374_v42 = vsub.f32 %v11150_v5, %v5373_v4  ;;  %v13973_v13 = vand.u32 4294901760, %v10874_v50  ;;  %5275 = vmatpush.msra.mxu2 %v11133_v16  ;;  %v13974_v50 = vand.u32 4294901760, %v10882_v60 }
 0x544   : > { %5171 = vmatpush.msra.mxu0 %v13971_v37  ;;  %v11174_v36 = vpop.f32.mrf.mxu2  ;;  %5232 = vmatpush.msra.mxu1 %v10885_v44  ;;  %v5380_v62 = vsub.f32 %v11158_v43, %v13441_v3  ;;  %v5385_v37 = vand.u32 4294901760, %v11172_v15  ;;  %v4490_v44 = vpop.f32.mrf.mxu1 }
 0x545   : > { %13972 = vst [vmem:[#allocation62_spill] sm:$0xff] %v11174_v36  ;;  %v4732_v38 = vpop.f32.mrf.mxu3  ;;  %5364 = vmatpush.msra.mxu3 %v5363_v47  ;;  %v11188_v36 = vsub.f32 %v4845_v2, %v11169_v32  ;;  %v5375_v63 = vand.u32 4294901760, %v5374_v42  ;;  %v4375_v47 = vadd.f32 %v11080_v61, %v10704_v19  ;;  %5277 = vmatpush.msra.mxu2 %v11145_v46  ;;  %v4384_v61 = vpop.f32.mrf.mxu0 }
 0x546   : > { %5175 = vmatpush.msra.mxu0 %v13973_v13  ;;  %5234 = vmatpush.msra.mxu1 %v10897_v31  ;;  %v5381_v13 = vand.u32 4294901760, %v5380_v62  ;;  %v5386_v3 = vsub.f32 %v11172_v15, %v5385_v37  ;;  %v13975_v31 = vand.u32 4294901760, %v10895_v20 }
 0x547   : > { %5370 = vmatpush.msra.mxu3 %v5369_v57  ;;  %v5391_v2 = vand.u32 4294901760, %v11188_v36  ;;  %5279 = vmatpush.msra.mxu2 %v11155_v40  ;;  %v4485_v57 = vadd.f32 %v11107_v6, %v4375_v47  ;;  %v13978_v6 = vand.u32 4294901760, %v10944_v24 }
 0x548   : > { %5179 = vmatpush.msra.mxu0 %v13974_v50  ;;  %5236 = vmatpush.msra.mxu1 %v10916_v1  ;;  %v5387_v19 = vand.u32 4294901760, %v5386_v3  ;;  %v13976_v1 = vand.u32 4294901760, %v10914_v11 }
 0x549   : > { %5376 = vmatpush.msra.mxu3 %v5375_v63  ;;  %v5392_v60 = vsub.f32 %v11188_v36, %v5391_v2  ;;  %5281 = vmatpush.msra.mxu2 %v11169_v32  ;;  %v4380_v63 = vadd.f32 %v4379_v33, %v10708_v17 }
 0x54a   : > { %5183 = vmatpush.msra.mxu0 %v13975_v31  ;;  %5238 = vmatpush.msra.mxu1 %v10932_v25  ;;  %v13977_v25 = vand.u32 4294901760, %v10928_v14  ;;  %v4385_v14 = vadd.f32 %v4384_v61, %v10712_v34 }
 0x54b   : > { %5382 = vmatpush.msra.mxu3 %v5381_v13  ;;  %v5393_v42 = vand.u32 4294901760, %v5392_v60  ;;  %v13979_v13 = vand.u32 4294901760, %v10951_v8 }
 0x54c   : > { %5187 = vmatpush.msra.mxu0 %v13976_v1  ;;  %v4637_v62 = vpop.f32.mrf.mxu2  ;;  %5240 = vmatpush.msra.mxu1 %v10939_v48  ;;  %v4496_v11 = vpop.f32.mrf.mxu1  ;;  %v4491_v48 = vadd.f32 %v4490_v44, %v4380_v63  ;;  %v11228_v44 = vld [vmem:[%s13236_s4] ss:$0 sm:$0xff] }
 0x54d   : > { %v4736_v20 = vpop.f32.mrf.mxu3  ;;  %v4638_v3 = vadd.f32 %v4637_v62, %v4485_v57  ;;  %5388 = vmatpush.msra.mxu3 %v5387_v19  ;;  %v4389_v57 = vpop.f32.mrf.mxu0 }
 0x54e   : > { %5191 = vmatpush.msra.mxu0 %v13977_v25 }
 0x54f   : > { %v4733_v50 = vadd.f32 %v4732_v38, %v4638_v3  ;;  %5394 = vmatpush.msra.mxu3 %v5393_v42  ;;  %v4497_v38 = vadd.f32 %v4496_v11, %v4385_v14 }
 0x550   : > { %5195 = vmatpush.msra.mxu0 %v13978_v6 }
 0x551   : > { %v4793_v47 = vadd.f32 %v4733_v50, %v10600_v28  ;;  %v4390_v28 = vadd.f32 %v4389_v57, %v10716_v23 }
 0x552   : > { %5199 = vmatpush.msra.mxu0 %v13979_v13 }
 0x554   : > { %v4641_v31 = vpop.f32.mrf.mxu2  ;;  %v4502_v33 = vpop.f32.mrf.mxu1 }
 0x555   : > { %v4740_v60 = vpop.f32.mrf.mxu3  ;;  %v4642_v19 = vadd.f32 %v4641_v31, %v4491_v48  ;;  %v4394_v8 = vpop.f32.mrf.mxu0  ;;  %v4503_v61 = vadd.f32 %v4502_v33, %v4390_v28  ;;  %v13981_v28 = vand.u32 4294901760, %v10991_v35 }
 0x556   : > { %v4395_v23 = vadd.f32 %v4394_v8, %v10724_v21 }
 0x557   : > { %v4737_v1 = vadd.f32 %v4736_v20, %v4642_v19  ;;  %v4813_v20 = vadd.f32 %v11228_v44, %v4793_v47 }
 0x559   : > { %v4794_v17 = vadd.f32 %v4737_v1, %v10607_v0  ;;  %v4829_v48 = vmax.f32 %v4813_v20, 0.0  ;;  %v13980_v1 = vand.u32 4294901760, %v10980_v9 }
 0x55b   : > { %v11241_v21 = vand.u32 4294901760, %v4829_v48 }
 0x55c   : > { %v4645_v24 = vpop.f32.mrf.mxu2  ;;  %v4508_v0 = vpop.f32.mrf.mxu1 }
 0x55d   : > { %v4646_v42 = vadd.f32 %v4645_v24, %v4497_v38  ;;  %v4744_v62 = vpop.f32.mrf.mxu3  ;;  %v4399_v19 = vpop.f32.mrf.mxu0  ;;  %v4509_v57 = vadd.f32 %v4508_v0, %v4395_v23  ;;  %v13983_v0 = vld [vmem:[#allocation63_spill] sm:$0xff] }
 0x55f   : > { %v4741_v3 = vadd.f32 %v4740_v60, %v4646_v42 }
 0x561   : > { %v4795_v25 = vadd.f32 %v4741_v3, %v10614_v26  ;;  %v4400_v3 = vadd.f32 %v4399_v19, %v10732_v41  ;;  %v13986_v19 = vand.u32 4294901760, %v11034_v51 }
 0x563   : > { %v4815_v34 = vadd.f32 %v11228_v44, %v4795_v25 }
 0x564   : > { %v4649_v63 = vpop.f32.mrf.mxu2  ;;  %v4514_v42 = vpop.f32.mrf.mxu1 }
 0x565   : > { %v4831_v50 = vmax.f32 %v4815_v34, 0.0  ;;  %v4650_v6 = vadd.f32 %v4649_v63, %v4503_v61  ;;  %v4748_v31 = vpop.f32.mrf.mxu3  ;;  %v11255_v61 = vsub.f32 %v4829_v48, %v11241_v21  ;;  %v4515_v23 = vadd.f32 %v4514_v42, %v4400_v3  ;;  %v4404_v48 = vpop.f32.mrf.mxu0 }
 0x567   : > { %v11234_v11 = vand.u32 4294901760, %v4831_v50  ;;  %v4745_v13 = vadd.f32 %v4744_v62, %v4650_v6  ;;  %v4814_v62 = vadd.f32 %v11228_v44, %v4794_v17  ;;  %v13982_v17 = vand.u32 4294901760, %v11003_v55 }
 0x569   : > { %v4911_v60 = vsub.f32 %v4831_v50, %v11234_v11  ;;  %v4796_v26 = vadd.f32 %v4745_v13, %v10621_v45  ;;  %5024 = vmatmul.f32.vlgmr.msrb.gmra.mxu1 %v11234_v11  ;;  %v13984_v50 = vld [vmem:[#allocation53_spill] sm:$0xff] }
 0x56a   : > { %5464 = vmatpush.msrb.mxu1 %v10969_v18  ;;  %v13985_v6 = vand.u32 4294901760, %v13984_v50 }
 0x56b   : > { %v4816_v47 = vadd.f32 %v11228_v44, %v4796_v26  ;;  %5082 = vmatmul.f32.vlgmr.msrb.gmra.mxu2 %v4911_v60  ;;  %v4912_v14 = vand.u32 4294901760, %v4911_v60 }
 0x56c   : > { %5466 = vmatpush.msrb.mxu1 %v10982_v59  ;;  %5511 = vmatpush.msrb.mxu2 %v13980_v1  ;;  %v4653_v33 = vpop.f32.mrf.mxu2  ;;  %v4520_v1 = vpop.f32.mrf.mxu1 }
 0x56d   : > { %v4832_v38 = vmax.f32 %v4816_v47, 0.0  ;;  %v4654_v45 = vadd.f32 %v4653_v33, %v4509_v57  ;;  %5126 = vmatmul.f32.vlgmr.msrb.gmra.mxu3 %v4912_v14  ;;  %v4913_v24 = vsub.f32 %v4911_v60, %v4912_v14  ;;  %v4752_v63 = vpop.f32.mrf.mxu3  ;;  %v13987_v47 = vld [vmem:[#allocation71_spill] sm:$0xff] }
 0x56e   : > { %5468 = vmatpush.msrb.mxu1 %v10988_v10  ;;  %5515 = vmatpush.msrb.mxu2 %v13981_v28  ;;  %v4405_v57 = vadd.f32 %v4404_v48, %v13987_v47 }
 0x56f   : > { %v4749_v8 = vadd.f32 %v4748_v31, %v4654_v45  ;;  %5582 = vmatpush.msrb.mxu3 %v10969_v18  ;;  %v4914_v25 = vand.u32 4294901760, %v4913_v24  ;;  %v11252_v34 = vand.u32 4294901760, %v4832_v38  ;;  %v4830_v18 = vmax.f32 %v4814_v62, 0.0  ;;  %v5638_v45 = vld [vmem:[#allocation6 + $0x178] sm:$0xff]  ;;  %v13990_v24 = vld [vmem:[#allocation64_spill] sm:$0xff] }
 0x570   : > { %5470 = vmatpush.msrb.mxu1 %v11000_v52  ;;  %5519 = vmatpush.msrb.mxu2 %v13982_v17  ;;  %v5284_v31 = vand.u32 4294901760, %v11255_v61  ;;  %v4521_v28 = vadd.f32 %v4520_v1, %v4405_v57  ;;  %v11299_v3 = vand.u32 4294901760, %v5638_v45  ;;  %v13998_v57 = vand.u32 4294901760, %v11100_v49 }
 0x571   : > { %v11261_v20 = vadd.f32 %v4749_v8, %v13983_v0  ;;  %5584 = vmatpush.msrb.mxu3 %v10982_v59  ;;  %4915 = vmatmul.f32.vlgmr.msrb.gmra.mxu0 %v4914_v25  ;;  %v4919_v41 = vsub.f32 %v4832_v38, %v11252_v34  ;;  %v11274_v26 = vand.u32 4294901760, %v4830_v18  ;;  %v5637_v8 = vld [vmem:[#allocation6 + $0x170] sm:$0xff]  ;;  %v13993_v0 = vld [vmem:[#allocation31_spill] sm:$0xff] }
 0x572   : > { %5028 = vmatmul.f32.gmra.mxu1 %v11252_v34  ;;  %5406 = vmatpush.msrb.mxu0 %v10980_v9  ;;  %v5285_v38 = vsub.f32 %v11255_v61, %v5284_v31  ;;  %v11314_v48 = vsub.f32 %v5638_v45, %v11299_v3 }
 0x573   : > { %5472 = vmatpush.msrb.mxu1 %v11018_v30  ;;  %5523 = vmatpush.msrb.mxu2 %v13985_v6  ;;  %v4920_v13 = vand.u32 4294901760, %v4919_v41  ;;  %v11296_v62 = vsub.f32 %v4830_v18, %v11274_v26  ;;  %v5636_v6 = vld [vmem:[#allocation6 + $0x168] sm:$0xff] }
 0x574   : > { %5586 = vmatpush.msrb.mxu3 %v10988_v10  ;;  %5087 = vmatmul.f32.gmra.mxu2 %v4919_v41  ;;  %v4657_v59 = vpop.f32.mrf.mxu2  ;;  %v4526_v47 = vpop.f32.mrf.mxu1 }
 0x575   : > { %5409 = vmatpush.msrb.mxu0 %v10991_v35  ;;  %5474 = vmatpush.msrb.mxu1 %v11027_v7  ;;  %v4658_v60 = vadd.f32 %v4657_v59, %v4515_v23  ;;  %v4921_v9 = vsub.f32 %v4919_v41, %v4920_v13  ;;  %v13988_v35 = vld [vmem:[#allocation12_spill] sm:$0xff]  ;;  %v4756_v25 = vpop.f32.mrf.mxu3  ;;  %v13994_v41 = vand.u32 4294901760, %v13993_v0  ;;  %v13996_v59 = vand.u32 4294901760, %v11093_v22 }
 0x576   : > { %5527 = vmatpush.msrb.mxu2 %v13986_v19  ;;  %5588 = vmatpush.msrb.mxu3 %v11000_v52  ;;  %v13989_v33 = vand.u32 4294901760, %v13988_v35  ;;  %v13995_v23 = vld [vmem:[#allocation72_spill] sm:$0xff]  ;;  %v11324_v19 = vand.u32 4294901760, %v5636_v6 }
 0x577   : > { %v4753_v10 = vadd.f32 %v4752_v63, %v4658_v60  ;;  %5132 = vmatmul.f32.gmra.mxu3 %v4920_v13  ;;  %5412 = vmatpush.msrb.mxu0 %v11003_v55  ;;  %v4922_v14 = vand.u32 4294901760, %v4921_v9  ;;  %v13991_v55 = vld [vmem:[#allocation23_spill] sm:$0xff]  ;;  %v4409_v63 = vpop.f32.mrf.mxu0  ;;  %v13997_v60 = vld [vmem:[#allocation16_spill] sm:$0xff] }
 0x578   : > { %5476 = vmatpush.msrb.mxu1 %v11040_v39  ;;  %5531 = vmatpush.msrb.mxu2 %v13989_v33  ;;  %v13992_v42 = vand.u32 4294901760, %v13991_v55  ;;  %v4410_v13 = vadd.f32 %v4409_v63, %v13995_v23 }
 0x579   : > { %v11288_v52 = vadd.f32 %v4753_v10, %v13990_v24  ;;  %5590 = vmatpush.msrb.mxu3 %v11018_v30  ;;  %5415 = vmatpush.msrb.mxu0 %v13984_v50  ;;  %v5286_v30 = vand.u32 4294901760, %v5285_v38  ;;  %v11308_v50 = vand.u32 4294901760, %v5637_v8  ;;  %v13999_v38 = vand.u32 4294901760, %v11116_v54 }
 0x57a   : > { %5478 = vmatpush.msrb.mxu1 %v11054_v12  ;;  %5535 = vmatpush.msrb.mxu2 %v13992_v42  ;;  %v4527_v1 = vadd.f32 %v4526_v47, %v4410_v13 }
 0x57b   : > { %5592 = vmatpush.msrb.mxu3 %v11027_v7  ;;  %4923 = vmatmul.f32.gmra.mxu0 %v4922_v14  ;;  %v5292_v7 = vand.u32 4294901760, %v11296_v62  ;;  %v11333_v10 = vsub.f32 %v5637_v8, %v11308_v50  ;;  %v5634_v14 = vld [vmem:[#allocation6 + $0x158] sm:$0xff] }
 0x57c   : > { %5242 = vmatmul.f32.vlgmr.msra.gmra.mxu1 %v11234_v11  ;;  %5418 = vmatpush.msrb.mxu0 %v11034_v51  ;;  %v4661_v17 = vpop.f32.mrf.mxu2 }
 0x57d   : > { %5480 = vmatpush.msrb.mxu1 %v11074_v29  ;;  %5539 = vmatpush.msrb.mxu2 %v13994_v41  ;;  %v4662_v18 = vadd.f32 %v4661_v17, %v4521_v28  ;;  %v4760_v42 = vpop.f32.mrf.mxu3  ;;  %v13456_v8 = vand.u32 4294901760, %v11333_v10 }
 0x57e   : > { %5594 = vmatpush.msrb.mxu3 %v11040_v39  ;;  %5287 = vmatmul.f32.vlgmr.msra.gmra.mxu2 %v5286_v30  ;;  %v5635_v39 = vld [vmem:[#allocation6 + $0x160] sm:$0xff] }
 0x57f   : > { %5421 = vmatpush.msrb.mxu0 %v13988_v35  ;;  %5482 = vmatpush.msrb.mxu1 %v11088_v58  ;;  %v4757_v51 = vadd.f32 %v4756_v25, %v4662_v18  ;;  %v13457_v35 = vand.u32 4294901760, %v11314_v48  ;;  %v11338_v33 = vand.u32 4294901760, %v5635_v39  ;;  %v5633_v25 = vld [vmem:[#allocation6 + $0x150] sm:$0xff] }
 0x580   : > { %5543 = vmatpush.msrb.mxu2 %v13996_v59  ;;  %5596 = vmatpush.msrb.mxu3 %v11054_v12  ;;  %v5293_v12 = vsub.f32 %v11296_v62, %v5292_v7 }
 0x581   : > { %v11320_v9 = vadd.f32 %v4757_v51, %v13997_v60  ;;  %5396 = vmatmul.f32.vlgmr.msra.gmra.mxu3 %v11241_v21  ;;  %5424 = vmatpush.msrb.mxu0 %v13991_v55  ;;  %v11348_v55 = vand.u32 4294901760, %v5634_v14  ;;  %v5691_v30 = vsub.f32 %v11314_v48, %v13457_v35  ;;  %v11360_v17 = vsub.f32 %v5635_v39, %v11338_v33  ;;  %v5630_v60 = vld [vmem:[#allocation6 + $0x138] sm:$0xff] }
 0x582   : > { %5484 = vmatpush.msrb.mxu1 %v11097_v56  ;;  %5547 = vmatpush.msrb.mxu2 %v13998_v57  ;;  %v5294_v28 = vand.u32 4294901760, %v5293_v12  ;;  %v5629_v57 = vld [vmem:[#allocation6 + $0x130] sm:$0xff]  ;;  %v11412_v12 = vand.u32 4294901760, %v5630_v60 }
 0x583   : > { %5598 = vmatpush.msrb.mxu3 %v11074_v29  ;;  %5427 = vmatpush.msrb.mxu0 %v13993_v0  ;;  %v11346_v29 = vsub.f32 %v5636_v6, %v11324_v19  ;;  %v14001_v0 = vld [vmem:[#allocation18_spill] sm:$0xff]  ;;  %v11370_v63 = vsub.f32 %v5634_v14, %v11348_v55  ;;  %v11372_v6 = vand.u32 4294901760, %v5633_v25  ;;  %v5692_v23 = vand.u32 4294901760, %v5691_v30 }
 0x584   : > { %5486 = vmatpush.msrb.mxu1 %v11113_v53  ;;  %5551 = vmatpush.msrb.mxu2 %v13999_v38  ;;  %v4665_v45 = vpop.f32.mrf.mxu2  ;;  %v13454_v13 = vand.u32 4294901760, %v11360_v17  ;;  %v5627_v38 = vld [vmem:[#allocation6 + $0x120] sm:$0xff] }
 0x585   : > { %5600 = vmatpush.msrb.mxu3 %v11088_v58  ;;  %5201 = vmatmul.f32.vlgmr.msra.gmra.mxu0 %v11234_v11  ;;  %v4666_v24 = vadd.f32 %v4665_v45, %v4527_v1  ;;  %v14000_v58 = vand.u32 4294901760, %v11137_v27  ;;  %v13455_v18 = vand.u32 4294901760, %v11346_v29  ;;  %v11395_v59 = vsub.f32 %v5633_v25, %v11372_v6 }
 0x586   : > { %5246 = vmatmul.f32.gmra.mxu1 %v11252_v34  ;;  %5430 = vmatpush.msrb.mxu0 %v11093_v22  ;;  %v5632_v22 = vld [vmem:[#allocation6 + $0x148] sm:$0xff]  ;;  %v11433_v45 = vsub.f32 %v5630_v60, %v11412_v12  ;;  %v11447_v25 = vand.u32 4294901760, %v5627_v38 }
 0x587   : > { %5488 = vmatpush.msrb.mxu1 %v11133_v16  ;;  %5555 = vmatpush.msrb.mxu2 %v14000_v58  ;;  %v4761_v11 = vadd.f32 %v4760_v42, %v4666_v24  ;;  %v11383_v51 = vand.u32 4294901760, %v5632_v22  ;;  %v13452_v14 = vand.u32 4294901760, %v11395_v59 }
 0x588   : > { %5602 = vmatpush.msrb.mxu3 %v11097_v56  ;;  %5295 = vmatmul.f32.gmra.mxu2 %v5294_v28  ;;  %v5697_v56 = vsub.f32 %v11333_v10, %v13456_v8  ;;  %v5626_v28 = vld [vmem:[#allocation6 + $0x118] sm:$0xff]  ;;  %v13447_v30 = vand.u32 4294901760, %v11433_v45 }
 0x589   : > { %5433 = vmatpush.msrb.mxu0 %v11100_v49  ;;  %5490 = vmatpush.msrb.mxu1 %v11145_v46  ;;  %v11366_v41 = vadd.f32 %v4761_v11, %v14001_v0  ;;  %v5631_v49 = vld [vmem:[#allocation6 + $0x140] sm:$0xff]  ;;  %v11407_v47 = vsub.f32 %v5632_v22, %v11383_v51  ;;  %v5625_v11 = vld [vmem:[#allocation6 + $0x110] sm:$0xff]  ;;  %v11459_v22 = vand.u32 4294901760, %v5626_v28 }
 0x58a   : > { %5559 = vmatpush.msrb.mxu2 %v5373_v4  ;;  %5604 = vmatpush.msrb.mxu3 %v11113_v53  ;;  %v14002_v4 = vand.u32 4294901760, %v11158_v43  ;;  %v5703_v53 = vsub.f32 %v11346_v29, %v13455_v18  ;;  %v11397_v39 = vand.u32 4294901760, %v5631_v49  ;;  %v5739_v60 = vsub.f32 %v11433_v45, %v13447_v30 }
 0x58b   : > { %5400 = vmatmul.f32.gmra.mxu3 %v11274_v26  ;;  %5436 = vmatpush.msrb.mxu0 %v11116_v54  ;;  %v13453_v54 = vand.u32 4294901760, %v11370_v63 }
 0x58c   : > { %5492 = vmatpush.msrb.mxu1 %v11155_v40  ;;  %5563 = vmatpush.msrb.mxu2 %v14002_v4  ;;  %v11422_v1 = vsub.f32 %v5631_v49, %v11397_v39  ;;  %v11471_v4 = vand.u32 4294901760, %v5625_v11 }
 0x58d   : > { %5606 = vmatpush.msrb.mxu3 %v11133_v16  ;;  %5439 = vmatpush.msrb.mxu0 %v11137_v27  ;;  %v5698_v16 = vand.u32 4294901760, %v5697_v56  ;;  %v5709_v27 = vsub.f32 %v11360_v17, %v13454_v13  ;;  %v5624_v56 = vld [vmem:[#allocation6 + $0x108] sm:$0xff] }
 0x58e   : > { %5494 = vmatpush.msrb.mxu1 %v11169_v32  ;;  %5567 = vmatpush.msrb.mxu2 %v5385_v37  ;;  %v5715_v37 = vsub.f32 %v11370_v63, %v13453_v54  ;;  %v13449_v42 = vand.u32 4294901760, %v11422_v1  ;;  %v6025_v54 = vld [vmem:[#allocation6 + $0x1d8] sm:$0xff] }
 0x58f   : > { %5608 = vmatpush.msrb.mxu3 %v11145_v46  ;;  %5205 = vmatmul.f32.gmra.mxu0 %v11252_v34  ;;  %v5704_v46 = vand.u32 4294901760, %v5703_v53  ;;  %v5628_v34 = vld [vmem:[#allocation6 + $0x128] sm:$0xff]  ;;  %v5623_v53 = vld [vmem:[#allocation6 + $0x100] sm:$0xff]  ;;  %v11599_v35 = vand.u32 4294901760, %v6025_v54 }
 0x590   : > { %5693 = vmatpush.msra.mxu1 %v5692_v23  ;;  %5442 = vmatpush.msrb.mxu0 %v11150_v5  ;;  %v5710_v5 = vand.u32 4294901760, %v5709_v27  ;;  %v11435_v24 = vand.u32 4294901760, %v5628_v34  ;;  %v5733_v0 = vsub.f32 %v11422_v1, %v13449_v42  ;;  %v11469_v23 = vsub.f32 %v5627_v38, %v11447_v25  ;;  %v6026_v42 = vld [vmem:[#allocation6 + $0x1e0] sm:$0xff] }
 0x591   : > { %5498 = vmatmul.f32.vlgmr.msrb.gmra.mxu1 %v5284_v31  ;;  %5571 = vmatpush.msrb.mxu2 %v5391_v2  ;;  %v11425_v31 = vand.u32 4294901760, %v5629_v57  ;;  %v13450_v2 = vand.u32 4294901760, %v11407_v47  ;;  %v11483_v27 = vsub.f32 %v5626_v28, %v11459_v22  ;;  %v11509_v28 = vpop.f32.mrf.mxu0  ;;  %v11586_v18 = vand.u32 4294901760, %v6026_v42 }
 0x592   : > { %5610 = vmatpush.msrb.mxu3 %v11155_v40  ;;  %5699 = vmatpush.msra.mxu1 %v5698_v16  ;;  %v5716_v40 = vand.u32 4294901760, %v5715_v37  ;;  %v11495_v37 = vsub.f32 %v5625_v11, %v11471_v4  ;;  %14004 = vst [vmem:[#allocation15_spill] sm:$0xff] %v11509_v28  ;;  %v11515_v11 = vpop.f32.mrf.mxu2 }
 0x593   : > { %5795 = vmatpush.msra.mxu2 %v11314_v48  ;;  %5445 = vmatpush.msrb.mxu0 %v11158_v43  ;;  %v5721_v43 = vsub.f32 %v11395_v59, %v13452_v14  ;;  %v5727_v58 = vsub.f32 %v11407_v47, %v13450_v2  ;;  %14006 = vst [vmem:[#allocation56_spill] sm:$0xff] %v11515_v11 }
 0x594   : > { %5573 = vmatmul.f32.vlgmr.msrb.gmra.mxu2 %v11241_v21  ;;  %5612 = vmatpush.msrb.mxu3 %v11169_v32  ;;  %v11445_v32 = vsub.f32 %v5629_v57, %v11425_v31  ;;  %v11485_v57 = vand.u32 4294901760, %v5624_v56 }
 0x595   : > { %5705 = vmatpush.msra.mxu1 %v5704_v46  ;;  %5798 = vmatpush.msra.mxu2 %v11333_v10  ;;  %v13442_v46 = vand.u32 4294901760, %v11469_v23 }
 0x596   : > { %5853 = vmatpush.msra.mxu3 %v11299_v3  ;;  %5448 = vmatpush.msrb.mxu0 %v11172_v15  ;;  %v11457_v15 = vsub.f32 %v5628_v34, %v11435_v24  ;;  %v13445_v49 = vand.u32 4294901760, %v11445_v32  ;;  %v11497_v34 = vand.u32 4294901760, %v5623_v53 }
 0x597   : > { %5614 = vmatmul.f32.vlgmr.msrb.gmra.mxu3 %v11241_v21  ;;  %5711 = vmatpush.msra.mxu1 %v5710_v5  ;;  %v5722_v21 = vand.u32 4294901760, %v5721_v43  ;;  %v5740_v5 = vand.u32 4294901760, %v5739_v60  ;;  %v11507_v43 = vsub.f32 %v5624_v56, %v11485_v57  ;;  %v13446_v56 = vand.u32 4294901760, %v11495_v37  ;;  %v6029_v60 = vld [vmem:[#allocation6 + $0x1f8] sm:$0xff] }
 0x598   : > { %5801 = vmatpush.msra.mxu2 %v11346_v29  ;;  %5855 = vmatpush.msra.mxu3 %v11308_v50  ;;  %v13443_v16 = vand.u32 4294901760, %v11457_v15 }
 0x599   : > { %5451 = vmatpush.msrb.mxu0 %v11188_v36  ;;  %5717 = vmatpush.msra.mxu1 %v5716_v40  ;;  %v5728_v36 = vand.u32 4294901760, %v5727_v58  ;;  %v13444_v40 = vand.u32 4294901760, %v11483_v27  ;;  %14003 = vst [vmem:[#allocation57_spill] sm:$0xff] %v11507_v43  ;;  %v11513_v58 = vpop.f32.mrf.mxu1  ;;  %v11562_v30 = vpop.f32.mrf.mxu0 }
 0x59a   : > { %5804 = vmatpush.msra.mxu2 %v11360_v17  ;;  %5857 = vmatpush.msra.mxu3 %v11324_v19  ;;  %v5751_v38 = vsub.f32 %v11457_v15, %v13443_v16  ;;  %14005 = vst [vmem:[#allocation38_spill] sm:$0xff] %v11513_v58 }
 0x59b   : > { %5640 = vmatpush.msra.mxu0 %v11299_v3  ;;  %5504 = vmatmul.f32.gmra.mxu1 %v5292_v7  ;;  %v5745_v7 = vsub.f32 %v11445_v32, %v13445_v49  ;;  %14009 = vst [vmem:[#allocation27_spill] sm:$0xff] %v11562_v30 }
 0x59c   : > { %5454 = vmatmul.f32.vlgmr.msrb.gmra.mxu0 %v11255_v61  ;;  %5723 = vmatpush.msra.mxu1 %v5722_v21  ;;  %v5734_v61 = vand.u32 4294901760, %v5733_v0  ;;  %v5757_v0 = vsub.f32 %v11469_v23, %v13442_v46  ;;  %v13448_v46 = vand.u32 4294901760, %v11507_v43 }
 0x59d   : > { %5642 = vmatpush.msra.mxu0 %v11308_v50  ;;  %5807 = vmatpush.msra.mxu2 %v11370_v63  ;;  %v5746_v21 = vand.u32 4294901760, %v5745_v7  ;;  %v5763_v7 = vsub.f32 %v11483_v27, %v13444_v40  ;;  %v11543_v40 = vand.u32 4294901760, %v6029_v60 }
 0x59e   : > { %5859 = vmatpush.msra.mxu3 %v11338_v33  ;;  %5577 = vmatmul.f32.gmra.mxu2 %v11274_v26 }
 0x59f   : > { %5644 = vmatpush.msra.mxu0 %v11324_v19  ;;  %5729 = vmatpush.msra.mxu1 %v5728_v36  ;;  %v11523_v36 = vsub.f32 %v5623_v53, %v11497_v34  ;;  %v11536_v53 = vpop.f32.mrf.mxu3 }
 0x5a0   : > { %5810 = vmatpush.msra.mxu2 %v11395_v59  ;;  %5861 = vmatpush.msra.mxu3 %v11348_v55  ;;  %14008 = vst [vmem:[#allocation42_spill] sm:$0xff] %v11536_v53 }
 0x5a1   : > { %5618 = vmatmul.f32.gmra.mxu3 %v11274_v26  ;;  %5646 = vmatpush.msra.mxu0 %v11338_v33  ;;  %14007 = vst [vmem:[#allocation44_spill] sm:$0xff] %v11523_v36  ;;  %v4817_v26 = vadd.f32 %v11228_v44, %v11261_v20  ;;  %v6028_v20 = vld [vmem:[#allocation6 + $0x1f0] sm:$0xff]  ;;  %v13451_v16 = vand.u32 4294901760, %v11523_v36  ;;  %v11568_v2 = vpop.f32.mrf.mxu1  ;;  %v11625_v53 = vpop.f32.mrf.mxu0 }
 0x5a2   : > { %5735 = vmatpush.msra.mxu1 %v5734_v61  ;;  %5813 = vmatpush.msra.mxu2 %v11407_v47  ;;  %v5752_v61 = vand.u32 4294901760, %v5751_v38  ;;  %v5769_v38 = vsub.f32 %v11495_v37, %v13446_v56  ;;  %v6027_v56 = vld [vmem:[#allocation6 + $0x1e8] sm:$0xff]  ;;  %14010 = vst [vmem:[#allocation41_spill] sm:$0xff] %v11568_v2  ;;  %v6022_v2 = vld [vmem:[#allocation6 + $0x1c0] sm:$0xff] }
 0x5a3   : > { %5863 = vmatpush.msra.mxu3 %v11372_v6  ;;  %5648 = vmatpush.msra.mxu0 %v11348_v55  ;;  %v4833_v49 = vmax.f32 %v4817_v26, 0.0  ;;  %14018 = vst [vmem:[#allocation22_spill] sm:$0xff] %v11625_v53  ;;  %v6021_v53 = vld [vmem:[#allocation6 + $0x1b8] sm:$0xff]  ;;  %v11642_v28 = vand.u32 4294901760, %v6022_v2 }
 0x5a4   : > { %5741 = vmatpush.msra.mxu1 %v5740_v5  ;;  %5816 = vmatpush.msra.mxu2 %v11422_v1  ;;  %v5758_v5 = vand.u32 4294901760, %v5757_v0  ;;  %v11551_v0 = vand.u32 4294901760, %v6028_v20  ;;  %v5770_v26 = vand.u32 4294901760, %v5769_v38  ;;  %v11574_v38 = vpop.f32.mrf.mxu2 }
 0x5a5   : > { %5865 = vmatpush.msra.mxu3 %v11383_v51  ;;  %5459 = vmatmul.f32.gmra.mxu0 %v11296_v62  ;;  %v5764_v62 = vand.u32 4294901760, %v5763_v7  ;;  %v11560_v7 = vsub.f32 %v6029_v60, %v11543_v40  ;;  %14011 = vst [vmem:[#allocation46_spill] sm:$0xff] %v11574_v38  ;;  %v11623_v38 = vsub.f32 %v6025_v54, %v11599_v35 }
 0x5a6   : > { %5650 = vmatpush.msra.mxu0 %v11372_v6  ;;  %5747 = vmatpush.msra.mxu1 %v5746_v21  ;;  %v5775_v21 = vsub.f32 %v11507_v43, %v13448_v46  ;;  %v11564_v46 = vand.u32 4294901760, %v4833_v49  ;;  %v11580_v14 = vsub.f32 %v6028_v20, %v11551_v0  ;;  %v6024_v20 = vld [vmem:[#allocation6 + $0x1d0] sm:$0xff] }
 0x5a7   : > { %5819 = vmatpush.msra.mxu2 %v11433_v45  ;;  %5867 = vmatpush.msra.mxu3 %v11397_v39  ;;  %v13458_v13 = vand.u32 4294901760, %v11560_v7  ;;  %v11592_v8 = vpop.f32.mrf.mxu3  ;;  %14017 = vst [vmem:[#allocation45_spill] sm:$0xff] %v11623_v38 }
 0x5a8   : > { %5652 = vmatpush.msra.mxu0 %v11383_v51  ;;  %5753 = vmatpush.msra.mxu1 %v5752_v61  ;;  %v5781_v61 = vsub.f32 %v11523_v36, %v13451_v16  ;;  %v5776_v60 = vand.u32 4294901760, %v5775_v21  ;;  %v11577_v16 = vand.u32 4294901760, %v6027_v56  ;;  %14012 = vst [vmem:[#allocation36_spill] sm:$0xff] %v11592_v8 }
 0x5a9   : > { %5822 = vmatpush.msra.mxu2 %v11445_v32  ;;  %5869 = vmatpush.msra.mxu3 %v11412_v12  ;;  %v11631_v11 = vpop.f32.mrf.mxu1 }
 0x5aa   : > { %5654 = vmatpush.msra.mxu0 %v11397_v39  ;;  %5759 = vmatpush.msra.mxu1 %v5758_v5  ;;  %v11572_v5 = vadd.f32 %v11228_v44, %v11288_v52  ;;  %v5782_v52 = vand.u32 4294901760, %v5781_v61  ;;  %v11597_v61 = vsub.f32 %v6027_v56, %v11577_v16  ;;  %v6023_v56 = vld [vmem:[#allocation6 + $0x1c8] sm:$0xff]  ;;  %14019 = vst [vmem:[#allocation61_spill] sm:$0xff] %v11631_v11 }
 0x5ab   : > { %5825 = vmatpush.msra.mxu2 %v11457_v15  ;;  %5871 = vmatpush.msra.mxu3 %v11425_v31  ;;  %v11629_v30 = vand.u32 4294901760, %v6023_v56  ;;  %v6019_v11 = vld [vmem:[#allocation6 + $0x1a8] sm:$0xff] }
 0x5ac   : > { %5656 = vmatpush.msra.mxu0 %v11412_v12  ;;  %5765 = vmatpush.msra.mxu1 %v5764_v62  ;;  %v5672_v62 = vsub.f32 %v4833_v49, %v11564_v46  ;;  %v4834_v21 = vmax.f32 %v11572_v5, 0.0  ;;  %14013 = vst [vmem:[#allocation20_spill] sm:$0xff] %v11597_v61  ;;  %v6082_v49 = vsub.f32 %v11560_v7, %v13458_v13  ;;  %v11633_v58 = vpop.f32.mrf.mxu2 }
 0x5ad   : > { %5828 = vmatpush.msra.mxu2 %v11469_v23  ;;  %5873 = vmatpush.msra.mxu3 %v11435_v24  ;;  %v11608_v5 = vsub.f32 %v6026_v42, %v11586_v18  ;;  %14020 = vst [vmem:[#allocation63_spill] sm:$0xff] %v11633_v58 }
 0x5ae   : > { %5658 = vmatpush.msra.mxu0 %v11425_v31  ;;  %5771 = vmatpush.msra.mxu1 %v5770_v26  ;;  %v5673_v26 = vand.u32 4294901760, %v5672_v62  ;;  %v11619_v13 = vand.u32 4294901760, %v4834_v21 }
 0x5af   : > { %5831 = vmatpush.msra.mxu2 %v11483_v27  ;;  %5875 = vmatpush.msra.mxu3 %v11447_v25  ;;  %14014 = vst [vmem:[#allocation43_spill] sm:$0xff] %v11608_v5 }
 0x5b0   : > { %5660 = vmatpush.msra.mxu0 %v11435_v24  ;;  %5777 = vmatpush.msra.mxu1 %v5776_v60  ;;  %v11610_v60 = vand.u32 4294901760, %v6024_v20  ;;  %14016 = vst [vmem:[#allocation17_spill] sm:$0xff] %v11619_v13 }
 0x5b1   : > { %5834 = vmatpush.msra.mxu2 %v11495_v37  ;;  %5877 = vmatpush.msra.mxu3 %v11459_v22 }
 0x5b2   : > { %5662 = vmatpush.msra.mxu0 %v11447_v25  ;;  %5783 = vmatpush.msra.mxu1 %v5782_v52  ;;  %v14015_v52 = vand.u32 4294901760, %v11580_v14  ;;  %v11638_v42 = vsub.f32 %v6024_v20, %v11610_v60  ;;  %v5680_v20 = vsub.f32 %v4834_v21, %v11619_v13 }
 0x5b3   : > { %5837 = vmatpush.msra.mxu2 %v11507_v43  ;;  %5879 = vmatpush.msra.mxu3 %v11471_v4  ;;  %v11657_v43 = vpop.f32.mrf.mxu3 }
 0x5b4   : > { %5785 = vmatmul.f32.vlgmr.msra.gmra.mxu1 %v11564_v46  ;;  %5664 = vmatpush.msra.mxu0 %v11459_v22  ;;  %v6088_v8 = vsub.f32 %v11580_v14, %v14015_v52  ;;  %v6083_v52 = vand.u32 4294901760, %v6082_v49  ;;  %14021 = vst [vmem:[#allocation53_spill] sm:$0xff] %v11638_v42  ;;  %v14022_v49 = vand.u32 4294901760, %v11597_v61 }
 0x5b5   : > { %5971 = vmatpush.msrb.mxu1 %v11299_v3  ;;  %5840 = vmatpush.msra.mxu2 %v11523_v36  ;;  %v5674_v3 = vsub.f32 %v5672_v62, %v5673_v26  ;;  %v6020_v36 = vld [vmem:[#allocation6 + $0x1b0] sm:$0xff]  ;;  %14023 = vst [vmem:[#allocation71_spill] sm:$0xff] %v11657_v43  ;;  %v5681_v43 = vand.u32 4294901760, %v5680_v20 }
 0x5b6   : > { %5881 = vmatpush.msra.mxu3 %v11485_v57  ;;  %5843 = vmatmul.f32.vlgmr.msra.gmra.mxu2 %v5672_v62  ;;  %v6089_v58 = vand.u32 4294901760, %v6088_v8  ;;  %v6094_v54 = vsub.f32 %v11597_v61, %v14022_v49  ;;  %v11655_v62 = vand.u32 4294901760, %v6021_v53  ;;  %v14024_v8 = vand.u32 4294901760, %v11608_v5 }
 0x5b7   : > { %5973 = vmatpush.msrb.mxu1 %v11308_v50  ;;  %6031 = vmatpush.msrb.mxu2 %v11543_v40  ;;  %v11653_v50 = vsub.f32 %v6023_v56, %v11629_v30  ;;  %v5675_v56 = vand.u32 4294901760, %v5674_v3  ;;  %v11681_v61 = vand.u32 4294901760, %v6019_v11 }
 0x5b8   : > { %5666 = vmatpush.msra.mxu0 %v11471_v4  ;;  %5883 = vmatpush.msra.mxu3 %v11497_v34  ;;  %v6100_v21 = vsub.f32 %v11608_v5, %v14024_v8  ;;  %v14025_v8 = vand.u32 4294901760, %v11623_v38  ;;  %v6018_v5 = vld [vmem:[#allocation6 + $0x1a0] sm:$0xff] }
 0x5b9   : > { %5887 = vmatmul.f32.vlgmr.msra.gmra.mxu3 %v5673_v26  ;;  %5975 = vmatpush.msrb.mxu1 %v11324_v19  ;;  %v11667_v19 = vsub.f32 %v6022_v2, %v11642_v28  ;;  %v11669_v26 = vand.u32 4294901760, %v6020_v36  ;;  %v11679_v2 = vsub.f32 %v6021_v53, %v11655_v62  ;;  %v14031_v53 = vand.u32 4294901760, %v11333_v10 }
 0x5ba   : > { %6033 = vmatpush.msrb.mxu2 %v11551_v0  ;;  %6084 = vmatpush.msrb.mxu3 %v6083_v52  ;;  %v6095_v52 = vand.u32 4294901760, %v6094_v54  ;;  %v6106_v49 = vsub.f32 %v11623_v38, %v14025_v8  ;;  %v14026_v54 = vand.u32 4294901760, %v11638_v42  ;;  %v6017_v8 = vld [vmem:[#allocation6 + $0x198] sm:$0xff]  ;;  %v11687_v38 = vpop.f32.mrf.mxu0  ;;  %v14033_v10 = vand.u32 4294901760, %v11346_v29 }
 0x5bb   : > { %5668 = vmatpush.msra.mxu0 %v11485_v57  ;;  %5977 = vmatpush.msrb.mxu1 %v11338_v33  ;;  %14027 = vst [vmem:[#allocation12_spill] sm:$0xff] %v11687_v38  ;;  %v11694_v33 = vsub.f32 %v6020_v36, %v11669_v26  ;;  %v6016_v38 = vld [vmem:[#allocation6 + $0x190] sm:$0xff]  ;;  %v14032_v36 = vand.u32 4294901760, %v11653_v50 }
 0x5bc   : > { %6035 = vmatpush.msrb.mxu2 %v11577_v16  ;;  %6090 = vmatpush.msrb.mxu3 %v6089_v58  ;;  %v6101_v58 = vand.u32 4294901760, %v6100_v21  ;;  %v6112_v3 = vsub.f32 %v11638_v42, %v14026_v54  ;;  %v11702_v21 = vadd.f32 %v11228_v44, %v11320_v9  ;;  %v11704_v54 = vpop.f32.mrf.mxu2  ;;  %v11714_v9 = vsub.f32 %v6019_v11, %v11681_v61 }
 0x5bd   : > { %5670 = vmatpush.msra.mxu0 %v11497_v34  ;;  %5789 = vmatmul.f32.gmra.mxu1 %v11619_v13  ;;  %v14028_v13 = vand.u32 4294901760, %v11314_v48  ;;  %14030 = vst [vmem:[#allocation23_spill] sm:$0xff] %v11704_v54  ;;  %v6107_v48 = vand.u32 4294901760, %v6106_v49  ;;  %v11716_v54 = vand.u32 4294901760, %v6017_v8  ;;  %v11728_v11 = vand.u32 4294901760, %v6016_v38 }
 0x5be   : > { %5676 = vmatmul.f32.vlgmr.msra.gmra.mxu0 %v5675_v56  ;;  %5979 = vmatpush.msrb.mxu1 %v11348_v55  ;;  %v11696_v56 = vand.u32 4294901760, %v6018_v5  ;;  %v11698_v55 = vpop.f32.mrf.mxu1  ;;  %v4835_v42 = vmax.f32 %v11702_v21, 0.0 }
 0x5bf   : > { %5900 = vmatpush.msrb.mxu0 %v14028_v13  ;;  %6037 = vmatpush.msrb.mxu2 %v11586_v18  ;;  %14029 = vst [vmem:[#allocation64_spill] sm:$0xff] %v11698_v55  ;;  %v5682_v13 = vsub.f32 %v5680_v20, %v5681_v43  ;;  %v6118_v55 = vsub.f32 %v11653_v50, %v14032_v36  ;;  %v6015_v36 = vld [vmem:[#allocation6 + $0x188] sm:$0xff] }
 0x5c0   : > { %6096 = vmatpush.msrb.mxu3 %v6095_v52  ;;  %5848 = vmatmul.f32.gmra.mxu2 %v5680_v20  ;;  %v6113_v20 = vand.u32 4294901760, %v6112_v3  ;;  %v11742_v21 = vsub.f32 %v6017_v8, %v11716_v54  ;;  %v6014_v52 = vld [vmem:[#allocation6 + $0x180] sm:$0xff]  ;;  %v11755_v8 = vand.u32 4294901760, %v4835_v42 }
 0x5c1   : > { %5904 = vmatpush.msrb.mxu0 %v14031_v53  ;;  %5981 = vmatpush.msrb.mxu1 %v11372_v6  ;;  %v14034_v6 = vand.u32 4294901760, %v11667_v19  ;;  %v11726_v53 = vsub.f32 %v6018_v5, %v11696_v56  ;;  %v5683_v29 = vand.u32 4294901760, %v5682_v13  ;;  %v6119_v3 = vand.u32 4294901760, %v6118_v55 }
 0x5c2   : > { %6039 = vmatpush.msrb.mxu2 %v11599_v35  ;;  %6102 = vmatpush.msrb.mxu3 %v6101_v58  ;;  %v11731_v58 = vpop.f32.mrf.mxu3  ;;  %v14036_v5 = vand.u32 4294901760, %v11679_v2  ;;  %v14037_v55 = vand.u32 4294901760, %v11694_v33 }
 0x5c3   : > { %5893 = vmatmul.f32.gmra.mxu3 %v5681_v43  ;;  %5908 = vmatpush.msrb.mxu0 %v14033_v10  ;;  %v6124_v49 = vsub.f32 %v11667_v19, %v14034_v6  ;;  %v14035_v43 = vand.u32 4294901760, %v11360_v17  ;;  %v13471_v6 = vand.u32 4294901760, %v11714_v9  ;;  %v6147_v13 = vand.u32 4294901760, %v11726_v53 }
 0x5c4   : > { %5983 = vmatpush.msrb.mxu1 %v11383_v51  ;;  %6041 = vmatpush.msrb.mxu2 %v11610_v60  ;;  %v6130_v10 = vsub.f32 %v11679_v2, %v14036_v5  ;;  %v11746_v51 = vand.u32 4294901760, %v6015_v36  ;;  %v11760_v5 = vand.u32 4294901760, %v6014_v52 }
 0x5c5   : > { %6108 = vmatpush.msrb.mxu3 %v6107_v48  ;;  %5912 = vmatpush.msrb.mxu0 %v14035_v43  ;;  %v6125_v17 = vand.u32 4294901760, %v6124_v49  ;;  %v6136_v48 = vsub.f32 %v11694_v33, %v14037_v55  ;;  %v11753_v43 = vsub.f32 %v6016_v38, %v11728_v11  ;;  %v6142_v38 = vsub.f32 %v11714_v9, %v13471_v6 }
 0x5c6   : > { %5985 = vmatpush.msrb.mxu1 %v11397_v39  ;;  %6043 = vmatpush.msrb.mxu2 %v11629_v30  ;;  %v14038_v39 = vand.u32 4294901760, %v11370_v63  ;;  %v6131_v49 = vand.u32 4294901760, %v6130_v10  ;;  %v11769_v55 = vpop.f32.mrf.mxu1  ;;  %v4820_v63 = vadd.f32 %v11228_v44, %v11366_v41  ;;  %v6148_v6 = vsub.f32 %v11726_v53, %v6147_v13 }
 0x5c7   : > { %6114 = vmatpush.msrb.mxu3 %v6113_v20  ;;  %5684 = vmatmul.f32.gmra.mxu0 %v5683_v29  ;;  %v11762_v20 = vpop.f32.mrf.mxu0  ;;  %v6153_v29 = vand.u32 4294901760, %v11742_v21  ;;  %14040 = vst [vmem:[#allocation72_spill] sm:$0xff] %v11769_v55  ;;  %v6137_v10 = vand.u32 4294901760, %v6136_v48  ;;  %v6159_v44 = vand.u32 4294901760, %v11753_v43  ;;  %v11787_v41 = vsub.f32 %v4835_v42, %v11755_v8 }
 0x5c8   : > { %5916 = vmatpush.msrb.mxu0 %v14038_v39  ;;  %5987 = vmatpush.msrb.mxu1 %v11412_v12  ;;  %14039 = vst [vmem:[#allocation31_spill] sm:$0xff] %v11762_v20  ;;  %v11773_v12 = vpop.f32.mrf.mxu2  ;;  %v14042_v39 = vand.u32 4294901760, %v11395_v59  ;;  %v14043_v59 = vand.u32 4294901760, %v11407_v47  ;;  %v4836_v48 = vmax.f32 %v4820_v63, 0.0  ;;  %v14045_v42 = vand.u32 4294901760, %v11422_v1  ;;  %v14126_v20 = vld [vmem:[#allocation63_spill] sm:$0xff] }
 0x5c9   : > { %6045 = vmatpush.msrb.mxu2 %v11642_v28  ;;  %6120 = vmatpush.msrb.mxu3 %v6119_v3  ;;  %14041 = vst [vmem:[#allocation16_spill] sm:$0xff] %v11773_v12  ;;  %v11779_v3 = vsub.f32 %v6015_v36, %v11746_v51  ;;  %v6143_v36 = vand.u32 4294901760, %v6142_v38  ;;  %v6064_v1 = vand.u32 4294901760, %v11787_v41 }
 0x5ca   : > { %5920 = vmatpush.msrb.mxu0 %v14042_v39  ;;  %5989 = vmatpush.msrb.mxu1 %v11425_v31  ;;  %v11793_v31 = vsub.f32 %v6014_v52, %v11760_v5  ;;  %v11799_v39 = vpop.f32.mrf.mxu3  ;;  %v6160_v52 = vsub.f32 %v11753_v43, %v6159_v44  ;;  %v11815_v63 = vand.u32 4294901760, %v4836_v48 }
 0x5cb   : > { %6047 = vmatpush.msrb.mxu2 %v11655_v62  ;;  %6126 = vmatpush.msrb.mxu3 %v6125_v17  ;;  %v6154_v17 = vsub.f32 %v11742_v21, %v6153_v29  ;;  %14044 = vst [vmem:[#allocation18_spill] sm:$0xff] %v11799_v39  ;;  %v6165_v47 = vand.u32 4294901760, %v11779_v3 }
 0x5cc   : > { %5924 = vmatpush.msrb.mxu0 %v14043_v59  ;;  %5991 = vmatpush.msrb.mxu1 %v11435_v24  ;;  %v6149_v24 = vand.u32 4294901760, %v6148_v6  ;;  %v6171_v38 = vand.u32 4294901760, %v11793_v31  ;;  %v14047_v6 = vand.u32 4294901760, %v11445_v32  ;;  %v6065_v32 = vsub.f32 %v11787_v41, %v6064_v1 }
 0x5cd   : > { %6049 = vmatpush.msrb.mxu2 %v11669_v26  ;;  %6132 = vmatpush.msrb.mxu3 %v6131_v49  ;;  %v14046_v49 = vand.u32 4294901760, %v11433_v45  ;;  %v6166_v45 = vsub.f32 %v11779_v3, %v6165_v47 }
 0x5ce   : > { %5928 = vmatpush.msrb.mxu0 %v14045_v42  ;;  %5993 = vmatpush.msrb.mxu1 %v11447_v25  ;;  %v6155_v25 = vand.u32 4294901760, %v6154_v17  ;;  %v11826_v59 = vpop.f32.mrf.mxu1  ;;  %v14051_v17 = vand.u32 4294901760, %v11457_v15  ;;  %v14052_v42 = vand.u32 4294901760, %v11469_v23 }
 0x5cf   : > { %6051 = vmatpush.msrb.mxu2 %v11681_v61  ;;  %6138 = vmatpush.msrb.mxu3 %v6137_v10  ;;  %v6161_v10 = vand.u32 4294901760, %v6160_v52  ;;  %14049 = vst [vmem:[#allocation79_spill] sm:$0xff] %v11826_v59  ;;  %v6167_v15 = vand.u32 4294901760, %v6166_v45  ;;  %v14054_v52 = vand.u32 4294901760, %v11483_v27  ;;  %v14058_v27 = vand.u32 4294901760, %v11495_v37 }
 0x5d0   : > { %5932 = vmatpush.msrb.mxu0 %v14046_v49  ;;  %5995 = vmatpush.msrb.mxu1 %v11459_v22  ;;  %v11823_v22 = vpop.f32.mrf.mxu0  ;;  %v6066_v49 = vand.u32 4294901760, %v6065_v32  ;;  %v14061_v32 = vld [vmem:[#allocation57_spill] sm:$0xff] }
 0x5d1   : > { %6053 = vmatpush.msrb.mxu2 %v11696_v56  ;;  %6144 = vmatpush.msrb.mxu3 %v6143_v36  ;;  %14048 = vst [vmem:[#allocation78_spill] sm:$0xff] %v11823_v22  ;;  %v11828_v36 = vpop.f32.mrf.mxu2 }
 0x5d2   : > { %5936 = vmatpush.msrb.mxu0 %v14047_v6  ;;  %5997 = vmatpush.msrb.mxu1 %v11471_v4  ;;  %14050 = vst [vmem:[#allocation80_spill] sm:$0xff] %v11828_v36  ;;  %v6172_v4 = vsub.f32 %v11793_v31, %v6171_v38 }
 0x5d3   : > { %6055 = vmatpush.msrb.mxu2 %v11716_v54  ;;  %6150 = vmatpush.msrb.mxu3 %v6149_v24  ;;  %v11844_v24 = vsub.f32 %v4836_v48, %v11815_v63 }
 0x5d4   : > { %5940 = vmatpush.msrb.mxu0 %v14051_v17  ;;  %5999 = vmatpush.msrb.mxu1 %v11485_v57  ;;  %v11847_v57 = vpop.f32.mrf.mxu3 }
 0x5d5   : > { %6057 = vmatpush.msrb.mxu2 %v11728_v11  ;;  %6156 = vmatpush.msrb.mxu3 %v6155_v25  ;;  %14053 = vst [vmem:[#allocation81_spill] sm:$0xff] %v11847_v57  ;;  %v6173_v25 = vand.u32 4294901760, %v6172_v4  ;;  %v13474_v23 = vand.u32 4294901760, %v11844_v24  ;;  %v14062_v4 = vand.u32 4294901760, %v14061_v32 }
 0x5d6   : > { %5944 = vmatpush.msrb.mxu0 %v14052_v42  ;;  %6001 = vmatpush.msrb.mxu1 %v11497_v34  ;;  %v14055_v34 = vand.u32 4294901760, %v11560_v7  ;;  %v11860_v6 = vpop.f32.mrf.mxu1  ;;  %v14064_v42 = vld [vmem:[#allocation20_spill] sm:$0xff] }
 0x5d7   : > { %6059 = vmatpush.msrb.mxu2 %v11746_v51  ;;  %6162 = vmatpush.msrb.mxu3 %v6161_v10  ;;  %14057 = vst [vmem:[#allocation83_spill] sm:$0xff] %v11860_v6  ;;  %v14060_v10 = vand.u32 4294901760, %v11580_v14  ;;  %v6073_v17 = vsub.f32 %v11844_v24, %v13474_v23 }
 0x5d8   : > { %6003 = vmatmul.f32.vlgmr.msrb.gmra.mxu1 %v11564_v46  ;;  %5948 = vmatpush.msrb.mxu0 %v14054_v52  ;;  %v11858_v48 = vpop.f32.mrf.mxu0  ;;  %v14066_v52 = vld [vmem:[#allocation44_spill] sm:$0xff] }
 0x5d9   : > { %6244 = vmatpush.msra.mxu1 %v11543_v40  ;;  %6061 = vmatpush.msrb.mxu2 %v11760_v5  ;;  %14056 = vst [vmem:[#allocation82_spill] sm:$0xff] %v11858_v48  ;;  %v11866_v45 = vpop.f32.mrf.mxu2  ;;  %v14120_v48 = vld [vmem:[#allocation22_spill] sm:$0xff] }
 0x5da   : > { %6168 = vmatpush.msrb.mxu3 %v6167_v15  ;;  %6067 = vmatmul.f32.vlgmr.msrb.gmra.mxu2 %v6066_v49  ;;  %14059 = vst [vmem:[#allocation84_spill] sm:$0xff] %v11866_v45  ;;  %v14065_v15 = vand.u32 4294901760, %v14064_v42  ;;  %v14067_v49 = vand.u32 4294901760, %v14066_v52  ;;  %v6418_v52 = vld [vmem:[#allocation6 + $0x268] sm:$0xff]  ;;  %v14110_v45 = vld [vmem:[#allocation70_spill] sm:$0xff] }
 0x5db   : > { %6246 = vmatpush.msra.mxu1 %v11551_v0  ;;  %6291 = vmatpush.msra.mxu2 %v14055_v34  ;;  %v14069_v34 = vld [vmem:[#allocation43_spill] sm:$0xff] }
 0x5dc   : > { %5952 = vmatpush.msrb.mxu0 %v14058_v27  ;;  %6174 = vmatpush.msrb.mxu3 %v6173_v25  ;;  %v11877_v37 = vpop.f32.mrf.mxu3  ;;  %v6074_v25 = vand.u32 4294901760, %v6073_v17  ;;  %v14070_v27 = vand.u32 4294901760, %v14069_v34 }
 0x5dd   : > { %6176 = vmatmul.f32.vlgmr.msrb.gmra.mxu3 %v11755_v8  ;;  %6248 = vmatpush.msra.mxu1 %v11577_v16  ;;  %14063 = vst [vmem:[#allocation57_spill] sm:$0xff] %v11877_v37 }
 0x5de   : > { %6295 = vmatpush.msra.mxu2 %v14060_v10  ;;  %6362 = vmatpush.msra.mxu3 %v11543_v40  ;;  %v14068_v40 = vld [vmem:[#allocation17_spill] sm:$0xff]  ;;  %v11895_v10 = vpop.f32.mrf.mxu1 }
 0x5df   : > { %5956 = vmatpush.msrb.mxu0 %v14062_v4  ;;  %6250 = vmatpush.msra.mxu1 %v11586_v18  ;;  %14072 = vst [vmem:[#allocation44_spill] sm:$0xff] %v11895_v10  ;;  %v6419_v4 = vld [vmem:[#allocation6 + $0x270] sm:$0xff] }
 0x5e0   : > { %6299 = vmatpush.msra.mxu2 %v14065_v15  ;;  %6364 = vmatpush.msra.mxu3 %v11551_v0  ;;  %v11893_v0 = vpop.f32.mrf.mxu0  ;;  %v14096_v10 = vld [vmem:[#allocation42_spill] sm:$0xff] }
 0x5e1   : > { %5960 = vmatpush.msrb.mxu0 %v14067_v49  ;;  %6007 = vmatmul.f32.gmra.mxu1 %v14068_v40  ;;  %14071 = vst [vmem:[#allocation20_spill] sm:$0xff] %v11893_v0  ;;  %v11918_v49 = vand.u32 4294901760, %v6419_v4 }
 0x5e2   : > { %5962 = vmatmul.f32.vlgmr.msrb.gmra.mxu0 %v11564_v46  ;;  %6252 = vmatpush.msra.mxu1 %v11599_v35  ;;  %v14073_v46 = vld [vmem:[#allocation45_spill] sm:$0xff] }
 0x5e3   : > { %6186 = vmatpush.msra.mxu0 %v11560_v7  ;;  %6303 = vmatpush.msra.mxu2 %v14070_v27  ;;  %v14074_v32 = vand.u32 4294901760, %v14073_v46  ;;  %v6420_v7 = vld [vmem:[#allocation6 + $0x278] sm:$0xff]  ;;  %v11928_v27 = vand.u32 4294901760, %v6418_v52 }
 0x5e4   : > { %6366 = vmatpush.msra.mxu3 %v11577_v16  ;;  %6075 = vmatmul.f32.gmra.mxu2 %v6074_v25  ;;  %v11902_v16 = vpop.f32.mrf.mxu2  ;;  %v11909_v15 = vand.u32 4294901760, %v6420_v7  ;;  %v14080_v25 = vand.u32 4294901760, %v11667_v19 }
 0x5e5   : > { %6189 = vmatpush.msra.mxu0 %v11580_v14  ;;  %6254 = vmatpush.msra.mxu1 %v11610_v60  ;;  %14075 = vst [vmem:[#allocation17_spill] sm:$0xff] %v11902_v16  ;;  %v14076_v14 = vld [vmem:[#allocation53_spill] sm:$0xff] }
 0x5e6   : > { %6307 = vmatpush.msra.mxu2 %v14074_v32  ;;  %6368 = vmatpush.msra.mxu3 %v11586_v18  ;;  %v14077_v17 = vand.u32 4294901760, %v14076_v14  ;;  %v11911_v18 = vpop.f32.mrf.mxu3  ;;  %v11936_v32 = vsub.f32 %v6419_v4, %v11918_v49 }
 0x5e7   : > { %6180 = vmatmul.f32.gmra.mxu3 %v11815_v63  ;;  %6192 = vmatpush.msra.mxu0 %v14064_v42  ;;  %14078 = vst [vmem:[#allocation43_spill] sm:$0xff] %v11911_v18  ;;  %v14079_v42 = vand.u32 4294901760, %v11653_v50  ;;  %v14091_v18 = vld [vmem:[#allocation67_spill] sm:$0xff] }
 0x5e8   : > { %6256 = vmatpush.msra.mxu1 %v11629_v30  ;;  %6311 = vmatpush.msra.mxu2 %v14077_v17 }
 0x5e9   : > { %6370 = vmatpush.msra.mxu3 %v11599_v35  ;;  %6195 = vmatpush.msra.mxu0 %v14069_v34  ;;  %v6417_v35 = vld [vmem:[#allocation6 + $0x260] sm:$0xff]  ;;  %v11926_v34 = vsub.f32 %v6420_v7, %v11909_v15  ;;  %v6416_v7 = vld [vmem:[#allocation6 + $0x258] sm:$0xff] }
 0x5ea   : > { %6258 = vmatpush.msra.mxu1 %v11642_v28  ;;  %6315 = vmatpush.msra.mxu2 %v14079_v42  ;;  %v14082_v42 = vand.u32 4294901760, %v11694_v33 }
 0x5eb   : > { %6372 = vmatpush.msra.mxu3 %v11610_v60  ;;  %5966 = vmatmul.f32.gmra.mxu0 %v14068_v40  ;;  %v5025_v60 = vpop.f32.mrf.mxu1 }
 0x5ec   : > { %6198 = vmatpush.msra.mxu0 %v14073_v46  ;;  %6260 = vmatpush.msra.mxu1 %v11655_v62  ;;  %v14081_v46 = vand.u32 4294901760, %v11679_v2 }
 0x5ed   : > { %6319 = vmatpush.msra.mxu2 %v14080_v25  ;;  %6374 = vmatpush.msra.mxu3 %v11629_v30  ;;  %v11938_v30 = vand.u32 4294901760, %v6417_v35  ;;  %v13473_v25 = vand.u32 4294901760, %v11926_v34 }
 0x5ee   : > { %6201 = vmatpush.msra.mxu0 %v14076_v14  ;;  %6262 = vmatpush.msra.mxu1 %v11669_v26  ;;  %v4916_v40 = vpop.f32.mrf.mxu0  ;;  %v5083_v14 = vpop.f32.mrf.mxu2 }
 0x5ef   : > { %6323 = vmatpush.msra.mxu2 %v14081_v46  ;;  %6376 = vmatpush.msra.mxu3 %v11642_v28  ;;  %v5026_v17 = vadd.f32 %v5025_v60, %v4916_v40  ;;  %v11947_v28 = vsub.f32 %v6418_v52, %v11928_v27  ;;  %v11951_v60 = vand.u32 4294901760, %v6416_v7  ;;  %v14083_v46 = vand.u32 4294901760, %v11714_v9 }
 0x5f0   : > { %6204 = vmatpush.msra.mxu0 %v11653_v50  ;;  %6264 = vmatpush.msra.mxu1 %v11681_v61  ;;  %v6415_v50 = vld [vmem:[#allocation6 + $0x250] sm:$0xff]  ;;  %v5127_v40 = vpop.f32.mrf.mxu3 }
 0x5f1   : > { %6327 = vmatpush.msra.mxu2 %v14082_v42  ;;  %6378 = vmatpush.msra.mxu3 %v11655_v62  ;;  %v5084_v4 = vadd.f32 %v5083_v14, %v5026_v17  ;;  %v13472_v62 = vand.u32 4294901760, %v11936_v32  ;;  %v11958_v42 = vsub.f32 %v6417_v35, %v11938_v30  ;;  %v13475_v17 = vand.u32 4294901760, %v11947_v28 }
 0x5f2   : > { %6207 = vmatpush.msra.mxu0 %v11667_v19  ;;  %6266 = vmatpush.msra.mxu1 %v11696_v56  ;;  %v6414_v19 = vld [vmem:[#allocation6 + $0x248] sm:$0xff]  ;;  %v11971_v35 = vand.u32 4294901760, %v6415_v50 }
 0x5f3   : > { %6331 = vmatpush.msra.mxu2 %v14083_v46  ;;  %6380 = vmatpush.msra.mxu3 %v11669_v26  ;;  %v11960_v52 = vadd.f32 %v5127_v40, %v5084_v4  ;;  %v6473_v26 = vsub.f32 %v11926_v34, %v13473_v25  ;;  %v11985_v14 = vand.u32 4294901760, %v6414_v19  ;;  %v6413_v4 = vld [vmem:[#allocation6 + $0x240] sm:$0xff]  ;;  %v14085_v40 = vld [vmem:[#allocation74_spill] sm:$0xff] }
 0x5f4   : > { %6210 = vmatpush.msra.mxu0 %v11679_v2  ;;  %6268 = vmatpush.msra.mxu1 %v11716_v54  ;;  %v11976_v2 = vsub.f32 %v6416_v7, %v11951_v60  ;;  %v5029_v7 = vpop.f32.mrf.mxu1  ;;  %v11998_v25 = vsub.f32 %v6415_v50, %v11971_v35  ;;  %v12003_v23 = vand.u32 4294901760, %v6413_v4 }
 0x5f5   : > { %6335 = vmatpush.msra.mxu2 %v6147_v13  ;;  %6382 = vmatpush.msra.mxu3 %v11681_v61  ;;  %v6479_v61 = vsub.f32 %v11936_v32, %v13472_v62  ;;  %v13476_v13 = vand.u32 4294901760, %v11958_v42  ;;  %v6485_v62 = vsub.f32 %v11947_v28, %v13475_v17  ;;  %v14086_v17 = vld [vmem:[#allocation15_spill] sm:$0xff] }
 0x5f6   : > { %6213 = vmatpush.msra.mxu0 %v11694_v33  ;;  %6270 = vmatpush.msra.mxu1 %v11728_v11  ;;  %v14084_v33 = vld [vmem:[#allocation19_spill] sm:$0xff] }
 0x5f7   : > { %6339 = vmatpush.msra.mxu2 %v6153_v29  ;;  %6384 = vmatpush.msra.mxu3 %v11696_v56  ;;  %v4295_v46 = vadd.f32 %v14085_v40, %v14084_v33  ;;  %v6474_v56 = vand.u32 4294901760, %v6473_v26  ;;  %v6412_v33 = vld [vmem:[#allocation6 + $0x238] sm:$0xff]  ;;  %v6491_v50 = vsub.f32 %v11958_v42, %v13476_v13  ;;  %v12012_v26 = vsub.f32 %v6414_v19, %v11985_v14 }
 0x5f8   : > { %6216 = vmatpush.msra.mxu0 %v11714_v9  ;;  %6272 = vmatpush.msra.mxu1 %v11746_v51  ;;  %v4924_v29 = vpop.f32.mrf.mxu0  ;;  %v13477_v9 = vand.u32 4294901760, %v11976_v2  ;;  %v13478_v19 = vand.u32 4294901760, %v11998_v25 }
 0x5f9   : > { %6343 = vmatpush.msra.mxu2 %v6159_v44  ;;  %6386 = vmatpush.msra.mxu3 %v11716_v54  ;;  %v5030_v40 = vadd.f32 %v5029_v7, %v4924_v29  ;;  %v5088_v44 = vpop.f32.mrf.mxu2  ;;  %v6480_v54 = vand.u32 4294901760, %v6479_v61  ;;  %v6411_v7 = vld [vmem:[#allocation6 + $0x230] sm:$0xff]  ;;  %v12017_v29 = vand.u32 4294901760, %v6412_v33  ;;  %v6486_v61 = vand.u32 4294901760, %v6485_v62 }
 0x5fa   : > { %6219 = vmatpush.msra.mxu0 %v11726_v53  ;;  %6274 = vmatpush.msra.mxu1 %v11760_v5  ;;  %v6492_v62 = vand.u32 4294901760, %v6491_v50  ;;  %v6406_v50 = vld [vmem:[#allocation6 + $0x208] sm:$0xff] }
 0x5fb   : > { %6347 = vmatpush.msra.mxu2 %v6165_v47  ;;  %6388 = vmatpush.msra.mxu3 %v11728_v11  ;;  %v5089_v53 = vadd.f32 %v5088_v44, %v5030_v40  ;;  %v5133_v47 = vpop.f32.mrf.mxu3  ;;  %v4415_v11 = vadd.f32 %v14086_v17, %v4295_v46  ;;  %v6410_v40 = vld [vmem:[#allocation6 + $0x228] sm:$0xff]  ;;  %v12033_v17 = vand.u32 4294901760, %v6411_v7  ;;  %v13479_v46 = vand.u32 4294901760, %v12012_v26  ;;  %v14088_v44 = vld [vmem:[#allocation51_spill] sm:$0xff] }
 0x5fc   : > { %6278 = vmatmul.f32.vlgmr.msra.gmra.mxu1 %v6064_v1  ;;  %6222 = vmatpush.msra.mxu0 %v11742_v21  ;;  %v6497_v21 = vsub.f32 %v11976_v2, %v13477_v9  ;;  %v12031_v1 = vsub.f32 %v6413_v4, %v12003_v23  ;;  %v14087_v4 = vld [vmem:[#allocation76_spill] sm:$0xff] }
 0x5fd   : > { %6475 = vmatpush.msrb.mxu1 %v6474_v56  ;;  %6351 = vmatpush.msra.mxu2 %v6171_v38  ;;  %v12023_v13 = vadd.f32 %v5133_v47, %v5089_v53  ;;  %v6409_v38 = vld [vmem:[#allocation6 + $0x220] sm:$0xff]  ;;  %v12042_v56 = vand.u32 4294901760, %v6410_v40  ;;  %v4299_v53 = vadd.f32 %v14088_v44, %v14087_v4  ;;  %v14089_v47 = vld [vmem:[#allocation38_spill] sm:$0xff]  ;;  %v12057_v4 = vsub.f32 %v6411_v7, %v12033_v17 }
 0x5fe   : > { %6390 = vmatpush.msra.mxu3 %v11746_v51  ;;  %6353 = vmatmul.f32.vlgmr.msra.gmra.mxu2 %v11755_v8  ;;  %v12040_v51 = vsub.f32 %v6412_v33, %v12017_v29  ;;  %v4533_v9 = vadd.f32 %v14089_v47, %v4415_v11  ;;  %v6498_v33 = vand.u32 4294901760, %v6497_v21  ;;  %v6509_v44 = vsub.f32 %v12012_v26, %v13479_v46  ;;  %v14092_v21 = vld [vmem:[#allocation59_spill] sm:$0xff] }
 0x5ff   : > { %6481 = vmatpush.msrb.mxu1 %v6480_v54  ;;  %6577 = vmatpush.msrb.mxu2 %v11926_v34  ;;  %v6503_v54 = vsub.f32 %v11998_v25, %v13478_v19  ;;  %v6407_v19 = vld [vmem:[#allocation6 + $0x210] sm:$0xff]  ;;  %v3869_v16 = vadd.f32 %v14092_v21, %v14091_v18 }
 0x600   : > { %6225 = vmatpush.msra.mxu0 %v11753_v43  ;;  %6392 = vmatpush.msra.mxu3 %v11760_v5  ;;  %v12051_v43 = vand.u32 4294901760, %v6409_v38  ;;  %v6408_v5 = vld [vmem:[#allocation6 + $0x218] sm:$0xff] }
 0x601   : > { %6394 = vmatmul.f32.vlgmr.msra.gmra.mxu3 %v11755_v8  ;;  %6487 = vmatpush.msrb.mxu1 %v6486_v61  ;;  %v14090_v8 = vld [vmem:[#allocation56_spill] sm:$0xff]  ;;  %v6504_v18 = vand.u32 4294901760, %v6503_v54 }
 0x602   : > { %6580 = vmatpush.msrb.mxu2 %v11936_v32  ;;  %6635 = vmatpush.msrb.mxu3 %v11909_v15  ;;  %v5202_v11 = vpop.f32.mrf.mxu0  ;;  %v4670_v61 = vadd.f32 %v14090_v8, %v4533_v9  ;;  %v5243_v9 = vpop.f32.mrf.mxu1  ;;  %v14093_v8 = vld [vmem:[#allocation27_spill] sm:$0xff] }
 0x603   : > { %6228 = vmatpush.msra.mxu0 %v11779_v3  ;;  %6493 = vmatpush.msrb.mxu1 %v6492_v62  ;;  %v5203_v47 = vadd.f32 %v5202_v11, %v11960_v52  ;;  %v12071_v3 = vsub.f32 %v6410_v40, %v12042_v56  ;;  %v12073_v62 = vand.u32 4294901760, %v6408_v5  ;;  %v4420_v46 = vadd.f32 %v14093_v8, %v4299_v53  ;;  %v5288_v8 = vpop.f32.mrf.mxu2  ;;  %v14099_v53 = vld [vmem:[#allocation24_spill] sm:$0xff] }
 0x604   : > { %6583 = vmatpush.msrb.mxu2 %v11947_v28  ;;  %6637 = vmatpush.msrb.mxu3 %v11918_v49  ;;  %v14094_v52 = vand.u32 4294901760, %v11844_v24  ;;  %v12080_v11 = vsub.f32 %v6409_v38, %v12051_v43  ;;  %v14095_v40 = vand.u32 4294901760, %v12031_v1  ;;  %v6510_v38 = vand.u32 4294901760, %v6509_v44 }
 0x605   : > { %6231 = vmatpush.msra.mxu0 %v11793_v31  ;;  %v5244_v21 = vadd.f32 %v5243_v9, %v5203_v47  ;;  %6499 = vmatpush.msrb.mxu1 %v6498_v33  ;;  %v12087_v31 = vand.u32 4294901760, %v6407_v19  ;;  %v6405_v47 = vld [vmem:[#allocation6 + $0x200] sm:$0xff]  ;;  %v3966_v44 = vadd.f32 %v14099_v53, %v3869_v16 }
 0x606   : > { %6284 = vmatmul.f32.gmra.mxu1 %v14094_v52  ;;  %6234 = vmatmul.f32.vlgmr.msra.gmra.mxu0 %v11787_v41  ;;  %v6515_v7 = vsub.f32 %v12031_v1, %v14095_v40  ;;  %v4765_v52 = vadd.f32 %v14096_v10, %v4670_v61  ;;  %v14097_v41 = vand.u32 4294901760, %v12040_v51  ;;  %v12099_v40 = vsub.f32 %v6408_v5, %v12073_v62  ;;  %v5397_v10 = vpop.f32.mrf.mxu3 }
 0x607   : > { %6422 = vmatpush.msrb.mxu0 %v11909_v15  ;;  %6586 = vmatpush.msrb.mxu2 %v11958_v42  ;;  %v5289_v54 = vadd.f32 %v5288_v8, %v5244_v21  ;;  %v12101_v61 = vand.u32 4294901760, %v6406_v50  ;;  %v14100_v21 = vld [vmem:[#allocation41_spill] sm:$0xff]  ;;  %v13480_v37 = vand.u32 4294901760, %v12080_v11  ;;  %v12115_v16 = vsub.f32 %v6407_v19, %v12087_v31 }
 0x608   : > { %6639 = vmatpush.msrb.mxu3 %v11928_v27  ;;  %6357 = vmatmul.f32.gmra.mxu2 %v11815_v63  ;;  %v6521_v33 = vsub.f32 %v12040_v51, %v14097_v41  ;;  %14098 = vst [vmem:[#allocation45_spill] sm:$0xff] %v12099_v40  ;;  %v4539_v8 = vadd.f32 %v14100_v21, %v4420_v46  ;;  %v6516_v5 = vand.u32 4294901760, %v6515_v7  ;;  %v14101_v41 = vand.u32 4294901760, %v12057_v4 }
 0x609   : > { %6424 = vmatpush.msrb.mxu0 %v11918_v49  ;;  %6505 = vmatpush.msrb.mxu1 %v6504_v18  ;;  %v12107_v0 = vadd.f32 %v5397_v10, %v5289_v54  ;;  %14102 = vst [vmem:[#allocation53_spill] sm:$0xff] %v12115_v16  ;;  %v12117_v46 = vand.u32 4294901760, %v6405_v47  ;;  %v4801_v53 = vadd.f32 %v4765_v52, %v3966_v44  ;;  %v14103_v18 = vld [vmem:[#allocation46_spill] sm:$0xff]  ;;  %v14104_v54 = vand.u32 4294901760, %v12071_v3  ;;  %v14107_v44 = vld [vmem:[#allocation48_spill] sm:$0xff] }
 0x60a   : > { %6589 = vmatpush.msrb.mxu2 %v11976_v2  ;;  %6641 = vmatpush.msrb.mxu3 %v11938_v30  ;;  %v6527_v9 = vsub.f32 %v12057_v4, %v14101_v41  ;;  %v4674_v21 = vadd.f32 %v14103_v18, %v4539_v8  ;;  %v6522_v7 = vand.u32 4294901760, %v6521_v33  ;;  %v13481_v19 = vand.u32 4294901760, %v12099_v40  ;;  %v14106_v52 = vld [vmem:[#allocation34_spill] sm:$0xff]  ;;  %v6811_v18 = vld [vmem:[#allocation6 + $0x2f8] sm:$0xff] }
 0x60b   : > { %6398 = vmatmul.f32.gmra.mxu3 %v11815_v63  ;;  %6426 = vmatpush.msrb.mxu0 %v11928_v27  ;;  %v6533_v10 = vsub.f32 %v12071_v3, %v14104_v54  ;;  %v12128_v41 = vsub.f32 %v6406_v50, %v12101_v61  ;;  %v3873_v8 = vadd.f32 %v14107_v44, %v14106_v52  ;;  %v12146_v52 = vld [vmem:[%s13236_s4] ss:$0 sm:$0xff] }
 0x60c   : > { %6511 = vmatpush.msrb.mxu1 %v6510_v38  ;;  %6592 = vmatpush.msrb.mxu2 %v11998_v25  ;;  %v6539_v63 = vsub.f32 %v12080_v11, %v13480_v37  ;;  %v5206_v38 = vpop.f32.mrf.mxu0  ;;  %v6528_v33 = vand.u32 4294901760, %v6527_v9  ;;  %v12140_v50 = vsub.f32 %v6405_v47, %v12117_v46  ;;  %v12149_v44 = vadd.f32 %v12146_v52, %v4801_v53  ;;  %v14109_v37 = vld [vmem:[#allocation36_spill] sm:$0xff]  ;;  %v5247_v9 = vpop.f32.mrf.mxu1 }
 0x60d   : > { %14105 = vst [vmem:[#allocation19_spill] sm:$0xff] %v12128_v41  ;;  %6643 = vmatpush.msrb.mxu3 %v11951_v60  ;;  %6428 = vmatpush.msrb.mxu0 %v11938_v30  ;;  %v5207_v54 = vadd.f32 %v5206_v38, %v12023_v13  ;;  %v6534_v13 = vand.u32 4294901760, %v6533_v10  ;;  %v6545_v47 = vsub.f32 %v12099_v40, %v13481_v19 }
 0x60e   : > { %6517 = vmatpush.msrb.mxu1 %v6516_v5  ;;  %6595 = vmatpush.msrb.mxu2 %v12012_v26  ;;  %14108 = vst [vmem:[#allocation74_spill] sm:$0xff] %v12140_v50  ;;  %v4769_v5 = vadd.f32 %v14109_v37, %v4674_v21  ;;  %v3970_v6 = vadd.f32 %v14110_v45, %v3873_v8  ;;  %v5296_v37 = vpop.f32.mrf.mxu2  ;;  %v6810_v21 = vld [vmem:[#allocation6 + $0x2f0] sm:$0xff]  ;;  %v4837_v45 = vmax.f32 %v12149_v44, 0.0  ;;  %v14115_v44 = vld [vmem:[#allocation52_spill] sm:$0xff] }
 0x60f   : > { %6645 = vmatpush.msrb.mxu3 %v11971_v35  ;;  %6239 = vmatmul.f32.gmra.mxu0 %v11844_v24  ;;  %v5248_v53 = vadd.f32 %v5247_v9, %v5207_v54  ;;  %v6540_v24 = vand.u32 4294901760, %v6539_v63  ;;  %v12167_v54 = vand.u32 4294901760, %v6811_v18  ;;  %v5401_v63 = vpop.f32.mrf.mxu3  ;;  %v14113_v9 = vand.u32 4294901760, %v12128_v41 }
 0x610   : > { %6430 = vmatpush.msrb.mxu0 %v11951_v60  ;;  %6523 = vmatpush.msrb.mxu1 %v6522_v7  ;;  %v14111_v7 = vand.u32 4294901760, %v12115_v16  ;;  %v4802_v8 = vadd.f32 %v4769_v5, %v3970_v6  ;;  %v6809_v5 = vld [vmem:[#allocation6 + $0x2e8] sm:$0xff] }
 0x611   : > { %6598 = vmatpush.msrb.mxu2 %v12031_v1  ;;  %6647 = vmatpush.msrb.mxu3 %v11985_v14  ;;  %v5297_v38 = vadd.f32 %v5296_v37, %v5248_v53  ;;  %14112 = vst [vmem:[#allocation15_spill] sm:$0xff] %v12167_v54  ;;  %v12178_v53 = vand.u32 4294901760, %v6810_v21  ;;  %v14114_v37 = vld [vmem:[#allocation50_spill] sm:$0xff] }
 0x612   : > { %6432 = vmatpush.msrb.mxu0 %v11971_v35  ;;  %6529 = vmatpush.msrb.mxu1 %v6528_v33  ;;  %v6551_v10 = vsub.f32 %v12115_v16, %v14111_v7  ;;  %v6546_v33 = vand.u32 4294901760, %v6545_v47  ;;  %v6557_v7 = vsub.f32 %v12128_v41, %v14113_v9  ;;  %v4303_v6 = vadd.f32 %v14115_v44, %v14114_v37  ;;  %v6808_v37 = vld [vmem:[#allocation6 + $0x2e0] sm:$0xff] }
 0x613   : > { %6601 = vmatpush.msrb.mxu2 %v12040_v51  ;;  %6649 = vmatpush.msrb.mxu3 %v12003_v23  ;;  %v12176_v19 = vadd.f32 %v5401_v63, %v5297_v38  ;;  %v14116_v47 = vand.u32 4294901760, %v12140_v50  ;;  %v12189_v38 = vsub.f32 %v6811_v18, %v12167_v54  ;;  %v12191_v63 = vand.u32 4294901760, %v4837_v45 }
 0x614   : > { %6434 = vmatpush.msrb.mxu0 %v11985_v14  ;;  %6535 = vmatpush.msrb.mxu1 %v6534_v13  ;;  %v6552_v13 = vand.u32 4294901760, %v6551_v10  ;;  %v12196_v44 = vadd.f32 %v12146_v52, %v4802_v8  ;;  %v12199_v10 = vand.u32 4294901760, %v6809_v5  ;;  %v4425_v57 = vadd.f32 %v14120_v48, %v4303_v6  ;;  %v6807_v8 = vld [vmem:[#allocation6 + $0x2d8] sm:$0xff]  ;;  %v6806_v6 = vld [vmem:[#allocation6 + $0x2d0] sm:$0xff] }
 0x615   : > { %6604 = vmatpush.msrb.mxu2 %v12057_v4  ;;  %6651 = vmatpush.msrb.mxu3 %v12017_v29  ;;  %v6563_v9 = vsub.f32 %v12140_v50, %v14116_v47  ;;  %14117 = vst [vmem:[#allocation76_spill] sm:$0xff] %v12189_v38  ;;  %v12202_v47 = vsub.f32 %v6810_v21, %v12178_v53  ;;  %v12210_v39 = vand.u32 4294901760, %v6808_v37  ;;  %v12221_v59 = vand.u32 4294901760, %v6807_v8 }
 0x616   : > { %6436 = vmatpush.msrb.mxu0 %v12003_v23  ;;  %6541 = vmatpush.msrb.mxu1 %v6540_v24  ;;  %14118 = vst [vmem:[#allocation51_spill] sm:$0xff] %v12191_v63  ;;  %v6558_v24 = vand.u32 4294901760, %v6557_v7  ;;  %v5499_v7 = vpop.f32.mrf.mxu1  ;;  %v6454_v21 = vsub.f32 %v4837_v45, %v12191_v63  ;;  %v14122_v45 = vld [vmem:[#allocation61_spill] sm:$0xff] }
 0x617   : > { %6607 = vmatpush.msrb.mxu2 %v12071_v3  ;;  %6653 = vmatpush.msrb.mxu3 %v12033_v17  ;;  %14119 = vst [vmem:[#allocation38_spill] sm:$0xff] %v12202_v47  ;;  %v4545_v22 = vadd.f32 %v14122_v45, %v4425_v57  ;;  %v12235_v57 = vand.u32 4294901760, %v6806_v6  ;;  %v6805_v45 = vld [vmem:[#allocation6 + $0x2c8] sm:$0xff] }
 0x618   : > { %6438 = vmatpush.msrb.mxu0 %v12017_v29  ;;  %6547 = vmatpush.msrb.mxu1 %v6546_v33  ;;  %v6564_v33 = vand.u32 4294901760, %v6563_v9  ;;  %v12219_v9 = vsub.f32 %v6809_v5, %v12199_v10 }
 0x619   : > { %v5455_v18 = vpop.f32.mrf.mxu0  ;;  %6610 = vmatpush.msrb.mxu2 %v12080_v11  ;;  %6655 = vmatpush.msrb.mxu3 %v12042_v56 }
 0x61a   : > { %v5456_v36 = vadd.f32 %v5455_v18, %v12107_v0  ;;  %6440 = vmatpush.msrb.mxu0 %v12033_v17  ;;  %6553 = vmatpush.msrb.mxu1 %v6552_v13  ;;  %v4838_v0 = vmax.f32 %v12196_v44, 0.0  ;;  %14121 = vst [vmem:[#allocation56_spill] sm:$0xff] %v12219_v9  ;;  %v5574_v18 = vpop.f32.mrf.mxu2  ;;  %v14124_v44 = vld [vmem:[#allocation33_spill] sm:$0xff]  ;;  %v12233_v13 = vsub.f32 %v6808_v37, %v12210_v39  ;;  %v5615_v55 = vpop.f32.mrf.mxu3  ;;  %v14128_v37 = vand.u32 4294901760, %v12202_v47 }
 0x61b   : > { %6613 = vmatpush.msrb.mxu2 %v12099_v40  ;;  %6657 = vmatpush.msrb.mxu3 %v12051_v43  ;;  %v6803_v40 = vld [vmem:[#allocation6 + $0x2b8] sm:$0xff] }
 0x61c   : > { %v5500_v48 = vadd.f32 %v5499_v7, %v5456_v36  ;;  %6442 = vmatpush.msrb.mxu0 %v12042_v56  ;;  %6559 = vmatpush.msrb.mxu1 %v6558_v24  ;;  %v14123_v7 = vld [vmem:[#allocation35_spill] sm:$0xff]  ;;  %v14125_v24 = vand.u32 4294901760, %v12189_v38 }
 0x61d   : > { %6616 = vmatpush.msrb.mxu2 %v12115_v16  ;;  %6659 = vmatpush.msrb.mxu3 %v12073_v62  ;;  %v4307_v12 = vadd.f32 %v14124_v44, %v14123_v7  ;;  %v4678_v16 = vadd.f32 %v14126_v20, %v4545_v22  ;;  %v12247_v7 = vand.u32 4294901760, %v4838_v0  ;;  %v12251_v20 = vsub.f32 %v6807_v8, %v12221_v59  ;;  %v6804_v22 = vld [vmem:[#allocation6 + $0x2c0] sm:$0xff] }
 0x61e   : > { %v5575_v36 = vadd.f32 %v5574_v18, %v5500_v48  ;;  %6444 = vmatpush.msrb.mxu0 %v12051_v43  ;;  %6565 = vmatpush.msrb.mxu1 %v6564_v33  ;;  %v6864_v5 = vsub.f32 %v12189_v38, %v14125_v24  ;;  %v6455_v48 = vand.u32 4294901760, %v6454_v21  ;;  %v6870_v33 = vsub.f32 %v12202_v47, %v14128_v37  ;;  %v14130_v24 = vld [vmem:[#allocation66_spill] sm:$0xff]  ;;  %v5505_v44 = vpop.f32.mrf.mxu1 }
 0x61f   : > { %6619 = vmatpush.msrb.mxu2 %v12128_v41  ;;  %6661 = vmatpush.msrb.mxu3 %v12087_v31  ;;  %14129 = vst [vmem:[#allocation59_spill] sm:$0xff] %v12251_v20  ;;  %v14131_v41 = vld [vmem:[#allocation60_spill] sm:$0xff]  ;;  %v12263_v8 = vsub.f32 %v6806_v6, %v12235_v57  ;;  %v14134_v6 = vand.u32 4294901760, %v12219_v9 }
 0x620   : > { %v12240_v18 = vadd.f32 %v5615_v55, %v5575_v36  ;;  %6567 = vmatmul.f32.vlgmr.msrb.gmra.mxu1 %v12191_v63  ;;  %6446 = vmatpush.msrb.mxu0 %v12073_v62  ;;  %v3877_v55 = vadd.f32 %v14131_v41, %v14130_v24  ;;  %v12257_v36 = vand.u32 4294901760, %v6805_v45  ;;  %v6865_v37 = vand.u32 4294901760, %v6864_v5  ;;  %v14133_v41 = vld [vmem:[#allocation71_spill] sm:$0xff]  ;;  %v14136_v63 = vld [vmem:[#allocation64_spill] sm:$0xff] }
 0x621   : > { %6753 = vmatpush.msra.mxu1 %v11909_v15  ;;  %6622 = vmatpush.msrb.mxu2 %v12140_v50  ;;  %v4773_v24 = vadd.f32 %v14133_v41, %v4678_v16  ;;  %v6456_v15 = vsub.f32 %v6454_v21, %v6455_v48  ;;  %v12268_v50 = vand.u32 4294901760, %v6804_v22  ;;  %v6871_v5 = vand.u32 4294901760, %v6870_v33  ;;  %v14135_v33 = vld [vmem:[#allocation32_spill] sm:$0xff] }
 0x622   : > { %14127 = vst [vmem:[#allocation67_spill] sm:$0xff] %v12240_v18  ;;  %v14132_v18 = vld [vmem:[#allocation12_spill] sm:$0xff]  ;;  %6663 = vmatpush.msrb.mxu3 %v12101_v61  ;;  %6625 = vmatmul.f32.vlgmr.msrb.gmra.mxu2 %v6454_v21  ;;  %v5460_v47 = vpop.f32.mrf.mxu0  ;;  %v12277_v16 = vsub.f32 %v4838_v0, %v12247_v7  ;;  %v6802_v21 = vld [vmem:[#allocation6 + $0x2b0] sm:$0xff]  ;;  %v12284_v41 = vand.u32 4294901760, %v6803_v40  ;;  %v14137_v0 = vand.u32 4294901760, %v12233_v13 }
 0x623   : > { %v4430_v38 = vadd.f32 %v14132_v18, %v4307_v12  ;;  %6755 = vmatpush.msra.mxu1 %v11918_v49  ;;  %6813 = vmatpush.msra.mxu2 %v12167_v54  ;;  %v5461_v12 = vadd.f32 %v5460_v47, %v12176_v19  ;;  %v6876_v18 = vsub.f32 %v12219_v9, %v14134_v6  ;;  %v6801_v9 = vld [vmem:[#allocation6 + $0x2a8] sm:$0xff] }
 0x624   : > { %6448 = vmatpush.msrb.mxu0 %v12087_v31  ;;  %6665 = vmatpush.msrb.mxu3 %v12117_v46  ;;  %v12282_v19 = vsub.f32 %v6805_v45, %v12257_v36  ;;  %v3974_v54 = vadd.f32 %v14135_v33, %v3877_v55  ;;  %v6882_v49 = vsub.f32 %v12233_v13, %v14137_v0  ;;  %v6457_v45 = vand.u32 4294901760, %v6456_v15 }
 0x625   : > { %6669 = vmatmul.f32.vlgmr.msrb.gmra.mxu3 %v6455_v48  ;;  %6757 = vmatpush.msra.mxu1 %v11928_v27  ;;  %v5506_v47 = vadd.f32 %v5505_v44, %v5461_v12  ;;  %v4551_v6 = vadd.f32 %v14136_v63, %v4430_v38  ;;  %v5578_v27 = vpop.f32.mrf.mxu2  ;;  %v12296_v55 = vsub.f32 %v6804_v22, %v12268_v50  ;;  %v12298_v38 = vand.u32 4294901760, %v6802_v21  ;;  %v5619_v48 = vpop.f32.mrf.mxu3 }
 0x626   : > { %6815 = vmatpush.msra.mxu2 %v12178_v53  ;;  %6866 = vmatpush.msra.mxu3 %v6865_v37  ;;  %v4803_v63 = vadd.f32 %v4773_v24, %v3974_v54  ;;  %v6877_v37 = vand.u32 4294901760, %v6876_v18  ;;  %v6463_v12 = vand.u32 4294901760, %v12277_v16  ;;  %v14138_v33 = vand.u32 4294901760, %v12251_v20 }
 0x627   : > { %6450 = vmatpush.msrb.mxu0 %v12101_v61  ;;  %6759 = vmatpush.msra.mxu1 %v11938_v30  ;;  %v5579_v44 = vadd.f32 %v5578_v27, %v5506_v47  ;;  %v6800_v30 = vld [vmem:[#allocation6 + $0x2a0] sm:$0xff]  ;;  %v12311_v54 = vsub.f32 %v6803_v40, %v12284_v41  ;;  %v12313_v24 = vand.u32 4294901760, %v6801_v9  ;;  %v6883_v47 = vand.u32 4294901760, %v6882_v49 }
 0x628   : > { %6817 = vmatpush.msra.mxu2 %v12199_v10  ;;  %6872 = vmatpush.msra.mxu3 %v6871_v5  ;;  %v6888_v0 = vsub.f32 %v12251_v20, %v14138_v33  ;;  %v14139_v5 = vld [vmem:[#allocation23_spill] sm:$0xff]  ;;  %v14140_v27 = vand.u32 4294901760, %v12263_v8  ;;  %v14141_v22 = vand.u32 4294901760, %v11926_v34 }
 0x629   : > { %6452 = vmatpush.msrb.mxu0 %v12117_v46  ;;  %6571 = vmatmul.f32.gmra.mxu1 %v12247_v7  ;;  %v12308_v15 = vadd.f32 %v5619_v48, %v5579_v44  ;;  %v4682_v18 = vadd.f32 %v14139_v5, %v4551_v6  ;;  %v6799_v20 = vld [vmem:[#allocation6 + $0x298] sm:$0xff]  ;;  %v12325_v48 = vsub.f32 %v6802_v21, %v12298_v38  ;;  %v12327_v6 = vand.u32 4294901760, %v6800_v30  ;;  %v6798_v5 = vld [vmem:[#allocation6 + $0x290] sm:$0xff] }
 0x62a   : > { %6458 = vmatmul.f32.vlgmr.msrb.gmra.mxu0 %v6457_v45  ;;  %6761 = vmatpush.msra.mxu1 %v11951_v60  ;;  %v6894_v33 = vsub.f32 %v12263_v8, %v14140_v27  ;;  %v14142_v45 = vld [vmem:[#allocation65_spill] sm:$0xff]  ;;  %v12332_v44 = vadd.f32 %v12146_v52, %v4803_v63  ;;  %v6889_v34 = vand.u32 4294901760, %v6888_v0  ;;  %v14144_v27 = vand.u32 4294901760, %v11936_v32 }
 0x62b   : > { %6682 = vmatpush.msra.mxu0 %v14141_v22  ;;  %6819 = vmatpush.msra.mxu2 %v12210_v39  ;;  %v14143_v60 = vld [vmem:[#allocation73_spill] sm:$0xff]  ;;  %v6464_v22 = vsub.f32 %v12277_v16, %v6463_v12  ;;  %v14145_v21 = vand.u32 4294901760, %v12282_v19  ;;  %v12344_v63 = vsub.f32 %v6801_v9, %v12313_v24  ;;  %v4777_v0 = vadd.f32 %v11731_v58, %v4682_v18 }
 0x62c   : > { %v3881_v49 = vadd.f32 %v14143_v60, %v14142_v45  ;;  %6878 = vmatpush.msra.mxu3 %v6877_v37  ;;  %6630 = vmatmul.f32.gmra.mxu2 %v12277_v16  ;;  %v6911_v45 = vand.u32 4294901760, %v12311_v54  ;;  %v12346_v37 = vand.u32 4294901760, %v6799_v20  ;;  %v6895_v32 = vand.u32 4294901760, %v6894_v33  ;;  %v6797_v58 = vld [vmem:[#allocation6 + $0x288] sm:$0xff] }
 0x62d   : > { %6686 = vmatpush.msra.mxu0 %v14144_v27  ;;  %6763 = vmatpush.msra.mxu1 %v11971_v35  ;;  %v6900_v40 = vsub.f32 %v12282_v19, %v14145_v21  ;;  %v14146_v35 = vand.u32 4294901760, %v11947_v28  ;;  %v14147_v16 = vand.u32 4294901760, %v12296_v55  ;;  %v6917_v27 = vand.u32 4294901760, %v12325_v48 }
 0x62e   : > { %6821 = vmatpush.msra.mxu2 %v12221_v59  ;;  %6884 = vmatpush.msra.mxu3 %v6883_v47  ;;  %v12357_v9 = vsub.f32 %v6800_v30, %v12327_v6  ;;  %v12359_v21 = vand.u32 4294901760, %v6798_v5  ;;  %v4839_v18 = vmax.f32 %v12332_v44, 0.0  ;;  %v14148_v47 = vld [vmem:[#allocation75_spill] sm:$0xff]  ;;  %v6465_v28 = vand.u32 4294901760, %v6464_v22 }
 0x62f   : > { %6675 = vmatmul.f32.gmra.mxu3 %v6463_v12  ;;  %6690 = vmatpush.msra.mxu0 %v14146_v35  ;;  %v6906_v60 = vsub.f32 %v12296_v55, %v14147_v16  ;;  %v3978_v33 = vadd.f32 %v14148_v47, %v3881_v49  ;;  %v14149_v12 = vand.u32 4294901760, %v11958_v42  ;;  %v6901_v35 = vand.u32 4294901760, %v6900_v40  ;;  %v6796_v49 = vld [vmem:[#allocation6 + $0x280] sm:$0xff] }
 0x630   : > { %6765 = vmatpush.msra.mxu1 %v11985_v14  ;;  %6823 = vmatpush.msra.mxu2 %v12235_v57  ;;  %v6912_v30 = vsub.f32 %v12311_v54, %v6911_v45  ;;  %v6923_v16 = vand.u32 4294901760, %v12344_v63  ;;  %v12372_v44 = vsub.f32 %v6799_v20, %v12346_v37  ;;  %v12376_v14 = vand.u32 4294901760, %v6797_v58 }
 0x631   : > { %6890 = vmatpush.msra.mxu3 %v6889_v34  ;;  %6694 = vmatpush.msra.mxu0 %v14149_v12  ;;  %v4804_v47 = vadd.f32 %v4777_v0, %v3978_v33  ;;  %v6907_v42 = vand.u32 4294901760, %v6906_v60  ;;  %v6918_v40 = vsub.f32 %v12325_v48, %v6917_v27  ;;  %v6929_v34 = vand.u32 4294901760, %v12357_v9 }
 0x632   : > { %6767 = vmatpush.msra.mxu1 %v12003_v23  ;;  %6825 = vmatpush.msra.mxu2 %v12257_v36  ;;  %v12383_v20 = vsub.f32 %v6798_v5, %v12359_v21  ;;  %v12385_v22 = vand.u32 4294901760, %v4839_v18  ;;  %v14150_v23 = vand.u32 4294901760, %v11976_v2  ;;  %v12390_v0 = vand.u32 4294901760, %v6796_v49 }
 0x633   : > { %6896 = vmatpush.msra.mxu3 %v6895_v32  ;;  %6466 = vmatmul.f32.gmra.mxu0 %v6465_v28  ;;  %v6913_v32 = vand.u32 4294901760, %v6912_v30  ;;  %v6924_v60 = vsub.f32 %v12344_v63, %v6923_v16  ;;  %v6935_v5 = vand.u32 4294901760, %v12372_v44  ;;  %v4824_v33 = vadd.f32 %v12146_v52, %v4804_v47 }
 0x634   : > { %6698 = vmatpush.msra.mxu0 %v14150_v23  ;;  %6769 = vmatpush.msra.mxu1 %v12017_v29  ;;  %v14151_v28 = vand.u32 4294901760, %v11998_v25  ;;  %v12402_v2 = vsub.f32 %v6797_v58, %v12376_v14  ;;  %v6919_v29 = vand.u32 4294901760, %v6918_v40  ;;  %v6930_v12 = vsub.f32 %v12357_v9, %v6929_v34 }
 0x635   : > { %6827 = vmatpush.msra.mxu2 %v12268_v50  ;;  %6902 = vmatpush.msra.mxu3 %v6901_v35  ;;  %v6941_v35 = vand.u32 4294901760, %v12383_v20  ;;  %v12410_v52 = vsub.f32 %v4839_v18, %v12385_v22  ;;  %v14152_v25 = vand.u32 4294901760, %v12012_v26  ;;  %v6925_v58 = vand.u32 4294901760, %v6924_v60  ;;  %v5786_v26 = vpop.f32.mrf.mxu1 }
 0x636   : > { %6702 = vmatpush.msra.mxu0 %v14151_v28  ;;  %6771 = vmatpush.msra.mxu1 %v12033_v17  ;;  %v12416_v17 = vsub.f32 %v6796_v49, %v12390_v0  ;;  %v6936_v30 = vsub.f32 %v12372_v44, %v6935_v5  ;;  %v4840_v47 = vmax.f32 %v4824_v33, 0.0  ;;  %v14153_v18 = vand.u32 4294901760, %v12031_v1 }
 0x637   : > { %6829 = vmatpush.msra.mxu2 %v12284_v41  ;;  %6908 = vmatpush.msra.mxu3 %v6907_v42  ;;  %v6931_v49 = vand.u32 4294901760, %v6930_v12  ;;  %v6942_v42 = vsub.f32 %v12383_v20, %v6941_v35  ;;  %v14154_v23 = vand.u32 4294901760, %v12040_v51  ;;  %v6846_v1 = vand.u32 4294901760, %v12410_v52 }
 0x638   : > { %6706 = vmatpush.msra.mxu0 %v14152_v25  ;;  %6773 = vmatpush.msra.mxu1 %v12042_v56  ;;  %v6947_v56 = vand.u32 4294901760, %v12402_v2  ;;  %v6937_v33 = vand.u32 4294901760, %v6936_v30  ;;  %v12436_v28 = vand.u32 4294901760, %v4840_v47 }
 0x639   : > { %6831 = vmatpush.msra.mxu2 %v12298_v38  ;;  %6914 = vmatpush.msra.mxu3 %v6913_v32  ;;  %v5844_v60 = vpop.f32.mrf.mxu2  ;;  %v6943_v25 = vand.u32 4294901760, %v6942_v42 }
 0x63a   : > { %6710 = vmatpush.msra.mxu0 %v14153_v18  ;;  %6775 = vmatpush.msra.mxu1 %v12051_v43  ;;  %v6953_v43 = vand.u32 4294901760, %v12416_v17  ;;  %v6948_v51 = vsub.f32 %v12402_v2, %v6947_v56  ;;  %v14157_v18 = vand.u32 4294901760, %v12080_v11  ;;  %v14161_v11 = vld [vmem:[#allocation15_spill] sm:$0xff] }
 0x63b   : > { %6833 = vmatpush.msra.mxu2 %v12313_v24  ;;  %6920 = vmatpush.msra.mxu3 %v6919_v29  ;;  %v5677_v40 = vpop.f32.mrf.mxu0  ;;  %v14155_v29 = vand.u32 4294901760, %v12057_v4  ;;  %v6847_v4 = vsub.f32 %v12410_v52, %v6846_v1 }
 0x63c   : > { %6714 = vmatpush.msra.mxu0 %v14154_v23  ;;  %6777 = vmatpush.msra.mxu1 %v12073_v62  ;;  %v5787_v32 = vadd.f32 %v5786_v26, %v5677_v40  ;;  %v5888_v12 = vpop.f32.mrf.mxu3  ;;  %v14158_v26 = vld [vmem:[#allocation51_spill] sm:$0xff] }
 0x63d   : > { %6835 = vmatpush.msra.mxu2 %v12327_v6  ;;  %6926 = vmatpush.msra.mxu3 %v6925_v58  ;;  %v14156_v58 = vand.u32 4294901760, %v12071_v3  ;;  %v6949_v3 = vand.u32 4294901760, %v6948_v51  ;;  %v6848_v40 = vand.u32 4294901760, %v6847_v4 }
 0x63e   : > { %6718 = vmatpush.msra.mxu0 %v14155_v29  ;;  %6779 = vmatpush.msra.mxu1 %v12087_v31  ;;  %v5845_v62 = vadd.f32 %v5844_v60, %v5787_v32  ;;  %v6954_v31 = vsub.f32 %v12416_v17, %v6953_v43  ;;  %v5790_v32 = vpop.f32.mrf.mxu1  ;;  %v14162_v29 = vld [vmem:[#allocation76_spill] sm:$0xff] }
 0x63f   : > { %6837 = vmatpush.msra.mxu2 %v12346_v37  ;;  %6932 = vmatpush.msra.mxu3 %v6931_v49  ;;  %v14159_v49 = vld [vmem:[#allocation45_spill] sm:$0xff]  ;;  %v14163_v51 = vand.u32 4294901760, %v14162_v29 }
 0x640   : > { %6722 = vmatpush.msra.mxu0 %v14156_v58  ;;  %6781 = vmatpush.msra.mxu1 %v12101_v61  ;;  %v12454_v30 = vadd.f32 %v5888_v12, %v5845_v62  ;;  %v12461_v61 = vsub.f32 %v4840_v47, %v12436_v28  ;;  %v14160_v42 = vand.u32 4294901760, %v14159_v49  ;;  %v6955_v23 = vand.u32 4294901760, %v6954_v31  ;;  %v14164_v12 = vld [vmem:[#allocation53_spill] sm:$0xff]  ;;  %v14166_v31 = vld [vmem:[#allocation38_spill] sm:$0xff]  ;;  %v14168_v49 = vld [vmem:[#allocation19_spill] sm:$0xff] }
 0x641   : > { %6839 = vmatpush.msra.mxu2 %v12359_v21  ;;  %6938 = vmatpush.msra.mxu3 %v6937_v33 }
 0x642   : > { %6726 = vmatpush.msra.mxu0 %v14157_v18  ;;  %6783 = vmatpush.msra.mxu1 %v12117_v46  ;;  %v6854_v47 = vand.u32 4294901760, %v12461_v61  ;;  %v14167_v18 = vand.u32 4294901760, %v14166_v31 }
 0x643   : > { %6841 = vmatpush.msra.mxu2 %v12376_v14  ;;  %6944 = vmatpush.msra.mxu3 %v6943_v25  ;;  %v5849_v33 = vpop.f32.mrf.mxu2  ;;  %v14165_v25 = vand.u32 4294901760, %v14164_v12 }
 0x644   : > { %6785 = vmatmul.f32.vlgmr.msra.gmra.mxu1 %v14158_v26  ;;  %6730 = vmatpush.msra.mxu0 %v14160_v42  ;;  %v5685_v60 = vpop.f32.mrf.mxu0  ;;  %v14169_v42 = vand.u32 4294901760, %v14168_v49 }
 0x645   : > { %7026 = vmatpush.msrb.mxu1 %v14161_v11  ;;  %6843 = vmatpush.msra.mxu2 %v12390_v0  ;;  %v5791_v46 = vadd.f32 %v5790_v32, %v5685_v60  ;;  %v14172_v32 = vld [vmem:[#allocation74_spill] sm:$0xff] }
 0x646   : > { %6950 = vmatpush.msra.mxu3 %v6949_v3  ;;  %6849 = vmatmul.f32.vlgmr.msra.gmra.mxu2 %v6848_v40  ;;  %v5894_v58 = vpop.f32.mrf.mxu3  ;;  %v6855_v3 = vsub.f32 %v12461_v61, %v6854_v47  ;;  %v14170_v40 = vld [vmem:[#allocation56_spill] sm:$0xff]  ;;  %v14173_v60 = vand.u32 4294901760, %v14172_v32 }
 0x647   : > { %7028 = vmatpush.msrb.mxu1 %v12178_v53  ;;  %7073 = vmatpush.msrb.mxu2 %v14163_v51  ;;  %v5850_v62 = vadd.f32 %v5849_v33, %v5791_v46  ;;  %v14174_v46 = vand.u32 4294901760, %v12233_v13 }
 0x648   : > { %6734 = vmatpush.msra.mxu0 %v14165_v25  ;;  %6956 = vmatpush.msra.mxu3 %v6955_v23  ;;  %v14171_v23 = vand.u32 4294901760, %v14170_v40 }
 0x649   : > { %6958 = vmatmul.f32.vlgmr.msra.gmra.mxu3 %v12385_v22  ;;  %7030 = vmatpush.msrb.mxu1 %v12199_v10  ;;  %v12477_v4 = vadd.f32 %v5894_v58, %v5850_v62  ;;  %v7200_v62 = vld [vmem:[#allocation6 + $0x368] sm:$0xff] }
 0x64a   : > { %7077 = vmatpush.msrb.mxu2 %v14167_v18  ;;  %7144 = vmatpush.msrb.mxu3 %v14161_v11  ;;  %v6856_v11 = vand.u32 4294901760, %v6855_v3  ;;  %v12529_v58 = vand.u32 4294901760, %v7200_v62 }
 0x64b   : > { %6738 = vmatpush.msra.mxu0 %v14169_v42  ;;  %7032 = vmatpush.msrb.mxu1 %v12210_v39  ;;  %v7196_v42 = vld [vmem:[#allocation6 + $0x348] sm:$0xff] }
 0x64c   : > { %7081 = vmatpush.msrb.mxu2 %v14171_v23  ;;  %7146 = vmatpush.msrb.mxu3 %v12178_v53  ;;  %v14175_v53 = vld [vmem:[#allocation59_spill] sm:$0xff]  ;;  %v7195_v23 = vld [vmem:[#allocation6 + $0x340] sm:$0xff] }
 0x64d   : > { %6742 = vmatpush.msra.mxu0 %v14173_v60  ;;  %6789 = vmatmul.f32.gmra.mxu1 %v12247_v7  ;;  %v14176_v33 = vand.u32 4294901760, %v14175_v53  ;;  %v12587_v60 = vand.u32 4294901760, %v7196_v42 }
 0x64e   : > { %6744 = vmatmul.f32.vlgmr.msra.gmra.mxu0 %v14158_v26  ;;  %7034 = vmatpush.msrb.mxu1 %v12221_v59  ;;  %v7202_v26 = vld [vmem:[#allocation6 + $0x378] sm:$0xff] }
 0x64f   : > { %6968 = vmatpush.msrb.mxu0 %v14162_v29  ;;  %7085 = vmatpush.msrb.mxu2 %v14174_v46  ;;  %v14177_v29 = vand.u32 4294901760, %v12263_v8  ;;  %v12512_v51 = vand.u32 4294901760, %v7202_v26 }
 0x650   : > { %7148 = vmatpush.msrb.mxu3 %v12199_v10  ;;  %6857 = vmatmul.f32.gmra.mxu2 %v6856_v11  ;;  %v7201_v10 = vld [vmem:[#allocation6 + $0x370] sm:$0xff]  ;;  %v14181_v11 = vld [vmem:[#allocation39_spill] sm:$0xff] }
 0x651   : > { %6971 = vmatpush.msrb.mxu0 %v14166_v31  ;;  %7036 = vmatpush.msrb.mxu1 %v12235_v57  ;;  %v12519_v12 = vand.u32 4294901760, %v7201_v10  ;;  %v12527_v25 = vsub.f32 %v7202_v26, %v12512_v51  ;;  %v7197_v31 = vld [vmem:[#allocation6 + $0x350] sm:$0xff] }
 0x652   : > { %7089 = vmatpush.msrb.mxu2 %v14176_v33  ;;  %7150 = vmatpush.msrb.mxu3 %v12210_v39  ;;  %v14178_v39 = vand.u32 4294901760, %v12282_v19 }
 0x653   : > { %6962 = vmatmul.f32.gmra.mxu3 %v12436_v28  ;;  %6974 = vmatpush.msrb.mxu0 %v14170_v40  ;;  %v12571_v40 = vand.u32 4294901760, %v7197_v31 }
 0x654   : > { %7038 = vmatpush.msrb.mxu1 %v12257_v36  ;;  %7093 = vmatpush.msrb.mxu2 %v14177_v29  ;;  %v12605_v29 = vand.u32 4294901760, %v7195_v23 }
 0x655   : > { %7152 = vmatpush.msrb.mxu3 %v12221_v59  ;;  %6977 = vmatpush.msrb.mxu0 %v12233_v13  ;;  %v7199_v59 = vld [vmem:[#allocation6 + $0x360] sm:$0xff]  ;;  %v14179_v13 = vand.u32 4294901760, %v12296_v55  ;;  %v12603_v26 = vsub.f32 %v7197_v31, %v12571_v40 }
 0x656   : > { %7040 = vmatpush.msrb.mxu1 %v12268_v50  ;;  %7097 = vmatpush.msrb.mxu2 %v14178_v39  ;;  %v12617_v39 = vsub.f32 %v7196_v42, %v12587_v60 }
 0x657   : > { %7154 = vmatpush.msrb.mxu3 %v12235_v57  ;;  %6748 = vmatmul.f32.gmra.mxu0 %v12247_v7  ;;  %v12537_v57 = vsub.f32 %v7201_v10, %v12519_v12  ;;  %v12539_v7 = vand.u32 4294901760, %v7199_v59  ;;  %v13508_v31 = vand.u32 4294901760, %v12603_v26 }
 0x658   : > { %6980 = vmatpush.msrb.mxu0 %v14175_v53  ;;  %7042 = vmatpush.msrb.mxu1 %v12284_v41  ;;  %v14182_v53 = vld [vmem:[#allocation67_spill] sm:$0xff]  ;;  %v13507_v42 = vand.u32 4294901760, %v12617_v39 }
 0x659   : > { %7101 = vmatpush.msrb.mxu2 %v14179_v13  ;;  %7156 = vmatpush.msrb.mxu3 %v12257_v36  ;;  %v7198_v36 = vld [vmem:[#allocation6 + $0x358] sm:$0xff] }
 0x65a   : > { %6983 = vmatpush.msrb.mxu0 %v12263_v8  ;;  %7044 = vmatpush.msrb.mxu1 %v12298_v38  ;;  %v13513_v8 = vand.u32 4294901760, %v12527_v25 }
 0x65b   : > { %7105 = vmatpush.msrb.mxu2 %v6911_v45  ;;  %7158 = vmatpush.msrb.mxu3 %v12268_v50  ;;  %v12548_v45 = vsub.f32 %v7200_v62, %v12529_v58  ;;  %v12552_v50 = vand.u32 4294901760, %v7198_v36  ;;  %v7193_v62 = vld [vmem:[#allocation6 + $0x330] sm:$0xff] }
 0x65c   : > { %6986 = vmatpush.msrb.mxu0 %v12282_v19  ;;  %7046 = vmatpush.msrb.mxu1 %v12313_v24  ;;  %v6004_v19 = vpop.f32.mrf.mxu1 }
 0x65d   : > { %7109 = vmatpush.msrb.mxu2 %v6917_v27  ;;  %7160 = vmatpush.msrb.mxu3 %v12284_v41  ;;  %v13512_v41 = vand.u32 4294901760, %v12537_v57  ;;  %v12559_v27 = vsub.f32 %v7199_v59, %v12539_v7  ;;  %v6068_v3 = vpop.f32.mrf.mxu2  ;;  %v14183_v59 = vld [vmem:[#allocation31_spill] sm:$0xff] }
 0x65e   : > { %6989 = vmatpush.msrb.mxu0 %v12296_v55  ;;  %7048 = vmatpush.msrb.mxu1 %v12327_v6 }
 0x65f   : > { %7113 = vmatpush.msrb.mxu2 %v6923_v16  ;;  %7162 = vmatpush.msrb.mxu3 %v12298_v38  ;;  %v5963_v18 = vpop.f32.mrf.mxu0  ;;  %v7255_v38 = vsub.f32 %v12527_v25, %v13513_v8  ;;  %v13511_v16 = vand.u32 4294901760, %v12548_v45  ;;  %v13510_v32 = vand.u32 4294901760, %v12559_v27  ;;  %v14212_v8 = vld [vmem:[#allocation25_spill] sm:$0xff] }
 0x660   : > { %6992 = vmatpush.msrb.mxu0 %v12311_v54  ;;  %7050 = vmatpush.msrb.mxu1 %v12346_v37  ;;  %v5964_v55 = vadd.f32 %v5963_v18, %v12454_v30  ;;  %v6177_v49 = vpop.f32.mrf.mxu3  ;;  %v12578_v30 = vsub.f32 %v7198_v36, %v12552_v50 }
 0x661   : > { %7117 = vmatpush.msrb.mxu2 %v6929_v34  ;;  %7164 = vmatpush.msrb.mxu3 %v12313_v24  ;;  %v12573_v54 = vadd.f32 %v6177_v49, %v6068_v3  ;;  %v7261_v24 = vsub.f32 %v12537_v57, %v13512_v41 }
 0x662   : > { %6995 = vmatpush.msrb.mxu0 %v12325_v48  ;;  %7052 = vmatpush.msrb.mxu1 %v12359_v21  ;;  %v6005_v34 = vadd.f32 %v6004_v19, %v5964_v55  ;;  %v14180_v48 = vld [vmem:[#allocation40_spill] sm:$0xff]  ;;  %v13509_v10 = vand.u32 4294901760, %v12578_v30  ;;  %v12629_v19 = vsub.f32 %v7195_v23, %v12605_v29  ;;  %v7192_v55 = vld [vmem:[#allocation6 + $0x328] sm:$0xff] }
 0x663   : > { %7121 = vmatpush.msrb.mxu2 %v6935_v5  ;;  %7166 = vmatpush.msrb.mxu3 %v12327_v6  ;;  %v4311_v46 = vadd.f32 %v14181_v11, %v14180_v48  ;;  %v7256_v6 = vand.u32 4294901760, %v7255_v38  ;;  %v7267_v5 = vsub.f32 %v12548_v45, %v13511_v16  ;;  %v12649_v48 = vand.u32 4294901760, %v7192_v55  ;;  %v14185_v11 = vld [vmem:[#allocation14_spill] sm:$0xff] }
 0x664   : > { %6998 = vmatpush.msrb.mxu0 %v12344_v63  ;;  %7054 = vmatpush.msrb.mxu1 %v12376_v14  ;;  %v12594_v33 = vadd.f32 %v6005_v34, %v14182_v53  ;;  %v7194_v63 = vld [vmem:[#allocation6 + $0x338] sm:$0xff]  ;;  %v6008_v36 = vpop.f32.mrf.mxu1  ;;  %v14184_v34 = vld [vmem:[#allocation72_spill] sm:$0xff] }
 0x665   : > { %7125 = vmatpush.msrb.mxu2 %v6941_v35  ;;  %7168 = vmatpush.msrb.mxu3 %v12346_v37  ;;  %v7262_v37 = vand.u32 4294901760, %v7261_v24  ;;  %v7273_v35 = vsub.f32 %v12559_v27, %v13510_v32  ;;  %v12623_v13 = vand.u32 4294901760, %v7194_v63 }
 0x666   : > { %7001 = vmatpush.msrb.mxu0 %v12357_v9  ;;  %7056 = vmatpush.msrb.mxu1 %v12390_v0  ;;  %v4435_v9 = vadd.f32 %v14183_v59, %v4311_v46  ;;  %v14186_v46 = vld [vmem:[#allocation55_spill] sm:$0xff] }
 0x667   : > { %7129 = vmatpush.msrb.mxu2 %v6947_v56  ;;  %7170 = vmatpush.msrb.mxu3 %v12359_v21  ;;  %v7268_v21 = vand.u32 4294901760, %v7267_v5  ;;  %v7274_v49 = vand.u32 4294901760, %v7273_v35  ;;  %v12647_v24 = vsub.f32 %v7194_v63, %v12623_v13  ;;  %v4315_v53 = vadd.f32 %v14186_v46, %v14185_v11  ;;  %v14187_v35 = vld [vmem:[#allocation16_spill] sm:$0xff] }
 0x668   : > { %7060 = vmatmul.f32.vlgmr.msrb.gmra.mxu1 %v6846_v1  ;;  %7004 = vmatpush.msrb.mxu0 %v12372_v44  ;;  %v5967_v56 = vpop.f32.mrf.mxu0  ;;  %v7279_v44 = vsub.f32 %v12578_v30, %v13509_v10  ;;  %v6076_v1 = vpop.f32.mrf.mxu2  ;;  %v4557_v23 = vadd.f32 %v14184_v34, %v4435_v9  ;;  %v13504_v5 = vand.u32 4294901760, %v12629_v19  ;;  %v7189_v9 = vld [vmem:[#allocation6 + $0x310] sm:$0xff]  ;;  %v7187_v46 = vld [vmem:[#allocation6 + $0x300] sm:$0xff]  ;;  %v7589_v10 = vld [vmem:[#allocation6 + $0x3d8] sm:$0xff] }
 0x669   : > { %7257 = vmatpush.msra.mxu1 %v7256_v6  ;;  %7133 = vmatpush.msrb.mxu2 %v6953_v43  ;;  %v5968_v18 = vadd.f32 %v5967_v56, %v12477_v4  ;;  %v12637_v43 = vand.u32 4294901760, %v7193_v62  ;;  %v7285_v6 = vsub.f32 %v12603_v26, %v13508_v31  ;;  %v13503_v56 = vand.u32 4294901760, %v12647_v24 }
 0x66a   : > { %7172 = vmatpush.msrb.mxu3 %v12376_v14  ;;  %7135 = vmatmul.f32.vlgmr.msrb.gmra.mxu2 %v12385_v22  ;;  %v6181_v3 = vpop.f32.mrf.mxu3  ;;  %v7191_v14 = vld [vmem:[#allocation6 + $0x320] sm:$0xff]  ;;  %v7280_v63 = vand.u32 4294901760, %v7279_v44  ;;  %v4686_v59 = vadd.f32 %v14187_v35, %v4557_v23  ;;  %v14190_v44 = vld [vmem:[#allocation78_spill] sm:$0xff]  ;;  %v12695_v23 = vand.u32 4294901760, %v7189_v9 }
 0x66b   : > { %7263 = vmatpush.msra.mxu1 %v7262_v37  ;;  %7359 = vmatpush.msra.mxu2 %v12527_v25  ;;  %v6009_v4 = vadd.f32 %v6008_v36, %v5968_v18  ;;  %v12641_v38 = vadd.f32 %v6181_v3, %v6076_v1  ;;  %v12664_v37 = vsub.f32 %v7193_v62, %v12637_v43  ;;  %v14188_v36 = vld [vmem:[#allocation69_spill] sm:$0xff]  ;;  %v14189_v18 = vld [vmem:[#allocation47_spill] sm:$0xff]  ;;  %v7286_v3 = vand.u32 4294901760, %v7285_v6 }
 0x66c   : > { %7007 = vmatpush.msrb.mxu0 %v12383_v20  ;;  %7174 = vmatpush.msrb.mxu3 %v12390_v0  ;;  %v7190_v20 = vld [vmem:[#allocation6 + $0x318] sm:$0xff]  ;;  %v12677_v62 = vsub.f32 %v7192_v55, %v12649_v48  ;;  %v4440_v1 = vadd.f32 %v14190_v44, %v4315_v53  ;;  %v12721_v44 = vsub.f32 %v7189_v9, %v12695_v23 }
 0x66d   : > { %7176 = vmatmul.f32.vlgmr.msrb.gmra.mxu3 %v12385_v22  ;;  %7269 = vmatpush.msra.mxu1 %v7268_v21  ;;  %v12659_v0 = vadd.f32 %v6009_v4, %v12308_v15  ;;  %v12666_v22 = vand.u32 4294901760, %v7191_v14  ;;  %v7291_v15 = vsub.f32 %v12617_v39, %v13507_v42  ;;  %v12679_v21 = vand.u32 4294901760, %v7190_v20  ;;  %v7188_v4 = vld [vmem:[#allocation6 + $0x308] sm:$0xff] }
 0x66e   : > { %7362 = vmatpush.msra.mxu2 %v12537_v57  ;;  %7417 = vmatpush.msra.mxu3 %v12512_v51  ;;  %v13500_v55 = vand.u32 4294901760, %v12664_v37  ;;  %v12709_v6 = vand.u32 4294901760, %v7188_v4  ;;  %14195 = vst [vmem:[#allocation42_spill] sm:$0xff] %v12721_v44 }
 0x66f   : > { %7010 = vmatpush.msrb.mxu0 %v12402_v2  ;;  %7275 = vmatpush.msra.mxu1 %v7274_v49  ;;  %v3885_v2 = vadd.f32 %v14189_v18, %v14188_v36  ;;  %v7297_v49 = vsub.f32 %v12629_v19, %v13504_v5  ;;  %v12693_v34 = vsub.f32 %v7191_v14, %v12666_v22  ;;  %v13499_v14 = vand.u32 4294901760, %v12677_v62 }
 0x670   : > { %7365 = vmatpush.msra.mxu2 %v12548_v45  ;;  %7419 = vmatpush.msra.mxu3 %v12519_v12  ;;  %v12707_v53 = vsub.f32 %v7190_v20, %v12679_v21  ;;  %v7309_v18 = vsub.f32 %v12664_v37, %v13500_v55  ;;  %v14202_v55 = vld [vmem:[#allocation77_spill] sm:$0xff] }
 0x671   : > { %7013 = vmatpush.msrb.mxu0 %v12416_v17  ;;  %7066 = vmatmul.f32.gmra.mxu1 %v6854_v47  ;;  %v14191_v17 = vld [vmem:[#allocation18_spill] sm:$0xff]  ;;  %v7292_v47 = vand.u32 4294901760, %v7291_v15  ;;  %v7298_v36 = vand.u32 4294901760, %v7297_v49  ;;  %v13498_v20 = vand.u32 4294901760, %v12693_v34  ;;  %v7315_v49 = vsub.f32 %v12677_v62, %v13499_v14 }
 0x672   : > { %7016 = vmatmul.f32.vlgmr.msrb.gmra.mxu0 %v12410_v52  ;;  %7281 = vmatpush.msra.mxu1 %v7280_v63  ;;  %v4781_v11 = vadd.f32 %v14191_v17, %v4686_v59  ;;  %v7303_v52 = vsub.f32 %v12647_v24, %v13503_v56  ;;  %14192 = vst [vmem:[#allocation27_spill] sm:$0xff] %v12707_v53  ;;  %v14193_v63 = vld [vmem:[#allocation26_spill] sm:$0xff]  ;;  %v14194_v59 = vld [vmem:[#allocation79_spill] sm:$0xff]  ;;  %v14196_v17 = vld [vmem:[#allocation80_spill] sm:$0xff]  ;;  %v13501_v9 = vand.u32 4294901760, %v12707_v53 }
 0x673   : > { %7204 = vmatpush.msra.mxu0 %v12512_v51  ;;  %7368 = vmatpush.msra.mxu2 %v12559_v27  ;;  %v3982_v35 = vadd.f32 %v14193_v63, %v3885_v2  ;;  %v4563_v15 = vadd.f32 %v14194_v59, %v4440_v1  ;;  %v12723_v2 = vand.u32 4294901760, %v7187_v46  ;;  %v12734_v59 = vsub.f32 %v7188_v4, %v12709_v6  ;;  %v14205_v56 = vld [vmem:[#allocation13_spill] sm:$0xff] }
 0x674   : > { %7421 = vmatpush.msra.mxu3 %v12529_v58  ;;  %7139 = vmatmul.f32.gmra.mxu2 %v12436_v28 }
 0x675   : > { %7206 = vmatpush.msra.mxu0 %v12519_v12  ;;  %7287 = vmatpush.msra.mxu1 %v7286_v3  ;;  %v4805_v1 = vadd.f32 %v4781_v11, %v3982_v35  ;;  %v4690_v63 = vadd.f32 %v14196_v17, %v4563_v15  ;;  %v7304_v3 = vand.u32 4294901760, %v7303_v52  ;;  %14197 = vst [vmem:[#allocation24_spill] sm:$0xff] %v12734_v59  ;;  %v14198_v11 = vld [vmem:[#allocation68_spill] sm:$0xff]  ;;  %v14199_v35 = vld [vmem:[#allocation54_spill] sm:$0xff]  ;;  %v13502_v52 = vand.u32 4294901760, %v12721_v44 }
 0x676   : > { %7371 = vmatpush.msra.mxu2 %v12578_v30  ;;  %7423 = vmatpush.msra.mxu3 %v12539_v7  ;;  %v3889_v15 = vadd.f32 %v14199_v35, %v14198_v11  ;;  %v12746_v4 = vsub.f32 %v7187_v46, %v12723_v2  ;;  %v12751_v17 = vld [vmem:[%s13236_s4] ss:$0 sm:$0xff]  ;;  %v7316_v46 = vand.u32 4294901760, %v7315_v49  ;;  %v13505_v14 = vand.u32 4294901760, %v12734_v59 }
 0x677   : > { %7180 = vmatmul.f32.gmra.mxu3 %v12436_v28  ;;  %7208 = vmatpush.msra.mxu0 %v12529_v58  ;;  %v7310_v28 = vand.u32 4294901760, %v7309_v18  ;;  %v12754_v11 = vadd.f32 %v12751_v17, %v4805_v1  ;;  %v7593_v18 = vld [vmem:[#allocation6 + $0x3f8] sm:$0xff] }
 0x678   : > { %7293 = vmatpush.msra.mxu1 %v7292_v47  ;;  %7374 = vmatpush.msra.mxu2 %v12603_v26  ;;  %v7321_v47 = vsub.f32 %v12693_v34, %v13498_v20  ;;  %14200 = vst [vmem:[#allocation41_spill] sm:$0xff] %v12746_v4  ;;  %v7327_v20 = vsub.f32 %v12707_v53, %v13501_v9  ;;  %v13506_v49 = vand.u32 4294901760, %v12746_v4 }
 0x679   : > { %7425 = vmatpush.msra.mxu3 %v12552_v50  ;;  %7210 = vmatpush.msra.mxu0 %v12539_v7  ;;  %v3986_v1 = vadd.f32 %v14202_v55, %v3889_v15  ;;  %v4841_v9 = vmax.f32 %v12754_v11, 0.0  ;;  %v7591_v11 = vld [vmem:[#allocation6 + $0x3e8] sm:$0xff] }
 0x67a   : > { %7299 = vmatpush.msra.mxu1 %v7298_v36  ;;  %7377 = vmatpush.msra.mxu2 %v12617_v39  ;;  %v14201_v36 = vld [vmem:[#allocation81_spill] sm:$0xff]  ;;  %v7328_v15 = vand.u32 4294901760, %v7327_v20  ;;  %v7345_v20 = vsub.f32 %v12746_v4, %v13506_v49  ;;  %v12802_v49 = vand.u32 4294901760, %v7591_v11 }
 0x67b   : > { %v4785_v35 = vadd.f32 %v14201_v36, %v4690_v63  ;;  %7427 = vmatpush.msra.mxu3 %v12571_v40  ;;  %7021 = vmatmul.f32.gmra.mxu0 %v12461_v61  ;;  %v7592_v63 = vld [vmem:[#allocation6 + $0x3f0] sm:$0xff]  ;;  %v7322_v61 = vand.u32 4294901760, %v7321_v47  ;;  %v12772_v36 = vand.u32 4294901760, %v7593_v18 }
 0x67c   : > { %7212 = vmatpush.msra.mxu0 %v12552_v50  ;;  %7305 = vmatpush.msra.mxu1 %v7304_v3  ;;  %v7333_v3 = vsub.f32 %v12721_v44, %v13502_v52  ;;  %v12781_v47 = vand.u32 4294901760, %v7592_v63  ;;  %v14204_v52 = vld [vmem:[#allocation21_spill] sm:$0xff] }
 0x67d   : > { %7380 = vmatpush.msra.mxu2 %v12629_v19  ;;  %7429 = vmatpush.msra.mxu3 %v12587_v60  ;;  %14203 = vst [vmem:[#allocation46_spill] sm:$0xff] %v12772_v36  ;;  %v4806_v55 = vadd.f32 %v4785_v35, %v3986_v1  ;;  %v4318_v5 = vadd.f32 %v14205_v56, %v14204_v52  ;;  %v12794_v1 = vand.u32 4294901760, %v4841_v9  ;;  %v7590_v52 = vld [vmem:[#allocation6 + $0x3e0] sm:$0xff] }
 0x67e   : > { %7214 = vmatpush.msra.mxu0 %v12571_v40  ;;  %7311 = vmatpush.msra.mxu1 %v7310_v28  ;;  %v7339_v28 = vsub.f32 %v12734_v59, %v13505_v14  ;;  %v7334_v35 = vand.u32 4294901760, %v7333_v3  ;;  %v6279_v3 = vpop.f32.mrf.mxu1  ;;  %v12813_v32 = vand.u32 4294901760, %v7590_v52 }
 0x67f   : > { %7383 = vmatpush.msra.mxu2 %v12647_v24  ;;  %7431 = vmatpush.msra.mxu3 %v12605_v29  ;;  %14207 = vst [vmem:[#allocation48_spill] sm:$0xff] %v12794_v1  ;;  %v12797_v56 = vadd.f32 %v12751_v17, %v4806_v55  ;;  %v14209_v55 = vld [vmem:[#allocation82_spill] sm:$0xff]  ;;  %v12816_v41 = vsub.f32 %v4841_v9, %v12794_v1 }
 0x680   : > { %7216 = vmatpush.msra.mxu0 %v12587_v60  ;;  %7317 = vmatpush.msra.mxu1 %v7316_v46  ;;  %v12792_v46 = vsub.f32 %v7593_v18, %v12772_v36  ;;  %v12805_v18 = vsub.f32 %v7592_v63, %v12781_v47  ;;  %v4443_v31 = vadd.f32 %v14209_v55, %v4318_v5  ;;  %v7588_v5 = vld [vmem:[#allocation6 + $0x3d0] sm:$0xff] }
 0x681   : > { %7386 = vmatpush.msra.mxu2 %v12664_v37  ;;  %7433 = vmatpush.msra.mxu3 %v12623_v13  ;;  %v6354_v63 = vpop.f32.mrf.mxu2 }
 0x682   : > { %7218 = vmatpush.msra.mxu0 %v12605_v29  ;;  %7323 = vmatpush.msra.mxu1 %v7322_v61  ;;  %14206 = vst [vmem:[#allocation34_spill] sm:$0xff] %v12792_v46  ;;  %v7340_v61 = vand.u32 4294901760, %v7339_v28 }
 0x683   : > { %7389 = vmatpush.msra.mxu2 %v12677_v62  ;;  %7435 = vmatpush.msra.mxu3 %v12637_v43  ;;  %v6235_v14 = vpop.f32.mrf.mxu0  ;;  %14208 = vst [vmem:[#allocation36_spill] sm:$0xff] %v12805_v18 }
 0x684   : > { %7220 = vmatpush.msra.mxu0 %v12623_v13  ;;  %7329 = vmatpush.msra.mxu1 %v7328_v15  ;;  %v6236_v42 = vadd.f32 %v6235_v14, %v12573_v54  ;;  %v7346_v15 = vand.u32 4294901760, %v7345_v20  ;;  %v4842_v54 = vmax.f32 %v12797_v56, 0.0  ;;  %v12826_v20 = vand.u32 4294901760, %v7589_v10  ;;  %v6395_v9 = vpop.f32.mrf.mxu3  ;;  %v14211_v56 = vld [vmem:[#allocation62_spill] sm:$0xff] }
 0x685   : > { %7392 = vmatpush.msra.mxu2 %v12693_v34  ;;  %7437 = vmatpush.msra.mxu3 %v12649_v48  ;;  %v4321_v28 = vadd.f32 %v14212_v8, %v14211_v56  ;;  %v12840_v14 = vand.u32 4294901760, %v7588_v5  ;;  %v7237_v56 = vand.u32 4294901760, %v12816_v41 }
 0x686   : > { %7222 = vmatpush.msra.mxu0 %v12637_v43  ;;  %7335 = vmatpush.msra.mxu1 %v7334_v35  ;;  %v6280_v16 = vadd.f32 %v6279_v3, %v6236_v42  ;;  %v12824_v35 = vsub.f32 %v7591_v11, %v12802_v49  ;;  %v14210_v3 = vld [vmem:[#allocation83_spill] sm:$0xff] }
 0x687   : > { %7395 = vmatpush.msra.mxu2 %v12707_v53  ;;  %7439 = vmatpush.msra.mxu3 %v12666_v22  ;;  %v4566_v55 = vadd.f32 %v14210_v3, %v4443_v31  ;;  %v7587_v31 = vld [vmem:[#allocation6 + $0x3c8] sm:$0xff]  ;;  %v14214_v3 = vld [vmem:[#allocation84_spill] sm:$0xff] }
 0x688   : > { %7224 = vmatpush.msra.mxu0 %v12649_v48  ;;  %7341 = vmatpush.msra.mxu1 %v7340_v61  ;;  %v6355_v42 = vadd.f32 %v6354_v63, %v6280_v16  ;;  %v14213_v61 = vand.u32 4294901760, %v12792_v46  ;;  %v12838_v16 = vsub.f32 %v7590_v52, %v12813_v32  ;;  %v14215_v52 = vand.u32 4294901760, %v12805_v18 }
 0x689   : > { %7398 = vmatpush.msra.mxu2 %v12721_v44  ;;  %7441 = vmatpush.msra.mxu3 %v12679_v21  ;;  %v4693_v8 = vadd.f32 %v14214_v3, %v4566_v55  ;;  %v7586_v3 = vld [vmem:[#allocation6 + $0x3c0] sm:$0xff]  ;;  %v14218_v44 = vld [vmem:[#allocation30_spill] sm:$0xff] }
 0x68a   : > { %7226 = vmatpush.msra.mxu0 %v12666_v22  ;;  %7347 = vmatpush.msra.mxu1 %v7346_v15  ;;  %v7646_v11 = vsub.f32 %v12792_v46, %v14213_v61  ;;  %v6396_v63 = vadd.f32 %v6395_v9, %v6355_v42  ;;  %v12846_v15 = vand.u32 4294901760, %v4842_v54  ;;  %v7652_v42 = vsub.f32 %v12805_v18, %v14215_v52  ;;  %v14219_v46 = vld [vmem:[#allocation28_spill] sm:$0xff] }
 0x68b   : > { %7401 = vmatpush.msra.mxu2 %v12734_v59  ;;  %7443 = vmatpush.msra.mxu3 %v12695_v23  ;;  %v12858_v61 = vsub.f32 %v7589_v10, %v12826_v20  ;;  %v3893_v53 = vadd.f32 %v14219_v46, %v14218_v44  ;;  %v14220_v9 = vld [vmem:[#allocation20_spill] sm:$0xff]  ;;  %v6285_v10 = vpop.f32.mrf.mxu1  ;;  %v12872_v44 = vsub.f32 %v7588_v5, %v12840_v14  ;;  %v14221_v46 = vld [vmem:[#allocation57_spill] sm:$0xff]  ;;  %v14222_v5 = vand.u32 4294901760, %v12824_v35 }
 0x68c   : > { %7349 = vmatmul.f32.vlgmr.msra.gmra.mxu1 %v12794_v1  ;;  %7228 = vmatpush.msra.mxu0 %v12679_v21  ;;  %v12855_v55 = vadd.f32 %v6396_v63, %v12594_v33  ;;  %v6240_v59 = vpop.f32.mrf.mxu0  ;;  %v12864_v1 = vand.u32 4294901760, %v7587_v31  ;;  %v4446_v18 = vadd.f32 %v14220_v9, %v4321_v28  ;;  %v7647_v33 = vand.u32 4294901760, %v7646_v11  ;;  %v7584_v63 = vld [vmem:[#allocation6 + $0x3b0] sm:$0xff] }
 0x68d   : > { %14217 = vst [vmem:[#allocation50_spill] sm:$0xff] %v12858_v61  ;;  %7535 = vmatpush.msrb.mxu1 %v12512_v51  ;;  %7404 = vmatpush.msra.mxu2 %v12746_v4  ;;  %v6241_v52 = vadd.f32 %v6240_v59, %v12641_v38  ;;  %v7585_v51 = vld [vmem:[#allocation6 + $0x3b8] sm:$0xff]  ;;  %v7238_v38 = vsub.f32 %v12816_v41, %v7237_v56  ;;  %v12878_v59 = vand.u32 4294901760, %v7586_v3  ;;  %v7653_v11 = vand.u32 4294901760, %v7652_v42 }
 0x68e   : > { %14216 = vst [vmem:[#allocation70_spill] sm:$0xff] %v12855_v55  ;;  %7445 = vmatpush.msra.mxu3 %v12709_v6  ;;  %7407 = vmatmul.f32.vlgmr.msra.gmra.mxu2 %v12816_v41  ;;  %v4788_v55 = vadd.f32 %v14221_v46, %v4693_v8  ;;  %v7658_v9 = vsub.f32 %v12824_v35, %v14222_v5  ;;  %v6358_v46 = vpop.f32.mrf.mxu2  ;;  %v14223_v41 = vld [vmem:[#allocation29_spill] sm:$0xff] }
 0x68f   : > { %7537 = vmatpush.msrb.mxu1 %v12519_v12  ;;  %7595 = vmatpush.msrb.mxu2 %v12772_v36  ;;  %v6286_v28 = vadd.f32 %v6285_v10, %v6241_v52  ;;  %v12886_v8 = vsub.f32 %v4842_v54, %v12846_v15  ;;  %v3990_v4 = vadd.f32 %v14223_v41, %v3893_v53  ;;  %v12894_v10 = vand.u32 4294901760, %v7585_v51  ;;  %v14224_v36 = vld [vmem:[#allocation44_spill] sm:$0xff]  ;;  %v7583_v41 = vld [vmem:[#allocation6 + $0x3a8] sm:$0xff] }
 0x690   : > { %7230 = vmatpush.msra.mxu0 %v12695_v23  ;;  %7447 = vmatpush.msra.mxu3 %v12723_v2  ;;  %v12892_v52 = vsub.f32 %v7587_v31, %v12864_v1  ;;  %v4569_v5 = vadd.f32 %v14224_v36, %v4446_v18  ;;  %v14225_v54 = vand.u32 4294901760, %v12838_v16  ;;  %v13528_v53 = vand.u32 4294901760, %v12872_v44 }
 0x691   : > { %7451 = vmatmul.f32.vlgmr.msra.gmra.mxu3 %v7237_v56  ;;  %7539 = vmatpush.msrb.mxu1 %v12529_v58  ;;  %v6359_v42 = vadd.f32 %v6358_v46, %v6286_v28  ;;  %v6399_v56 = vpop.f32.mrf.mxu3  ;;  %v4807_v58 = vadd.f32 %v4788_v55, %v3990_v4  ;;  %v12905_v31 = vsub.f32 %v7586_v3, %v12878_v59  ;;  %v12907_v18 = vand.u32 4294901760, %v7584_v63  ;;  %v7582_v55 = vld [vmem:[#allocation6 + $0x3a0] sm:$0xff] }
 0x692   : > { %7597 = vmatpush.msrb.mxu2 %v12781_v47  ;;  %7648 = vmatpush.msrb.mxu3 %v7647_v33  ;;  %v7664_v12 = vsub.f32 %v12838_v16, %v14225_v54  ;;  %v7239_v33 = vand.u32 4294901760, %v7238_v38  ;;  %v7659_v28 = vand.u32 4294901760, %v7658_v9  ;;  %v7245_v46 = vand.u32 4294901760, %v12886_v8  ;;  %v14227_v9 = vld [vmem:[#allocation17_spill] sm:$0xff] }
 0x693   : > { %7232 = vmatpush.msra.mxu0 %v12709_v6  ;;  %7541 = vmatpush.msrb.mxu1 %v12539_v7  ;;  %v6400_v36 = vadd.f32 %v6399_v56, %v6359_v42  ;;  %v14226_v54 = vand.u32 4294901760, %v12858_v61  ;;  %v12923_v38 = vand.u32 4294901760, %v7583_v41  ;;  %v4696_v42 = vadd.f32 %v14227_v9, %v4569_v5  ;;  %v7580_v9 = vld [vmem:[#allocation6 + $0x390] sm:$0xff] }
 0x694   : > { %7599 = vmatpush.msrb.mxu2 %v12802_v49  ;;  %7654 = vmatpush.msrb.mxu3 %v7653_v11  ;;  %v12921_v11 = vsub.f32 %v7585_v51, %v12894_v10  ;;  %v7665_v56 = vand.u32 4294901760, %v7664_v12  ;;  %v14228_v7 = vand.u32 4294901760, %v12527_v25  ;;  %v12935_v51 = vsub.f32 %v7584_v63, %v12907_v18 }
 0x695   : > { %v7670_v4 = vsub.f32 %v12858_v61, %v14226_v54  ;;  %7234 = vmatpush.msra.mxu0 %v12723_v2  ;;  %7353 = vmatmul.f32.gmra.mxu1 %v12846_v15  ;;  %v12918_v3 = vadd.f32 %v6400_v36, %v12659_v0  ;;  %v7676_v54 = vsub.f32 %v12872_v44, %v13528_v53  ;;  %v7581_v61 = vld [vmem:[#allocation6 + $0x398] sm:$0xff]  ;;  %v12937_v5 = vand.u32 4294901760, %v7582_v55  ;;  %v14229_v36 = vld [vmem:[#allocation49_spill] sm:$0xff] }
 0x696   : > { %7240 = vmatmul.f32.vlgmr.msra.gmra.mxu0 %v7239_v33  ;;  %7543 = vmatpush.msrb.mxu1 %v12552_v50  ;;  %v14230_v50 = vld [vmem:[#allocation58_spill] sm:$0xff]  ;;  %v12942_v33 = vadd.f32 %v12751_v17, %v4807_v58  ;;  %v14231_v53 = vand.u32 4294901760, %v12537_v57  ;;  %v14232_v63 = vand.u32 4294901760, %v12892_v52  ;;  %v12954_v58 = vsub.f32 %v7583_v41, %v12923_v38 }
 0x697   : > { %7464 = vmatpush.msrb.mxu0 %v14228_v7  ;;  %7601 = vmatpush.msrb.mxu2 %v12813_v32  ;;  %v3897_v12 = vadd.f32 %v14230_v50, %v14229_v36  ;;  %v7671_v25 = vand.u32 4294901760, %v7670_v4  ;;  %v7246_v7 = vsub.f32 %v12886_v8, %v7245_v46  ;;  %v14233_v4 = vld [vmem:[#allocation43_spill] sm:$0xff]  ;;  %v7677_v57 = vand.u32 4294901760, %v7676_v54 }
 0x698   : > { %7660 = vmatpush.msrb.mxu3 %v7659_v28  ;;  %7412 = vmatmul.f32.gmra.mxu2 %v12886_v8  ;;  %v7682_v0 = vsub.f32 %v12892_v52, %v14232_v63  ;;  %v12956_v28 = vand.u32 4294901760, %v7581_v61  ;;  %v4791_v50 = vadd.f32 %v14233_v4, %v4696_v42  ;;  %v14235_v8 = vand.u32 4294901760, %v12905_v31  ;;  %v7579_v42 = vld [vmem:[#allocation6 + $0x388] sm:$0xff] }
 0x699   : > { %7468 = vmatpush.msrb.mxu0 %v14231_v53  ;;  %7545 = vmatpush.msrb.mxu1 %v12571_v40  ;;  %v14234_v40 = vand.u32 4294901760, %v12548_v45  ;;  %v12967_v41 = vsub.f32 %v7582_v55, %v12937_v5  ;;  %v12969_v36 = vand.u32 4294901760, %v7580_v9  ;;  %v4843_v4 = vmax.f32 %v12942_v33, 0.0 }
 0x69a   : > { %7603 = vmatpush.msrb.mxu2 %v12826_v20  ;;  %7666 = vmatpush.msrb.mxu3 %v7665_v56  ;;  %v7688_v53 = vsub.f32 %v12905_v31, %v14235_v8  ;;  %v14236_v56 = vld [vmem:[#allocation37_spill] sm:$0xff]  ;;  %v7247_v45 = vand.u32 4294901760, %v7246_v7  ;;  %v14238_v55 = vand.u32 4294901760, %v12921_v11  ;;  %v7705_v63 = vand.u32 4294901760, %v12954_v58 }
 0x69b   : > { %7457 = vmatmul.f32.gmra.mxu3 %v7245_v46  ;;  %7472 = vmatpush.msrb.mxu0 %v14234_v40  ;;  %v3994_v54 = vadd.f32 %v14236_v56, %v3897_v12  ;;  %v14237_v46 = vand.u32 4294901760, %v12559_v27  ;;  %v7683_v40 = vand.u32 4294901760, %v7682_v0  ;;  %v12982_v33 = vsub.f32 %v7581_v61, %v12956_v28  ;;  %v7578_v12 = vld [vmem:[#allocation6 + $0x380] sm:$0xff] }
 0x69c   : > { %7547 = vmatpush.msrb.mxu1 %v12587_v60  ;;  %7605 = vmatpush.msrb.mxu2 %v12840_v14  ;;  %v7694_v8 = vsub.f32 %v12921_v11, %v14238_v55  ;;  %v12986_v60 = vand.u32 4294901760, %v7579_v42  ;;  %v7689_v27 = vand.u32 4294901760, %v7688_v53  ;;  %v14239_v0 = vand.u32 4294901760, %v12935_v51 }
 0x69d   : > { %7672 = vmatpush.msrb.mxu3 %v7671_v25  ;;  %7476 = vmatpush.msrb.mxu0 %v14237_v46  ;;  %v4808_v56 = vadd.f32 %v4791_v50, %v3994_v54  ;;  %v7711_v7 = vand.u32 4294901760, %v12967_v41  ;;  %v12993_v61 = vsub.f32 %v7580_v9, %v12969_v36  ;;  %v12995_v46 = vand.u32 4294901760, %v4843_v4 }
 0x69e   : > { %7549 = vmatpush.msrb.mxu1 %v12605_v29  ;;  %7607 = vmatpush.msrb.mxu2 %v12864_v1  ;;  %v7700_v25 = vsub.f32 %v12935_v51, %v14239_v0  ;;  %v14240_v29 = vand.u32 4294901760, %v12578_v30  ;;  %v13000_v50 = vand.u32 4294901760, %v7578_v12  ;;  %v7706_v53 = vsub.f32 %v12954_v58, %v7705_v63 }
 0x69f   : > { %7678 = vmatpush.msrb.mxu3 %v7677_v57  ;;  %7248 = vmatmul.f32.gmra.mxu0 %v7247_v45  ;;  %v7695_v57 = vand.u32 4294901760, %v7694_v8  ;;  %v7717_v9 = vand.u32 4294901760, %v12982_v33  ;;  %v4828_v54 = vadd.f32 %v12751_v17, %v4808_v56  ;;  %v14241_v45 = vand.u32 4294901760, %v12603_v26 }
 0x6a0   : > { %7480 = vmatpush.msrb.mxu0 %v14240_v29  ;;  %7551 = vmatpush.msrb.mxu1 %v12623_v13  ;;  %v13012_v30 = vsub.f32 %v7579_v42, %v12986_v60  ;;  %v7701_v13 = vand.u32 4294901760, %v7700_v25  ;;  %v7723_v55 = vand.u32 4294901760, %v12993_v61  ;;  %v13020_v17 = vsub.f32 %v4843_v4, %v12995_v46 }
 0x6a1   : > { %7609 = vmatpush.msrb.mxu2 %v12878_v59  ;;  %7684 = vmatpush.msrb.mxu3 %v7683_v40  ;;  %v7712_v40 = vsub.f32 %v12967_v41, %v7711_v7  ;;  %v14242_v26 = vand.u32 4294901760, %v12617_v39  ;;  %v7707_v42 = vand.u32 4294901760, %v7706_v53  ;;  %v7718_v8 = vsub.f32 %v12982_v33, %v7717_v9  ;;  %v6568_v39 = vpop.f32.mrf.mxu1 }
 0x6a2   : > { %7484 = vmatpush.msrb.mxu0 %v14241_v45  ;;  %7553 = vmatpush.msrb.mxu1 %v12637_v43  ;;  %v13026_v43 = vsub.f32 %v7578_v12, %v13000_v50  ;;  %v4844_v56 = vmax.f32 %v4828_v54, 0.0  ;;  %v14243_v4 = vand.u32 4294901760, %v12629_v19  ;;  %v7628_v25 = vand.u32 4294901760, %v13020_v17 }
 0x6a3   : > { %7611 = vmatpush.msrb.mxu2 %v12894_v10  ;;  %7690 = vmatpush.msrb.mxu3 %v7689_v27  ;;  %v7713_v12 = vand.u32 4294901760, %v7712_v40  ;;  %v7724_v27 = vsub.f32 %v12993_v61, %v7723_v55  ;;  %v14244_v29 = vand.u32 4294901760, %v12647_v24  ;;  %v7719_v53 = vand.u32 4294901760, %v7718_v8 }
 0x6a4   : > { %7488 = vmatpush.msrb.mxu0 %v14242_v26  ;;  %7555 = vmatpush.msrb.mxu1 %v12649_v48  ;;  %v7729_v48 = vand.u32 4294901760, %v13012_v30  ;;  %v7735_v19 = vand.u32 4294901760, %v13026_v43  ;;  %v13046_v54 = vand.u32 4294901760, %v4844_v56  ;;  %v14245_v45 = vand.u32 4294901760, %v12664_v37 }
 0x6a5   : > { %7613 = vmatpush.msrb.mxu2 %v12907_v18  ;;  %7696 = vmatpush.msrb.mxu3 %v7695_v57  ;;  %v6626_v57 = vpop.f32.mrf.mxu2  ;;  %v7725_v40 = vand.u32 4294901760, %v7724_v27  ;;  %v14246_v26 = vand.u32 4294901760, %v12677_v62  ;;  %v7629_v37 = vsub.f32 %v13020_v17, %v7628_v25  ;;  %v14247_v62 = vand.u32 4294901760, %v12693_v34 }
 0x6a6   : > { %7492 = vmatpush.msrb.mxu0 %v14243_v4  ;;  %7557 = vmatpush.msrb.mxu1 %v12666_v22  ;;  %v7730_v24 = vsub.f32 %v13012_v30, %v7729_v48  ;;  %v13068_v8 = vsub.f32 %v4844_v56, %v13046_v54  ;;  %v14248_v4 = vld [vmem:[#allocation48_spill] sm:$0xff]  ;;  %v14251_v56 = vld [vmem:[#allocation46_spill] sm:$0xff] }
 0x6a7   : > { %7615 = vmatpush.msrb.mxu2 %v12923_v38  ;;  %7702 = vmatpush.msrb.mxu3 %v7701_v13  ;;  %v6459_v0 = vpop.f32.mrf.mxu0  ;;  %v7630_v27 = vand.u32 4294901760, %v7629_v37  ;;  %v14256_v37 = vld [vmem:[#allocation36_spill] sm:$0xff] }
 0x6a8   : > { %7496 = vmatpush.msrb.mxu0 %v14244_v29  ;;  %7559 = vmatpush.msrb.mxu1 %v12679_v21  ;;  %v6569_v22 = vadd.f32 %v6568_v39, %v6459_v0  ;;  %v6670_v13 = vpop.f32.mrf.mxu3  ;;  %v14249_v39 = vld [vmem:[#allocation27_spill] sm:$0xff] }
 0x6a9   : > { %7617 = vmatpush.msrb.mxu2 %v12937_v5  ;;  %7708 = vmatpush.msrb.mxu3 %v7707_v42  ;;  %v6572_v29 = vpop.f32.mrf.mxu1 }
 0x6aa   : > { %7500 = vmatpush.msrb.mxu0 %v14245_v45  ;;  %7561 = vmatpush.msrb.mxu1 %v12695_v23  ;;  %v6627_v21 = vadd.f32 %v6626_v57, %v6569_v22  ;;  %v7736_v23 = vsub.f32 %v13026_v43, %v7735_v19 }
 0x6ab   : > { %7619 = vmatpush.msrb.mxu2 %v12956_v28  ;;  %7714 = vmatpush.msrb.mxu3 %v7713_v12  ;;  %v14250_v12 = vand.u32 4294901760, %v14249_v39 }
 0x6ac   : > { %7504 = vmatpush.msrb.mxu0 %v14246_v26  ;;  %7563 = vmatpush.msrb.mxu1 %v12709_v6  ;;  %v13064_v42 = vadd.f32 %v6670_v13, %v6627_v21  ;;  %v7731_v6 = vand.u32 4294901760, %v7730_v24  ;;  %v7737_v0 = vand.u32 4294901760, %v7736_v23  ;;  %v14254_v21 = vld [vmem:[#allocation42_spill] sm:$0xff]  ;;  %v14257_v23 = vand.u32 4294901760, %v14256_v37 }
 0x6ad   : > { %7621 = vmatpush.msrb.mxu2 %v12969_v36  ;;  %7720 = vmatpush.msrb.mxu3 %v7719_v53  ;;  %v14252_v53 = vld [vmem:[#allocation34_spill] sm:$0xff]  ;;  %v14255_v13 = vand.u32 4294901760, %v14254_v21 }
 0x6ae   : > { %7508 = vmatpush.msrb.mxu0 %v14247_v62  ;;  %7565 = vmatpush.msrb.mxu1 %v12723_v2  ;;  %v7636_v2 = vand.u32 4294901760, %v13068_v8  ;;  %v14253_v45 = vand.u32 4294901760, %v14252_v53 }
 0x6af   : > { %7623 = vmatpush.msrb.mxu2 %v12986_v60  ;;  %7726 = vmatpush.msrb.mxu3 %v7725_v40  ;;  %v6631_v57 = vpop.f32.mrf.mxu2 }
 0x6b0   : > { %7567 = vmatmul.f32.vlgmr.msrb.gmra.mxu1 %v14248_v4  ;;  %7512 = vmatpush.msrb.mxu0 %v14250_v12  ;;  %v6467_v22 = vpop.f32.mrf.mxu0  ;;  %v7637_v62 = vsub.f32 %v13068_v8, %v7636_v2  ;;  %v14260_v12 = vand.u32 4294901760, %v12824_v35 }
 0x6b1   : > { %7808 = vmatpush.msra.mxu1 %v14251_v56  ;;  %7625 = vmatpush.msrb.mxu2 %v13000_v50  ;;  %v6573_v34 = vadd.f32 %v6572_v29, %v6467_v22  ;;  %v14263_v22 = vand.u32 4294901760, %v12838_v16 }
 0x6b2   : > { %7732 = vmatpush.msrb.mxu3 %v7731_v6  ;;  %7631 = vmatmul.f32.vlgmr.msrb.gmra.mxu2 %v7630_v27  ;;  %v6676_v40 = vpop.f32.mrf.mxu3  ;;  %v14258_v6 = vld [vmem:[#allocation24_spill] sm:$0xff]  ;;  %v14261_v27 = vld [vmem:[#allocation41_spill] sm:$0xff]  ;;  %v7638_v29 = vand.u32 4294901760, %v7637_v62 }
 0x6b3   : > { %7810 = vmatpush.msra.mxu1 %v12781_v47  ;;  %7855 = vmatpush.msra.mxu2 %v14253_v45  ;;  %v6632_v24 = vadd.f32 %v6631_v57, %v6573_v34  ;;  %v14259_v39 = vand.u32 4294901760, %v14258_v6 }
 0x6b4   : > { %7516 = vmatpush.msrb.mxu0 %v14255_v13  ;;  %7738 = vmatpush.msrb.mxu3 %v7737_v0  ;;  %v14262_v0 = vand.u32 4294901760, %v14261_v27 }
 0x6b5   : > { %7740 = vmatmul.f32.vlgmr.msrb.gmra.mxu3 %v12995_v46  ;;  %7812 = vmatpush.msra.mxu1 %v12802_v49  ;;  %v13087_v26 = vadd.f32 %v6676_v40, %v6632_v24 }
 0x6b6   : > { %7859 = vmatpush.msra.mxu2 %v14257_v23  ;;  %7926 = vmatpush.msra.mxu3 %v14251_v56 }
 0x6b7   : > { %7520 = vmatpush.msrb.mxu0 %v14259_v39  ;;  %7814 = vmatpush.msra.mxu1 %v12813_v32 }
 0x6b8   : > { %7863 = vmatpush.msra.mxu2 %v14260_v12  ;;  %7928 = vmatpush.msra.mxu3 %v12781_v47  ;;  %v14264_v47 = vld [vmem:[#allocation50_spill] sm:$0xff] }
 0x6b9   : > { %7524 = vmatpush.msrb.mxu0 %v14262_v0  ;;  %7571 = vmatmul.f32.gmra.mxu1 %v12846_v15  ;;  %v14265_v56 = vand.u32 4294901760, %v14264_v47 }
 0x6ba   : > { %7526 = vmatmul.f32.vlgmr.msrb.gmra.mxu0 %v14248_v4  ;;  %7816 = vmatpush.msra.mxu1 %v12826_v20  ;;  %v14266_v4 = vand.u32 4294901760, %v12872_v44 }
 0x6bb   : > { %7750 = vmatpush.msra.mxu0 %v14252_v53  ;;  %7867 = vmatpush.msra.mxu2 %v14263_v22 }
 0x6bc   : > { %7930 = vmatpush.msra.mxu3 %v12802_v49  ;;  %7639 = vmatmul.f32.gmra.mxu2 %v7638_v29  ;;  %v14267_v49 = vand.u32 4294901760, %v12892_v52 }
 0x6bd   : > { %7753 = vmatpush.msra.mxu0 %v14256_v37  ;;  %7818 = vmatpush.msra.mxu1 %v12840_v14 }
 0x6be   : > { %7871 = vmatpush.msra.mxu2 %v14265_v56  ;;  %7932 = vmatpush.msra.mxu3 %v12813_v32  ;;  %v14268_v32 = vand.u32 4294901760, %v12905_v31 }
 0x6bf   : > { %7744 = vmatmul.f32.gmra.mxu3 %v13046_v54  ;;  %7756 = vmatpush.msra.mxu0 %v12824_v35  ;;  %v14269_v35 = vand.u32 4294901760, %v12921_v11 }
 0x6c0   : > { %7820 = vmatpush.msra.mxu1 %v12864_v1  ;;  %7875 = vmatpush.msra.mxu2 %v14266_v4 }
 0x6c1   : > { %7934 = vmatpush.msra.mxu3 %v12826_v20  ;;  %7759 = vmatpush.msra.mxu0 %v12838_v16  ;;  %v6786_v20 = vpop.f32.mrf.mxu1 }
 0x6c2   : > { %7822 = vmatpush.msra.mxu1 %v12878_v59  ;;  %7879 = vmatpush.msra.mxu2 %v14267_v49 }
 0x6c3   : > { %7936 = vmatpush.msra.mxu3 %v12840_v14  ;;  %7530 = vmatmul.f32.gmra.mxu0 %v12846_v15  ;;  %v14270_v14 = vand.u32 4294901760, %v12935_v51 }
 0x6c4   : > { %7762 = vmatpush.msra.mxu0 %v14264_v47  ;;  %7824 = vmatpush.msra.mxu1 %v12894_v10 }
 0x6c5   : > { %7883 = vmatpush.msra.mxu2 %v14268_v32  ;;  %7938 = vmatpush.msra.mxu3 %v12864_v1 }
 0x6c6   : > { %7765 = vmatpush.msra.mxu0 %v12872_v44  ;;  %7826 = vmatpush.msra.mxu1 %v12907_v18  ;;  %v14271_v44 = vld [vmem:[#allocation70_spill] sm:$0xff] }
 0x6c7   : > { %7887 = vmatpush.msra.mxu2 %v14269_v35  ;;  %7940 = vmatpush.msra.mxu3 %v12878_v59 }
 0x6c8   : > { %7768 = vmatpush.msra.mxu0 %v12892_v52  ;;  %7828 = vmatpush.msra.mxu1 %v12923_v38 }
 0x6c9   : > { %7891 = vmatpush.msra.mxu2 %v14270_v14  ;;  %7942 = vmatpush.msra.mxu3 %v12894_v10 }
 0x6ca   : > { %7771 = vmatpush.msra.mxu0 %v12905_v31  ;;  %7830 = vmatpush.msra.mxu1 %v12937_v5  ;;  %v6790_v31 = vpop.f32.mrf.mxu1 }
 0x6cb   : > { %7895 = vmatpush.msra.mxu2 %v7705_v63  ;;  %7944 = vmatpush.msra.mxu3 %v12907_v18  ;;  %v6745_v1 = vpop.f32.mrf.mxu0 }
 0x6cc   : > { %7774 = vmatpush.msra.mxu0 %v12921_v11  ;;  %7832 = vmatpush.msra.mxu1 %v12956_v28  ;;  %v6746_v16 = vadd.f32 %v6745_v1, %v13064_v42 }
 0x6cd   : > { %7899 = vmatpush.msra.mxu2 %v7711_v7  ;;  %7946 = vmatpush.msra.mxu3 %v12923_v38  ;;  %v6850_v38 = vpop.f32.mrf.mxu2 }
 0x6ce   : > { %7777 = vmatpush.msra.mxu0 %v12935_v51  ;;  %7834 = vmatpush.msra.mxu1 %v12969_v36  ;;  %v6787_v15 = vadd.f32 %v6786_v20, %v6746_v16  ;;  %v6959_v51 = vpop.f32.mrf.mxu3 }
 0x6cf   : > { %7903 = vmatpush.msra.mxu2 %v7717_v9  ;;  %7948 = vmatpush.msra.mxu3 %v12937_v5  ;;  %v6960_v42 = vadd.f32 %v6959_v51, %v6850_v38 }
 0x6d0   : > { %7780 = vmatpush.msra.mxu0 %v12954_v58  ;;  %7836 = vmatpush.msra.mxu1 %v12986_v60  ;;  %v13161_v59 = vadd.f32 %v6787_v15, %v14271_v44 }
 0x6d1   : > { %7907 = vmatpush.msra.mxu2 %v7723_v55  ;;  %7950 = vmatpush.msra.mxu3 %v12956_v28 }
 0x6d2   : > { %7783 = vmatpush.msra.mxu0 %v12967_v41  ;;  %7838 = vmatpush.msra.mxu1 %v13000_v50 }
 0x6d3   : > { %7911 = vmatpush.msra.mxu2 %v7729_v48  ;;  %7952 = vmatpush.msra.mxu3 %v12969_v36 }
 0x6d4   : > { %7842 = vmatmul.f32.vlgmr.msra.gmra.mxu1 %v7628_v25  ;;  %7786 = vmatpush.msra.mxu0 %v12982_v33  ;;  %v6749_v52 = vpop.f32.mrf.mxu0 }
 0x6d5   : > { %7915 = vmatpush.msra.mxu2 %v7735_v19  ;;  %7954 = vmatpush.msra.mxu3 %v12986_v60  ;;  %v6750_v10 = vadd.f32 %v6749_v52, %v13087_v26  ;;  %v6858_v5 = vpop.f32.mrf.mxu2  ;;  %v8171_v52 = vld [vmem:[%s13238_s6] ss:$0 sm:$0xff] }
 0x6d6   : > { %7917 = vmatmul.f32.vlgmr.msra.gmra.mxu2 %v12995_v46  ;;  %7789 = vmatpush.msra.mxu0 %v12993_v61  ;;  %v6963_v36 = vpop.f32.mrf.mxu3 }
 0x6d7   : > { %7956 = vmatpush.msra.mxu3 %v13000_v50  ;;  %v6791_v18 = vadd.f32 %v6790_v31, %v6750_v10  ;;  %v6964_v21 = vadd.f32 %v6963_v36, %v6858_v5 }
 0x6d8   : > { %7958 = vmatmul.f32.vlgmr.msra.gmra.mxu3 %v12995_v46  ;;  %7792 = vmatpush.msra.mxu0 %v13012_v30 }
 0x6d9   : > { %v13184_v11 = vadd.f32 %v6791_v18, %v12918_v3 }
 0x6da   : > { %7795 = vmatpush.msra.mxu0 %v13026_v43 }
 0x6db   : > { %7798 = vmatmul.f32.vlgmr.msra.gmra.mxu0 %v13020_v17 }
 0x6dc   : > { %7848 = vmatmul.f32.gmra.mxu1 %v7636_v2 }
 0x6de   : > { %7921 = vmatmul.f32.gmra.mxu2 %v13046_v54 }
 0x6e0   : > { %7962 = vmatmul.f32.gmra.mxu3 %v13046_v54 }
 0x6e3   : > { %7803 = vmatmul.f32.gmra.mxu0 %v13068_v8 }
 0x6e5   : > { %v7061_v58 = vpop.f32.mrf.mxu1 }
 0x6ed   : > { %v7136_v28 = vpop.f32.mrf.mxu2 }
 0x6ee   : > { %v7067_v41 = vpop.f32.mrf.mxu1 }
 0x6ef   : > { %v7017_v3 = vpop.f32.mrf.mxu0 }
 0x6f0   : > { %v7177_v63 = vpop.f32.mrf.mxu3  ;;  %v7018_v8 = vadd.f32 %v7017_v3, %v6960_v42 }
 0x6f2   : > { %v7062_v53 = vadd.f32 %v7061_v58, %v7018_v8 }
 0x6f4   : > { %v7137_v40 = vadd.f32 %v7136_v28, %v7062_v53 }
 0x6f6   : > { %v7178_v27 = vadd.f32 %v7177_v63, %v7137_v40 }
 0x6f7   : > { %v7140_v60 = vpop.f32.mrf.mxu2 }
 0x6f8   : > { %v7022_v33 = vpop.f32.mrf.mxu0  ;;  %v7184_v32 = vadd.f32 %v7178_v27, %v13161_v59 }
 0x6f9   : > { %v7023_v26 = vadd.f32 %v7022_v33, %v6964_v21 }
 0x6fa   : > { %v7181_v7 = vpop.f32.mrf.mxu3 }
 0x6fb   : > { %v7068_v0 = vadd.f32 %v7067_v41, %v7023_v26 }
 0x6fd   : > { %v7141_v35 = vadd.f32 %v7140_v60, %v7068_v0 }
 0x6ff   : > { %v7182_v31 = vadd.f32 %v7181_v7, %v7141_v35 }
 0x701   : > { %v7185_v3 = vadd.f32 %v7182_v31, %v13184_v11 }
 0x709   : > { %v7350_v61 = vpop.f32.mrf.mxu1 }
 0x711   : > { %v7408_v50 = vpop.f32.mrf.mxu2 }
 0x712   : > { %v7354_v30 = vpop.f32.mrf.mxu1 }
 0x713   : > { %v7241_v46 = vpop.f32.mrf.mxu0 }
 0x714   : > { %v7452_v9 = vpop.f32.mrf.mxu3  ;;  %v7351_v34 = vadd.f32 %v7350_v61, %v7241_v46 }
 0x716   : > { %v7409_v45 = vadd.f32 %v7408_v50, %v7351_v34 }
 0x718   : > { %v7453_v37 = vadd.f32 %v7452_v9, %v7409_v45 }
 0x71b   : > { %v7413_v17 = vpop.f32.mrf.mxu2 }
 0x71c   : > { %v7249_v55 = vpop.f32.mrf.mxu0 }
 0x71d   : > { %v7355_v23 = vadd.f32 %v7354_v30, %v7249_v55 }
 0x71e   : > { %v7458_v43 = vpop.f32.mrf.mxu3 }
 0x71f   : > { %v7414_v29 = vadd.f32 %v7413_v17, %v7355_v23 }
 0x721   : > { %v7459_v14 = vadd.f32 %v7458_v43, %v7414_v29 }
 0x72d   : > { %v7568_v48 = vpop.f32.mrf.mxu1 }
 0x735   : > { %v7632_v19 = vpop.f32.mrf.mxu2 }
 0x736   : > { %v7572_v2 = vpop.f32.mrf.mxu1 }
 0x737   : > { %v7527_v25 = vpop.f32.mrf.mxu0 }
 0x738   : > { %v7741_v54 = vpop.f32.mrf.mxu3  ;;  %v7528_v62 = vadd.f32 %v7527_v25, %v7453_v37 }
 0x739   : > { %v7742_v6 = vadd.f32 %v7741_v54, %v7632_v19 }
 0x73a   : > { %v7569_v56 = vadd.f32 %v7568_v48, %v7528_v62 }
 0x73c   : > { %v7575_v15 = vadd.f32 %v7569_v56, %v7184_v32 }
 0x73f   : > { %v7640_v24 = vpop.f32.mrf.mxu2 }
 0x740   : > { %v7531_v57 = vpop.f32.mrf.mxu0 }
 0x741   : > { %v7532_v20 = vadd.f32 %v7531_v57, %v7459_v14 }
 0x742   : > { %v7745_v13 = vpop.f32.mrf.mxu3 }
 0x743   : > { %v7746_v16 = vadd.f32 %v7745_v13, %v7640_v24  ;;  %v7573_v5 = vadd.f32 %v7572_v2, %v7532_v20 }
 0x745   : > { %v7576_v41 = vadd.f32 %v7573_v5, %v7185_v3 }
 0x751   : > { %v7843_v39 = vpop.f32.mrf.mxu1 }
 0x758   : > { %v7799_v12 = vpop.f32.mrf.mxu0 }
 0x759   : > { %v7800_v22 = vadd.f32 %v7799_v12, %v7742_v6  ;;  %v7918_v47 = vpop.f32.mrf.mxu2  ;;  %v7849_v51 = vpop.f32.mrf.mxu1 }
 0x75b   : > { %v7844_v4 = vadd.f32 %v7843_v39, %v7800_v22  ;;  %v7959_v49 = vpop.f32.mrf.mxu3 }
 0x75d   : > { %v7919_v1 = vadd.f32 %v7918_v47, %v7844_v4 }
 0x75f   : > { %v7960_v44 = vadd.f32 %v7959_v49, %v7919_v1 }
 0x760   : > { %v7804_v10 = vpop.f32.mrf.mxu0 }
 0x761   : > { %v7966_v18 = vadd.f32 %v7960_v44, %v7575_v15  ;;  %v7805_v38 = vadd.f32 %v7804_v10, %v7746_v16  ;;  %v7922_v58 = vpop.f32.mrf.mxu2 }
 0x763   : > { %v7972_v59 = vadd.f32 %v8171_v52, %v7966_v18  ;;  %v7850_v36 = vadd.f32 %v7849_v51, %v7805_v38  ;;  %v7963_v63 = vpop.f32.mrf.mxu3 }
 0x765   : > { %7974 = vst [vmem:[%s406_s11] sm:$0xff] %v7972_v59  ;;  %v7923_v28 = vadd.f32 %v7922_v58, %v7850_v36 }
 0x767   : > { %v7964_v33 = vadd.f32 %v7963_v63, %v7923_v28 }
 0x769   : > { %v7967_v60 = vadd.f32 %v7964_v33, %v7576_v41 }
 0x76b   : > { %v7973_v7 = vadd.f32 %v8171_v52, %v7967_v60 }
 0x76d   : > { %7975 = vst [vmem:[%s406_s11 + $0x8] sm:$0xff] %v7973_v7 }
 0x76e   : > { %8262 = shalt.err (!%p8259_p9)
}
 0x76f   : > { %s8312_s19 = smov 128   ;;  %s8313_s20 = smov 8  }
 0x770   : > { %8112 = dma.vmem_to_hbm [thread:$0]  (%p8397_p6), %s7990_s22, 256, %s7992_s28, %s7977_s23, %s8312_s19, %s8312_s19, %s8313_s20  }
 0x771 PF: > { %s8006_s21 = sand.u32 1, %s8293_s24   ;;  %p8122_p11 = pnand %p8086_p1, %p8403_p10 }
 0x772   : > { %s8007_s17 = scalar_lea.sflag [#allocation5], %s8006_s21 }
 0x773   : > { %p8123_p12 = pneg %p8122_p11 }
 0x775   : > { %8288 = dma.done.wait (%p8123_p12), %s8007_s17, 256  }
 0x776   : > { %8290 = vsyncadd (%p8123_p12), %s8007_s17, 4294967040  ;;  %p19_p13 = scmp.ge.s32.totalorder %s8379_s30, 4   ;;  %s14272_s24 = smov %s8297_s25 }
 0x777   : > { %s14273_s25 = smov %s8301_s26  ;;  %s14274_s26 = smov %s8391_s10 }
 0x778   : > { %s14275_s27 = smov %s8379_s30  ;;  %21 = sbr.rel (!%p19_p13) target bundleno = 5 (0x5), region = 146 }
 0x77d   :  { %8013 = vsyncpa [#allocation4], 1 }
 0x77e   :  { %8015 = vsyncpa [#allocation4 + $0x1], 1 }
 0x77f   :  { %8016 = vsyncpa [#allocation7], 1 }
 0x780   :  { %8017 = vsyncpa [#allocation5], 1 }
 0x781   :  { %8019 = vsyncpa [#allocation5 + $0x1], 1 }

</bundles_post_ra>
